<compile_context>
chip_gen: v5e
topology: v5e:2x2
jax: 0.10.0
libtpu: 0.0.40
codegen_flags: <defaults>
</compile_context>

<pallas_src>
import functools
import math

import jax
import jax.numpy as jnp
from jax.experimental import pallas as pl
from jax.experimental.pallas import tpu as pltpu

NEG_MASK = -1e9   # finite "minus infinity" -> no NaN for fully-masked rows
LN_EPS = 1e-5


def _pick_tile(n, pref):
    """Largest divisor of n that is <= pref (falls back to n itself)."""
    if n <= pref:
        return n
    for t in range(pref, 0, -1):
        if n % t == 0:
            return t
    return n


# --------------------------- in-kernel helpers ------------------------------

def _ln_f32(z, g, b, eps):
    mu = jnp.mean(z, axis=-1, keepdims=True)
    zc = z - mu
    var = jnp.mean(zc * zc, axis=-1, keepdims=True)
    return zc * jax.lax.rsqrt(var + eps) * g + b


def _mha_heads(q, k, v, mask, nhead):
    """q: (Sq, D) f32, k/v: (Sk, D) f32, mask: (Sq, Sk) f32 additive or None.
    Returns (Sq, D) f32. Heads are static lane slices of the packed D dim."""
    d = q.shape[-1]
    dh = d // nhead
    scale = 1.0 / math.sqrt(dh)
    qb = (q * scale).astype(jnp.bfloat16)       # fold scale into q (VPU saving)
    kb = k.astype(jnp.bfloat16)
    vb = v.astype(jnp.bfloat16)
    outs = []
    for h in range(nhead):
        sl = slice(h * dh, (h + 1) * dh)
        # s = qh @ kh.T  (MXU handles the transposed-rhs contraction natively)
        s = jax.lax.dot_general(qb[:, sl], kb[:, sl], (((1,), (1,)), ((), ())),
                                preferred_element_type=jnp.float32)
        if mask is not None:
            s = s + mask
        s = s - jnp.max(s, axis=-1, keepdims=True)
        p = jnp.exp(s)
        p = p * pl.reciprocal(jnp.sum(p, axis=-1, keepdims=True), approx=True)
        outs.append(jnp.dot(p.astype(jnp.bfloat16), vb[:, sl],
                            preferred_element_type=jnp.float32))
    return jnp.concatenate(outs, axis=-1)


# ----------------------------- fused layer kernels --------------------------

def _encoder_layer_kernel(*refs, nhead, eps, has_mask, has_final_ln):
    o_ref = refs[-1]
    it = iter(refs[:-1])
    x_ref = next(it)
    m_ref = next(it) if has_mask else None
    w_qkv = next(it); b_qkv = next(it)
    w_o = next(it);   b_o = next(it)
    g1 = next(it);    be1 = next(it)
    w1 = next(it);    b1 = next(it)
    w2 = next(it);    b2 = next(it)
    g2 = next(it);    be2 = next(it)

    xb = x_ref[0]                                   # (S, D) bf16
    x = xb.astype(jnp.float32)
    d = x.shape[-1]

    # self-attention block: LN1(x + OutProj(MHA(x)))
    qkv = jnp.dot(xb, w_qkv[...], preferred_element_type=jnp.float32) + b_qkv[...]
    mask = m_ref[0] if has_mask else None
    attn = _mha_heads(qkv[:, :d], qkv[:, d:2 * d], qkv[:, 2 * d:], mask, nhead)
    y = jnp.dot(attn.astype(jnp.bfloat16), w_o[...],
                preferred_element_type=jnp.float32) + b_o[...]
    x1 = _ln_f32(x + y, g1[...], be1[...], eps)

    # FFN block: LN2(x1 + relu(x1 @ w1 + b1) @ w2 + b2)
    h = jnp.maximum(jnp.dot(x1.astype(jnp.bfloat16), w1[...],
                            preferred_element_type=jnp.float32) + b1[...], 0.0)
    y = jnp.dot(h.astype(jnp.bfloat16), w2[...],
                preferred_element_type=jnp.float32) + b2[...]
    x2 = _ln_f32(x1 + y, g2[...], be2[...], eps)

    if has_final_ln:                                 # encoder-final LayerNorm
        gf = next(it); bef = next(it)
        x2 = _ln_f32(x2, gf[...], bef[...], eps)

    o_ref[0] = x2.astype(o_ref.dtype)


def _decoder_layer_kernel(*refs, nhead, eps, has_mask):
    o_ref = refs[-1]
    it = iter(refs[:-1])
    x_ref = next(it); mem_ref = next(it)
    m_ref = next(it) if has_mask else None
    w_qkv = next(it); b_qkv = next(it); w_o1 = next(it); b_o1 = next(it)
    g1 = next(it);    be1 = next(it)
    w_q = next(it);   b_q = next(it);   w_kv = next(it); b_kv = next(it)
    w_o2 = next(it);  b_o2 = next(it);  g2 = next(it);   be2 = next(it)
    w1 = next(it);    b1 = next(it);    w2 = next(it);   b2 = next(it)
    g3 = next(it);    be3 = next(it)

    xb = x_ref[0]                                   # (St, D) bf16
    memb = mem_ref[0]                               # (Ss, D) bf16
    x = xb.astype(jnp.float32)
    d = x.shape[-1]

    # masked self-attention block
    qkv = jnp.dot(xb, w_qkv[...], preferred_element_type=jnp.float32) + b_qkv[...]
    mask = m_ref[0] if has_mask else None
    sa = _mha_heads(qkv[:, :d], qkv[:, d:2 * d], qkv[:, 2 * d:], mask, nhead)
    y = jnp.dot(sa.astype(jnp.bfloat16), w_o1[...],
                preferred_element_type=jnp.float32) + b_o1[...]
    y1 = _ln_f32(x + y, g1[...], be1[...], eps)

    # cross-attention block (memory k/v packed projection, no mask)
    q = jnp.dot(y1.astype(jnp.bfloat16), w_q[...],
                preferred_element_type=jnp.float32) + b_q[...]
    kv = jnp.dot(memb, w_kv[...], preferred_element_type=jnp.float32) + b_kv[...]
    ca = _mha_heads(q, kv[:, :d], kv[:, d:], None, nhead)
    y = jnp.dot(ca.astype(jnp.bfloat16), w_o2[...],
                preferred_element_type=jnp.float32) + b_o2[...]
    y2 = _ln_f32(y1 + y, g2[...], be2[...], eps)

    # FFN block
    h = jnp.maximum(jnp.dot(y2.astype(jnp.bfloat16), w1[...],
                            preferred_element_type=jnp.float32) + b1[...], 0.0)
    y = jnp.dot(h.astype(jnp.bfloat16), w2[...],
                preferred_element_type=jnp.float32) + b2[...]
    y3 = _ln_f32(y2 + y, g3[...], be3[...], eps)

    o_ref[0] = y3.astype(o_ref.dtype)


def _ln_linear_kernel(x_ref, g_ref, b_ref, w_ref, bias_ref, o_ref, *, eps):
    # logits = LayerNorm(x) @ W + b  (decoder-final LN fused into vocab proj)
    x = x_ref[...].astype(jnp.float32)
    z = _ln_f32(x, g_ref[...], b_ref[...], eps)
    o_ref[...] = (jnp.dot(z.astype(jnp.bfloat16), w_ref[...],
                          preferred_element_type=jnp.float32)
                  + bias_ref[...]).astype(o_ref.dtype)


# ------------------------------ kernel wrappers ------------------------------

def encoder_layer(x, p, mask, nhead, final_ln=None, *, eps=LN_EPS):
    B, S, D = x.shape
    has_mask = mask is not None
    has_final = final_ln is not None
    inputs = [x]
    in_specs = [pl.BlockSpec((1, S, D), lambda b: (b, 0, 0))]
    if has_mask:
        inputs.append(mask)
        in_specs.append(pl.BlockSpec((1, S, S), lambda b: (b, 0, 0)))

    def const(a):
        inputs.append(a)
        in_specs.append(pl.BlockSpec(a.shape, lambda b: (0, 0)))

    for a in (p["w_qkv"], p["b_qkv"], p["w_out"], p["b_out"],
              p["norm1_w"], p["norm1_b"],
              p["w1"], p["b1"], p["w2"], p["b2"],
              p["norm2_w"], p["norm2_b"]):
        const(a)
    if has_final:
        const(final_ln[0]); const(final_ln[1])

    return pl.pallas_call(
        functools.partial(_encoder_layer_kernel, nhead=nhead, eps=eps,
                          has_mask=has_mask, has_final_ln=has_final),
        grid=(B,),
        out_shape=jax.ShapeDtypeStruct((B, S, D), jnp.bfloat16),
        in_specs=in_specs,
        out_specs=pl.BlockSpec((1, S, D), lambda b: (b, 0, 0)),
        compiler_params=pltpu.CompilerParams(dimension_semantics=("parallel",)),
    )(*inputs)


def decoder_layer(y, memory, p, mask, nhead, *, eps=LN_EPS):
    B, St, D = y.shape
    Ss = memory.shape[1]
    has_mask = mask is not None
    inputs = [y, memory]
    in_specs = [pl.BlockSpec((1, St, D), lambda b: (b, 0, 0)),
                pl.BlockSpec((1, Ss, D), lambda b: (b, 0, 0))]
    if has_mask:
        inputs.append(mask)
        in_specs.append(pl.BlockSpec((1, St, St), lambda b: (b, 0, 0)))

    def const(a):
        inputs.append(a)
        in_specs.append(pl.BlockSpec(a.shape, lambda b: (0, 0)))

    sa, ca = p["self_attn"], p["cross_attn"]
    for a in (sa["w_qkv"], sa["b_qkv"], sa["w_out"], sa["b_out"],
              p["norm1_w"], p["norm1_b"],
              ca["w_q"], ca["b_q"], ca["w_kv"], ca["b_kv"],
              ca["w_out"], ca["b_out"], p["norm2_w"], p["norm2_b"],
              p["w1"], p["b1"], p["w2"], p["b2"],
              p["norm3_w"], p["norm3_b"]):
        const(a)

    return pl.pallas_call(
        functools.partial(_decoder_layer_kernel, nhead=nhead, eps=eps,
                          has_mask=has_mask),
        grid=(B,),
        out_shape=jax.ShapeDtypeStruct((B, St, D), jnp.bfloat16),
        in_specs=in_specs,
        out_specs=pl.BlockSpec((1, St, D), lambda b: (b, 0, 0)),
        compiler_params=pltpu.CompilerParams(dimension_semantics=("parallel",)),
    )(*inputs)


def ln_linear(x, gamma, beta, w_t, bias, *, tile_m=256, tile_n=512, eps=LN_EPS):
    """logits = LayerNorm(x) @ w_t + bias.  x: (M, D) bf16, w_t: (D, N) bf16.
    Grid is (N-tiles, M-tiles): weight block is constant along the inner M axis
    so it stays VMEM-resident instead of being re-streamed per M tile."""
    M, D = x.shape
    N = w_t.shape[1]
    tm = _pick_tile(M, tile_m)
    tn = _pick_tile(N, tile_n)
    return pl.pallas_call(
        functools.partial(_ln_linear_kernel, eps=eps),
        grid=(N // tn, M // tm),
        out_shape=jax.ShapeDtypeStruct((M, N), jnp.float32),
        in_specs=[
            pl.BlockSpec((tm, D), lambda j, i: (i, 0)),
            pl.BlockSpec((1, D), lambda j, i: (0, 0)),
            pl.BlockSpec((1, D), lambda j, i: (0, 0)),
            pl.BlockSpec((D, tn), lambda j, i: (0, j)),
            pl.BlockSpec((1, tn), lambda j, i: (0, j)),
        ],
        out_specs=pl.BlockSpec((tm, tn), lambda j, i: (i, j)),
        compiler_params=pltpu.CompilerParams(
            dimension_semantics=("parallel", "parallel")),
    )(x, gamma, beta, w_t, bias)


# ------------------------------ model glue ----------------------------------

def build_attn_mask(B, attn_mask, key_padding_mask, Sq, Sk):
    """Small (B, Sq, Sk) additive f32 mask, or None when nothing is masked."""
    if attn_mask is None and key_padding_mask is None:
        return None
    m = jnp.zeros((B, Sq, Sk), jnp.float32)
    if attn_mask is not None:                     # (Sq, Sk) float (may hold -inf)
        m = m + jnp.maximum(attn_mask.astype(jnp.float32), NEG_MASK)[None]
    if key_padding_mask is not None:              # bool (B, Sk), True == pad
        m = m + jnp.where(key_padding_mask, NEG_MASK, 0.0)[:, None, :]
    return m


def transformer_seq2seq_forward(params, src, tgt,
                                src_key_padding_mask=None,
                                tgt_key_padding_mask=None,
                                tgt_mask=None, *, nhead):
    D = params["embedding"].shape[1]
    V = params["w_vocab"].shape[1]
    B, Ss = src.shape
    St = tgt.shape[1]

    # embedding lookup + positional encoding (glue); bf16 activations after this
    src_emb = (jnp.take(params["embedding"], src, axis=0)
               + params["pe"][None, :Ss, :]).astype(jnp.bfloat16)
    tgt_emb = (jnp.take(params["embedding"], tgt, axis=0)
               + params["pe"][None, :St, :]).astype(jnp.bfloat16)

    src_mask_add = build_attn_mask(B, None, src_key_padding_mask, Ss, Ss)
    tgt_mask_add = build_attn_mask(B, tgt_mask, tgt_key_padding_mask, St, St)
    # cross-attention: memory_key_padding_mask=None -> no mask at all

    x = src_emb
    n_enc = len(params["encoder_layers"])
    for li, p in enumerate(params["encoder_layers"]):
        final_ln = ((params["enc_norm_w"], params["enc_norm_b"])
                    if li == n_enc - 1 else None)          # fuse encoder-final LN
        x = encoder_layer(x, p, src_mask_add, nhead, final_ln)
    memory = x                                              # (B, Ss, D) bf16, LN'd

    y = tgt_emb
    for p in params["decoder_layers"]:
        y = decoder_layer(y, memory, p, tgt_mask_add, nhead)

    # decoder-final LN fused into the vocab projection
    logits = ln_linear(y.reshape(B * St, D),
                       params["dec_norm_w"], params["dec_norm_b"],
                       params["w_vocab"], params["b_vocab"])
    return logits.reshape(B, St, V)


# ----------------------------- parameter init --------------------------------

def make_pe(max_len, d_model):
    position = jnp.arange(max_len, dtype=jnp.float32)[:, None]
    div_term = jnp.exp(jnp.arange(0, d_model, 2, dtype=jnp.float32)
                       * (-math.log(10000.0) / d_model))
    pe = jnp.zeros((max_len, d_model), jnp.float32)
    pe = pe.at[:, 0::2].set(jnp.sin(position * div_term))
    pe = pe.at[:, 1::2].set(jnp.cos(position * div_term))
    return pe


def init_params(key, vocab_size, d_model, nhead, n_enc, n_dec, dim_ff, max_len):
    """Weights stored pre-transposed / pre-packed in bf16 ((in, out) layout,
    i.e. PyTorch W.T); biases and LN params stored as (1, N) f32 rows."""
    keys = iter(jax.random.split(key, 256))

    def dense_t(out_f, in_f, scale=0.02):
        w = jax.random.normal(next(keys), (out_f, in_f), jnp.float32) * scale
        return jnp.asarray(w.T, jnp.bfloat16)

    def row0(n):
        return jnp.zeros((1, n), jnp.float32)

    def row1(n):
        return jnp.ones((1, n), jnp.float32)

    def self_mha():
        return dict(w_qkv=dense_t(3 * d_model, d_model), b_qkv=row0(3 * d_model),
                    w_out=dense_t(d_model, d_model), b_out=row0(d_model))

    def cross_mha():
        return dict(w_q=dense_t(d_model, d_model), b_q=row0(d_model),
                    w_kv=dense_t(2 * d_model, d_model), b_kv=row0(2 * d_model),
                    w_out=dense_t(d_model, d_model), b_out=row0(d_model))

    def enc_layer():
        return dict(**self_mha(),
                    w1=dense_t(dim_ff, d_model), b1=row0(dim_ff),
                    w2=dense_t(d_model, dim_ff), b2=row0(d_model),
                    norm1_w=row1(d_model), norm1_b=row0(d_model),
                    norm2_w=row1(d_model), norm2_b=row0(d_model))

    def enc_layer_nested():
        return dict(self_attn=self_mha(),
                    w1=dense_t(dim_ff, d_model), b1=row0(dim_ff),
                    w2=dense_t(d_model, dim_ff), b2=row0(d_model),
                    norm1_w=row1(d_model), norm1_b=row0(d_model),
                    norm2_w=row1(d_model), norm2_b=row0(d_model))

    def dec_layer():
        d = enc_layer_nested()
        d.update(cross_attn=cross_mha(),
                 norm3_w=row1(d_model), norm3_b=row0(d_model))
        return d

    embedding = jax.random.normal(next(keys), (vocab_size, d_model), jnp.float32)
    return dict(
        embedding=embedding,
        pe=make_pe(max_len, d_model),
        encoder_layers=[enc_layer() for _ in range(n_enc)],
        decoder_layers=[dec_layer() for _ in range(n_dec)],
        enc_norm_w=row1(d_model), enc_norm_b=row0(d_model),
        dec_norm_w=row1(d_model), dec_norm_b=row0(d_model),
        w_vocab=dense_t(vocab_size, d_model), b_vocab=row0(vocab_size),
    )


# ---------------------------------- main -------------------------------------

if __name__ == "__main__":
    # small, module-consistent config
    VOCAB = 512
    D_MODEL = 128
    NHEAD = 4
    N_ENC = 2
    N_DEC = 2
    DIM_FF = 256
    MAX_LEN = 64
    B, S_SRC, S_TGT = 2, 8, 8

    key = jax.random.PRNGKey(0)
    kp, ks, kt = jax.random.split(key, 3)
    params = init_params(kp, VOCAB, D_MODEL, NHEAD, N_ENC, N_DEC, DIM_FF, MAX_LEN)

    src = jax.random.randint(ks, (B, S_SRC), 0, VOCAB, dtype=jnp.int32)
    tgt = jax.random.randint(kt, (B, S_TGT), 0, VOCAB, dtype=jnp.int32)

    # causal mask, same semantics as nn.Transformer.generate_square_subsequent_mask
    causal = jnp.where(jnp.triu(jnp.ones((S_TGT, S_TGT), bool), k=1), -jnp.inf, 0.0)

    forward = jax.jit(functools.partial(transformer_seq2seq_forward, nhead=NHEAD))
    logits = forward(params, src, tgt, tgt_mask=causal)
    logits = jax.block_until_ready(logits)

    assert logits.shape == (B, S_TGT, VOCAB), logits.shape
    assert bool(jnp.all(jnp.isfinite(logits)))
    print("KERNEL_OK")
</pallas_src>

<mosaic_0001>
module attributes {stable_mosaic.version = 11 : i64} {
  func.func @_encoder_layer_kernel(%arg0: i32, %arg1: memref<1x8x128xbf16, #tpu.memory_space<vmem>>, %arg2: memref<128x384xbf16, #tpu.memory_space<vmem>>, %arg3: memref<1x384xf32, #tpu.memory_space<vmem>>, %arg4: memref<128x128xbf16, #tpu.memory_space<vmem>>, %arg5: memref<1x128xf32, #tpu.memory_space<vmem>>, %arg6: memref<1x128xf32, #tpu.memory_space<vmem>>, %arg7: memref<1x128xf32, #tpu.memory_space<vmem>>, %arg8: memref<128x256xbf16, #tpu.memory_space<vmem>>, %arg9: memref<1x256xf32, #tpu.memory_space<vmem>>, %arg10: memref<256x128xbf16, #tpu.memory_space<vmem>>, %arg11: memref<1x128xf32, #tpu.memory_space<vmem>>, %arg12: memref<1x128xf32, #tpu.memory_space<vmem>>, %arg13: memref<1x128xf32, #tpu.memory_space<vmem>>, %arg14: memref<1x128xf32, #tpu.memory_space<vmem>>, %arg15: memref<1x128xf32, #tpu.memory_space<vmem>>, %arg16: memref<1x8x128xbf16, #tpu.memory_space<vmem>>) attributes {dimension_semantics = [#tpu.dimension_semantics<parallel>], iteration_bounds = array<i64: 2>, scalar_prefetch = 0 : i64, scratch_operands = 0 : i64, tpu.core_type = #tpu.core_type<tc>, window_params = [{transform_indices = @transform_0, window_bounds = array<i64: 1, 8, 128>}, {pipeline_mode = #tpu.pipeline_mode<synchronous>, transform_indices = @transform_1, window_bounds = array<i64: 128, 384>}, {pipeline_mode = #tpu.pipeline_mode<synchronous>, transform_indices = @transform_2, window_bounds = array<i64: 1, 384>}, {pipeline_mode = #tpu.pipeline_mode<synchronous>, transform_indices = @transform_3, window_bounds = array<i64: 128, 128>}, {pipeline_mode = #tpu.pipeline_mode<synchronous>, transform_indices = @transform_4, window_bounds = array<i64: 1, 128>}, {pipeline_mode = #tpu.pipeline_mode<synchronous>, transform_indices = @transform_5, window_bounds = array<i64: 1, 128>}, {pipeline_mode = #tpu.pipeline_mode<synchronous>, transform_indices = @transform_6, window_bounds = array<i64: 1, 128>}, {pipeline_mode = #tpu.pipeline_mode<synchronous>, transform_indices = @transform_7, window_bounds = array<i64: 128, 256>}, {pipeline_mode = #tpu.pipeline_mode<synchronous>, transform_indices = @transform_8, window_bounds = array<i64: 1, 256>}, {pipeline_mode = #tpu.pipeline_mode<synchronous>, transform_indices = @transform_9, window_bounds = array<i64: 256, 128>}, {pipeline_mode = #tpu.pipeline_mode<synchronous>, transform_indices = @transform_10, window_bounds = array<i64: 1, 128>}, {pipeline_mode = #tpu.pipeline_mode<synchronous>, transform_indices = @transform_11, window_bounds = array<i64: 1, 128>}, {pipeline_mode = #tpu.pipeline_mode<synchronous>, transform_indices = @transform_12, window_bounds = array<i64: 1, 128>}, {pipeline_mode = #tpu.pipeline_mode<synchronous>, transform_indices = @transform_13, window_bounds = array<i64: 1, 128>}, {pipeline_mode = #tpu.pipeline_mode<synchronous>, transform_indices = @transform_14, window_bounds = array<i64: 1, 128>}, {transform_indices = @transform_15, window_bounds = array<i64: 1, 8, 128>}]} {
    %c0 = arith.constant 0 : index
    %c0_0 = arith.constant 0 : index
    %c0_1 = arith.constant 0 : index
    %0 = vector.load %arg1[%c0, %c0_0, %c0_1] : memref<1x8x128xbf16, #tpu.memory_space<vmem>>, vector<1x8x128xbf16>
    %1 = vector.shape_cast %0 : vector<1x8x128xbf16> to vector<8x128xbf16>
    %2 = arith.extf %1 : vector<8x128xbf16> to vector<8x128xf32>
    %c0_2 = arith.constant 0 : index
    %c0_3 = arith.constant 0 : index
    %3 = vector.load %arg2[%c0_2, %c0_3] : memref<128x384xbf16, #tpu.memory_space<vmem>>, vector<128x384xbf16>
    %cst = arith.constant dense<0.000000e+00> : vector<8x384xf32>
    %4 = tpu.matmul %1, %3, %cst {dimension_numbers = #tpu.dot_dimension_numbers<[1], [0], [0], [1], [0, 0, 1, 1], [], []>} : vector<8x128xbf16>, vector<128x384xbf16>, vector<8x384xf32> -> vector<8x384xf32>
    %c0_4 = arith.constant 0 : index
    %c0_5 = arith.constant 0 : index
    %5 = vector.load %arg3[%c0_4, %c0_5] : memref<1x384xf32, #tpu.memory_space<vmem>>, vector<1x384xf32>
    %6 = vector.broadcast %5 : vector<1x384xf32> to vector<8x384xf32>
    %7 = arith.addf %4, %6 : vector<8x384xf32>
    %8 = vector.extract_strided_slice %7 {offsets = [0, 0], sizes = [8, 128], strides = [1, 1]} : vector<8x384xf32> to vector<8x128xf32>
    %9 = vector.extract_strided_slice %7 {offsets = [0, 128], sizes = [8, 128], strides = [1, 1]} : vector<8x384xf32> to vector<8x128xf32>
    %10 = vector.extract_strided_slice %7 {offsets = [0, 256], sizes = [8, 128], strides = [1, 1]} : vector<8x384xf32> to vector<8x128xf32>
    %cst_6 = arith.constant 0.176776692 : f32
    %11 = vector.broadcast %cst_6 : f32 to vector<8x128xf32>
    %12 = arith.mulf %8, %11 : vector<8x128xf32>
    %13 = arith.truncf %12 : vector<8x128xf32> to vector<8x128xbf16>
    %14 = arith.truncf %9 : vector<8x128xf32> to vector<8x128xbf16>
    %15 = arith.truncf %10 : vector<8x128xf32> to vector<8x128xbf16>
    %16 = vector.extract_strided_slice %13 {offsets = [0, 0], sizes = [8, 32], strides = [1, 1]} : vector<8x128xbf16> to vector<8x32xbf16>
    %17 = vector.extract_strided_slice %14 {offsets = [0, 0], sizes = [8, 32], strides = [1, 1]} : vector<8x128xbf16> to vector<8x32xbf16>
    %cst_7 = arith.constant dense<0.000000e+00> : vector<8x8xf32>
    %18 = tpu.matmul %16, %17, %cst_7 {dimension_numbers = #tpu.dot_dimension_numbers<[1], [1], [0], [0], [0, 0, 1, 0], [], []>} : vector<8x32xbf16>, vector<8x32xbf16>, vector<8x8xf32> -> vector<8x8xf32>
    %cst_8 = arith.constant dense<0xFF800000> : vector<8xf32>
    %19 = vector.multi_reduction <maximumf>, %18, %cst_8 [1] : vector<8x8xf32> to vector<8xf32>
    %20 = vector.shape_cast %19 : vector<8xf32> to vector<8x1xf32>
    %21 = vector.broadcast %20 : vector<8x1xf32> to vector<8x8xf32>
    %22 = arith.subf %18, %21 : vector<8x8xf32>
    %23 = math.exp %22 : vector<8x8xf32>
    %cst_9 = arith.constant dense<0.000000e+00> : vector<8xf32>
    %24 = vector.multi_reduction <add>, %23, %cst_9 [1] : vector<8x8xf32> to vector<8xf32>
    %25 = vector.shape_cast %24 : vector<8xf32> to vector<8x1xf32>
    %26 = tpu.reciprocal %25 {approx = true} : vector<8x1xf32> -> vector<8x1xf32>
    %27 = vector.broadcast %26 : vector<8x1xf32> to vector<8x8xf32>
    %28 = arith.mulf %23, %27 : vector<8x8xf32>
    %29 = arith.truncf %28 : vector<8x8xf32> to vector<8x8xbf16>
    %30 = vector.extract_strided_slice %15 {offsets = [0, 0], sizes = [8, 32], strides = [1, 1]} : vector<8x128xbf16> to vector<8x32xbf16>
    %cst_10 = arith.constant dense<0.000000e+00> : vector<8x32xf32>
    %31 = tpu.matmul %29, %30, %cst_10 {dimension_numbers = #tpu.dot_dimension_numbers<[1], [0], [0], [1], [0, 0, 1, 1], [], []>} : vector<8x8xbf16>, vector<8x32xbf16>, vector<8x32xf32> -> vector<8x32xf32>
    %32 = vector.extract_strided_slice %13 {offsets = [0, 32], sizes = [8, 32], strides = [1, 1]} : vector<8x128xbf16> to vector<8x32xbf16>
    %33 = vector.extract_strided_slice %14 {offsets = [0, 32], sizes = [8, 32], strides = [1, 1]} : vector<8x128xbf16> to vector<8x32xbf16>
    %cst_11 = arith.constant dense<0.000000e+00> : vector<8x8xf32>
    %34 = tpu.matmul %32, %33, %cst_11 {dimension_numbers = #tpu.dot_dimension_numbers<[1], [1], [0], [0], [0, 0, 1, 0], [], []>} : vector<8x32xbf16>, vector<8x32xbf16>, vector<8x8xf32> -> vector<8x8xf32>
    %cst_12 = arith.constant dense<0xFF800000> : vector<8xf32>
    %35 = vector.multi_reduction <maximumf>, %34, %cst_12 [1] : vector<8x8xf32> to vector<8xf32>
    %36 = vector.shape_cast %35 : vector<8xf32> to vector<8x1xf32>
    %37 = vector.broadcast %36 : vector<8x1xf32> to vector<8x8xf32>
    %38 = arith.subf %34, %37 : vector<8x8xf32>
    %39 = math.exp %38 : vector<8x8xf32>
    %cst_13 = arith.constant dense<0.000000e+00> : vector<8xf32>
    %40 = vector.multi_reduction <add>, %39, %cst_13 [1] : vector<8x8xf32> to vector<8xf32>
    %41 = vector.shape_cast %40 : vector<8xf32> to vector<8x1xf32>
    %42 = tpu.reciprocal %41 {approx = true} : vector<8x1xf32> -> vector<8x1xf32>
    %43 = vector.broadcast %42 : vector<8x1xf32> to vector<8x8xf32>
    %44 = arith.mulf %39, %43 : vector<8x8xf32>
    %45 = arith.truncf %44 : vector<8x8xf32> to vector<8x8xbf16>
    %46 = vector.extract_strided_slice %15 {offsets = [0, 32], sizes = [8, 32], strides = [1, 1]} : vector<8x128xbf16> to vector<8x32xbf16>
    %cst_14 = arith.constant dense<0.000000e+00> : vector<8x32xf32>
    %47 = tpu.matmul %45, %46, %cst_14 {dimension_numbers = #tpu.dot_dimension_numbers<[1], [0], [0], [1], [0, 0, 1, 1], [], []>} : vector<8x8xbf16>, vector<8x32xbf16>, vector<8x32xf32> -> vector<8x32xf32>
    %48 = vector.extract_strided_slice %13 {offsets = [0, 64], sizes = [8, 32], strides = [1, 1]} : vector<8x128xbf16> to vector<8x32xbf16>
    %49 = vector.extract_strided_slice %14 {offsets = [0, 64], sizes = [8, 32], strides = [1, 1]} : vector<8x128xbf16> to vector<8x32xbf16>
    %cst_15 = arith.constant dense<0.000000e+00> : vector<8x8xf32>
    %50 = tpu.matmul %48, %49, %cst_15 {dimension_numbers = #tpu.dot_dimension_numbers<[1], [1], [0], [0], [0, 0, 1, 0], [], []>} : vector<8x32xbf16>, vector<8x32xbf16>, vector<8x8xf32> -> vector<8x8xf32>
    %cst_16 = arith.constant dense<0xFF800000> : vector<8xf32>
    %51 = vector.multi_reduction <maximumf>, %50, %cst_16 [1] : vector<8x8xf32> to vector<8xf32>
    %52 = vector.shape_cast %51 : vector<8xf32> to vector<8x1xf32>
    %53 = vector.broadcast %52 : vector<8x1xf32> to vector<8x8xf32>
    %54 = arith.subf %50, %53 : vector<8x8xf32>
    %55 = math.exp %54 : vector<8x8xf32>
    %cst_17 = arith.constant dense<0.000000e+00> : vector<8xf32>
    %56 = vector.multi_reduction <add>, %55, %cst_17 [1] : vector<8x8xf32> to vector<8xf32>
    %57 = vector.shape_cast %56 : vector<8xf32> to vector<8x1xf32>
    %58 = tpu.reciprocal %57 {approx = true} : vector<8x1xf32> -> vector<8x1xf32>
    %59 = vector.broadcast %58 : vector<8x1xf32> to vector<8x8xf32>
    %60 = arith.mulf %55, %59 : vector<8x8xf32>
    %61 = arith.truncf %60 : vector<8x8xf32> to vector<8x8xbf16>
    %62 = vector.extract_strided_slice %15 {offsets = [0, 64], sizes = [8, 32], strides = [1, 1]} : vector<8x128xbf16> to vector<8x32xbf16>
    %cst_18 = arith.constant dense<0.000000e+00> : vector<8x32xf32>
    %63 = tpu.matmul %61, %62, %cst_18 {dimension_numbers = #tpu.dot_dimension_numbers<[1], [0], [0], [1], [0, 0, 1, 1], [], []>} : vector<8x8xbf16>, vector<8x32xbf16>, vector<8x32xf32> -> vector<8x32xf32>
    %64 = vector.extract_strided_slice %13 {offsets = [0, 96], sizes = [8, 32], strides = [1, 1]} : vector<8x128xbf16> to vector<8x32xbf16>
    %65 = vector.extract_strided_slice %14 {offsets = [0, 96], sizes = [8, 32], strides = [1, 1]} : vector<8x128xbf16> to vector<8x32xbf16>
    %cst_19 = arith.constant dense<0.000000e+00> : vector<8x8xf32>
    %66 = tpu.matmul %64, %65, %cst_19 {dimension_numbers = #tpu.dot_dimension_numbers<[1], [1], [0], [0], [0, 0, 1, 0], [], []>} : vector<8x32xbf16>, vector<8x32xbf16>, vector<8x8xf32> -> vector<8x8xf32>
    %cst_20 = arith.constant dense<0xFF800000> : vector<8xf32>
    %67 = vector.multi_reduction <maximumf>, %66, %cst_20 [1] : vector<8x8xf32> to vector<8xf32>
    %68 = vector.shape_cast %67 : vector<8xf32> to vector<8x1xf32>
    %69 = vector.broadcast %68 : vector<8x1xf32> to vector<8x8xf32>
    %70 = arith.subf %66, %69 : vector<8x8xf32>
    %71 = math.exp %70 : vector<8x8xf32>
    %cst_21 = arith.constant dense<0.000000e+00> : vector<8xf32>
    %72 = vector.multi_reduction <add>, %71, %cst_21 [1] : vector<8x8xf32> to vector<8xf32>
    %73 = vector.shape_cast %72 : vector<8xf32> to vector<8x1xf32>
    %74 = tpu.reciprocal %73 {approx = true} : vector<8x1xf32> -> vector<8x1xf32>
    %75 = vector.broadcast %74 : vector<8x1xf32> to vector<8x8xf32>
    %76 = arith.mulf %71, %75 : vector<8x8xf32>
    %77 = arith.truncf %76 : vector<8x8xf32> to vector<8x8xbf16>
    %78 = vector.extract_strided_slice %15 {offsets = [0, 96], sizes = [8, 32], strides = [1, 1]} : vector<8x128xbf16> to vector<8x32xbf16>
    %cst_22 = arith.constant dense<0.000000e+00> : vector<8x32xf32>
    %79 = tpu.matmul %77, %78, %cst_22 {dimension_numbers = #tpu.dot_dimension_numbers<[1], [0], [0], [1], [0, 0, 1, 1], [], []>} : vector<8x8xbf16>, vector<8x32xbf16>, vector<8x32xf32> -> vector<8x32xf32>
    %80 = tpu.concatenate %31, %47, %63, %79 in 1 : vector<8x32xf32>, vector<8x32xf32>, vector<8x32xf32>, vector<8x32xf32> -> vector<8x128xf32>
    %81 = arith.truncf %80 : vector<8x128xf32> to vector<8x128xbf16>
    %c0_23 = arith.constant 0 : index
    %c0_24 = arith.constant 0 : index
    %82 = vector.load %arg4[%c0_23, %c0_24] : memref<128x128xbf16, #tpu.memory_space<vmem>>, vector<128x128xbf16>
    %cst_25 = arith.constant dense<0.000000e+00> : vector<8x128xf32>
    %83 = tpu.matmul %81, %82, %cst_25 {dimension_numbers = #tpu.dot_dimension_numbers<[1], [0], [0], [1], [0, 0, 1, 1], [], []>} : vector<8x128xbf16>, vector<128x128xbf16>, vector<8x128xf32> -> vector<8x128xf32>
    %c0_26 = arith.constant 0 : index
    %c0_27 = arith.constant 0 : index
    %84 = vector.load %arg5[%c0_26, %c0_27] : memref<1x128xf32, #tpu.memory_space<vmem>>, vector<1x128xf32>
    %85 = vector.broadcast %84 : vector<1x128xf32> to vector<8x128xf32>
    %86 = arith.addf %83, %85 : vector<8x128xf32>
    %87 = arith.addf %2, %86 : vector<8x128xf32>
    %c0_28 = arith.constant 0 : index
    %c0_29 = arith.constant 0 : index
    %88 = vector.load %arg6[%c0_28, %c0_29] : memref<1x128xf32, #tpu.memory_space<vmem>>, vector<1x128xf32>
    %c0_30 = arith.constant 0 : index
    %c0_31 = arith.constant 0 : index
    %89 = vector.load %arg7[%c0_30, %c0_31] : memref<1x128xf32, #tpu.memory_space<vmem>>, vector<1x128xf32>
    %cst_32 = arith.constant dense<0.000000e+00> : vector<8xf32>
    %90 = vector.multi_reduction <add>, %87, %cst_32 [1] : vector<8x128xf32> to vector<8xf32>
    %91 = vector.shape_cast %90 : vector<8xf32> to vector<8x1xf32>
    %cst_33 = arith.constant 1.280000e+02 : f32
    %92 = vector.broadcast %cst_33 : f32 to vector<8x1xf32>
    %93 = arith.divf %91, %92 : vector<8x1xf32>
    %94 = vector.broadcast %93 : vector<8x1xf32> to vector<8x128xf32>
    %95 = arith.subf %87, %94 : vector<8x128xf32>
    %96 = arith.mulf %95, %95 : vector<8x128xf32>
    %cst_34 = arith.constant dense<0.000000e+00> : vector<8xf32>
    %97 = vector.multi_reduction <add>, %96, %cst_34 [1] : vector<8x128xf32> to vector<8xf32>
    %98 = vector.shape_cast %97 : vector<8xf32> to vector<8x1xf32>
    %cst_35 = arith.constant 1.280000e+02 : f32
    %99 = vector.broadcast %cst_35 : f32 to vector<8x1xf32>
    %100 = arith.divf %98, %99 : vector<8x1xf32>
    %cst_36 = arith.constant 9.99999974E-6 : f32
    %101 = vector.broadcast %cst_36 : f32 to vector<8x1xf32>
    %102 = arith.addf %100, %101 : vector<8x1xf32>
    %103 = math.rsqrt %102 : vector<8x1xf32>
    %104 = vector.broadcast %103 : vector<8x1xf32> to vector<8x128xf32>
    %105 = arith.mulf %95, %104 : vector<8x128xf32>
    %106 = vector.broadcast %88 : vector<1x128xf32> to vector<8x128xf32>
    %107 = arith.mulf %105, %106 : vector<8x128xf32>
    %108 = vector.broadcast %89 : vector<1x128xf32> to vector<8x128xf32>
    %109 = arith.addf %107, %108 : vector<8x128xf32>
    %110 = arith.truncf %109 : vector<8x128xf32> to vector<8x128xbf16>
    %c0_37 = arith.constant 0 : index
    %c0_38 = arith.constant 0 : index
    %111 = vector.load %arg8[%c0_37, %c0_38] : memref<128x256xbf16, #tpu.memory_space<vmem>>, vector<128x256xbf16>
    %cst_39 = arith.constant dense<0.000000e+00> : vector<8x256xf32>
    %112 = tpu.matmul %110, %111, %cst_39 {dimension_numbers = #tpu.dot_dimension_numbers<[1], [0], [0], [1], [0, 0, 1, 1], [], []>} : vector<8x128xbf16>, vector<128x256xbf16>, vector<8x256xf32> -> vector<8x256xf32>
    %c0_40 = arith.constant 0 : index
    %c0_41 = arith.constant 0 : index
    %113 = vector.load %arg9[%c0_40, %c0_41] : memref<1x256xf32, #tpu.memory_space<vmem>>, vector<1x256xf32>
    %114 = vector.broadcast %113 : vector<1x256xf32> to vector<8x256xf32>
    %115 = arith.addf %112, %114 : vector<8x256xf32>
    %cst_42 = arith.constant 0.000000e+00 : f32
    %116 = vector.broadcast %cst_42 : f32 to vector<8x256xf32>
    %117 = arith.maximumf %115, %116 : vector<8x256xf32>
    %118 = arith.truncf %117 : vector<8x256xf32> to vector<8x256xbf16>
    %c0_43 = arith.constant 0 : index
    %c0_44 = arith.constant 0 : index
    %119 = vector.load %arg10[%c0_43, %c0_44] : memref<256x128xbf16, #tpu.memory_space<vmem>>, vector<256x128xbf16>
    %cst_45 = arith.constant dense<0.000000e+00> : vector<8x128xf32>
    %120 = tpu.matmul %118, %119, %cst_45 {dimension_numbers = #tpu.dot_dimension_numbers<[1], [0], [0], [1], [0, 0, 1, 1], [], []>} : vector<8x256xbf16>, vector<256x128xbf16>, vector<8x128xf32> -> vector<8x128xf32>
    %c0_46 = arith.constant 0 : index
    %c0_47 = arith.constant 0 : index
    %121 = vector.load %arg11[%c0_46, %c0_47] : memref<1x128xf32, #tpu.memory_space<vmem>>, vector<1x128xf32>
    %122 = vector.broadcast %121 : vector<1x128xf32> to vector<8x128xf32>
    %123 = arith.addf %120, %122 : vector<8x128xf32>
    %124 = arith.addf %109, %123 : vector<8x128xf32>
    %c0_48 = arith.constant 0 : index
    %c0_49 = arith.constant 0 : index
    %125 = vector.load %arg12[%c0_48, %c0_49] : memref<1x128xf32, #tpu.memory_space<vmem>>, vector<1x128xf32>
    %c0_50 = arith.constant 0 : index
    %c0_51 = arith.constant 0 : index
    %126 = vector.load %arg13[%c0_50, %c0_51] : memref<1x128xf32, #tpu.memory_space<vmem>>, vector<1x128xf32>
    %cst_52 = arith.constant dense<0.000000e+00> : vector<8xf32>
    %127 = vector.multi_reduction <add>, %124, %cst_52 [1] : vector<8x128xf32> to vector<8xf32>
    %128 = vector.shape_cast %127 : vector<8xf32> to vector<8x1xf32>
    %cst_53 = arith.constant 1.280000e+02 : f32
    %129 = vector.broadcast %cst_53 : f32 to vector<8x1xf32>
    %130 = arith.divf %128, %129 : vector<8x1xf32>
    %131 = vector.broadcast %130 : vector<8x1xf32> to vector<8x128xf32>
    %132 = arith.subf %124, %131 : vector<8x128xf32>
    %133 = arith.mulf %132, %132 : vector<8x128xf32>
    %cst_54 = arith.constant dense<0.000000e+00> : vector<8xf32>
    %134 = vector.multi_reduction <add>, %133, %cst_54 [1] : vector<8x128xf32> to vector<8xf32>
    %135 = vector.shape_cast %134 : vector<8xf32> to vector<8x1xf32>
    %cst_55 = arith.constant 1.280000e+02 : f32
    %136 = vector.broadcast %cst_55 : f32 to vector<8x1xf32>
    %137 = arith.divf %135, %136 : vector<8x1xf32>
    %cst_56 = arith.constant 9.99999974E-6 : f32
    %138 = vector.broadcast %cst_56 : f32 to vector<8x1xf32>
    %139 = arith.addf %137, %138 : vector<8x1xf32>
    %140 = math.rsqrt %139 : vector<8x1xf32>
    %141 = vector.broadcast %140 : vector<8x1xf32> to vector<8x128xf32>
    %142 = arith.mulf %132, %141 : vector<8x128xf32>
    %143 = vector.broadcast %125 : vector<1x128xf32> to vector<8x128xf32>
    %144 = arith.mulf %142, %143 : vector<8x128xf32>
    %145 = vector.broadcast %126 : vector<1x128xf32> to vector<8x128xf32>
    %146 = arith.addf %144, %145 : vector<8x128xf32>
    %c0_57 = arith.constant 0 : index
    %c0_58 = arith.constant 0 : index
    %147 = vector.load %arg14[%c0_57, %c0_58] : memref<1x128xf32, #tpu.memory_space<vmem>>, vector<1x128xf32>
    %c0_59 = arith.constant 0 : index
    %c0_60 = arith.constant 0 : index
    %148 = vector.load %arg15[%c0_59, %c0_60] : memref<1x128xf32, #tpu.memory_space<vmem>>, vector<1x128xf32>
    %cst_61 = arith.constant dense<0.000000e+00> : vector<8xf32>
    %149 = vector.multi_reduction <add>, %146, %cst_61 [1] : vector<8x128xf32> to vector<8xf32>
    %150 = vector.shape_cast %149 : vector<8xf32> to vector<8x1xf32>
    %cst_62 = arith.constant 1.280000e+02 : f32
    %151 = vector.broadcast %cst_62 : f32 to vector<8x1xf32>
    %152 = arith.divf %150, %151 : vector<8x1xf32>
    %153 = vector.broadcast %152 : vector<8x1xf32> to vector<8x128xf32>
    %154 = arith.subf %146, %153 : vector<8x128xf32>
    %155 = arith.mulf %154, %154 : vector<8x128xf32>
    %cst_63 = arith.constant dense<0.000000e+00> : vector<8xf32>
    %156 = vector.multi_reduction <add>, %155, %cst_63 [1] : vector<8x128xf32> to vector<8xf32>
    %157 = vector.shape_cast %156 : vector<8xf32> to vector<8x1xf32>
    %cst_64 = arith.constant 1.280000e+02 : f32
    %158 = vector.broadcast %cst_64 : f32 to vector<8x1xf32>
    %159 = arith.divf %157, %158 : vector<8x1xf32>
    %cst_65 = arith.constant 9.99999974E-6 : f32
    %160 = vector.broadcast %cst_65 : f32 to vector<8x1xf32>
    %161 = arith.addf %159, %160 : vector<8x1xf32>
    %162 = math.rsqrt %161 : vector<8x1xf32>
    %163 = vector.broadcast %162 : vector<8x1xf32> to vector<8x128xf32>
    %164 = arith.mulf %154, %163 : vector<8x128xf32>
    %165 = vector.broadcast %147 : vector<1x128xf32> to vector<8x128xf32>
    %166 = arith.mulf %164, %165 : vector<8x128xf32>
    %167 = vector.broadcast %148 : vector<1x128xf32> to vector<8x128xf32>
    %168 = arith.addf %166, %167 : vector<8x128xf32>
    %169 = arith.truncf %168 : vector<8x128xf32> to vector<8x128xbf16>
    %c0_66 = arith.constant 0 : index
    %c0_67 = arith.constant 0 : index
    %c0_68 = arith.constant 0 : index
    %170 = vector.load %arg16[%c0_66, %c0_67, %c0_68] : memref<1x8x128xbf16, #tpu.memory_space<vmem>>, vector<1x8x128xbf16>
    %171 = vector.shape_cast %170 : vector<1x8x128xbf16> to vector<8x128xbf16>
    %172 = vector.shape_cast %169 : vector<8x128xbf16> to vector<1x8x128xbf16>
    tpu.vector_store %arg16[%c0_66, %c0_67, %c0_68], %172 {strides = array<i32>} : memref<1x8x128xbf16, #tpu.memory_space<vmem>>, vector<1x8x128xbf16>,
    return
  }
  func.func @transform_0(%arg0: i32) -> (i32, i32, i32) {
    %c0_i32 = arith.constant 0 : i32
    %c0_i32_0 = arith.constant 0 : i32
    %c0_i32_1 = arith.constant 0 : i32
    return %arg0, %c0_i32, %c0_i32_0 : i32, i32, i32
  }
  func.func @transform_1(%arg0: i32) -> (i32, i32) {
    %c0_i32 = arith.constant 0 : i32
    %c0_i32_0 = arith.constant 0 : i32
    %c0_i32_1 = arith.constant 0 : i32
    return %c0_i32, %c0_i32_0 : i32, i32
  }
  func.func @transform_2(%arg0: i32) -> (i32, i32) {
    %c0_i32 = arith.constant 0 : i32
    %c0_i32_0 = arith.constant 0 : i32
    %c0_i32_1 = arith.constant 0 : i32
    return %c0_i32, %c0_i32_0 : i32, i32
  }
  func.func @transform_3(%arg0: i32) -> (i32, i32) {
    %c0_i32 = arith.constant 0 : i32
    %c0_i32_0 = arith.constant 0 : i32
    %c0_i32_1 = arith.constant 0 : i32
    return %c0_i32, %c0_i32_0 : i32, i32
  }
  func.func @transform_4(%arg0: i32) -> (i32, i32) {
    %c0_i32 = arith.constant 0 : i32
    %c0_i32_0 = arith.constant 0 : i32
    %c0_i32_1 = arith.constant 0 : i32
    return %c0_i32, %c0_i32_0 : i32, i32
  }
  func.func @transform_5(%arg0: i32) -> (i32, i32) {
    %c0_i32 = arith.constant 0 : i32
    %c0_i32_0 = arith.constant 0 : i32
    %c0_i32_1 = arith.constant 0 : i32
    return %c0_i32, %c0_i32_0 : i32, i32
  }
  func.func @transform_6(%arg0: i32) -> (i32, i32) {
    %c0_i32 = arith.constant 0 : i32
    %c0_i32_0 = arith.constant 0 : i32
    %c0_i32_1 = arith.constant 0 : i32
    return %c0_i32, %c0_i32_0 : i32, i32
  }
  func.func @transform_7(%arg0: i32) -> (i32, i32) {
    %c0_i32 = arith.constant 0 : i32
    %c0_i32_0 = arith.constant 0 : i32
    %c0_i32_1 = arith.constant 0 : i32
    return %c0_i32, %c0_i32_0 : i32, i32
  }
  func.func @transform_8(%arg0: i32) -> (i32, i32) {
    %c0_i32 = arith.constant 0 : i32
    %c0_i32_0 = arith.constant 0 : i32
    %c0_i32_1 = arith.constant 0 : i32
    return %c0_i32, %c0_i32_0 : i32, i32
  }
  func.func @transform_9(%arg0: i32) -> (i32, i32) {
    %c0_i32 = arith.constant 0 : i32
    %c0_i32_0 = arith.constant 0 : i32
    %c0_i32_1 = arith.constant 0 : i32
    return %c0_i32, %c0_i32_0 : i32, i32
  }
  func.func @transform_10(%arg0: i32) -> (i32, i32) {
    %c0_i32 = arith.constant 0 : i32
    %c0_i32_0 = arith.constant 0 : i32
    %c0_i32_1 = arith.constant 0 : i32
    return %c0_i32, %c0_i32_0 : i32, i32
  }
  func.func @transform_11(%arg0: i32) -> (i32, i32) {
    %c0_i32 = arith.constant 0 : i32
    %c0_i32_0 = arith.constant 0 : i32
    %c0_i32_1 = arith.constant 0 : i32
    return %c0_i32, %c0_i32_0 : i32, i32
  }
  func.func @transform_12(%arg0: i32) -> (i32, i32) {
    %c0_i32 = arith.constant 0 : i32
    %c0_i32_0 = arith.constant 0 : i32
    %c0_i32_1 = arith.constant 0 : i32
    return %c0_i32, %c0_i32_0 : i32, i32
  }
  func.func @transform_13(%arg0: i32) -> (i32, i32) {
    %c0_i32 = arith.constant 0 : i32
    %c0_i32_0 = arith.constant 0 : i32
    %c0_i32_1 = arith.constant 0 : i32
    return %c0_i32, %c0_i32_0 : i32, i32
  }
  func.func @transform_14(%arg0: i32) -> (i32, i32) {
    %c0_i32 = arith.constant 0 : i32
    %c0_i32_0 = arith.constant 0 : i32
    %c0_i32_1 = arith.constant 0 : i32
    return %c0_i32, %c0_i32_0 : i32, i32
  }
  func.func @transform_15(%arg0: i32) -> (i32, i32, i32) {
    %c0_i32 = arith.constant 0 : i32
    %c0_i32_0 = arith.constant 0 : i32
    %c0_i32_1 = arith.constant 0 : i32
    return %arg0, %c0_i32, %c0_i32_0 : i32, i32, i32
  }
}

module attributes {stable_mosaic.version = 11 : i64} {
  func.func @_decoder_layer_kernel(%arg0: i32, %arg1: memref<1x8x128xbf16, #tpu.memory_space<vmem>>, %arg2: memref<1x8x128xbf16, #tpu.memory_space<vmem>>, %arg3: memref<1x8x8xf32, #tpu.memory_space<vmem>>, %arg4: memref<128x384xbf16, #tpu.memory_space<vmem>>, %arg5: memref<1x384xf32, #tpu.memory_space<vmem>>, %arg6: memref<128x128xbf16, #tpu.memory_space<vmem>>, %arg7: memref<1x128xf32, #tpu.memory_space<vmem>>, %arg8: memref<1x128xf32, #tpu.memory_space<vmem>>, %arg9: memref<1x128xf32, #tpu.memory_space<vmem>>, %arg10: memref<128x128xbf16, #tpu.memory_space<vmem>>, %arg11: memref<1x128xf32, #tpu.memory_space<vmem>>, %arg12: memref<128x256xbf16, #tpu.memory_space<vmem>>, %arg13: memref<1x256xf32, #tpu.memory_space<vmem>>, %arg14: memref<128x128xbf16, #tpu.memory_space<vmem>>, %arg15: memref<1x128xf32, #tpu.memory_space<vmem>>, %arg16: memref<1x128xf32, #tpu.memory_space<vmem>>, %arg17: memref<1x128xf32, #tpu.memory_space<vmem>>, %arg18: memref<128x256xbf16, #tpu.memory_space<vmem>>, %arg19: memref<1x256xf32, #tpu.memory_space<vmem>>, %arg20: memref<256x128xbf16, #tpu.memory_space<vmem>>, %arg21: memref<1x128xf32, #tpu.memory_space<vmem>>, %arg22: memref<1x128xf32, #tpu.memory_space<vmem>>, %arg23: memref<1x128xf32, #tpu.memory_space<vmem>>, %arg24: memref<1x8x128xbf16, #tpu.memory_space<vmem>>) attributes {dimension_semantics = [#tpu.dimension_semantics<parallel>], iteration_bounds = array<i64: 2>, scalar_prefetch = 0 : i64, scratch_operands = 0 : i64, tpu.core_type = #tpu.core_type<tc>, window_params = [{transform_indices = @transform_0, window_bounds = array<i64: 1, 8, 128>}, {transform_indices = @transform_1, window_bounds = array<i64: 1, 8, 128>}, {transform_indices = @transform_2, window_bounds = array<i64: 1, 8, 8>}, {pipeline_mode = #tpu.pipeline_mode<synchronous>, transform_indices = @transform_3, window_bounds = array<i64: 128, 384>}, {pipeline_mode = #tpu.pipeline_mode<synchronous>, transform_indices = @transform_4, window_bounds = array<i64: 1, 384>}, {pipeline_mode = #tpu.pipeline_mode<synchronous>, transform_indices = @transform_5, window_bounds = array<i64: 128, 128>}, {pipeline_mode = #tpu.pipeline_mode<synchronous>, transform_indices = @transform_6, window_bounds = array<i64: 1, 128>}, {pipeline_mode = #tpu.pipeline_mode<synchronous>, transform_indices = @transform_7, window_bounds = array<i64: 1, 128>}, {pipeline_mode = #tpu.pipeline_mode<synchronous>, transform_indices = @transform_8, window_bounds = array<i64: 1, 128>}, {pipeline_mode = #tpu.pipeline_mode<synchronous>, transform_indices = @transform_9, window_bounds = array<i64: 128, 128>}, {pipeline_mode = #tpu.pipeline_mode<synchronous>, transform_indices = @transform_10, window_bounds = array<i64: 1, 128>}, {pipeline_mode = #tpu.pipeline_mode<synchronous>, transform_indices = @transform_11, window_bounds = array<i64: 128, 256>}, {pipeline_mode = #tpu.pipeline_mode<synchronous>, transform_indices = @transform_12, window_bounds = array<i64: 1, 256>}, {pipeline_mode = #tpu.pipeline_mode<synchronous>, transform_indices = @transform_13, window_bounds = array<i64: 128, 128>}, {pipeline_mode = #tpu.pipeline_mode<synchronous>, transform_indices = @transform_14, window_bounds = array<i64: 1, 128>}, {pipeline_mode = #tpu.pipeline_mode<synchronous>, transform_indices = @transform_15, window_bounds = array<i64: 1, 128>}, {pipeline_mode = #tpu.pipeline_mode<synchronous>, transform_indices = @transform_16, window_bounds = array<i64: 1, 128>}, {pipeline_mode = #tpu.pipeline_mode<synchronous>, transform_indices = @transform_17, window_bounds = array<i64: 128, 256>}, {pipeline_mode = #tpu.pipeline_mode<synchronous>, transform_indices = @transform_18, window_bounds = array<i64: 1, 256>}, {pipeline_mode = #tpu.pipeline_mode<synchronous>, transform_indices = @transform_19, window_bounds = array<i64: 256, 128>}, {pipeline_mode = #tpu.pipeline_mode<synchronous>, transform_indices = @transform_20, window_bounds = array<i64: 1, 128>}, {pipeline_mode = #tpu.pipeline_mode<synchronous>, transform_indices = @transform_21, window_bounds = array<i64: 1, 128>}, {pipeline_mode = #tpu.pipeline_mode<synchronous>, transform_indices = @transform_22, window_bounds = array<i64: 1, 128>}, {transform_indices = @transform_23, window_bounds = array<i64: 1, 8, 128>}]} {
    %c0 = arith.constant 0 : index
    %c0_0 = arith.constant 0 : index
    %c0_1 = arith.constant 0 : index
    %0 = vector.load %arg1[%c0, %c0_0, %c0_1] : memref<1x8x128xbf16, #tpu.memory_space<vmem>>, vector<1x8x128xbf16>
    %1 = vector.shape_cast %0 : vector<1x8x128xbf16> to vector<8x128xbf16>
    %c0_2 = arith.constant 0 : index
    %c0_3 = arith.constant 0 : index
    %c0_4 = arith.constant 0 : index
    %2 = vector.load %arg2[%c0_2, %c0_3, %c0_4] : memref<1x8x128xbf16, #tpu.memory_space<vmem>>, vector<1x8x128xbf16>
    %3 = vector.shape_cast %2 : vector<1x8x128xbf16> to vector<8x128xbf16>
    %4 = arith.extf %1 : vector<8x128xbf16> to vector<8x128xf32>
    %c0_5 = arith.constant 0 : index
    %c0_6 = arith.constant 0 : index
    %5 = vector.load %arg4[%c0_5, %c0_6] : memref<128x384xbf16, #tpu.memory_space<vmem>>, vector<128x384xbf16>
    %cst = arith.constant dense<0.000000e+00> : vector<8x384xf32>
    %6 = tpu.matmul %1, %5, %cst {dimension_numbers = #tpu.dot_dimension_numbers<[1], [0], [0], [1], [0, 0, 1, 1], [], []>} : vector<8x128xbf16>, vector<128x384xbf16>, vector<8x384xf32> -> vector<8x384xf32>
    %c0_7 = arith.constant 0 : index
    %c0_8 = arith.constant 0 : index
    %7 = vector.load %arg5[%c0_7, %c0_8] : memref<1x384xf32, #tpu.memory_space<vmem>>, vector<1x384xf32>
    %8 = vector.broadcast %7 : vector<1x384xf32> to vector<8x384xf32>
    %9 = arith.addf %6, %8 : vector<8x384xf32>
    %c0_9 = arith.constant 0 : index
    %c0_10 = arith.constant 0 : index
    %c0_11 = arith.constant 0 : index
    %10 = vector.load %arg3[%c0_9, %c0_10, %c0_11] : memref<1x8x8xf32, #tpu.memory_space<vmem>>, vector<1x8x8xf32>
    %11 = vector.shape_cast %10 : vector<1x8x8xf32> to vector<8x8xf32>
    %12 = vector.extract_strided_slice %9 {offsets = [0, 0], sizes = [8, 128], strides = [1, 1]} : vector<8x384xf32> to vector<8x128xf32>
    %13 = vector.extract_strided_slice %9 {offsets = [0, 128], sizes = [8, 128], strides = [1, 1]} : vector<8x384xf32> to vector<8x128xf32>
    %14 = vector.extract_strided_slice %9 {offsets = [0, 256], sizes = [8, 128], strides = [1, 1]} : vector<8x384xf32> to vector<8x128xf32>
    %cst_12 = arith.constant 0.176776692 : f32
    %15 = vector.broadcast %cst_12 : f32 to vector<8x128xf32>
    %16 = arith.mulf %12, %15 : vector<8x128xf32>
    %17 = arith.truncf %16 : vector<8x128xf32> to vector<8x128xbf16>
    %18 = arith.truncf %13 : vector<8x128xf32> to vector<8x128xbf16>
    %19 = arith.truncf %14 : vector<8x128xf32> to vector<8x128xbf16>
    %20 = vector.extract_strided_slice %17 {offsets = [0, 0], sizes = [8, 32], strides = [1, 1]} : vector<8x128xbf16> to vector<8x32xbf16>
    %21 = vector.extract_strided_slice %18 {offsets = [0, 0], sizes = [8, 32], strides = [1, 1]} : vector<8x128xbf16> to vector<8x32xbf16>
    %cst_13 = arith.constant dense<0.000000e+00> : vector<8x8xf32>
    %22 = tpu.matmul %20, %21, %cst_13 {dimension_numbers = #tpu.dot_dimension_numbers<[1], [1], [0], [0], [0, 0, 1, 0], [], []>} : vector<8x32xbf16>, vector<8x32xbf16>, vector<8x8xf32> -> vector<8x8xf32>
    %23 = arith.addf %22, %11 : vector<8x8xf32>
    %cst_14 = arith.constant dense<0xFF800000> : vector<8xf32>
    %24 = vector.multi_reduction <maximumf>, %23, %cst_14 [1] : vector<8x8xf32> to vector<8xf32>
    %25 = vector.shape_cast %24 : vector<8xf32> to vector<8x1xf32>
    %26 = vector.broadcast %25 : vector<8x1xf32> to vector<8x8xf32>
    %27 = arith.subf %23, %26 : vector<8x8xf32>
    %28 = math.exp %27 : vector<8x8xf32>
    %cst_15 = arith.constant dense<0.000000e+00> : vector<8xf32>
    %29 = vector.multi_reduction <add>, %28, %cst_15 [1] : vector<8x8xf32> to vector<8xf32>
    %30 = vector.shape_cast %29 : vector<8xf32> to vector<8x1xf32>
    %31 = tpu.reciprocal %30 {approx = true} : vector<8x1xf32> -> vector<8x1xf32>
    %32 = vector.broadcast %31 : vector<8x1xf32> to vector<8x8xf32>
    %33 = arith.mulf %28, %32 : vector<8x8xf32>
    %34 = arith.truncf %33 : vector<8x8xf32> to vector<8x8xbf16>
    %35 = vector.extract_strided_slice %19 {offsets = [0, 0], sizes = [8, 32], strides = [1, 1]} : vector<8x128xbf16> to vector<8x32xbf16>
    %cst_16 = arith.constant dense<0.000000e+00> : vector<8x32xf32>
    %36 = tpu.matmul %34, %35, %cst_16 {dimension_numbers = #tpu.dot_dimension_numbers<[1], [0], [0], [1], [0, 0, 1, 1], [], []>} : vector<8x8xbf16>, vector<8x32xbf16>, vector<8x32xf32> -> vector<8x32xf32>
    %37 = vector.extract_strided_slice %17 {offsets = [0, 32], sizes = [8, 32], strides = [1, 1]} : vector<8x128xbf16> to vector<8x32xbf16>
    %38 = vector.extract_strided_slice %18 {offsets = [0, 32], sizes = [8, 32], strides = [1, 1]} : vector<8x128xbf16> to vector<8x32xbf16>
    %cst_17 = arith.constant dense<0.000000e+00> : vector<8x8xf32>
    %39 = tpu.matmul %37, %38, %cst_17 {dimension_numbers = #tpu.dot_dimension_numbers<[1], [1], [0], [0], [0, 0, 1, 0], [], []>} : vector<8x32xbf16>, vector<8x32xbf16>, vector<8x8xf32> -> vector<8x8xf32>
    %40 = arith.addf %39, %11 : vector<8x8xf32>
    %cst_18 = arith.constant dense<0xFF800000> : vector<8xf32>
    %41 = vector.multi_reduction <maximumf>, %40, %cst_18 [1] : vector<8x8xf32> to vector<8xf32>
    %42 = vector.shape_cast %41 : vector<8xf32> to vector<8x1xf32>
    %43 = vector.broadcast %42 : vector<8x1xf32> to vector<8x8xf32>
    %44 = arith.subf %40, %43 : vector<8x8xf32>
    %45 = math.exp %44 : vector<8x8xf32>
    %cst_19 = arith.constant dense<0.000000e+00> : vector<8xf32>
    %46 = vector.multi_reduction <add>, %45, %cst_19 [1] : vector<8x8xf32> to vector<8xf32>
    %47 = vector.shape_cast %46 : vector<8xf32> to vector<8x1xf32>
    %48 = tpu.reciprocal %47 {approx = true} : vector<8x1xf32> -> vector<8x1xf32>
    %49 = vector.broadcast %48 : vector<8x1xf32> to vector<8x8xf32>
    %50 = arith.mulf %45, %49 : vector<8x8xf32>
    %51 = arith.truncf %50 : vector<8x8xf32> to vector<8x8xbf16>
    %52 = vector.extract_strided_slice %19 {offsets = [0, 32], sizes = [8, 32], strides = [1, 1]} : vector<8x128xbf16> to vector<8x32xbf16>
    %cst_20 = arith.constant dense<0.000000e+00> : vector<8x32xf32>
    %53 = tpu.matmul %51, %52, %cst_20 {dimension_numbers = #tpu.dot_dimension_numbers<[1], [0], [0], [1], [0, 0, 1, 1], [], []>} : vector<8x8xbf16>, vector<8x32xbf16>, vector<8x32xf32> -> vector<8x32xf32>
    %54 = vector.extract_strided_slice %17 {offsets = [0, 64], sizes = [8, 32], strides = [1, 1]} : vector<8x128xbf16> to vector<8x32xbf16>
    %55 = vector.extract_strided_slice %18 {offsets = [0, 64], sizes = [8, 32], strides = [1, 1]} : vector<8x128xbf16> to vector<8x32xbf16>
    %cst_21 = arith.constant dense<0.000000e+00> : vector<8x8xf32>
    %56 = tpu.matmul %54, %55, %cst_21 {dimension_numbers = #tpu.dot_dimension_numbers<[1], [1], [0], [0], [0, 0, 1, 0], [], []>} : vector<8x32xbf16>, vector<8x32xbf16>, vector<8x8xf32> -> vector<8x8xf32>
    %57 = arith.addf %56, %11 : vector<8x8xf32>
    %cst_22 = arith.constant dense<0xFF800000> : vector<8xf32>
    %58 = vector.multi_reduction <maximumf>, %57, %cst_22 [1] : vector<8x8xf32> to vector<8xf32>
    %59 = vector.shape_cast %58 : vector<8xf32> to vector<8x1xf32>
    %60 = vector.broadcast %59 : vector<8x1xf32> to vector<8x8xf32>
    %61 = arith.subf %57, %60 : vector<8x8xf32>
    %62 = math.exp %61 : vector<8x8xf32>
    %cst_23 = arith.constant dense<0.000000e+00> : vector<8xf32>
    %63 = vector.multi_reduction <add>, %62, %cst_23 [1] : vector<8x8xf32> to vector<8xf32>
    %64 = vector.shape_cast %63 : vector<8xf32> to vector<8x1xf32>
    %65 = tpu.reciprocal %64 {approx = true} : vector<8x1xf32> -> vector<8x1xf32>
    %66 = vector.broadcast %65 : vector<8x1xf32> to vector<8x8xf32>
    %67 = arith.mulf %62, %66 : vector<8x8xf32>
    %68 = arith.truncf %67 : vector<8x8xf32> to vector<8x8xbf16>
    %69 = vector.extract_strided_slice %19 {offsets = [0, 64], sizes = [8, 32], strides = [1, 1]} : vector<8x128xbf16> to vector<8x32xbf16>
    %cst_24 = arith.constant dense<0.000000e+00> : vector<8x32xf32>
    %70 = tpu.matmul %68, %69, %cst_24 {dimension_numbers = #tpu.dot_dimension_numbers<[1], [0], [0], [1], [0, 0, 1, 1], [], []>} : vector<8x8xbf16>, vector<8x32xbf16>, vector<8x32xf32> -> vector<8x32xf32>
    %71 = vector.extract_strided_slice %17 {offsets = [0, 96], sizes = [8, 32], strides = [1, 1]} : vector<8x128xbf16> to vector<8x32xbf16>
    %72 = vector.extract_strided_slice %18 {offsets = [0, 96], sizes = [8, 32], strides = [1, 1]} : vector<8x128xbf16> to vector<8x32xbf16>
    %cst_25 = arith.constant dense<0.000000e+00> : vector<8x8xf32>
    %73 = tpu.matmul %71, %72, %cst_25 {dimension_numbers = #tpu.dot_dimension_numbers<[1], [1], [0], [0], [0, 0, 1, 0], [], []>} : vector<8x32xbf16>, vector<8x32xbf16>, vector<8x8xf32> -> vector<8x8xf32>
    %74 = arith.addf %73, %11 : vector<8x8xf32>
    %cst_26 = arith.constant dense<0xFF800000> : vector<8xf32>
    %75 = vector.multi_reduction <maximumf>, %74, %cst_26 [1] : vector<8x8xf32> to vector<8xf32>
    %76 = vector.shape_cast %75 : vector<8xf32> to vector<8x1xf32>
    %77 = vector.broadcast %76 : vector<8x1xf32> to vector<8x8xf32>
    %78 = arith.subf %74, %77 : vector<8x8xf32>
    %79 = math.exp %78 : vector<8x8xf32>
    %cst_27 = arith.constant dense<0.000000e+00> : vector<8xf32>
    %80 = vector.multi_reduction <add>, %79, %cst_27 [1] : vector<8x8xf32> to vector<8xf32>
    %81 = vector.shape_cast %80 : vector<8xf32> to vector<8x1xf32>
    %82 = tpu.reciprocal %81 {approx = true} : vector<8x1xf32> -> vector<8x1xf32>
    %83 = vector.broadcast %82 : vector<8x1xf32> to vector<8x8xf32>
    %84 = arith.mulf %79, %83 : vector<8x8xf32>
    %85 = arith.truncf %84 : vector<8x8xf32> to vector<8x8xbf16>
    %86 = vector.extract_strided_slice %19 {offsets = [0, 96], sizes = [8, 32], strides = [1, 1]} : vector<8x128xbf16> to vector<8x32xbf16>
    %cst_28 = arith.constant dense<0.000000e+00> : vector<8x32xf32>
    %87 = tpu.matmul %85, %86, %cst_28 {dimension_numbers = #tpu.dot_dimension_numbers<[1], [0], [0], [1], [0, 0, 1, 1], [], []>} : vector<8x8xbf16>, vector<8x32xbf16>, vector<8x32xf32> -> vector<8x32xf32>
    %88 = tpu.concatenate %36, %53, %70, %87 in 1 : vector<8x32xf32>, vector<8x32xf32>, vector<8x32xf32>, vector<8x32xf32> -> vector<8x128xf32>
    %89 = arith.truncf %88 : vector<8x128xf32> to vector<8x128xbf16>
    %c0_29 = arith.constant 0 : index
    %c0_30 = arith.constant 0 : index
    %90 = vector.load %arg6[%c0_29, %c0_30] : memref<128x128xbf16, #tpu.memory_space<vmem>>, vector<128x128xbf16>
    %cst_31 = arith.constant dense<0.000000e+00> : vector<8x128xf32>
    %91 = tpu.matmul %89, %90, %cst_31 {dimension_numbers = #tpu.dot_dimension_numbers<[1], [0], [0], [1], [0, 0, 1, 1], [], []>} : vector<8x128xbf16>, vector<128x128xbf16>, vector<8x128xf32> -> vector<8x128xf32>
    %c0_32 = arith.constant 0 : index
    %c0_33 = arith.constant 0 : index
    %92 = vector.load %arg7[%c0_32, %c0_33] : memref<1x128xf32, #tpu.memory_space<vmem>>, vector<1x128xf32>
    %93 = vector.broadcast %92 : vector<1x128xf32> to vector<8x128xf32>
    %94 = arith.addf %91, %93 : vector<8x128xf32>
    %95 = arith.addf %4, %94 : vector<8x128xf32>
    %c0_34 = arith.constant 0 : index
    %c0_35 = arith.constant 0 : index
    %96 = vector.load %arg8[%c0_34, %c0_35] : memref<1x128xf32, #tpu.memory_space<vmem>>, vector<1x128xf32>
    %c0_36 = arith.constant 0 : index
    %c0_37 = arith.constant 0 : index
    %97 = vector.load %arg9[%c0_36, %c0_37] : memref<1x128xf32, #tpu.memory_space<vmem>>, vector<1x128xf32>
    %cst_38 = arith.constant dense<0.000000e+00> : vector<8xf32>
    %98 = vector.multi_reduction <add>, %95, %cst_38 [1] : vector<8x128xf32> to vector<8xf32>
    %99 = vector.shape_cast %98 : vector<8xf32> to vector<8x1xf32>
    %cst_39 = arith.constant 1.280000e+02 : f32
    %100 = vector.broadcast %cst_39 : f32 to vector<8x1xf32>
    %101 = arith.divf %99, %100 : vector<8x1xf32>
    %102 = vector.broadcast %101 : vector<8x1xf32> to vector<8x128xf32>
    %103 = arith.subf %95, %102 : vector<8x128xf32>
    %104 = arith.mulf %103, %103 : vector<8x128xf32>
    %cst_40 = arith.constant dense<0.000000e+00> : vector<8xf32>
    %105 = vector.multi_reduction <add>, %104, %cst_40 [1] : vector<8x128xf32> to vector<8xf32>
    %106 = vector.shape_cast %105 : vector<8xf32> to vector<8x1xf32>
    %cst_41 = arith.constant 1.280000e+02 : f32
    %107 = vector.broadcast %cst_41 : f32 to vector<8x1xf32>
    %108 = arith.divf %106, %107 : vector<8x1xf32>
    %cst_42 = arith.constant 9.99999974E-6 : f32
    %109 = vector.broadcast %cst_42 : f32 to vector<8x1xf32>
    %110 = arith.addf %108, %109 : vector<8x1xf32>
    %111 = math.rsqrt %110 : vector<8x1xf32>
    %112 = vector.broadcast %111 : vector<8x1xf32> to vector<8x128xf32>
    %113 = arith.mulf %103, %112 : vector<8x128xf32>
    %114 = vector.broadcast %96 : vector<1x128xf32> to vector<8x128xf32>
    %115 = arith.mulf %113, %114 : vector<8x128xf32>
    %116 = vector.broadcast %97 : vector<1x128xf32> to vector<8x128xf32>
    %117 = arith.addf %115, %116 : vector<8x128xf32>
    %118 = arith.truncf %117 : vector<8x128xf32> to vector<8x128xbf16>
    %c0_43 = arith.constant 0 : index
    %c0_44 = arith.constant 0 : index
    %119 = vector.load %arg10[%c0_43, %c0_44] : memref<128x128xbf16, #tpu.memory_space<vmem>>, vector<128x128xbf16>
    %cst_45 = arith.constant dense<0.000000e+00> : vector<8x128xf32>
    %120 = tpu.matmul %118, %119, %cst_45 {dimension_numbers = #tpu.dot_dimension_numbers<[1], [0], [0], [1], [0, 0, 1, 1], [], []>} : vector<8x128xbf16>, vector<128x128xbf16>, vector<8x128xf32> -> vector<8x128xf32>
    %c0_46 = arith.constant 0 : index
    %c0_47 = arith.constant 0 : index
    %121 = vector.load %arg11[%c0_46, %c0_47] : memref<1x128xf32, #tpu.memory_space<vmem>>, vector<1x128xf32>
    %122 = vector.broadcast %121 : vector<1x128xf32> to vector<8x128xf32>
    %123 = arith.addf %120, %122 : vector<8x128xf32>
    %c0_48 = arith.constant 0 : index
    %c0_49 = arith.constant 0 : index
    %124 = vector.load %arg12[%c0_48, %c0_49] : memref<128x256xbf16, #tpu.memory_space<vmem>>, vector<128x256xbf16>
    %cst_50 = arith.constant dense<0.000000e+00> : vector<8x256xf32>
    %125 = tpu.matmul %3, %124, %cst_50 {dimension_numbers = #tpu.dot_dimension_numbers<[1], [0], [0], [1], [0, 0, 1, 1], [], []>} : vector<8x128xbf16>, vector<128x256xbf16>, vector<8x256xf32> -> vector<8x256xf32>
    %c0_51 = arith.constant 0 : index
    %c0_52 = arith.constant 0 : index
    %126 = vector.load %arg13[%c0_51, %c0_52] : memref<1x256xf32, #tpu.memory_space<vmem>>, vector<1x256xf32>
    %127 = vector.broadcast %126 : vector<1x256xf32> to vector<8x256xf32>
    %128 = arith.addf %125, %127 : vector<8x256xf32>
    %129 = vector.extract_strided_slice %128 {offsets = [0, 0], sizes = [8, 128], strides = [1, 1]} : vector<8x256xf32> to vector<8x128xf32>
    %130 = vector.extract_strided_slice %128 {offsets = [0, 128], sizes = [8, 128], strides = [1, 1]} : vector<8x256xf32> to vector<8x128xf32>
    %cst_53 = arith.constant 0.176776692 : f32
    %131 = vector.broadcast %cst_53 : f32 to vector<8x128xf32>
    %132 = arith.mulf %123, %131 : vector<8x128xf32>
    %133 = arith.truncf %132 : vector<8x128xf32> to vector<8x128xbf16>
    %134 = arith.truncf %129 : vector<8x128xf32> to vector<8x128xbf16>
    %135 = arith.truncf %130 : vector<8x128xf32> to vector<8x128xbf16>
    %136 = vector.extract_strided_slice %133 {offsets = [0, 0], sizes = [8, 32], strides = [1, 1]} : vector<8x128xbf16> to vector<8x32xbf16>
    %137 = vector.extract_strided_slice %134 {offsets = [0, 0], sizes = [8, 32], strides = [1, 1]} : vector<8x128xbf16> to vector<8x32xbf16>
    %cst_54 = arith.constant dense<0.000000e+00> : vector<8x8xf32>
    %138 = tpu.matmul %136, %137, %cst_54 {dimension_numbers = #tpu.dot_dimension_numbers<[1], [1], [0], [0], [0, 0, 1, 0], [], []>} : vector<8x32xbf16>, vector<8x32xbf16>, vector<8x8xf32> -> vector<8x8xf32>
    %cst_55 = arith.constant dense<0xFF800000> : vector<8xf32>
    %139 = vector.multi_reduction <maximumf>, %138, %cst_55 [1] : vector<8x8xf32> to vector<8xf32>
    %140 = vector.shape_cast %139 : vector<8xf32> to vector<8x1xf32>
    %141 = vector.broadcast %140 : vector<8x1xf32> to vector<8x8xf32>
    %142 = arith.subf %138, %141 : vector<8x8xf32>
    %143 = math.exp %142 : vector<8x8xf32>
    %cst_56 = arith.constant dense<0.000000e+00> : vector<8xf32>
    %144 = vector.multi_reduction <add>, %143, %cst_56 [1] : vector<8x8xf32> to vector<8xf32>
    %145 = vector.shape_cast %144 : vector<8xf32> to vector<8x1xf32>
    %146 = tpu.reciprocal %145 {approx = true} : vector<8x1xf32> -> vector<8x1xf32>
    %147 = vector.broadcast %146 : vector<8x1xf32> to vector<8x8xf32>
    %148 = arith.mulf %143, %147 : vector<8x8xf32>
    %149 = arith.truncf %148 : vector<8x8xf32> to vector<8x8xbf16>
    %150 = vector.extract_strided_slice %135 {offsets = [0, 0], sizes = [8, 32], strides = [1, 1]} : vector<8x128xbf16> to vector<8x32xbf16>
    %cst_57 = arith.constant dense<0.000000e+00> : vector<8x32xf32>
    %151 = tpu.matmul %149, %150, %cst_57 {dimension_numbers = #tpu.dot_dimension_numbers<[1], [0], [0], [1], [0, 0, 1, 1], [], []>} : vector<8x8xbf16>, vector<8x32xbf16>, vector<8x32xf32> -> vector<8x32xf32>
    %152 = vector.extract_strided_slice %133 {offsets = [0, 32], sizes = [8, 32], strides = [1, 1]} : vector<8x128xbf16> to vector<8x32xbf16>
    %153 = vector.extract_strided_slice %134 {offsets = [0, 32], sizes = [8, 32], strides = [1, 1]} : vector<8x128xbf16> to vector<8x32xbf16>
    %cst_58 = arith.constant dense<0.000000e+00> : vector<8x8xf32>
    %154 = tpu.matmul %152, %153, %cst_58 {dimension_numbers = #tpu.dot_dimension_numbers<[1], [1], [0], [0], [0, 0, 1, 0], [], []>} : vector<8x32xbf16>, vector<8x32xbf16>, vector<8x8xf32> -> vector<8x8xf32>
    %cst_59 = arith.constant dense<0xFF800000> : vector<8xf32>
    %155 = vector.multi_reduction <maximumf>, %154, %cst_59 [1] : vector<8x8xf32> to vector<8xf32>
    %156 = vector.shape_cast %155 : vector<8xf32> to vector<8x1xf32>
    %157 = vector.broadcast %156 : vector<8x1xf32> to vector<8x8xf32>
    %158 = arith.subf %154, %157 : vector<8x8xf32>
    %159 = math.exp %158 : vector<8x8xf32>
    %cst_60 = arith.constant dense<0.000000e+00> : vector<8xf32>
    %160 = vector.multi_reduction <add>, %159, %cst_60 [1] : vector<8x8xf32> to vector<8xf32>
    %161 = vector.shape_cast %160 : vector<8xf32> to vector<8x1xf32>
    %162 = tpu.reciprocal %161 {approx = true} : vector<8x1xf32> -> vector<8x1xf32>
    %163 = vector.broadcast %162 : vector<8x1xf32> to vector<8x8xf32>
    %164 = arith.mulf %159, %163 : vector<8x8xf32>
    %165 = arith.truncf %164 : vector<8x8xf32> to vector<8x8xbf16>
    %166 = vector.extract_strided_slice %135 {offsets = [0, 32], sizes = [8, 32], strides = [1, 1]} : vector<8x128xbf16> to vector<8x32xbf16>
    %cst_61 = arith.constant dense<0.000000e+00> : vector<8x32xf32>
    %167 = tpu.matmul %165, %166, %cst_61 {dimension_numbers = #tpu.dot_dimension_numbers<[1], [0], [0], [1], [0, 0, 1, 1], [], []>} : vector<8x8xbf16>, vector<8x32xbf16>, vector<8x32xf32> -> vector<8x32xf32>
    %168 = vector.extract_strided_slice %133 {offsets = [0, 64], sizes = [8, 32], strides = [1, 1]} : vector<8x128xbf16> to vector<8x32xbf16>
    %169 = vector.extract_strided_slice %134 {offsets = [0, 64], sizes = [8, 32], strides = [1, 1]} : vector<8x128xbf16> to vector<8x32xbf16>
    %cst_62 = arith.constant dense<0.000000e+00> : vector<8x8xf32>
    %170 = tpu.matmul %168, %169, %cst_62 {dimension_numbers = #tpu.dot_dimension_numbers<[1], [1], [0], [0], [0, 0, 1, 0], [], []>} : vector<8x32xbf16>, vector<8x32xbf16>, vector<8x8xf32> -> vector<8x8xf32>
    %cst_63 = arith.constant dense<0xFF800000> : vector<8xf32>
    %171 = vector.multi_reduction <maximumf>, %170, %cst_63 [1] : vector<8x8xf32> to vector<8xf32>
    %172 = vector.shape_cast %171 : vector<8xf32> to vector<8x1xf32>
    %173 = vector.broadcast %172 : vector<8x1xf32> to vector<8x8xf32>
    %174 = arith.subf %170, %173 : vector<8x8xf32>
    %175 = math.exp %174 : vector<8x8xf32>
    %cst_64 = arith.constant dense<0.000000e+00> : vector<8xf32>
    %176 = vector.multi_reduction <add>, %175, %cst_64 [1] : vector<8x8xf32> to vector<8xf32>
    %177 = vector.shape_cast %176 : vector<8xf32> to vector<8x1xf32>
    %178 = tpu.reciprocal %177 {approx = true} : vector<8x1xf32> -> vector<8x1xf32>
    %179 = vector.broadcast %178 : vector<8x1xf32> to vector<8x8xf32>
    %180 = arith.mulf %175, %179 : vector<8x8xf32>
    %181 = arith.truncf %180 : vector<8x8xf32> to vector<8x8xbf16>
    %182 = vector.extract_strided_slice %135 {offsets = [0, 64], sizes = [8, 32], strides = [1, 1]} : vector<8x128xbf16> to vector<8x32xbf16>
    %cst_65 = arith.constant dense<0.000000e+00> : vector<8x32xf32>
    %183 = tpu.matmul %181, %182, %cst_65 {dimension_numbers = #tpu.dot_dimension_numbers<[1], [0], [0], [1], [0, 0, 1, 1], [], []>} : vector<8x8xbf16>, vector<8x32xbf16>, vector<8x32xf32> -> vector<8x32xf32>
    %184 = vector.extract_strided_slice %133 {offsets = [0, 96], sizes = [8, 32], strides = [1, 1]} : vector<8x128xbf16> to vector<8x32xbf16>
    %185 = vector.extract_strided_slice %134 {offsets = [0, 96], sizes = [8, 32], strides = [1, 1]} : vector<8x128xbf16> to vector<8x32xbf16>
    %cst_66 = arith.constant dense<0.000000e+00> : vector<8x8xf32>
    %186 = tpu.matmul %184, %185, %cst_66 {dimension_numbers = #tpu.dot_dimension_numbers<[1], [1], [0], [0], [0, 0, 1, 0], [], []>} : vector<8x32xbf16>, vector<8x32xbf16>, vector<8x8xf32> -> vector<8x8xf32>
    %cst_67 = arith.constant dense<0xFF800000> : vector<8xf32>
    %187 = vector.multi_reduction <maximumf>, %186, %cst_67 [1] : vector<8x8xf32> to vector<8xf32>
    %188 = vector.shape_cast %187 : vector<8xf32> to vector<8x1xf32>
    %189 = vector.broadcast %188 : vector<8x1xf32> to vector<8x8xf32>
    %190 = arith.subf %186, %189 : vector<8x8xf32>
    %191 = math.exp %190 : vector<8x8xf32>
    %cst_68 = arith.constant dense<0.000000e+00> : vector<8xf32>
    %192 = vector.multi_reduction <add>, %191, %cst_68 [1] : vector<8x8xf32> to vector<8xf32>
    %193 = vector.shape_cast %192 : vector<8xf32> to vector<8x1xf32>
    %194 = tpu.reciprocal %193 {approx = true} : vector<8x1xf32> -> vector<8x1xf32>
    %195 = vector.broadcast %194 : vector<8x1xf32> to vector<8x8xf32>
    %196 = arith.mulf %191, %195 : vector<8x8xf32>
    %197 = arith.truncf %196 : vector<8x8xf32> to vector<8x8xbf16>
    %198 = vector.extract_strided_slice %135 {offsets = [0, 96], sizes = [8, 32], strides = [1, 1]} : vector<8x128xbf16> to vector<8x32xbf16>
    %cst_69 = arith.constant dense<0.000000e+00> : vector<8x32xf32>
    %199 = tpu.matmul %197, %198, %cst_69 {dimension_numbers = #tpu.dot_dimension_numbers<[1], [0], [0], [1], [0, 0, 1, 1], [], []>} : vector<8x8xbf16>, vector<8x32xbf16>, vector<8x32xf32> -> vector<8x32xf32>
    %200 = tpu.concatenate %151, %167, %183, %199 in 1 : vector<8x32xf32>, vector<8x32xf32>, vector<8x32xf32>, vector<8x32xf32> -> vector<8x128xf32>
    %201 = arith.truncf %200 : vector<8x128xf32> to vector<8x128xbf16>
    %c0_70 = arith.constant 0 : index
    %c0_71 = arith.constant 0 : index
    %202 = vector.load %arg14[%c0_70, %c0_71] : memref<128x128xbf16, #tpu.memory_space<vmem>>, vector<128x128xbf16>
    %cst_72 = arith.constant dense<0.000000e+00> : vector<8x128xf32>
    %203 = tpu.matmul %201, %202, %cst_72 {dimension_numbers = #tpu.dot_dimension_numbers<[1], [0], [0], [1], [0, 0, 1, 1], [], []>} : vector<8x128xbf16>, vector<128x128xbf16>, vector<8x128xf32> -> vector<8x128xf32>
    %c0_73 = arith.constant 0 : index
    %c0_74 = arith.constant 0 : index
    %204 = vector.load %arg15[%c0_73, %c0_74] : memref<1x128xf32, #tpu.memory_space<vmem>>, vector<1x128xf32>
    %205 = vector.broadcast %204 : vector<1x128xf32> to vector<8x128xf32>
    %206 = arith.addf %203, %205 : vector<8x128xf32>
    %207 = arith.addf %117, %206 : vector<8x128xf32>
    %c0_75 = arith.constant 0 : index
    %c0_76 = arith.constant 0 : index
    %208 = vector.load %arg16[%c0_75, %c0_76] : memref<1x128xf32, #tpu.memory_space<vmem>>, vector<1x128xf32>
    %c0_77 = arith.constant 0 : index
    %c0_78 = arith.constant 0 : index
    %209 = vector.load %arg17[%c0_77, %c0_78] : memref<1x128xf32, #tpu.memory_space<vmem>>, vector<1x128xf32>
    %cst_79 = arith.constant dense<0.000000e+00> : vector<8xf32>
    %210 = vector.multi_reduction <add>, %207, %cst_79 [1] : vector<8x128xf32> to vector<8xf32>
    %211 = vector.shape_cast %210 : vector<8xf32> to vector<8x1xf32>
    %cst_80 = arith.constant 1.280000e+02 : f32
    %212 = vector.broadcast %cst_80 : f32 to vector<8x1xf32>
    %213 = arith.divf %211, %212 : vector<8x1xf32>
    %214 = vector.broadcast %213 : vector<8x1xf32> to vector<8x128xf32>
    %215 = arith.subf %207, %214 : vector<8x128xf32>
    %216 = arith.mulf %215, %215 : vector<8x128xf32>
    %cst_81 = arith.constant dense<0.000000e+00> : vector<8xf32>
    %217 = vector.multi_reduction <add>, %216, %cst_81 [1] : vector<8x128xf32> to vector<8xf32>
    %218 = vector.shape_cast %217 : vector<8xf32> to vector<8x1xf32>
    %cst_82 = arith.constant 1.280000e+02 : f32
    %219 = vector.broadcast %cst_82 : f32 to vector<8x1xf32>
    %220 = arith.divf %218, %219 : vector<8x1xf32>
    %cst_83 = arith.constant 9.99999974E-6 : f32
    %221 = vector.broadcast %cst_83 : f32 to vector<8x1xf32>
    %222 = arith.addf %220, %221 : vector<8x1xf32>
    %223 = math.rsqrt %222 : vector<8x1xf32>
    %224 = vector.broadcast %223 : vector<8x1xf32> to vector<8x128xf32>
    %225 = arith.mulf %215, %224 : vector<8x128xf32>
    %226 = vector.broadcast %208 : vector<1x128xf32> to vector<8x128xf32>
    %227 = arith.mulf %225, %226 : vector<8x128xf32>
    %228 = vector.broadcast %209 : vector<1x128xf32> to vector<8x128xf32>
    %229 = arith.addf %227, %228 : vector<8x128xf32>
    %230 = arith.truncf %229 : vector<8x128xf32> to vector<8x128xbf16>
    %c0_84 = arith.constant 0 : index
    %c0_85 = arith.constant 0 : index
    %231 = vector.load %arg18[%c0_84, %c0_85] : memref<128x256xbf16, #tpu.memory_space<vmem>>, vector<128x256xbf16>
    %cst_86 = arith.constant dense<0.000000e+00> : vector<8x256xf32>
    %232 = tpu.matmul %230, %231, %cst_86 {dimension_numbers = #tpu.dot_dimension_numbers<[1], [0], [0], [1], [0, 0, 1, 1], [], []>} : vector<8x128xbf16>, vector<128x256xbf16>, vector<8x256xf32> -> vector<8x256xf32>
    %c0_87 = arith.constant 0 : index
    %c0_88 = arith.constant 0 : index
    %233 = vector.load %arg19[%c0_87, %c0_88] : memref<1x256xf32, #tpu.memory_space<vmem>>, vector<1x256xf32>
    %234 = vector.broadcast %233 : vector<1x256xf32> to vector<8x256xf32>
    %235 = arith.addf %232, %234 : vector<8x256xf32>
    %cst_89 = arith.constant 0.000000e+00 : f32
    %236 = vector.broadcast %cst_89 : f32 to vector<8x256xf32>
    %237 = arith.maximumf %235, %236 : vector<8x256xf32>
    %238 = arith.truncf %237 : vector<8x256xf32> to vector<8x256xbf16>
    %c0_90 = arith.constant 0 : index
    %c0_91 = arith.constant 0 : index
    %239 = vector.load %arg20[%c0_90, %c0_91] : memref<256x128xbf16, #tpu.memory_space<vmem>>, vector<256x128xbf16>
    %cst_92 = arith.constant dense<0.000000e+00> : vector<8x128xf32>
    %240 = tpu.matmul %238, %239, %cst_92 {dimension_numbers = #tpu.dot_dimension_numbers<[1], [0], [0], [1], [0, 0, 1, 1], [], []>} : vector<8x256xbf16>, vector<256x128xbf16>, vector<8x128xf32> -> vector<8x128xf32>
    %c0_93 = arith.constant 0 : index
    %c0_94 = arith.constant 0 : index
    %241 = vector.load %arg21[%c0_93, %c0_94] : memref<1x128xf32, #tpu.memory_space<vmem>>, vector<1x128xf32>
    %242 = vector.broadcast %241 : vector<1x128xf32> to vector<8x128xf32>
    %243 = arith.addf %240, %242 : vector<8x128xf32>
    %244 = arith.addf %229, %243 : vector<8x128xf32>
    %c0_95 = arith.constant 0 : index
    %c0_96 = arith.constant 0 : index
    %245 = vector.load %arg22[%c0_95, %c0_96] : memref<1x128xf32, #tpu.memory_space<vmem>>, vector<1x128xf32>
    %c0_97 = arith.constant 0 : index
    %c0_98 = arith.constant 0 : index
    %246 = vector.load %arg23[%c0_97, %c0_98] : memref<1x128xf32, #tpu.memory_space<vmem>>, vector<1x128xf32>
    %cst_99 = arith.constant dense<0.000000e+00> : vector<8xf32>
    %247 = vector.multi_reduction <add>, %244, %cst_99 [1] : vector<8x128xf32> to vector<8xf32>
    %248 = vector.shape_cast %247 : vector<8xf32> to vector<8x1xf32>
    %cst_100 = arith.constant 1.280000e+02 : f32
    %249 = vector.broadcast %cst_100 : f32 to vector<8x1xf32>
    %250 = arith.divf %248, %249 : vector<8x1xf32>
    %251 = vector.broadcast %250 : vector<8x1xf32> to vector<8x128xf32>
    %252 = arith.subf %244, %251 : vector<8x128xf32>
    %253 = arith.mulf %252, %252 : vector<8x128xf32>
    %cst_101 = arith.constant dense<0.000000e+00> : vector<8xf32>
    %254 = vector.multi_reduction <add>, %253, %cst_101 [1] : vector<8x128xf32> to vector<8xf32>
    %255 = vector.shape_cast %254 : vector<8xf32> to vector<8x1xf32>
    %cst_102 = arith.constant 1.280000e+02 : f32
    %256 = vector.broadcast %cst_102 : f32 to vector<8x1xf32>
    %257 = arith.divf %255, %256 : vector<8x1xf32>
    %cst_103 = arith.constant 9.99999974E-6 : f32
    %258 = vector.broadcast %cst_103 : f32 to vector<8x1xf32>
    %259 = arith.addf %257, %258 : vector<8x1xf32>
    %260 = math.rsqrt %259 : vector<8x1xf32>
    %261 = vector.broadcast %260 : vector<8x1xf32> to vector<8x128xf32>
    %262 = arith.mulf %252, %261 : vector<8x128xf32>
    %263 = vector.broadcast %245 : vector<1x128xf32> to vector<8x128xf32>
    %264 = arith.mulf %262, %263 : vector<8x128xf32>
    %265 = vector.broadcast %246 : vector<1x128xf32> to vector<8x128xf32>
    %266 = arith.addf %264, %265 : vector<8x128xf32>
    %267 = arith.truncf %266 : vector<8x128xf32> to vector<8x128xbf16>
    %c0_104 = arith.constant 0 : index
    %c0_105 = arith.constant 0 : index
    %c0_106 = arith.constant 0 : index
    %268 = vector.load %arg24[%c0_104, %c0_105, %c0_106] : memref<1x8x128xbf16, #tpu.memory_space<vmem>>, vector<1x8x128xbf16>
    %269 = vector.shape_cast %268 : vector<1x8x128xbf16> to vector<8x128xbf16>
    %270 = vector.shape_cast %267 : vector<8x128xbf16> to vector<1x8x128xbf16>
    tpu.vector_store %arg24[%c0_104, %c0_105, %c0_106], %270 {strides = array<i32>} : memref<1x8x128xbf16, #tpu.memory_space<vmem>>, vector<1x8x128xbf16>,
    return
  }
  func.func @transform_0(%arg0: i32) -> (i32, i32, i32) {
    %c0_i32 = arith.constant 0 : i32
    %c0_i32_0 = arith.constant 0 : i32
    %c0_i32_1 = arith.constant 0 : i32
    return %arg0, %c0_i32, %c0_i32_0 : i32, i32, i32
  }
  func.func @transform_1(%arg0: i32) -> (i32, i32, i32) {
    %c0_i32 = arith.constant 0 : i32
    %c0_i32_0 = arith.constant 0 : i32
    %c0_i32_1 = arith.constant 0 : i32
    return %arg0, %c0_i32, %c0_i32_0 : i32, i32, i32
  }
  func.func @transform_2(%arg0: i32) -> (i32, i32, i32) {
    %c0_i32 = arith.constant 0 : i32
    %c0_i32_0 = arith.constant 0 : i32
    %c0_i32_1 = arith.constant 0 : i32
    return %arg0, %c0_i32, %c0_i32_0 : i32, i32, i32
  }
  func.func @transform_3(%arg0: i32) -> (i32, i32) {
    %c0_i32 = arith.constant 0 : i32
    %c0_i32_0 = arith.constant 0 : i32
    %c0_i32_1 = arith.constant 0 : i32
    return %c0_i32, %c0_i32_0 : i32, i32
  }
  func.func @transform_4(%arg0: i32) -> (i32, i32) {
    %c0_i32 = arith.constant 0 : i32
    %c0_i32_0 = arith.constant 0 : i32
    %c0_i32_1 = arith.constant 0 : i32
    return %c0_i32, %c0_i32_0 : i32, i32
  }
  func.func @transform_5(%arg0: i32) -> (i32, i32) {
    %c0_i32 = arith.constant 0 : i32
    %c0_i32_0 = arith.constant 0 : i32
    %c0_i32_1 = arith.constant 0 : i32
    return %c0_i32, %c0_i32_0 : i32, i32
  }
  func.func @transform_6(%arg0: i32) -> (i32, i32) {
    %c0_i32 = arith.constant 0 : i32
    %c0_i32_0 = arith.constant 0 : i32
    %c0_i32_1 = arith.constant 0 : i32
    return %c0_i32, %c0_i32_0 : i32, i32
  }
  func.func @transform_7(%arg0: i32) -> (i32, i32) {
    %c0_i32 = arith.constant 0 : i32
    %c0_i32_0 = arith.constant 0 : i32
    %c0_i32_1 = arith.constant 0 : i32
    return %c0_i32, %c0_i32_0 : i32, i32
  }
  func.func @transform_8(%arg0: i32) -> (i32, i32) {
    %c0_i32 = arith.constant 0 : i32
    %c0_i32_0 = arith.constant 0 : i32
    %c0_i32_1 = arith.constant 0 : i32
    return %c0_i32, %c0_i32_0 : i32, i32
  }
  func.func @transform_9(%arg0: i32) -> (i32, i32) {
    %c0_i32 = arith.constant 0 : i32
    %c0_i32_0 = arith.constant 0 : i32
    %c0_i32_1 = arith.constant 0 : i32
    return %c0_i32, %c0_i32_0 : i32, i32
  }
  func.func @transform_10(%arg0: i32) -> (i32, i32) {
    %c0_i32 = arith.constant 0 : i32
    %c0_i32_0 = arith.constant 0 : i32
    %c0_i32_1 = arith.constant 0 : i32
    return %c0_i32, %c0_i32_0 : i32, i32
  }
  func.func @transform_11(%arg0: i32) -> (i32, i32) {
    %c0_i32 = arith.constant 0 : i32
    %c0_i32_0 = arith.constant 0 : i32
    %c0_i32_1 = arith.constant 0 : i32
    return %c0_i32, %c0_i32_0 : i32, i32
  }
  func.func @transform_12(%arg0: i32) -> (i32, i32) {
    %c0_i32 = arith.constant 0 : i32
    %c0_i32_0 = arith.constant 0 : i32
    %c0_i32_1 = arith.constant 0 : i32
    return %c0_i32, %c0_i32_0 : i32, i32
  }
  func.func @transform_13(%arg0: i32) -> (i32, i32) {
    %c0_i32 = arith.constant 0 : i32
    %c0_i32_0 = arith.constant 0 : i32
    %c0_i32_1 = arith.constant 0 : i32
    return %c0_i32, %c0_i32_0 : i32, i32
  }
  func.func @transform_14(%arg0: i32) -> (i32, i32) {
    %c0_i32 = arith.constant 0 : i32
    %c0_i32_0 = arith.constant 0 : i32
    %c0_i32_1 = arith.constant 0 : i32
    return %c0_i32, %c0_i32_0 : i32, i32
  }
  func.func @transform_15(%arg0: i32) -> (i32, i32) {
    %c0_i32 = arith.constant 0 : i32
    %c0_i32_0 = arith.constant 0 : i32
    %c0_i32_1 = arith.constant 0 : i32
    return %c0_i32, %c0_i32_0 : i32, i32
  }
  func.func @transform_16(%arg0: i32) -> (i32, i32) {
    %c0_i32 = arith.constant 0 : i32
    %c0_i32_0 = arith.constant 0 : i32
    %c0_i32_1 = arith.constant 0 : i32
    return %c0_i32, %c0_i32_0 : i32, i32
  }
  func.func @transform_17(%arg0: i32) -> (i32, i32) {
    %c0_i32 = arith.constant 0 : i32
    %c0_i32_0 = arith.constant 0 : i32
    %c0_i32_1 = arith.constant 0 : i32
    return %c0_i32, %c0_i32_0 : i32, i32
  }
  func.func @transform_18(%arg0: i32) -> (i32, i32) {
    %c0_i32 = arith.constant 0 : i32
    %c0_i32_0 = arith.constant 0 : i32
    %c0_i32_1 = arith.constant 0 : i32
    return %c0_i32, %c0_i32_0 : i32, i32
  }
  func.func @transform_19(%arg0: i32) -> (i32, i32) {
    %c0_i32 = arith.constant 0 : i32
    %c0_i32_0 = arith.constant 0 : i32
    %c0_i32_1 = arith.constant 0 : i32
    return %c0_i32, %c0_i32_0 : i32, i32
  }
  func.func @transform_20(%arg0: i32) -> (i32, i32) {
    %c0_i32 = arith.constant 0 : i32
    %c0_i32_0 = arith.constant 0 : i32
    %c0_i32_1 = arith.constant 0 : i32
    return %c0_i32, %c0_i32_0 : i32, i32
  }
  func.func @transform_21(%arg0: i32) -> (i32, i32) {
    %c0_i32 = arith.constant 0 : i32
    %c0_i32_0 = arith.constant 0 : i32
    %c0_i32_1 = arith.constant 0 : i32
    return %c0_i32, %c0_i32_0 : i32, i32
  }
  func.func @transform_22(%arg0: i32) -> (i32, i32) {
    %c0_i32 = arith.constant 0 : i32
    %c0_i32_0 = arith.constant 0 : i32
    %c0_i32_1 = arith.constant 0 : i32
    return %c0_i32, %c0_i32_0 : i32, i32
  }
  func.func @transform_23(%arg0: i32) -> (i32, i32, i32) {
    %c0_i32 = arith.constant 0 : i32
    %c0_i32_0 = arith.constant 0 : i32
    %c0_i32_1 = arith.constant 0 : i32
    return %arg0, %c0_i32, %c0_i32_0 : i32, i32, i32
  }
}

module attributes {stable_mosaic.version = 11 : i64} {
  func.func @_encoder_layer_kernel(%arg0: i32, %arg1: memref<1x8x128xbf16, #tpu.memory_space<vmem>>, %arg2: memref<128x384xbf16, #tpu.memory_space<vmem>>, %arg3: memref<1x384xf32, #tpu.memory_space<vmem>>, %arg4: memref<128x128xbf16, #tpu.memory_space<vmem>>, %arg5: memref<1x128xf32, #tpu.memory_space<vmem>>, %arg6: memref<1x128xf32, #tpu.memory_space<vmem>>, %arg7: memref<1x128xf32, #tpu.memory_space<vmem>>, %arg8: memref<128x256xbf16, #tpu.memory_space<vmem>>, %arg9: memref<1x256xf32, #tpu.memory_space<vmem>>, %arg10: memref<256x128xbf16, #tpu.memory_space<vmem>>, %arg11: memref<1x128xf32, #tpu.memory_space<vmem>>, %arg12: memref<1x128xf32, #tpu.memory_space<vmem>>, %arg13: memref<1x128xf32, #tpu.memory_space<vmem>>, %arg14: memref<1x8x128xbf16, #tpu.memory_space<vmem>>) attributes {dimension_semantics = [#tpu.dimension_semantics<parallel>], iteration_bounds = array<i64: 2>, scalar_prefetch = 0 : i64, scratch_operands = 0 : i64, tpu.core_type = #tpu.core_type<tc>, window_params = [{transform_indices = @transform_0, window_bounds = array<i64: 1, 8, 128>}, {pipeline_mode = #tpu.pipeline_mode<synchronous>, transform_indices = @transform_1, window_bounds = array<i64: 128, 384>}, {pipeline_mode = #tpu.pipeline_mode<synchronous>, transform_indices = @transform_2, window_bounds = array<i64: 1, 384>}, {pipeline_mode = #tpu.pipeline_mode<synchronous>, transform_indices = @transform_3, window_bounds = array<i64: 128, 128>}, {pipeline_mode = #tpu.pipeline_mode<synchronous>, transform_indices = @transform_4, window_bounds = array<i64: 1, 128>}, {pipeline_mode = #tpu.pipeline_mode<synchronous>, transform_indices = @transform_5, window_bounds = array<i64: 1, 128>}, {pipeline_mode = #tpu.pipeline_mode<synchronous>, transform_indices = @transform_6, window_bounds = array<i64: 1, 128>}, {pipeline_mode = #tpu.pipeline_mode<synchronous>, transform_indices = @transform_7, window_bounds = array<i64: 128, 256>}, {pipeline_mode = #tpu.pipeline_mode<synchronous>, transform_indices = @transform_8, window_bounds = array<i64: 1, 256>}, {pipeline_mode = #tpu.pipeline_mode<synchronous>, transform_indices = @transform_9, window_bounds = array<i64: 256, 128>}, {pipeline_mode = #tpu.pipeline_mode<synchronous>, transform_indices = @transform_10, window_bounds = array<i64: 1, 128>}, {pipeline_mode = #tpu.pipeline_mode<synchronous>, transform_indices = @transform_11, window_bounds = array<i64: 1, 128>}, {pipeline_mode = #tpu.pipeline_mode<synchronous>, transform_indices = @transform_12, window_bounds = array<i64: 1, 128>}, {transform_indices = @transform_13, window_bounds = array<i64: 1, 8, 128>}]} {
    %c0 = arith.constant 0 : index
    %c0_0 = arith.constant 0 : index
    %c0_1 = arith.constant 0 : index
    %0 = vector.load %arg1[%c0, %c0_0, %c0_1] : memref<1x8x128xbf16, #tpu.memory_space<vmem>>, vector<1x8x128xbf16>
    %1 = vector.shape_cast %0 : vector<1x8x128xbf16> to vector<8x128xbf16>
    %2 = arith.extf %1 : vector<8x128xbf16> to vector<8x128xf32>
    %c0_2 = arith.constant 0 : index
    %c0_3 = arith.constant 0 : index
    %3 = vector.load %arg2[%c0_2, %c0_3] : memref<128x384xbf16, #tpu.memory_space<vmem>>, vector<128x384xbf16>
    %cst = arith.constant dense<0.000000e+00> : vector<8x384xf32>
    %4 = tpu.matmul %1, %3, %cst {dimension_numbers = #tpu.dot_dimension_numbers<[1], [0], [0], [1], [0, 0, 1, 1], [], []>} : vector<8x128xbf16>, vector<128x384xbf16>, vector<8x384xf32> -> vector<8x384xf32>
    %c0_4 = arith.constant 0 : index
    %c0_5 = arith.constant 0 : index
    %5 = vector.load %arg3[%c0_4, %c0_5] : memref<1x384xf32, #tpu.memory_space<vmem>>, vector<1x384xf32>
    %6 = vector.broadcast %5 : vector<1x384xf32> to vector<8x384xf32>
    %7 = arith.addf %4, %6 : vector<8x384xf32>
    %8 = vector.extract_strided_slice %7 {offsets = [0, 0], sizes = [8, 128], strides = [1, 1]} : vector<8x384xf32> to vector<8x128xf32>
    %9 = vector.extract_strided_slice %7 {offsets = [0, 128], sizes = [8, 128], strides = [1, 1]} : vector<8x384xf32> to vector<8x128xf32>
    %10 = vector.extract_strided_slice %7 {offsets = [0, 256], sizes = [8, 128], strides = [1, 1]} : vector<8x384xf32> to vector<8x128xf32>
    %cst_6 = arith.constant 0.176776692 : f32
    %11 = vector.broadcast %cst_6 : f32 to vector<8x128xf32>
    %12 = arith.mulf %8, %11 : vector<8x128xf32>
    %13 = arith.truncf %12 : vector<8x128xf32> to vector<8x128xbf16>
    %14 = arith.truncf %9 : vector<8x128xf32> to vector<8x128xbf16>
    %15 = arith.truncf %10 : vector<8x128xf32> to vector<8x128xbf16>
    %16 = vector.extract_strided_slice %13 {offsets = [0, 0], sizes = [8, 32], strides = [1, 1]} : vector<8x128xbf16> to vector<8x32xbf16>
    %17 = vector.extract_strided_slice %14 {offsets = [0, 0], sizes = [8, 32], strides = [1, 1]} : vector<8x128xbf16> to vector<8x32xbf16>
    %cst_7 = arith.constant dense<0.000000e+00> : vector<8x8xf32>
    %18 = tpu.matmul %16, %17, %cst_7 {dimension_numbers = #tpu.dot_dimension_numbers<[1], [1], [0], [0], [0, 0, 1, 0], [], []>} : vector<8x32xbf16>, vector<8x32xbf16>, vector<8x8xf32> -> vector<8x8xf32>
    %cst_8 = arith.constant dense<0xFF800000> : vector<8xf32>
    %19 = vector.multi_reduction <maximumf>, %18, %cst_8 [1] : vector<8x8xf32> to vector<8xf32>
    %20 = vector.shape_cast %19 : vector<8xf32> to vector<8x1xf32>
    %21 = vector.broadcast %20 : vector<8x1xf32> to vector<8x8xf32>
    %22 = arith.subf %18, %21 : vector<8x8xf32>
    %23 = math.exp %22 : vector<8x8xf32>
    %cst_9 = arith.constant dense<0.000000e+00> : vector<8xf32>
    %24 = vector.multi_reduction <add>, %23, %cst_9 [1] : vector<8x8xf32> to vector<8xf32>
    %25 = vector.shape_cast %24 : vector<8xf32> to vector<8x1xf32>
    %26 = tpu.reciprocal %25 {approx = true} : vector<8x1xf32> -> vector<8x1xf32>
    %27 = vector.broadcast %26 : vector<8x1xf32> to vector<8x8xf32>
    %28 = arith.mulf %23, %27 : vector<8x8xf32>
    %29 = arith.truncf %28 : vector<8x8xf32> to vector<8x8xbf16>
    %30 = vector.extract_strided_slice %15 {offsets = [0, 0], sizes = [8, 32], strides = [1, 1]} : vector<8x128xbf16> to vector<8x32xbf16>
    %cst_10 = arith.constant dense<0.000000e+00> : vector<8x32xf32>
    %31 = tpu.matmul %29, %30, %cst_10 {dimension_numbers = #tpu.dot_dimension_numbers<[1], [0], [0], [1], [0, 0, 1, 1], [], []>} : vector<8x8xbf16>, vector<8x32xbf16>, vector<8x32xf32> -> vector<8x32xf32>
    %32 = vector.extract_strided_slice %13 {offsets = [0, 32], sizes = [8, 32], strides = [1, 1]} : vector<8x128xbf16> to vector<8x32xbf16>
    %33 = vector.extract_strided_slice %14 {offsets = [0, 32], sizes = [8, 32], strides = [1, 1]} : vector<8x128xbf16> to vector<8x32xbf16>
    %cst_11 = arith.constant dense<0.000000e+00> : vector<8x8xf32>
    %34 = tpu.matmul %32, %33, %cst_11 {dimension_numbers = #tpu.dot_dimension_numbers<[1], [1], [0], [0], [0, 0, 1, 0], [], []>} : vector<8x32xbf16>, vector<8x32xbf16>, vector<8x8xf32> -> vector<8x8xf32>
    %cst_12 = arith.constant dense<0xFF800000> : vector<8xf32>
    %35 = vector.multi_reduction <maximumf>, %34, %cst_12 [1] : vector<8x8xf32> to vector<8xf32>
    %36 = vector.shape_cast %35 : vector<8xf32> to vector<8x1xf32>
    %37 = vector.broadcast %36 : vector<8x1xf32> to vector<8x8xf32>
    %38 = arith.subf %34, %37 : vector<8x8xf32>
    %39 = math.exp %38 : vector<8x8xf32>
    %cst_13 = arith.constant dense<0.000000e+00> : vector<8xf32>
    %40 = vector.multi_reduction <add>, %39, %cst_13 [1] : vector<8x8xf32> to vector<8xf32>
    %41 = vector.shape_cast %40 : vector<8xf32> to vector<8x1xf32>
    %42 = tpu.reciprocal %41 {approx = true} : vector<8x1xf32> -> vector<8x1xf32>
    %43 = vector.broadcast %42 : vector<8x1xf32> to vector<8x8xf32>
    %44 = arith.mulf %39, %43 : vector<8x8xf32>
    %45 = arith.truncf %44 : vector<8x8xf32> to vector<8x8xbf16>
    %46 = vector.extract_strided_slice %15 {offsets = [0, 32], sizes = [8, 32], strides = [1, 1]} : vector<8x128xbf16> to vector<8x32xbf16>
    %cst_14 = arith.constant dense<0.000000e+00> : vector<8x32xf32>
    %47 = tpu.matmul %45, %46, %cst_14 {dimension_numbers = #tpu.dot_dimension_numbers<[1], [0], [0], [1], [0, 0, 1, 1], [], []>} : vector<8x8xbf16>, vector<8x32xbf16>, vector<8x32xf32> -> vector<8x32xf32>
    %48 = vector.extract_strided_slice %13 {offsets = [0, 64], sizes = [8, 32], strides = [1, 1]} : vector<8x128xbf16> to vector<8x32xbf16>
    %49 = vector.extract_strided_slice %14 {offsets = [0, 64], sizes = [8, 32], strides = [1, 1]} : vector<8x128xbf16> to vector<8x32xbf16>
    %cst_15 = arith.constant dense<0.000000e+00> : vector<8x8xf32>
    %50 = tpu.matmul %48, %49, %cst_15 {dimension_numbers = #tpu.dot_dimension_numbers<[1], [1], [0], [0], [0, 0, 1, 0], [], []>} : vector<8x32xbf16>, vector<8x32xbf16>, vector<8x8xf32> -> vector<8x8xf32>
    %cst_16 = arith.constant dense<0xFF800000> : vector<8xf32>
    %51 = vector.multi_reduction <maximumf>, %50, %cst_16 [1] : vector<8x8xf32> to vector<8xf32>
    %52 = vector.shape_cast %51 : vector<8xf32> to vector<8x1xf32>
    %53 = vector.broadcast %52 : vector<8x1xf32> to vector<8x8xf32>
    %54 = arith.subf %50, %53 : vector<8x8xf32>
    %55 = math.exp %54 : vector<8x8xf32>
    %cst_17 = arith.constant dense<0.000000e+00> : vector<8xf32>
    %56 = vector.multi_reduction <add>, %55, %cst_17 [1] : vector<8x8xf32> to vector<8xf32>
    %57 = vector.shape_cast %56 : vector<8xf32> to vector<8x1xf32>
    %58 = tpu.reciprocal %57 {approx = true} : vector<8x1xf32> -> vector<8x1xf32>
    %59 = vector.broadcast %58 : vector<8x1xf32> to vector<8x8xf32>
    %60 = arith.mulf %55, %59 : vector<8x8xf32>
    %61 = arith.truncf %60 : vector<8x8xf32> to vector<8x8xbf16>
    %62 = vector.extract_strided_slice %15 {offsets = [0, 64], sizes = [8, 32], strides = [1, 1]} : vector<8x128xbf16> to vector<8x32xbf16>
    %cst_18 = arith.constant dense<0.000000e+00> : vector<8x32xf32>
    %63 = tpu.matmul %61, %62, %cst_18 {dimension_numbers = #tpu.dot_dimension_numbers<[1], [0], [0], [1], [0, 0, 1, 1], [], []>} : vector<8x8xbf16>, vector<8x32xbf16>, vector<8x32xf32> -> vector<8x32xf32>
    %64 = vector.extract_strided_slice %13 {offsets = [0, 96], sizes = [8, 32], strides = [1, 1]} : vector<8x128xbf16> to vector<8x32xbf16>
    %65 = vector.extract_strided_slice %14 {offsets = [0, 96], sizes = [8, 32], strides = [1, 1]} : vector<8x128xbf16> to vector<8x32xbf16>
    %cst_19 = arith.constant dense<0.000000e+00> : vector<8x8xf32>
    %66 = tpu.matmul %64, %65, %cst_19 {dimension_numbers = #tpu.dot_dimension_numbers<[1], [1], [0], [0], [0, 0, 1, 0], [], []>} : vector<8x32xbf16>, vector<8x32xbf16>, vector<8x8xf32> -> vector<8x8xf32>
    %cst_20 = arith.constant dense<0xFF800000> : vector<8xf32>
    %67 = vector.multi_reduction <maximumf>, %66, %cst_20 [1] : vector<8x8xf32> to vector<8xf32>
    %68 = vector.shape_cast %67 : vector<8xf32> to vector<8x1xf32>
    %69 = vector.broadcast %68 : vector<8x1xf32> to vector<8x8xf32>
    %70 = arith.subf %66, %69 : vector<8x8xf32>
    %71 = math.exp %70 : vector<8x8xf32>
    %cst_21 = arith.constant dense<0.000000e+00> : vector<8xf32>
    %72 = vector.multi_reduction <add>, %71, %cst_21 [1] : vector<8x8xf32> to vector<8xf32>
    %73 = vector.shape_cast %72 : vector<8xf32> to vector<8x1xf32>
    %74 = tpu.reciprocal %73 {approx = true} : vector<8x1xf32> -> vector<8x1xf32>
    %75 = vector.broadcast %74 : vector<8x1xf32> to vector<8x8xf32>
    %76 = arith.mulf %71, %75 : vector<8x8xf32>
    %77 = arith.truncf %76 : vector<8x8xf32> to vector<8x8xbf16>
    %78 = vector.extract_strided_slice %15 {offsets = [0, 96], sizes = [8, 32], strides = [1, 1]} : vector<8x128xbf16> to vector<8x32xbf16>
    %cst_22 = arith.constant dense<0.000000e+00> : vector<8x32xf32>
    %79 = tpu.matmul %77, %78, %cst_22 {dimension_numbers = #tpu.dot_dimension_numbers<[1], [0], [0], [1], [0, 0, 1, 1], [], []>} : vector<8x8xbf16>, vector<8x32xbf16>, vector<8x32xf32> -> vector<8x32xf32>
    %80 = tpu.concatenate %31, %47, %63, %79 in 1 : vector<8x32xf32>, vector<8x32xf32>, vector<8x32xf32>, vector<8x32xf32> -> vector<8x128xf32>
    %81 = arith.truncf %80 : vector<8x128xf32> to vector<8x128xbf16>
    %c0_23 = arith.constant 0 : index
    %c0_24 = arith.constant 0 : index
    %82 = vector.load %arg4[%c0_23, %c0_24] : memref<128x128xbf16, #tpu.memory_space<vmem>>, vector<128x128xbf16>
    %cst_25 = arith.constant dense<0.000000e+00> : vector<8x128xf32>
    %83 = tpu.matmul %81, %82, %cst_25 {dimension_numbers = #tpu.dot_dimension_numbers<[1], [0], [0], [1], [0, 0, 1, 1], [], []>} : vector<8x128xbf16>, vector<128x128xbf16>, vector<8x128xf32> -> vector<8x128xf32>
    %c0_26 = arith.constant 0 : index
    %c0_27 = arith.constant 0 : index
    %84 = vector.load %arg5[%c0_26, %c0_27] : memref<1x128xf32, #tpu.memory_space<vmem>>, vector<1x128xf32>
    %85 = vector.broadcast %84 : vector<1x128xf32> to vector<8x128xf32>
    %86 = arith.addf %83, %85 : vector<8x128xf32>
    %87 = arith.addf %2, %86 : vector<8x128xf32>
    %c0_28 = arith.constant 0 : index
    %c0_29 = arith.constant 0 : index
    %88 = vector.load %arg6[%c0_28, %c0_29] : memref<1x128xf32, #tpu.memory_space<vmem>>, vector<1x128xf32>
    %c0_30 = arith.constant 0 : index
    %c0_31 = arith.constant 0 : index
    %89 = vector.load %arg7[%c0_30, %c0_31] : memref<1x128xf32, #tpu.memory_space<vmem>>, vector<1x128xf32>
    %cst_32 = arith.constant dense<0.000000e+00> : vector<8xf32>
    %90 = vector.multi_reduction <add>, %87, %cst_32 [1] : vector<8x128xf32> to vector<8xf32>
    %91 = vector.shape_cast %90 : vector<8xf32> to vector<8x1xf32>
    %cst_33 = arith.constant 1.280000e+02 : f32
    %92 = vector.broadcast %cst_33 : f32 to vector<8x1xf32>
    %93 = arith.divf %91, %92 : vector<8x1xf32>
    %94 = vector.broadcast %93 : vector<8x1xf32> to vector<8x128xf32>
    %95 = arith.subf %87, %94 : vector<8x128xf32>
    %96 = arith.mulf %95, %95 : vector<8x128xf32>
    %cst_34 = arith.constant dense<0.000000e+00> : vector<8xf32>
    %97 = vector.multi_reduction <add>, %96, %cst_34 [1] : vector<8x128xf32> to vector<8xf32>
    %98 = vector.shape_cast %97 : vector<8xf32> to vector<8x1xf32>
    %cst_35 = arith.constant 1.280000e+02 : f32
    %99 = vector.broadcast %cst_35 : f32 to vector<8x1xf32>
    %100 = arith.divf %98, %99 : vector<8x1xf32>
    %cst_36 = arith.constant 9.99999974E-6 : f32
    %101 = vector.broadcast %cst_36 : f32 to vector<8x1xf32>
    %102 = arith.addf %100, %101 : vector<8x1xf32>
    %103 = math.rsqrt %102 : vector<8x1xf32>
    %104 = vector.broadcast %103 : vector<8x1xf32> to vector<8x128xf32>
    %105 = arith.mulf %95, %104 : vector<8x128xf32>
    %106 = vector.broadcast %88 : vector<1x128xf32> to vector<8x128xf32>
    %107 = arith.mulf %105, %106 : vector<8x128xf32>
    %108 = vector.broadcast %89 : vector<1x128xf32> to vector<8x128xf32>
    %109 = arith.addf %107, %108 : vector<8x128xf32>
    %110 = arith.truncf %109 : vector<8x128xf32> to vector<8x128xbf16>
    %c0_37 = arith.constant 0 : index
    %c0_38 = arith.constant 0 : index
    %111 = vector.load %arg8[%c0_37, %c0_38] : memref<128x256xbf16, #tpu.memory_space<vmem>>, vector<128x256xbf16>
    %cst_39 = arith.constant dense<0.000000e+00> : vector<8x256xf32>
    %112 = tpu.matmul %110, %111, %cst_39 {dimension_numbers = #tpu.dot_dimension_numbers<[1], [0], [0], [1], [0, 0, 1, 1], [], []>} : vector<8x128xbf16>, vector<128x256xbf16>, vector<8x256xf32> -> vector<8x256xf32>
    %c0_40 = arith.constant 0 : index
    %c0_41 = arith.constant 0 : index
    %113 = vector.load %arg9[%c0_40, %c0_41] : memref<1x256xf32, #tpu.memory_space<vmem>>, vector<1x256xf32>
    %114 = vector.broadcast %113 : vector<1x256xf32> to vector<8x256xf32>
    %115 = arith.addf %112, %114 : vector<8x256xf32>
    %cst_42 = arith.constant 0.000000e+00 : f32
    %116 = vector.broadcast %cst_42 : f32 to vector<8x256xf32>
    %117 = arith.maximumf %115, %116 : vector<8x256xf32>
    %118 = arith.truncf %117 : vector<8x256xf32> to vector<8x256xbf16>
    %c0_43 = arith.constant 0 : index
    %c0_44 = arith.constant 0 : index
    %119 = vector.load %arg10[%c0_43, %c0_44] : memref<256x128xbf16, #tpu.memory_space<vmem>>, vector<256x128xbf16>
    %cst_45 = arith.constant dense<0.000000e+00> : vector<8x128xf32>
    %120 = tpu.matmul %118, %119, %cst_45 {dimension_numbers = #tpu.dot_dimension_numbers<[1], [0], [0], [1], [0, 0, 1, 1], [], []>} : vector<8x256xbf16>, vector<256x128xbf16>, vector<8x128xf32> -> vector<8x128xf32>
    %c0_46 = arith.constant 0 : index
    %c0_47 = arith.constant 0 : index
    %121 = vector.load %arg11[%c0_46, %c0_47] : memref<1x128xf32, #tpu.memory_space<vmem>>, vector<1x128xf32>
    %122 = vector.broadcast %121 : vector<1x128xf32> to vector<8x128xf32>
    %123 = arith.addf %120, %122 : vector<8x128xf32>
    %124 = arith.addf %109, %123 : vector<8x128xf32>
    %c0_48 = arith.constant 0 : index
    %c0_49 = arith.constant 0 : index
    %125 = vector.load %arg12[%c0_48, %c0_49] : memref<1x128xf32, #tpu.memory_space<vmem>>, vector<1x128xf32>
    %c0_50 = arith.constant 0 : index
    %c0_51 = arith.constant 0 : index
    %126 = vector.load %arg13[%c0_50, %c0_51] : memref<1x128xf32, #tpu.memory_space<vmem>>, vector<1x128xf32>
    %cst_52 = arith.constant dense<0.000000e+00> : vector<8xf32>
    %127 = vector.multi_reduction <add>, %124, %cst_52 [1] : vector<8x128xf32> to vector<8xf32>
    %128 = vector.shape_cast %127 : vector<8xf32> to vector<8x1xf32>
    %cst_53 = arith.constant 1.280000e+02 : f32
    %129 = vector.broadcast %cst_53 : f32 to vector<8x1xf32>
    %130 = arith.divf %128, %129 : vector<8x1xf32>
    %131 = vector.broadcast %130 : vector<8x1xf32> to vector<8x128xf32>
    %132 = arith.subf %124, %131 : vector<8x128xf32>
    %133 = arith.mulf %132, %132 : vector<8x128xf32>
    %cst_54 = arith.constant dense<0.000000e+00> : vector<8xf32>
    %134 = vector.multi_reduction <add>, %133, %cst_54 [1] : vector<8x128xf32> to vector<8xf32>
    %135 = vector.shape_cast %134 : vector<8xf32> to vector<8x1xf32>
    %cst_55 = arith.constant 1.280000e+02 : f32
    %136 = vector.broadcast %cst_55 : f32 to vector<8x1xf32>
    %137 = arith.divf %135, %136 : vector<8x1xf32>
    %cst_56 = arith.constant 9.99999974E-6 : f32
    %138 = vector.broadcast %cst_56 : f32 to vector<8x1xf32>
    %139 = arith.addf %137, %138 : vector<8x1xf32>
    %140 = math.rsqrt %139 : vector<8x1xf32>
    %141 = vector.broadcast %140 : vector<8x1xf32> to vector<8x128xf32>
    %142 = arith.mulf %132, %141 : vector<8x128xf32>
    %143 = vector.broadcast %125 : vector<1x128xf32> to vector<8x128xf32>
    %144 = arith.mulf %142, %143 : vector<8x128xf32>
    %145 = vector.broadcast %126 : vector<1x128xf32> to vector<8x128xf32>
    %146 = arith.addf %144, %145 : vector<8x128xf32>
    %147 = arith.truncf %146 : vector<8x128xf32> to vector<8x128xbf16>
    %c0_57 = arith.constant 0 : index
    %c0_58 = arith.constant 0 : index
    %c0_59 = arith.constant 0 : index
    %148 = vector.load %arg14[%c0_57, %c0_58, %c0_59] : memref<1x8x128xbf16, #tpu.memory_space<vmem>>, vector<1x8x128xbf16>
    %149 = vector.shape_cast %148 : vector<1x8x128xbf16> to vector<8x128xbf16>
    %150 = vector.shape_cast %147 : vector<8x128xbf16> to vector<1x8x128xbf16>
    tpu.vector_store %arg14[%c0_57, %c0_58, %c0_59], %150 {strides = array<i32>} : memref<1x8x128xbf16, #tpu.memory_space<vmem>>, vector<1x8x128xbf16>,
    return
  }
  func.func @transform_0(%arg0: i32) -> (i32, i32, i32) {
    %c0_i32 = arith.constant 0 : i32
    %c0_i32_0 = arith.constant 0 : i32
    %c0_i32_1 = arith.constant 0 : i32
    return %arg0, %c0_i32, %c0_i32_0 : i32, i32, i32
  }
  func.func @transform_1(%arg0: i32) -> (i32, i32) {
    %c0_i32 = arith.constant 0 : i32
    %c0_i32_0 = arith.constant 0 : i32
    %c0_i32_1 = arith.constant 0 : i32
    return %c0_i32, %c0_i32_0 : i32, i32
  }
  func.func @transform_2(%arg0: i32) -> (i32, i32) {
    %c0_i32 = arith.constant 0 : i32
    %c0_i32_0 = arith.constant 0 : i32
    %c0_i32_1 = arith.constant 0 : i32
    return %c0_i32, %c0_i32_0 : i32, i32
  }
  func.func @transform_3(%arg0: i32) -> (i32, i32) {
    %c0_i32 = arith.constant 0 : i32
    %c0_i32_0 = arith.constant 0 : i32
    %c0_i32_1 = arith.constant 0 : i32
    return %c0_i32, %c0_i32_0 : i32, i32
  }
  func.func @transform_4(%arg0: i32) -> (i32, i32) {
    %c0_i32 = arith.constant 0 : i32
    %c0_i32_0 = arith.constant 0 : i32
    %c0_i32_1 = arith.constant 0 : i32
    return %c0_i32, %c0_i32_0 : i32, i32
  }
  func.func @transform_5(%arg0: i32) -> (i32, i32) {
    %c0_i32 = arith.constant 0 : i32
    %c0_i32_0 = arith.constant 0 : i32
    %c0_i32_1 = arith.constant 0 : i32
    return %c0_i32, %c0_i32_0 : i32, i32
  }
  func.func @transform_6(%arg0: i32) -> (i32, i32) {
    %c0_i32 = arith.constant 0 : i32
    %c0_i32_0 = arith.constant 0 : i32
    %c0_i32_1 = arith.constant 0 : i32
    return %c0_i32, %c0_i32_0 : i32, i32
  }
  func.func @transform_7(%arg0: i32) -> (i32, i32) {
    %c0_i32 = arith.constant 0 : i32
    %c0_i32_0 = arith.constant 0 : i32
    %c0_i32_1 = arith.constant 0 : i32
    return %c0_i32, %c0_i32_0 : i32, i32
  }
  func.func @transform_8(%arg0: i32) -> (i32, i32) {
    %c0_i32 = arith.constant 0 : i32
    %c0_i32_0 = arith.constant 0 : i32
    %c0_i32_1 = arith.constant 0 : i32
    return %c0_i32, %c0_i32_0 : i32, i32
  }
  func.func @transform_9(%arg0: i32) -> (i32, i32) {
    %c0_i32 = arith.constant 0 : i32
    %c0_i32_0 = arith.constant 0 : i32
    %c0_i32_1 = arith.constant 0 : i32
    return %c0_i32, %c0_i32_0 : i32, i32
  }
  func.func @transform_10(%arg0: i32) -> (i32, i32) {
    %c0_i32 = arith.constant 0 : i32
    %c0_i32_0 = arith.constant 0 : i32
    %c0_i32_1 = arith.constant 0 : i32
    return %c0_i32, %c0_i32_0 : i32, i32
  }
  func.func @transform_11(%arg0: i32) -> (i32, i32) {
    %c0_i32 = arith.constant 0 : i32
    %c0_i32_0 = arith.constant 0 : i32
    %c0_i32_1 = arith.constant 0 : i32
    return %c0_i32, %c0_i32_0 : i32, i32
  }
  func.func @transform_12(%arg0: i32) -> (i32, i32) {
    %c0_i32 = arith.constant 0 : i32
    %c0_i32_0 = arith.constant 0 : i32
    %c0_i32_1 = arith.constant 0 : i32
    return %c0_i32, %c0_i32_0 : i32, i32
  }
  func.func @transform_13(%arg0: i32) -> (i32, i32, i32) {
    %c0_i32 = arith.constant 0 : i32
    %c0_i32_0 = arith.constant 0 : i32
    %c0_i32_1 = arith.constant 0 : i32
    return %arg0, %c0_i32, %c0_i32_0 : i32, i32, i32
  }
}

module attributes {stable_mosaic.version = 11 : i64} {
  func.func @_decoder_layer_kernel(%arg0: i32, %arg1: memref<1x8x128xbf16, #tpu.memory_space<vmem>>, %arg2: memref<1x8x128xbf16, #tpu.memory_space<vmem>>, %arg3: memref<1x8x8xf32, #tpu.memory_space<vmem>>, %arg4: memref<128x384xbf16, #tpu.memory_space<vmem>>, %arg5: memref<1x384xf32, #tpu.memory_space<vmem>>, %arg6: memref<128x128xbf16, #tpu.memory_space<vmem>>, %arg7: memref<1x128xf32, #tpu.memory_space<vmem>>, %arg8: memref<1x128xf32, #tpu.memory_space<vmem>>, %arg9: memref<1x128xf32, #tpu.memory_space<vmem>>, %arg10: memref<128x128xbf16, #tpu.memory_space<vmem>>, %arg11: memref<1x128xf32, #tpu.memory_space<vmem>>, %arg12: memref<128x256xbf16, #tpu.memory_space<vmem>>, %arg13: memref<1x256xf32, #tpu.memory_space<vmem>>, %arg14: memref<128x128xbf16, #tpu.memory_space<vmem>>, %arg15: memref<1x128xf32, #tpu.memory_space<vmem>>, %arg16: memref<1x128xf32, #tpu.memory_space<vmem>>, %arg17: memref<1x128xf32, #tpu.memory_space<vmem>>, %arg18: memref<128x256xbf16, #tpu.memory_space<vmem>>, %arg19: memref<1x256xf32, #tpu.memory_space<vmem>>, %arg20: memref<256x128xbf16, #tpu.memory_space<vmem>>, %arg21: memref<1x128xf32, #tpu.memory_space<vmem>>, %arg22: memref<1x128xf32, #tpu.memory_space<vmem>>, %arg23: memref<1x128xf32, #tpu.memory_space<vmem>>, %arg24: memref<1x8x128xbf16, #tpu.memory_space<vmem>>) attributes {dimension_semantics = [#tpu.dimension_semantics<parallel>], iteration_bounds = array<i64: 2>, scalar_prefetch = 0 : i64, scratch_operands = 0 : i64, tpu.core_type = #tpu.core_type<tc>, window_params = [{transform_indices = @transform_0, window_bounds = array<i64: 1, 8, 128>}, {transform_indices = @transform_1, window_bounds = array<i64: 1, 8, 128>}, {transform_indices = @transform_2, window_bounds = array<i64: 1, 8, 8>}, {pipeline_mode = #tpu.pipeline_mode<synchronous>, transform_indices = @transform_3, window_bounds = array<i64: 128, 384>}, {pipeline_mode = #tpu.pipeline_mode<synchronous>, transform_indices = @transform_4, window_bounds = array<i64: 1, 384>}, {pipeline_mode = #tpu.pipeline_mode<synchronous>, transform_indices = @transform_5, window_bounds = array<i64: 128, 128>}, {pipeline_mode = #tpu.pipeline_mode<synchronous>, transform_indices = @transform_6, window_bounds = array<i64: 1, 128>}, {pipeline_mode = #tpu.pipeline_mode<synchronous>, transform_indices = @transform_7, window_bounds = array<i64: 1, 128>}, {pipeline_mode = #tpu.pipeline_mode<synchronous>, transform_indices = @transform_8, window_bounds = array<i64: 1, 128>}, {pipeline_mode = #tpu.pipeline_mode<synchronous>, transform_indices = @transform_9, window_bounds = array<i64: 128, 128>}, {pipeline_mode = #tpu.pipeline_mode<synchronous>, transform_indices = @transform_10, window_bounds = array<i64: 1, 128>}, {pipeline_mode = #tpu.pipeline_mode<synchronous>, transform_indices = @transform_11, window_bounds = array<i64: 128, 256>}, {pipeline_mode = #tpu.pipeline_mode<synchronous>, transform_indices = @transform_12, window_bounds = array<i64: 1, 256>}, {pipeline_mode = #tpu.pipeline_mode<synchronous>, transform_indices = @transform_13, window_bounds = array<i64: 128, 128>}, {pipeline_mode = #tpu.pipeline_mode<synchronous>, transform_indices = @transform_14, window_bounds = array<i64: 1, 128>}, {pipeline_mode = #tpu.pipeline_mode<synchronous>, transform_indices = @transform_15, window_bounds = array<i64: 1, 128>}, {pipeline_mode = #tpu.pipeline_mode<synchronous>, transform_indices = @transform_16, window_bounds = array<i64: 1, 128>}, {pipeline_mode = #tpu.pipeline_mode<synchronous>, transform_indices = @transform_17, window_bounds = array<i64: 128, 256>}, {pipeline_mode = #tpu.pipeline_mode<synchronous>, transform_indices = @transform_18, window_bounds = array<i64: 1, 256>}, {pipeline_mode = #tpu.pipeline_mode<synchronous>, transform_indices = @transform_19, window_bounds = array<i64: 256, 128>}, {pipeline_mode = #tpu.pipeline_mode<synchronous>, transform_indices = @transform_20, window_bounds = array<i64: 1, 128>}, {pipeline_mode = #tpu.pipeline_mode<synchronous>, transform_indices = @transform_21, window_bounds = array<i64: 1, 128>}, {pipeline_mode = #tpu.pipeline_mode<synchronous>, transform_indices = @transform_22, window_bounds = array<i64: 1, 128>}, {transform_indices = @transform_23, window_bounds = array<i64: 1, 8, 128>}]} {
    %c0 = arith.constant 0 : index
    %c0_0 = arith.constant 0 : index
    %c0_1 = arith.constant 0 : index
    %0 = vector.load %arg1[%c0, %c0_0, %c0_1] : memref<1x8x128xbf16, #tpu.memory_space<vmem>>, vector<1x8x128xbf16>
    %1 = vector.shape_cast %0 : vector<1x8x128xbf16> to vector<8x128xbf16>
    %c0_2 = arith.constant 0 : index
    %c0_3 = arith.constant 0 : index
    %c0_4 = arith.constant 0 : index
    %2 = vector.load %arg2[%c0_2, %c0_3, %c0_4] : memref<1x8x128xbf16, #tpu.memory_space<vmem>>, vector<1x8x128xbf16>
    %3 = vector.shape_cast %2 : vector<1x8x128xbf16> to vector<8x128xbf16>
    %4 = arith.extf %1 : vector<8x128xbf16> to vector<8x128xf32>
    %c0_5 = arith.constant 0 : index
    %c0_6 = arith.constant 0 : index
    %5 = vector.load %arg4[%c0_5, %c0_6] : memref<128x384xbf16, #tpu.memory_space<vmem>>, vector<128x384xbf16>
    %cst = arith.constant dense<0.000000e+00> : vector<8x384xf32>
    %6 = tpu.matmul %1, %5, %cst {dimension_numbers = #tpu.dot_dimension_numbers<[1], [0], [0], [1], [0, 0, 1, 1], [], []>} : vector<8x128xbf16>, vector<128x384xbf16>, vector<8x384xf32> -> vector<8x384xf32>
    %c0_7 = arith.constant 0 : index
    %c0_8 = arith.constant 0 : index
    %7 = vector.load %arg5[%c0_7, %c0_8] : memref<1x384xf32, #tpu.memory_space<vmem>>, vector<1x384xf32>
    %8 = vector.broadcast %7 : vector<1x384xf32> to vector<8x384xf32>
    %9 = arith.addf %6, %8 : vector<8x384xf32>
    %c0_9 = arith.constant 0 : index
    %c0_10 = arith.constant 0 : index
    %c0_11 = arith.constant 0 : index
    %10 = vector.load %arg3[%c0_9, %c0_10, %c0_11] : memref<1x8x8xf32, #tpu.memory_space<vmem>>, vector<1x8x8xf32>
    %11 = vector.shape_cast %10 : vector<1x8x8xf32> to vector<8x8xf32>
    %12 = vector.extract_strided_slice %9 {offsets = [0, 0], sizes = [8, 128], strides = [1, 1]} : vector<8x384xf32> to vector<8x128xf32>
    %13 = vector.extract_strided_slice %9 {offsets = [0, 128], sizes = [8, 128], strides = [1, 1]} : vector<8x384xf32> to vector<8x128xf32>
    %14 = vector.extract_strided_slice %9 {offsets = [0, 256], sizes = [8, 128], strides = [1, 1]} : vector<8x384xf32> to vector<8x128xf32>
    %cst_12 = arith.constant 0.176776692 : f32
    %15 = vector.broadcast %cst_12 : f32 to vector<8x128xf32>
    %16 = arith.mulf %12, %15 : vector<8x128xf32>
    %17 = arith.truncf %16 : vector<8x128xf32> to vector<8x128xbf16>
    %18 = arith.truncf %13 : vector<8x128xf32> to vector<8x128xbf16>
    %19 = arith.truncf %14 : vector<8x128xf32> to vector<8x128xbf16>
    %20 = vector.extract_strided_slice %17 {offsets = [0, 0], sizes = [8, 32], strides = [1, 1]} : vector<8x128xbf16> to vector<8x32xbf16>
    %21 = vector.extract_strided_slice %18 {offsets = [0, 0], sizes = [8, 32], strides = [1, 1]} : vector<8x128xbf16> to vector<8x32xbf16>
    %cst_13 = arith.constant dense<0.000000e+00> : vector<8x8xf32>
    %22 = tpu.matmul %20, %21, %cst_13 {dimension_numbers = #tpu.dot_dimension_numbers<[1], [1], [0], [0], [0, 0, 1, 0], [], []>} : vector<8x32xbf16>, vector<8x32xbf16>, vector<8x8xf32> -> vector<8x8xf32>
    %23 = arith.addf %22, %11 : vector<8x8xf32>
    %cst_14 = arith.constant dense<0xFF800000> : vector<8xf32>
    %24 = vector.multi_reduction <maximumf>, %23, %cst_14 [1] : vector<8x8xf32> to vector<8xf32>
    %25 = vector.shape_cast %24 : vector<8xf32> to vector<8x1xf32>
    %26 = vector.broadcast %25 : vector<8x1xf32> to vector<8x8xf32>
    %27 = arith.subf %23, %26 : vector<8x8xf32>
    %28 = math.exp %27 : vector<8x8xf32>
    %cst_15 = arith.constant dense<0.000000e+00> : vector<8xf32>
    %29 = vector.multi_reduction <add>, %28, %cst_15 [1] : vector<8x8xf32> to vector<8xf32>
    %30 = vector.shape_cast %29 : vector<8xf32> to vector<8x1xf32>
    %31 = tpu.reciprocal %30 {approx = true} : vector<8x1xf32> -> vector<8x1xf32>
    %32 = vector.broadcast %31 : vector<8x1xf32> to vector<8x8xf32>
    %33 = arith.mulf %28, %32 : vector<8x8xf32>
    %34 = arith.truncf %33 : vector<8x8xf32> to vector<8x8xbf16>
    %35 = vector.extract_strided_slice %19 {offsets = [0, 0], sizes = [8, 32], strides = [1, 1]} : vector<8x128xbf16> to vector<8x32xbf16>
    %cst_16 = arith.constant dense<0.000000e+00> : vector<8x32xf32>
    %36 = tpu.matmul %34, %35, %cst_16 {dimension_numbers = #tpu.dot_dimension_numbers<[1], [0], [0], [1], [0, 0, 1, 1], [], []>} : vector<8x8xbf16>, vector<8x32xbf16>, vector<8x32xf32> -> vector<8x32xf32>
    %37 = vector.extract_strided_slice %17 {offsets = [0, 32], sizes = [8, 32], strides = [1, 1]} : vector<8x128xbf16> to vector<8x32xbf16>
    %38 = vector.extract_strided_slice %18 {offsets = [0, 32], sizes = [8, 32], strides = [1, 1]} : vector<8x128xbf16> to vector<8x32xbf16>
    %cst_17 = arith.constant dense<0.000000e+00> : vector<8x8xf32>
    %39 = tpu.matmul %37, %38, %cst_17 {dimension_numbers = #tpu.dot_dimension_numbers<[1], [1], [0], [0], [0, 0, 1, 0], [], []>} : vector<8x32xbf16>, vector<8x32xbf16>, vector<8x8xf32> -> vector<8x8xf32>
    %40 = arith.addf %39, %11 : vector<8x8xf32>
    %cst_18 = arith.constant dense<0xFF800000> : vector<8xf32>
    %41 = vector.multi_reduction <maximumf>, %40, %cst_18 [1] : vector<8x8xf32> to vector<8xf32>
    %42 = vector.shape_cast %41 : vector<8xf32> to vector<8x1xf32>
    %43 = vector.broadcast %42 : vector<8x1xf32> to vector<8x8xf32>
    %44 = arith.subf %40, %43 : vector<8x8xf32>
    %45 = math.exp %44 : vector<8x8xf32>
    %cst_19 = arith.constant dense<0.000000e+00> : vector<8xf32>
    %46 = vector.multi_reduction <add>, %45, %cst_19 [1] : vector<8x8xf32> to vector<8xf32>
    %47 = vector.shape_cast %46 : vector<8xf32> to vector<8x1xf32>
    %48 = tpu.reciprocal %47 {approx = true} : vector<8x1xf32> -> vector<8x1xf32>
    %49 = vector.broadcast %48 : vector<8x1xf32> to vector<8x8xf32>
    %50 = arith.mulf %45, %49 : vector<8x8xf32>
    %51 = arith.truncf %50 : vector<8x8xf32> to vector<8x8xbf16>
    %52 = vector.extract_strided_slice %19 {offsets = [0, 32], sizes = [8, 32], strides = [1, 1]} : vector<8x128xbf16> to vector<8x32xbf16>
    %cst_20 = arith.constant dense<0.000000e+00> : vector<8x32xf32>
    %53 = tpu.matmul %51, %52, %cst_20 {dimension_numbers = #tpu.dot_dimension_numbers<[1], [0], [0], [1], [0, 0, 1, 1], [], []>} : vector<8x8xbf16>, vector<8x32xbf16>, vector<8x32xf32> -> vector<8x32xf32>
    %54 = vector.extract_strided_slice %17 {offsets = [0, 64], sizes = [8, 32], strides = [1, 1]} : vector<8x128xbf16> to vector<8x32xbf16>
    %55 = vector.extract_strided_slice %18 {offsets = [0, 64], sizes = [8, 32], strides = [1, 1]} : vector<8x128xbf16> to vector<8x32xbf16>
    %cst_21 = arith.constant dense<0.000000e+00> : vector<8x8xf32>
    %56 = tpu.matmul %54, %55, %cst_21 {dimension_numbers = #tpu.dot_dimension_numbers<[1], [1], [0], [0], [0, 0, 1, 0], [], []>} : vector<8x32xbf16>, vector<8x32xbf16>, vector<8x8xf32> -> vector<8x8xf32>
    %57 = arith.addf %56, %11 : vector<8x8xf32>
    %cst_22 = arith.constant dense<0xFF800000> : vector<8xf32>
    %58 = vector.multi_reduction <maximumf>, %57, %cst_22 [1] : vector<8x8xf32> to vector<8xf32>
    %59 = vector.shape_cast %58 : vector<8xf32> to vector<8x1xf32>
    %60 = vector.broadcast %59 : vector<8x1xf32> to vector<8x8xf32>
    %61 = arith.subf %57, %60 : vector<8x8xf32>
    %62 = math.exp %61 : vector<8x8xf32>
    %cst_23 = arith.constant dense<0.000000e+00> : vector<8xf32>
    %63 = vector.multi_reduction <add>, %62, %cst_23 [1] : vector<8x8xf32> to vector<8xf32>
    %64 = vector.shape_cast %63 : vector<8xf32> to vector<8x1xf32>
    %65 = tpu.reciprocal %64 {approx = true} : vector<8x1xf32> -> vector<8x1xf32>
    %66 = vector.broadcast %65 : vector<8x1xf32> to vector<8x8xf32>
    %67 = arith.mulf %62, %66 : vector<8x8xf32>
    %68 = arith.truncf %67 : vector<8x8xf32> to vector<8x8xbf16>
    %69 = vector.extract_strided_slice %19 {offsets = [0, 64], sizes = [8, 32], strides = [1, 1]} : vector<8x128xbf16> to vector<8x32xbf16>
    %cst_24 = arith.constant dense<0.000000e+00> : vector<8x32xf32>
    %70 = tpu.matmul %68, %69, %cst_24 {dimension_numbers = #tpu.dot_dimension_numbers<[1], [0], [0], [1], [0, 0, 1, 1], [], []>} : vector<8x8xbf16>, vector<8x32xbf16>, vector<8x32xf32> -> vector<8x32xf32>
    %71 = vector.extract_strided_slice %17 {offsets = [0, 96], sizes = [8, 32], strides = [1, 1]} : vector<8x128xbf16> to vector<8x32xbf16>
    %72 = vector.extract_strided_slice %18 {offsets = [0, 96], sizes = [8, 32], strides = [1, 1]} : vector<8x128xbf16> to vector<8x32xbf16>
    %cst_25 = arith.constant dense<0.000000e+00> : vector<8x8xf32>
    %73 = tpu.matmul %71, %72, %cst_25 {dimension_numbers = #tpu.dot_dimension_numbers<[1], [1], [0], [0], [0, 0, 1, 0], [], []>} : vector<8x32xbf16>, vector<8x32xbf16>, vector<8x8xf32> -> vector<8x8xf32>
    %74 = arith.addf %73, %11 : vector<8x8xf32>
    %cst_26 = arith.constant dense<0xFF800000> : vector<8xf32>
    %75 = vector.multi_reduction <maximumf>, %74, %cst_26 [1] : vector<8x8xf32> to vector<8xf32>
    %76 = vector.shape_cast %75 : vector<8xf32> to vector<8x1xf32>
    %77 = vector.broadcast %76 : vector<8x1xf32> to vector<8x8xf32>
    %78 = arith.subf %74, %77 : vector<8x8xf32>
    %79 = math.exp %78 : vector<8x8xf32>
    %cst_27 = arith.constant dense<0.000000e+00> : vector<8xf32>
    %80 = vector.multi_reduction <add>, %79, %cst_27 [1] : vector<8x8xf32> to vector<8xf32>
    %81 = vector.shape_cast %80 : vector<8xf32> to vector<8x1xf32>
    %82 = tpu.reciprocal %81 {approx = true} : vector<8x1xf32> -> vector<8x1xf32>
    %83 = vector.broadcast %82 : vector<8x1xf32> to vector<8x8xf32>
    %84 = arith.mulf %79, %83 : vector<8x8xf32>
    %85 = arith.truncf %84 : vector<8x8xf32> to vector<8x8xbf16>
    %86 = vector.extract_strided_slice %19 {offsets = [0, 96], sizes = [8, 32], strides = [1, 1]} : vector<8x128xbf16> to vector<8x32xbf16>
    %cst_28 = arith.constant dense<0.000000e+00> : vector<8x32xf32>
    %87 = tpu.matmul %85, %86, %cst_28 {dimension_numbers = #tpu.dot_dimension_numbers<[1], [0], [0], [1], [0, 0, 1, 1], [], []>} : vector<8x8xbf16>, vector<8x32xbf16>, vector<8x32xf32> -> vector<8x32xf32>
    %88 = tpu.concatenate %36, %53, %70, %87 in 1 : vector<8x32xf32>, vector<8x32xf32>, vector<8x32xf32>, vector<8x32xf32> -> vector<8x128xf32>
    %89 = arith.truncf %88 : vector<8x128xf32> to vector<8x128xbf16>
    %c0_29 = arith.constant 0 : index
    %c0_30 = arith.constant 0 : index
    %90 = vector.load %arg6[%c0_29, %c0_30] : memref<128x128xbf16, #tpu.memory_space<vmem>>, vector<128x128xbf16>
    %cst_31 = arith.constant dense<0.000000e+00> : vector<8x128xf32>
    %91 = tpu.matmul %89, %90, %cst_31 {dimension_numbers = #tpu.dot_dimension_numbers<[1], [0], [0], [1], [0, 0, 1, 1], [], []>} : vector<8x128xbf16>, vector<128x128xbf16>, vector<8x128xf32> -> vector<8x128xf32>
    %c0_32 = arith.constant 0 : index
    %c0_33 = arith.constant 0 : index
    %92 = vector.load %arg7[%c0_32, %c0_33] : memref<1x128xf32, #tpu.memory_space<vmem>>, vector<1x128xf32>
    %93 = vector.broadcast %92 : vector<1x128xf32> to vector<8x128xf32>
    %94 = arith.addf %91, %93 : vector<8x128xf32>
    %95 = arith.addf %4, %94 : vector<8x128xf32>
    %c0_34 = arith.constant 0 : index
    %c0_35 = arith.constant 0 : index
    %96 = vector.load %arg8[%c0_34, %c0_35] : memref<1x128xf32, #tpu.memory_space<vmem>>, vector<1x128xf32>
    %c0_36 = arith.constant 0 : index
    %c0_37 = arith.constant 0 : index
    %97 = vector.load %arg9[%c0_36, %c0_37] : memref<1x128xf32, #tpu.memory_space<vmem>>, vector<1x128xf32>
    %cst_38 = arith.constant dense<0.000000e+00> : vector<8xf32>
    %98 = vector.multi_reduction <add>, %95, %cst_38 [1] : vector<8x128xf32> to vector<8xf32>
    %99 = vector.shape_cast %98 : vector<8xf32> to vector<8x1xf32>
    %cst_39 = arith.constant 1.280000e+02 : f32
    %100 = vector.broadcast %cst_39 : f32 to vector<8x1xf32>
    %101 = arith.divf %99, %100 : vector<8x1xf32>
    %102 = vector.broadcast %101 : vector<8x1xf32> to vector<8x128xf32>
    %103 = arith.subf %95, %102 : vector<8x128xf32>
    %104 = arith.mulf %103, %103 : vector<8x128xf32>
    %cst_40 = arith.constant dense<0.000000e+00> : vector<8xf32>
    %105 = vector.multi_reduction <add>, %104, %cst_40 [1] : vector<8x128xf32> to vector<8xf32>
    %106 = vector.shape_cast %105 : vector<8xf32> to vector<8x1xf32>
    %cst_41 = arith.constant 1.280000e+02 : f32
    %107 = vector.broadcast %cst_41 : f32 to vector<8x1xf32>
    %108 = arith.divf %106, %107 : vector<8x1xf32>
    %cst_42 = arith.constant 9.99999974E-6 : f32
    %109 = vector.broadcast %cst_42 : f32 to vector<8x1xf32>
    %110 = arith.addf %108, %109 : vector<8x1xf32>
    %111 = math.rsqrt %110 : vector<8x1xf32>
    %112 = vector.broadcast %111 : vector<8x1xf32> to vector<8x128xf32>
    %113 = arith.mulf %103, %112 : vector<8x128xf32>
    %114 = vector.broadcast %96 : vector<1x128xf32> to vector<8x128xf32>
    %115 = arith.mulf %113, %114 : vector<8x128xf32>
    %116 = vector.broadcast %97 : vector<1x128xf32> to vector<8x128xf32>
    %117 = arith.addf %115, %116 : vector<8x128xf32>
    %118 = arith.truncf %117 : vector<8x128xf32> to vector<8x128xbf16>
    %c0_43 = arith.constant 0 : index
    %c0_44 = arith.constant 0 : index
    %119 = vector.load %arg10[%c0_43, %c0_44] : memref<128x128xbf16, #tpu.memory_space<vmem>>, vector<128x128xbf16>
    %cst_45 = arith.constant dense<0.000000e+00> : vector<8x128xf32>
    %120 = tpu.matmul %118, %119, %cst_45 {dimension_numbers = #tpu.dot_dimension_numbers<[1], [0], [0], [1], [0, 0, 1, 1], [], []>} : vector<8x128xbf16>, vector<128x128xbf16>, vector<8x128xf32> -> vector<8x128xf32>
    %c0_46 = arith.constant 0 : index
    %c0_47 = arith.constant 0 : index
    %121 = vector.load %arg11[%c0_46, %c0_47] : memref<1x128xf32, #tpu.memory_space<vmem>>, vector<1x128xf32>
    %122 = vector.broadcast %121 : vector<1x128xf32> to vector<8x128xf32>
    %123 = arith.addf %120, %122 : vector<8x128xf32>
    %c0_48 = arith.constant 0 : index
    %c0_49 = arith.constant 0 : index
    %124 = vector.load %arg12[%c0_48, %c0_49] : memref<128x256xbf16, #tpu.memory_space<vmem>>, vector<128x256xbf16>
    %cst_50 = arith.constant dense<0.000000e+00> : vector<8x256xf32>
    %125 = tpu.matmul %3, %124, %cst_50 {dimension_numbers = #tpu.dot_dimension_numbers<[1], [0], [0], [1], [0, 0, 1, 1], [], []>} : vector<8x128xbf16>, vector<128x256xbf16>, vector<8x256xf32> -> vector<8x256xf32>
    %c0_51 = arith.constant 0 : index
    %c0_52 = arith.constant 0 : index
    %126 = vector.load %arg13[%c0_51, %c0_52] : memref<1x256xf32, #tpu.memory_space<vmem>>, vector<1x256xf32>
    %127 = vector.broadcast %126 : vector<1x256xf32> to vector<8x256xf32>
    %128 = arith.addf %125, %127 : vector<8x256xf32>
    %129 = vector.extract_strided_slice %128 {offsets = [0, 0], sizes = [8, 128], strides = [1, 1]} : vector<8x256xf32> to vector<8x128xf32>
    %130 = vector.extract_strided_slice %128 {offsets = [0, 128], sizes = [8, 128], strides = [1, 1]} : vector<8x256xf32> to vector<8x128xf32>
    %cst_53 = arith.constant 0.176776692 : f32
    %131 = vector.broadcast %cst_53 : f32 to vector<8x128xf32>
    %132 = arith.mulf %123, %131 : vector<8x128xf32>
    %133 = arith.truncf %132 : vector<8x128xf32> to vector<8x128xbf16>
    %134 = arith.truncf %129 : vector<8x128xf32> to vector<8x128xbf16>
    %135 = arith.truncf %130 : vector<8x128xf32> to vector<8x128xbf16>
    %136 = vector.extract_strided_slice %133 {offsets = [0, 0], sizes = [8, 32], strides = [1, 1]} : vector<8x128xbf16> to vector<8x32xbf16>
    %137 = vector.extract_strided_slice %134 {offsets = [0, 0], sizes = [8, 32], strides = [1, 1]} : vector<8x128xbf16> to vector<8x32xbf16>
    %cst_54 = arith.constant dense<0.000000e+00> : vector<8x8xf32>
    %138 = tpu.matmul %136, %137, %cst_54 {dimension_numbers = #tpu.dot_dimension_numbers<[1], [1], [0], [0], [0, 0, 1, 0], [], []>} : vector<8x32xbf16>, vector<8x32xbf16>, vector<8x8xf32> -> vector<8x8xf32>
    %cst_55 = arith.constant dense<0xFF800000> : vector<8xf32>
    %139 = vector.multi_reduction <maximumf>, %138, %cst_55 [1] : vector<8x8xf32> to vector<8xf32>
    %140 = vector.shape_cast %139 : vector<8xf32> to vector<8x1xf32>
    %141 = vector.broadcast %140 : vector<8x1xf32> to vector<8x8xf32>
    %142 = arith.subf %138, %141 : vector<8x8xf32>
    %143 = math.exp %142 : vector<8x8xf32>
    %cst_56 = arith.constant dense<0.000000e+00> : vector<8xf32>
    %144 = vector.multi_reduction <add>, %143, %cst_56 [1] : vector<8x8xf32> to vector<8xf32>
    %145 = vector.shape_cast %144 : vector<8xf32> to vector<8x1xf32>
    %146 = tpu.reciprocal %145 {approx = true} : vector<8x1xf32> -> vector<8x1xf32>
    %147 = vector.broadcast %146 : vector<8x1xf32> to vector<8x8xf32>
    %148 = arith.mulf %143, %147 : vector<8x8xf32>
    %149 = arith.truncf %148 : vector<8x8xf32> to vector<8x8xbf16>
    %150 = vector.extract_strided_slice %135 {offsets = [0, 0], sizes = [8, 32], strides = [1, 1]} : vector<8x128xbf16> to vector<8x32xbf16>
    %cst_57 = arith.constant dense<0.000000e+00> : vector<8x32xf32>
    %151 = tpu.matmul %149, %150, %cst_57 {dimension_numbers = #tpu.dot_dimension_numbers<[1], [0], [0], [1], [0, 0, 1, 1], [], []>} : vector<8x8xbf16>, vector<8x32xbf16>, vector<8x32xf32> -> vector<8x32xf32>
    %152 = vector.extract_strided_slice %133 {offsets = [0, 32], sizes = [8, 32], strides = [1, 1]} : vector<8x128xbf16> to vector<8x32xbf16>
    %153 = vector.extract_strided_slice %134 {offsets = [0, 32], sizes = [8, 32], strides = [1, 1]} : vector<8x128xbf16> to vector<8x32xbf16>
    %cst_58 = arith.constant dense<0.000000e+00> : vector<8x8xf32>
    %154 = tpu.matmul %152, %153, %cst_58 {dimension_numbers = #tpu.dot_dimension_numbers<[1], [1], [0], [0], [0, 0, 1, 0], [], []>} : vector<8x32xbf16>, vector<8x32xbf16>, vector<8x8xf32> -> vector<8x8xf32>
    %cst_59 = arith.constant dense<0xFF800000> : vector<8xf32>
    %155 = vector.multi_reduction <maximumf>, %154, %cst_59 [1] : vector<8x8xf32> to vector<8xf32>
    %156 = vector.shape_cast %155 : vector<8xf32> to vector<8x1xf32>
    %157 = vector.broadcast %156 : vector<8x1xf32> to vector<8x8xf32>
    %158 = arith.subf %154, %157 : vector<8x8xf32>
    %159 = math.exp %158 : vector<8x8xf32>
    %cst_60 = arith.constant dense<0.000000e+00> : vector<8xf32>
    %160 = vector.multi_reduction <add>, %159, %cst_60 [1] : vector<8x8xf32> to vector<8xf32>
    %161 = vector.shape_cast %160 : vector<8xf32> to vector<8x1xf32>
    %162 = tpu.reciprocal %161 {approx = true} : vector<8x1xf32> -> vector<8x1xf32>
    %163 = vector.broadcast %162 : vector<8x1xf32> to vector<8x8xf32>
    %164 = arith.mulf %159, %163 : vector<8x8xf32>
    %165 = arith.truncf %164 : vector<8x8xf32> to vector<8x8xbf16>
    %166 = vector.extract_strided_slice %135 {offsets = [0, 32], sizes = [8, 32], strides = [1, 1]} : vector<8x128xbf16> to vector<8x32xbf16>
    %cst_61 = arith.constant dense<0.000000e+00> : vector<8x32xf32>
    %167 = tpu.matmul %165, %166, %cst_61 {dimension_numbers = #tpu.dot_dimension_numbers<[1], [0], [0], [1], [0, 0, 1, 1], [], []>} : vector<8x8xbf16>, vector<8x32xbf16>, vector<8x32xf32> -> vector<8x32xf32>
    %168 = vector.extract_strided_slice %133 {offsets = [0, 64], sizes = [8, 32], strides = [1, 1]} : vector<8x128xbf16> to vector<8x32xbf16>
    %169 = vector.extract_strided_slice %134 {offsets = [0, 64], sizes = [8, 32], strides = [1, 1]} : vector<8x128xbf16> to vector<8x32xbf16>
    %cst_62 = arith.constant dense<0.000000e+00> : vector<8x8xf32>
    %170 = tpu.matmul %168, %169, %cst_62 {dimension_numbers = #tpu.dot_dimension_numbers<[1], [1], [0], [0], [0, 0, 1, 0], [], []>} : vector<8x32xbf16>, vector<8x32xbf16>, vector<8x8xf32> -> vector<8x8xf32>
    %cst_63 = arith.constant dense<0xFF800000> : vector<8xf32>
    %171 = vector.multi_reduction <maximumf>, %170, %cst_63 [1] : vector<8x8xf32> to vector<8xf32>
    %172 = vector.shape_cast %171 : vector<8xf32> to vector<8x1xf32>
    %173 = vector.broadcast %172 : vector<8x1xf32> to vector<8x8xf32>
    %174 = arith.subf %170, %173 : vector<8x8xf32>
    %175 = math.exp %174 : vector<8x8xf32>
    %cst_64 = arith.constant dense<0.000000e+00> : vector<8xf32>
    %176 = vector.multi_reduction <add>, %175, %cst_64 [1] : vector<8x8xf32> to vector<8xf32>
    %177 = vector.shape_cast %176 : vector<8xf32> to vector<8x1xf32>
    %178 = tpu.reciprocal %177 {approx = true} : vector<8x1xf32> -> vector<8x1xf32>
    %179 = vector.broadcast %178 : vector<8x1xf32> to vector<8x8xf32>
    %180 = arith.mulf %175, %179 : vector<8x8xf32>
    %181 = arith.truncf %180 : vector<8x8xf32> to vector<8x8xbf16>
    %182 = vector.extract_strided_slice %135 {offsets = [0, 64], sizes = [8, 32], strides = [1, 1]} : vector<8x128xbf16> to vector<8x32xbf16>
    %cst_65 = arith.constant dense<0.000000e+00> : vector<8x32xf32>
    %183 = tpu.matmul %181, %182, %cst_65 {dimension_numbers = #tpu.dot_dimension_numbers<[1], [0], [0], [1], [0, 0, 1, 1], [], []>} : vector<8x8xbf16>, vector<8x32xbf16>, vector<8x32xf32> -> vector<8x32xf32>
    %184 = vector.extract_strided_slice %133 {offsets = [0, 96], sizes = [8, 32], strides = [1, 1]} : vector<8x128xbf16> to vector<8x32xbf16>
    %185 = vector.extract_strided_slice %134 {offsets = [0, 96], sizes = [8, 32], strides = [1, 1]} : vector<8x128xbf16> to vector<8x32xbf16>
    %cst_66 = arith.constant dense<0.000000e+00> : vector<8x8xf32>
    %186 = tpu.matmul %184, %185, %cst_66 {dimension_numbers = #tpu.dot_dimension_numbers<[1], [1], [0], [0], [0, 0, 1, 0], [], []>} : vector<8x32xbf16>, vector<8x32xbf16>, vector<8x8xf32> -> vector<8x8xf32>
    %cst_67 = arith.constant dense<0xFF800000> : vector<8xf32>
    %187 = vector.multi_reduction <maximumf>, %186, %cst_67 [1] : vector<8x8xf32> to vector<8xf32>
    %188 = vector.shape_cast %187 : vector<8xf32> to vector<8x1xf32>
    %189 = vector.broadcast %188 : vector<8x1xf32> to vector<8x8xf32>
    %190 = arith.subf %186, %189 : vector<8x8xf32>
    %191 = math.exp %190 : vector<8x8xf32>
    %cst_68 = arith.constant dense<0.000000e+00> : vector<8xf32>
    %192 = vector.multi_reduction <add>, %191, %cst_68 [1] : vector<8x8xf32> to vector<8xf32>
    %193 = vector.shape_cast %192 : vector<8xf32> to vector<8x1xf32>
    %194 = tpu.reciprocal %193 {approx = true} : vector<8x1xf32> -> vector<8x1xf32>
    %195 = vector.broadcast %194 : vector<8x1xf32> to vector<8x8xf32>
    %196 = arith.mulf %191, %195 : vector<8x8xf32>
    %197 = arith.truncf %196 : vector<8x8xf32> to vector<8x8xbf16>
    %198 = vector.extract_strided_slice %135 {offsets = [0, 96], sizes = [8, 32], strides = [1, 1]} : vector<8x128xbf16> to vector<8x32xbf16>
    %cst_69 = arith.constant dense<0.000000e+00> : vector<8x32xf32>
    %199 = tpu.matmul %197, %198, %cst_69 {dimension_numbers = #tpu.dot_dimension_numbers<[1], [0], [0], [1], [0, 0, 1, 1], [], []>} : vector<8x8xbf16>, vector<8x32xbf16>, vector<8x32xf32> -> vector<8x32xf32>
    %200 = tpu.concatenate %151, %167, %183, %199 in 1 : vector<8x32xf32>, vector<8x32xf32>, vector<8x32xf32>, vector<8x32xf32> -> vector<8x128xf32>
    %201 = arith.truncf %200 : vector<8x128xf32> to vector<8x128xbf16>
    %c0_70 = arith.constant 0 : index
    %c0_71 = arith.constant 0 : index
    %202 = vector.load %arg14[%c0_70, %c0_71] : memref<128x128xbf16, #tpu.memory_space<vmem>>, vector<128x128xbf16>
    %cst_72 = arith.constant dense<0.000000e+00> : vector<8x128xf32>
    %203 = tpu.matmul %201, %202, %cst_72 {dimension_numbers = #tpu.dot_dimension_numbers<[1], [0], [0], [1], [0, 0, 1, 1], [], []>} : vector<8x128xbf16>, vector<128x128xbf16>, vector<8x128xf32> -> vector<8x128xf32>
    %c0_73 = arith.constant 0 : index
    %c0_74 = arith.constant 0 : index
    %204 = vector.load %arg15[%c0_73, %c0_74] : memref<1x128xf32, #tpu.memory_space<vmem>>, vector<1x128xf32>
    %205 = vector.broadcast %204 : vector<1x128xf32> to vector<8x128xf32>
    %206 = arith.addf %203, %205 : vector<8x128xf32>
    %207 = arith.addf %117, %206 : vector<8x128xf32>
    %c0_75 = arith.constant 0 : index
    %c0_76 = arith.constant 0 : index
    %208 = vector.load %arg16[%c0_75, %c0_76] : memref<1x128xf32, #tpu.memory_space<vmem>>, vector<1x128xf32>
    %c0_77 = arith.constant 0 : index
    %c0_78 = arith.constant 0 : index
    %209 = vector.load %arg17[%c0_77, %c0_78] : memref<1x128xf32, #tpu.memory_space<vmem>>, vector<1x128xf32>
    %cst_79 = arith.constant dense<0.000000e+00> : vector<8xf32>
    %210 = vector.multi_reduction <add>, %207, %cst_79 [1] : vector<8x128xf32> to vector<8xf32>
    %211 = vector.shape_cast %210 : vector<8xf32> to vector<8x1xf32>
    %cst_80 = arith.constant 1.280000e+02 : f32
    %212 = vector.broadcast %cst_80 : f32 to vector<8x1xf32>
    %213 = arith.divf %211, %212 : vector<8x1xf32>
    %214 = vector.broadcast %213 : vector<8x1xf32> to vector<8x128xf32>
    %215 = arith.subf %207, %214 : vector<8x128xf32>
    %216 = arith.mulf %215, %215 : vector<8x128xf32>
    %cst_81 = arith.constant dense<0.000000e+00> : vector<8xf32>
    %217 = vector.multi_reduction <add>, %216, %cst_81 [1] : vector<8x128xf32> to vector<8xf32>
    %218 = vector.shape_cast %217 : vector<8xf32> to vector<8x1xf32>
    %cst_82 = arith.constant 1.280000e+02 : f32
    %219 = vector.broadcast %cst_82 : f32 to vector<8x1xf32>
    %220 = arith.divf %218, %219 : vector<8x1xf32>
    %cst_83 = arith.constant 9.99999974E-6 : f32
    %221 = vector.broadcast %cst_83 : f32 to vector<8x1xf32>
    %222 = arith.addf %220, %221 : vector<8x1xf32>
    %223 = math.rsqrt %222 : vector<8x1xf32>
    %224 = vector.broadcast %223 : vector<8x1xf32> to vector<8x128xf32>
    %225 = arith.mulf %215, %224 : vector<8x128xf32>
    %226 = vector.broadcast %208 : vector<1x128xf32> to vector<8x128xf32>
    %227 = arith.mulf %225, %226 : vector<8x128xf32>
    %228 = vector.broadcast %209 : vector<1x128xf32> to vector<8x128xf32>
    %229 = arith.addf %227, %228 : vector<8x128xf32>
    %230 = arith.truncf %229 : vector<8x128xf32> to vector<8x128xbf16>
    %c0_84 = arith.constant 0 : index
    %c0_85 = arith.constant 0 : index
    %231 = vector.load %arg18[%c0_84, %c0_85] : memref<128x256xbf16, #tpu.memory_space<vmem>>, vector<128x256xbf16>
    %cst_86 = arith.constant dense<0.000000e+00> : vector<8x256xf32>
    %232 = tpu.matmul %230, %231, %cst_86 {dimension_numbers = #tpu.dot_dimension_numbers<[1], [0], [0], [1], [0, 0, 1, 1], [], []>} : vector<8x128xbf16>, vector<128x256xbf16>, vector<8x256xf32> -> vector<8x256xf32>
    %c0_87 = arith.constant 0 : index
    %c0_88 = arith.constant 0 : index
    %233 = vector.load %arg19[%c0_87, %c0_88] : memref<1x256xf32, #tpu.memory_space<vmem>>, vector<1x256xf32>
    %234 = vector.broadcast %233 : vector<1x256xf32> to vector<8x256xf32>
    %235 = arith.addf %232, %234 : vector<8x256xf32>
    %cst_89 = arith.constant 0.000000e+00 : f32
    %236 = vector.broadcast %cst_89 : f32 to vector<8x256xf32>
    %237 = arith.maximumf %235, %236 : vector<8x256xf32>
    %238 = arith.truncf %237 : vector<8x256xf32> to vector<8x256xbf16>
    %c0_90 = arith.constant 0 : index
    %c0_91 = arith.constant 0 : index
    %239 = vector.load %arg20[%c0_90, %c0_91] : memref<256x128xbf16, #tpu.memory_space<vmem>>, vector<256x128xbf16>
    %cst_92 = arith.constant dense<0.000000e+00> : vector<8x128xf32>
    %240 = tpu.matmul %238, %239, %cst_92 {dimension_numbers = #tpu.dot_dimension_numbers<[1], [0], [0], [1], [0, 0, 1, 1], [], []>} : vector<8x256xbf16>, vector<256x128xbf16>, vector<8x128xf32> -> vector<8x128xf32>
    %c0_93 = arith.constant 0 : index
    %c0_94 = arith.constant 0 : index
    %241 = vector.load %arg21[%c0_93, %c0_94] : memref<1x128xf32, #tpu.memory_space<vmem>>, vector<1x128xf32>
    %242 = vector.broadcast %241 : vector<1x128xf32> to vector<8x128xf32>
    %243 = arith.addf %240, %242 : vector<8x128xf32>
    %244 = arith.addf %229, %243 : vector<8x128xf32>
    %c0_95 = arith.constant 0 : index
    %c0_96 = arith.constant 0 : index
    %245 = vector.load %arg22[%c0_95, %c0_96] : memref<1x128xf32, #tpu.memory_space<vmem>>, vector<1x128xf32>
    %c0_97 = arith.constant 0 : index
    %c0_98 = arith.constant 0 : index
    %246 = vector.load %arg23[%c0_97, %c0_98] : memref<1x128xf32, #tpu.memory_space<vmem>>, vector<1x128xf32>
    %cst_99 = arith.constant dense<0.000000e+00> : vector<8xf32>
    %247 = vector.multi_reduction <add>, %244, %cst_99 [1] : vector<8x128xf32> to vector<8xf32>
    %248 = vector.shape_cast %247 : vector<8xf32> to vector<8x1xf32>
    %cst_100 = arith.constant 1.280000e+02 : f32
    %249 = vector.broadcast %cst_100 : f32 to vector<8x1xf32>
    %250 = arith.divf %248, %249 : vector<8x1xf32>
    %251 = vector.broadcast %250 : vector<8x1xf32> to vector<8x128xf32>
    %252 = arith.subf %244, %251 : vector<8x128xf32>
    %253 = arith.mulf %252, %252 : vector<8x128xf32>
    %cst_101 = arith.constant dense<0.000000e+00> : vector<8xf32>
    %254 = vector.multi_reduction <add>, %253, %cst_101 [1] : vector<8x128xf32> to vector<8xf32>
    %255 = vector.shape_cast %254 : vector<8xf32> to vector<8x1xf32>
    %cst_102 = arith.constant 1.280000e+02 : f32
    %256 = vector.broadcast %cst_102 : f32 to vector<8x1xf32>
    %257 = arith.divf %255, %256 : vector<8x1xf32>
    %cst_103 = arith.constant 9.99999974E-6 : f32
    %258 = vector.broadcast %cst_103 : f32 to vector<8x1xf32>
    %259 = arith.addf %257, %258 : vector<8x1xf32>
    %260 = math.rsqrt %259 : vector<8x1xf32>
    %261 = vector.broadcast %260 : vector<8x1xf32> to vector<8x128xf32>
    %262 = arith.mulf %252, %261 : vector<8x128xf32>
    %263 = vector.broadcast %245 : vector<1x128xf32> to vector<8x128xf32>
    %264 = arith.mulf %262, %263 : vector<8x128xf32>
    %265 = vector.broadcast %246 : vector<1x128xf32> to vector<8x128xf32>
    %266 = arith.addf %264, %265 : vector<8x128xf32>
    %267 = arith.truncf %266 : vector<8x128xf32> to vector<8x128xbf16>
    %c0_104 = arith.constant 0 : index
    %c0_105 = arith.constant 0 : index
    %c0_106 = arith.constant 0 : index
    %268 = vector.load %arg24[%c0_104, %c0_105, %c0_106] : memref<1x8x128xbf16, #tpu.memory_space<vmem>>, vector<1x8x128xbf16>
    %269 = vector.shape_cast %268 : vector<1x8x128xbf16> to vector<8x128xbf16>
    %270 = vector.shape_cast %267 : vector<8x128xbf16> to vector<1x8x128xbf16>
    tpu.vector_store %arg24[%c0_104, %c0_105, %c0_106], %270 {strides = array<i32>} : memref<1x8x128xbf16, #tpu.memory_space<vmem>>, vector<1x8x128xbf16>,
    return
  }
  func.func @transform_0(%arg0: i32) -> (i32, i32, i32) {
    %c0_i32 = arith.constant 0 : i32
    %c0_i32_0 = arith.constant 0 : i32
    %c0_i32_1 = arith.constant 0 : i32
    return %arg0, %c0_i32, %c0_i32_0 : i32, i32, i32
  }
  func.func @transform_1(%arg0: i32) -> (i32, i32, i32) {
    %c0_i32 = arith.constant 0 : i32
    %c0_i32_0 = arith.constant 0 : i32
    %c0_i32_1 = arith.constant 0 : i32
    return %arg0, %c0_i32, %c0_i32_0 : i32, i32, i32
  }
  func.func @transform_2(%arg0: i32) -> (i32, i32, i32) {
    %c0_i32 = arith.constant 0 : i32
    %c0_i32_0 = arith.constant 0 : i32
    %c0_i32_1 = arith.constant 0 : i32
    return %arg0, %c0_i32, %c0_i32_0 : i32, i32, i32
  }
  func.func @transform_3(%arg0: i32) -> (i32, i32) {
    %c0_i32 = arith.constant 0 : i32
    %c0_i32_0 = arith.constant 0 : i32
    %c0_i32_1 = arith.constant 0 : i32
    return %c0_i32, %c0_i32_0 : i32, i32
  }
  func.func @transform_4(%arg0: i32) -> (i32, i32) {
    %c0_i32 = arith.constant 0 : i32
    %c0_i32_0 = arith.constant 0 : i32
    %c0_i32_1 = arith.constant 0 : i32
    return %c0_i32, %c0_i32_0 : i32, i32
  }
  func.func @transform_5(%arg0: i32) -> (i32, i32) {
    %c0_i32 = arith.constant 0 : i32
    %c0_i32_0 = arith.constant 0 : i32
    %c0_i32_1 = arith.constant 0 : i32
    return %c0_i32, %c0_i32_0 : i32, i32
  }
  func.func @transform_6(%arg0: i32) -> (i32, i32) {
    %c0_i32 = arith.constant 0 : i32
    %c0_i32_0 = arith.constant 0 : i32
    %c0_i32_1 = arith.constant 0 : i32
    return %c0_i32, %c0_i32_0 : i32, i32
  }
  func.func @transform_7(%arg0: i32) -> (i32, i32) {
    %c0_i32 = arith.constant 0 : i32
    %c0_i32_0 = arith.constant 0 : i32
    %c0_i32_1 = arith.constant 0 : i32
    return %c0_i32, %c0_i32_0 : i32, i32
  }
  func.func @transform_8(%arg0: i32) -> (i32, i32) {
    %c0_i32 = arith.constant 0 : i32
    %c0_i32_0 = arith.constant 0 : i32
    %c0_i32_1 = arith.constant 0 : i32
    return %c0_i32, %c0_i32_0 : i32, i32
  }
  func.func @transform_9(%arg0: i32) -> (i32, i32) {
    %c0_i32 = arith.constant 0 : i32
    %c0_i32_0 = arith.constant 0 : i32
    %c0_i32_1 = arith.constant 0 : i32
    return %c0_i32, %c0_i32_0 : i32, i32
  }
  func.func @transform_10(%arg0: i32) -> (i32, i32) {
    %c0_i32 = arith.constant 0 : i32
    %c0_i32_0 = arith.constant 0 : i32
    %c0_i32_1 = arith.constant 0 : i32
    return %c0_i32, %c0_i32_0 : i32, i32
  }
  func.func @transform_11(%arg0: i32) -> (i32, i32) {
    %c0_i32 = arith.constant 0 : i32
    %c0_i32_0 = arith.constant 0 : i32
    %c0_i32_1 = arith.constant 0 : i32
    return %c0_i32, %c0_i32_0 : i32, i32
  }
  func.func @transform_12(%arg0: i32) -> (i32, i32) {
    %c0_i32 = arith.constant 0 : i32
    %c0_i32_0 = arith.constant 0 : i32
    %c0_i32_1 = arith.constant 0 : i32
    return %c0_i32, %c0_i32_0 : i32, i32
  }
  func.func @transform_13(%arg0: i32) -> (i32, i32) {
    %c0_i32 = arith.constant 0 : i32
    %c0_i32_0 = arith.constant 0 : i32
    %c0_i32_1 = arith.constant 0 : i32
    return %c0_i32, %c0_i32_0 : i32, i32
  }
  func.func @transform_14(%arg0: i32) -> (i32, i32) {
    %c0_i32 = arith.constant 0 : i32
    %c0_i32_0 = arith.constant 0 : i32
    %c0_i32_1 = arith.constant 0 : i32
    return %c0_i32, %c0_i32_0 : i32, i32
  }
  func.func @transform_15(%arg0: i32) -> (i32, i32) {
    %c0_i32 = arith.constant 0 : i32
    %c0_i32_0 = arith.constant 0 : i32
    %c0_i32_1 = arith.constant 0 : i32
    return %c0_i32, %c0_i32_0 : i32, i32
  }
  func.func @transform_16(%arg0: i32) -> (i32, i32) {
    %c0_i32 = arith.constant 0 : i32
    %c0_i32_0 = arith.constant 0 : i32
    %c0_i32_1 = arith.constant 0 : i32
    return %c0_i32, %c0_i32_0 : i32, i32
  }
  func.func @transform_17(%arg0: i32) -> (i32, i32) {
    %c0_i32 = arith.constant 0 : i32
    %c0_i32_0 = arith.constant 0 : i32
    %c0_i32_1 = arith.constant 0 : i32
    return %c0_i32, %c0_i32_0 : i32, i32
  }
  func.func @transform_18(%arg0: i32) -> (i32, i32) {
    %c0_i32 = arith.constant 0 : i32
    %c0_i32_0 = arith.constant 0 : i32
    %c0_i32_1 = arith.constant 0 : i32
    return %c0_i32, %c0_i32_0 : i32, i32
  }
  func.func @transform_19(%arg0: i32) -> (i32, i32) {
    %c0_i32 = arith.constant 0 : i32
    %c0_i32_0 = arith.constant 0 : i32
    %c0_i32_1 = arith.constant 0 : i32
    return %c0_i32, %c0_i32_0 : i32, i32
  }
  func.func @transform_20(%arg0: i32) -> (i32, i32) {
    %c0_i32 = arith.constant 0 : i32
    %c0_i32_0 = arith.constant 0 : i32
    %c0_i32_1 = arith.constant 0 : i32
    return %c0_i32, %c0_i32_0 : i32, i32
  }
  func.func @transform_21(%arg0: i32) -> (i32, i32) {
    %c0_i32 = arith.constant 0 : i32
    %c0_i32_0 = arith.constant 0 : i32
    %c0_i32_1 = arith.constant 0 : i32
    return %c0_i32, %c0_i32_0 : i32, i32
  }
  func.func @transform_22(%arg0: i32) -> (i32, i32) {
    %c0_i32 = arith.constant 0 : i32
    %c0_i32_0 = arith.constant 0 : i32
    %c0_i32_1 = arith.constant 0 : i32
    return %c0_i32, %c0_i32_0 : i32, i32
  }
  func.func @transform_23(%arg0: i32) -> (i32, i32, i32) {
    %c0_i32 = arith.constant 0 : i32
    %c0_i32_0 = arith.constant 0 : i32
    %c0_i32_1 = arith.constant 0 : i32
    return %arg0, %c0_i32, %c0_i32_0 : i32, i32, i32
  }
}

module attributes {stable_mosaic.version = 11 : i64} {
  func.func @_ln_linear_kernel(%arg0: i32, %arg1: i32, %arg2: memref<16x128xbf16, #tpu.memory_space<vmem>>, %arg3: memref<1x128xf32, #tpu.memory_space<vmem>>, %arg4: memref<1x128xf32, #tpu.memory_space<vmem>>, %arg5: memref<128x512xbf16, #tpu.memory_space<vmem>>, %arg6: memref<1x512xf32, #tpu.memory_space<vmem>>, %arg7: memref<16x512xf32, #tpu.memory_space<vmem>>) attributes {dimension_semantics = [#tpu.dimension_semantics<parallel>, #tpu.dimension_semantics<parallel>], iteration_bounds = array<i64: 1, 1>, scalar_prefetch = 0 : i64, scratch_operands = 0 : i64, tpu.core_type = #tpu.core_type<tc>, window_params = [{transform_indices = @transform_0, window_bounds = array<i64: 16, 128>}, {pipeline_mode = #tpu.pipeline_mode<synchronous>, transform_indices = @transform_1, window_bounds = array<i64: 1, 128>}, {pipeline_mode = #tpu.pipeline_mode<synchronous>, transform_indices = @transform_2, window_bounds = array<i64: 1, 128>}, {transform_indices = @transform_3, window_bounds = array<i64: 128, 512>}, {transform_indices = @transform_4, window_bounds = array<i64: 1, 512>}, {transform_indices = @transform_5, window_bounds = array<i64: 16, 512>}]} {
    %c0 = arith.constant 0 : index
    %c0_0 = arith.constant 0 : index
    %0 = vector.load %arg2[%c0, %c0_0] : memref<16x128xbf16, #tpu.memory_space<vmem>>, vector<16x128xbf16>
    %1 = arith.extf %0 : vector<16x128xbf16> to vector<16x128xf32>
    %c0_1 = arith.constant 0 : index
    %c0_2 = arith.constant 0 : index
    %2 = vector.load %arg3[%c0_1, %c0_2] : memref<1x128xf32, #tpu.memory_space<vmem>>, vector<1x128xf32>
    %c0_3 = arith.constant 0 : index
    %c0_4 = arith.constant 0 : index
    %3 = vector.load %arg4[%c0_3, %c0_4] : memref<1x128xf32, #tpu.memory_space<vmem>>, vector<1x128xf32>
    %cst = arith.constant dense<0.000000e+00> : vector<16xf32>
    %4 = vector.multi_reduction <add>, %1, %cst [1] : vector<16x128xf32> to vector<16xf32>
    %5 = vector.shape_cast %4 : vector<16xf32> to vector<16x1xf32>
    %cst_5 = arith.constant 1.280000e+02 : f32
    %6 = vector.broadcast %cst_5 : f32 to vector<16x1xf32>
    %7 = arith.divf %5, %6 : vector<16x1xf32>
    %8 = vector.broadcast %7 : vector<16x1xf32> to vector<16x128xf32>
    %9 = arith.subf %1, %8 : vector<16x128xf32>
    %10 = arith.mulf %9, %9 : vector<16x128xf32>
    %cst_6 = arith.constant dense<0.000000e+00> : vector<16xf32>
    %11 = vector.multi_reduction <add>, %10, %cst_6 [1] : vector<16x128xf32> to vector<16xf32>
    %12 = vector.shape_cast %11 : vector<16xf32> to vector<16x1xf32>
    %cst_7 = arith.constant 1.280000e+02 : f32
    %13 = vector.broadcast %cst_7 : f32 to vector<16x1xf32>
    %14 = arith.divf %12, %13 : vector<16x1xf32>
    %cst_8 = arith.constant 9.99999974E-6 : f32
    %15 = vector.broadcast %cst_8 : f32 to vector<16x1xf32>
    %16 = arith.addf %14, %15 : vector<16x1xf32>
    %17 = math.rsqrt %16 : vector<16x1xf32>
    %18 = vector.broadcast %17 : vector<16x1xf32> to vector<16x128xf32>
    %19 = arith.mulf %9, %18 : vector<16x128xf32>
    %20 = vector.broadcast %2 : vector<1x128xf32> to vector<16x128xf32>
    %21 = arith.mulf %19, %20 : vector<16x128xf32>
    %22 = vector.broadcast %3 : vector<1x128xf32> to vector<16x128xf32>
    %23 = arith.addf %21, %22 : vector<16x128xf32>
    %24 = arith.truncf %23 : vector<16x128xf32> to vector<16x128xbf16>
    %c0_9 = arith.constant 0 : index
    %c0_10 = arith.constant 0 : index
    %25 = vector.load %arg5[%c0_9, %c0_10] : memref<128x512xbf16, #tpu.memory_space<vmem>>, vector<128x512xbf16>
    %cst_11 = arith.constant dense<0.000000e+00> : vector<16x512xf32>
    %26 = tpu.matmul %24, %25, %cst_11 {dimension_numbers = #tpu.dot_dimension_numbers<[1], [0], [0], [1], [0, 0, 1, 1], [], []>} : vector<16x128xbf16>, vector<128x512xbf16>, vector<16x512xf32> -> vector<16x512xf32>
    %c0_12 = arith.constant 0 : index
    %c0_13 = arith.constant 0 : index
    %27 = vector.load %arg6[%c0_12, %c0_13] : memref<1x512xf32, #tpu.memory_space<vmem>>, vector<1x512xf32>
    %28 = vector.broadcast %27 : vector<1x512xf32> to vector<16x512xf32>
    %29 = arith.addf %26, %28 : vector<16x512xf32>
    %c0_14 = arith.constant 0 : index
    %c0_15 = arith.constant 0 : index
    %30 = vector.load %arg7[%c0_14, %c0_15] : memref<16x512xf32, #tpu.memory_space<vmem>>, vector<16x512xf32>
    tpu.vector_store %arg7[%c0_14, %c0_15], %29 {strides = array<i32>} : memref<16x512xf32, #tpu.memory_space<vmem>>, vector<16x512xf32>,
    return
  }
  func.func @transform_0(%arg0: i32, %arg1: i32) -> (i32, i32) {
    %c0_i32 = arith.constant 0 : i32
    %c0_i32_0 = arith.constant 0 : i32
    return %arg1, %c0_i32 : i32, i32
  }
  func.func @transform_1(%arg0: i32, %arg1: i32) -> (i32, i32) {
    %c0_i32 = arith.constant 0 : i32
    %c0_i32_0 = arith.constant 0 : i32
    %c0_i32_1 = arith.constant 0 : i32
    return %c0_i32, %c0_i32_0 : i32, i32
  }
  func.func @transform_2(%arg0: i32, %arg1: i32) -> (i32, i32) {
    %c0_i32 = arith.constant 0 : i32
    %c0_i32_0 = arith.constant 0 : i32
    %c0_i32_1 = arith.constant 0 : i32
    return %c0_i32, %c0_i32_0 : i32, i32
  }
  func.func @transform_3(%arg0: i32, %arg1: i32) -> (i32, i32) {
    %c0_i32 = arith.constant 0 : i32
    %c0_i32_0 = arith.constant 0 : i32
    return %c0_i32, %arg0 : i32, i32
  }
  func.func @transform_4(%arg0: i32, %arg1: i32) -> (i32, i32) {
    %c0_i32 = arith.constant 0 : i32
    %c0_i32_0 = arith.constant 0 : i32
    return %c0_i32, %arg0 : i32, i32
  }
  func.func @transform_5(%arg0: i32, %arg1: i32) -> (i32, i32) {
    %c0_i32 = arith.constant 0 : i32
    return %arg1, %arg0 : i32, i32
  }
}

</mosaic_0001>

<bundles_post_ra>
// kernel: transformer_seq2seq_forward.6
= control target key start
LH: loop header
LB: loop body
LE: loop exit
PB: predicated region body
PF: predicated region fallthrough
CT: control target
= control target key end

     0   :  { %s2422_s0 = inlined_call_operand.vmem [shape: bf16[2,8,128], index: 0, kind: input, shape index: {}]   ;;  %s2423_s1 = inlined_call_operand.hbm [shape: bf16[128,384], index: 1, kind: input, shape index: {}]   ;;  %s2424_s2 = inlined_call_operand.vmem [shape: f32[1,384], index: 2, kind: input, shape index: {}]   ;;  %s2425_s3 = inlined_call_operand.hbm [shape: bf16[128,128], index: 3, kind: input, shape index: {}]   ;;  %s2426_s4 = inlined_call_operand.vmem [shape: f32[1,128], index: 4, kind: input, shape index: {}]   ;;  %s2427_s5 = inlined_call_operand.vmem [shape: f32[1,128], index: 5, kind: input, shape index: {}]   ;;  %s2428_s6 = inlined_call_operand.vmem [shape: f32[1,128], index: 6, kind: input, shape index: {}]   ;;  %s2429_s7 = inlined_call_operand.hbm [shape: bf16[128,256], index: 7, kind: input, shape index: {}]   ;;  %s2430_s8 = inlined_call_operand.vmem [shape: f32[1,256], index: 8, kind: input, shape index: {}]   ;;  %s2431_s9 = inlined_call_operand.hbm [shape: bf16[256,128], index: 9, kind: input, shape index: {}]   ;;  %s2432_s10 = inlined_call_operand.vmem [shape: f32[1,128], index: 10, kind: input, shape index: {}]   ;;  %s2433_s11 = inlined_call_operand.vmem [shape: f32[1,128], index: 11, kind: input, shape index: {}]   ;;  %s2434_s12 = inlined_call_operand.vmem [shape: f32[1,128], index: 12, kind: input, shape index: {}]   ;;  %s2435_s13 = inlined_call_operand.vmem [shape: f32[1,128], index: 13, kind: input, shape index: {}]   ;;  %s2436_s14 = inlined_call_operand.vmem [shape: f32[1,128], index: 14, kind: input, shape index: {}]   ;;  %s2437_s15 = inlined_call_operand.vmem [shape: bf16[2,8,128], index: 15, kind: output, shape index: {}]  }
   0x1   :  { %2439 = sst [smem:[#allocation13_spill]] %s2423_s1 }
   0x2   :  { %2440 = sst [smem:[#allocation14_spill]] %s2425_s3 }
   0x3   :  { %2441 = sst [smem:[#allocation15_spill]] %s2435_s13 }
   0x4   :  { %2442 = sst [smem:[#allocation16_spill]] %s2436_s14 }
   0x5   :  { %2443 = sst [smem:[#allocation17_spill]] %s2437_s15 }
   0x6   :  { %20 = vsyncpa [#allocation3], 0 }
   0x7   :  { %21 = vsyncpa [#allocation5], 0 }
   0x8   :  { %22 = vsyncpa [#allocation8], 0  ;;  %s2256_s18 = smov 0  }
   0x9 LB: > { %2444 = sst [smem:[#allocation12_spill]] %s2160_s18  ;;  %s2265_s22 = sadd.s32 4294967295, %s2160_s18   ;;  %s2160_s18 = sphi %s2256_s18, %s28_s18  }
   0xa   : > { %s2445_s3 = sld [smem:[#allocation14_spill]]  ;;  %p1588_p0 = scmp.ge.s32.totalorder %s2160_s18, 1 }
   0xb   : > { %p379_p1 = scmp.lt.s32.totalorder %s2160_s18, 3  ;;  %p1960_p2 = scmp.eq.s32.totalorder %s2265_s22, 0 }
   0xc   : > { %s2162_s24 = smov [#allocation4]   ;;  %s2447_s1 = sld [smem:[#allocation13_spill]] }
   0xd   : > { %p2270_p3 = pnand %p1588_p0, %p379_p1  ;;  %s409_s25 = sshll.u32 %s2162_s24, 4  ;;  %s410_s25 = int_to_ptr.vmem [resolvable:$true] %s409_s25 }
   0xe   : > { %s2163_s30 = smov [#allocation2]   ;;  %s2164_s17 = smov 64  }
   0xf   : > { %p1947_p4 = pneg %p2270_p3  ;;  %s392_s16 = sshll.u32 %s2163_s30, 4  ;;  %s393_s16 = int_to_ptr.vmem [resolvable:$true] %s392_s16 }
  0x10   : > { %s407_s21 = sshll.u32 %s2445_s3, 4  ;;  %s2165_s19 = smov 4   ;;  %s408_s21 = int_to_ptr.hbm [resolvable:$true] %s407_s21 }
  0x11   : > { %p2281_p5 = pnand %p1960_p2, %p1947_p4  ;;  %s430_s26 = sshll.u32 %s2429_s7, 4  ;;  %s431_s26 = int_to_ptr.hbm [resolvable:$true] %s430_s26 }
  0x12   : > { %s390_s28 = sshll.u32 %s2447_s1, 4  ;;  %s2166_s27 = smov 192   ;;  %s391_s28 = int_to_ptr.hbm [resolvable:$true] %s390_s28 }
  0x13   : > { %1953 = dma.hbm_to_vmem [thread:$0]  (!%p2281_p5), %s408_s21, 1024, %s410_s25, [#allocation5], %s2164_s17, %s2164_s17, %s2165_s19  }
  0x14   : > { %s2167_s1 = smov 12   ;;  %s2168_s3 = smov [#allocation6]  }
  0x15   : > { %1950 = dma.hbm_to_vmem [thread:$0]  (!%p2281_p5), %s391_s28, 3072, %s393_s16, [#allocation3], %s2166_s27, %s2166_s27, %s2167_s1  }
  0x16   : > { %s432_s18 = sshll.u32 %s2168_s3, 4  ;;  %s2169_s15 = smov 128   ;;  %s433_s18 = int_to_ptr.vmem [resolvable:$true] %s432_s18 }
  0x17   : > { %s2170_s30 = smov 8   ;;  %s447_s21 = sshll.u32 %s2431_s9, 4  ;;  %s448_s21 = int_to_ptr.hbm [resolvable:$true] %s447_s21 }
  0x18   : > { %1956 = dma.hbm_to_vmem [thread:$0]  (!%p2281_p5), %s431_s26, 2048, %s433_s18, [#allocation5], %s2169_s15, %s2169_s15, %s2170_s30  }
  0x19   : > { %s2171_s25 = smov [#allocation7]   ;;  %487 = sbr.rel (%p2270_p3) target bundleno = 2480 (0x9b0), region = 80 }
  0x1a   : > { %s449_s20 = sshll.u32 %s2171_s25, 4  ;;  %s450_s20 = int_to_ptr.vmem [resolvable:$true] %s449_s20 }
  0x1b   : > { %1959 = dma.hbm_to_vmem [thread:$0]  (!%p2281_p5), %s448_s21, 2048, %s450_s20, [#allocation8], %s2164_s17, %s2164_s17, %s2165_s19  }
  0x1e   : > { %2147 = dma.done.wait (%p1960_p2), [#allocation3], 3072  }
  0x1f   : > { %2149 = vsyncadd (%p1960_p2), [#allocation3], 4294964224 }
  0x20   : > { %2151 = dma.done.wait (%p1960_p2), [#allocation5], 3072  }
  0x21   : > { %2153 = vsyncadd (%p1960_p2), [#allocation5], 4294964224 }
  0x22   : > { %2155 = dma.done.wait (%p1960_p2), [#allocation8], 2048  }
  0x23   : > { %2157 = vsyncadd (%p1960_p2), [#allocation8], 4294965248  ;;  %v1687_v0 = vld [vmem:[#allocation2 + $0xa8] sm:$0xf]  ;;  %v1889_v1 = vld [vmem:[#allocation2 + $0xb0] sm:$0xf0] }
  0x24   : > { %v1888_v2 = vld [vmem:[#allocation2 + $0xac] sm:$0xf]  ;;  %v1688_v3 = vor.u32 %v1889_v1, %v1687_v0  ;;  %v1689_v4 = vld [vmem:[#allocation2 + $0xb4] sm:$0xf0]  ;;  %v1675_v5 = vld [vmem:[#allocation2 + $0x90] sm:$0xf] }
  0x25   : > { %v1886_v6 = vld [vmem:[#allocation2 + $0x98] sm:$0xf0]  ;;  %v1692_v7 = vor.u32 %v1888_v2, %v1689_v4  ;;  %v1885_v8 = vld [vmem:[#allocation2 + $0x94] sm:$0xf]  ;;  %v1677_v9 = vld [vmem:[#allocation2 + $0x9c] sm:$0xf0] }
  0x26   : > { %728 = vmatpush.bf16.msra.mxu0 %v1688_v3  ;;  %v1676_v10 = vor.u32 %v1886_v6, %v1675_v5  ;;  %v1680_v11 = vor.u32 %v1885_v8, %v1677_v9  ;;  %v1663_v12 = vld [vmem:[#allocation2 + $0x78] sm:$0xf]  ;;  %v1883_v13 = vld [vmem:[#allocation2 + $0x80] sm:$0xf0]  ;;  %v1882_v14 = vld [vmem:[#allocation2 + $0x7c] sm:$0xf] }
  0x27   : > { %741 = vmatpush.bf16.msra.mxu1 %v1692_v7  ;;  %v1665_v15 = vld [vmem:[#allocation2 + $0x84] sm:$0xf0]  ;;  %v1664_v16 = vor.u32 %v1883_v13, %v1663_v12  ;;  %v1651_v18 = vld [vmem:[#allocation2 + $0x60] sm:$0xf]  ;;  %v1880_v19 = vld [vmem:[#allocation2 + $0x68] sm:$0xf0] }
  0x28   : > { %v1668_v17 = vor.u32 %v1882_v14, %v1665_v15  ;;  %v1879_v20 = vld [vmem:[#allocation2 + $0x64] sm:$0xf]  ;;  %v1653_v21 = vld [vmem:[#allocation2 + $0x6c] sm:$0xf0]  ;;  %v1652_v22 = vor.u32 %v1880_v19, %v1651_v18  ;;  %v1890_v24 = vld [vmem:[#allocation2 + $0xb8] sm:$0xf0] }
  0x29   : > { %v1695_v23 = vld [vmem:[#allocation2 + $0xb0] sm:$0xf]  ;;  %v1683_v25 = vld [vmem:[#allocation2 + $0x98] sm:$0xf]  ;;  %v1656_v26 = vor.u32 %v1879_v20, %v1653_v21  ;;  %v1639_v27 = vld [vmem:[#allocation2 + $0x48] sm:$0xf] }
  0x2a   : > { %729 = vmatpush.bf16.msra.mxu0 %v1676_v10  ;;  %v1877_v28 = vld [vmem:[#allocation2 + $0x50] sm:$0xf0]  ;;  %v1696_v29 = vor.u32 %v1890_v24, %v1695_v23  ;;  %v1887_v30 = vld [vmem:[#allocation2 + $0xa0] sm:$0xf0]  ;;  %v1876_v31 = vld [vmem:[#allocation2 + $0x4c] sm:$0xf] }
  0x2b   : > { %742 = vmatpush.bf16.msra.mxu1 %v1680_v11  ;;  %v1641_v32 = vld [vmem:[#allocation2 + $0x54] sm:$0xf0]  ;;  %v1627_v33 = vld [vmem:[#allocation2 + $0x30] sm:$0xf]  ;;  %p549_p6 = scmp.lt.s32.totalorder %s2265_s22, 1  ;;  %v1684_v34 = vor.u32 %v1887_v30, %v1683_v25  ;;  %v1640_v35 = vor.u32 %v1877_v28, %v1639_v27  ;;  %vm771_vm0 = vcmask 261120  }
  0x2c   : > { %754 = vmatpush.bf16.msra.mxu2 %v1696_v29  ;;  %v1874_v36 = vld [vmem:[#allocation2 + $0x38] sm:$0xf0]  ;;  %v1671_v37 = vld [vmem:[#allocation2 + $0x80] sm:$0xf]  ;;  %v1884_v38 = vld [vmem:[#allocation2 + $0x88] sm:$0xf0]  ;;  %v1644_v39 = vor.u32 %v1876_v31, %v1641_v32 }
  0x2d   : > { %v1873_v40 = vld [vmem:[#allocation2 + $0x34] sm:$0xf]  ;;  %v1629_v41 = vld [vmem:[#allocation2 + $0x3c] sm:$0xf0]  ;;  %v1659_v42 = vld [vmem:[#allocation2 + $0x68] sm:$0xf]  ;;  %v1672_v43 = vor.u32 %v1884_v38, %v1671_v37  ;;  %v1628_v44 = vor.u32 %v1874_v36, %v1627_v33 }
  0x2e   : > { %730 = vmatpush.bf16.msra.mxu0 %v1664_v16  ;;  %v1881_v45 = vld [vmem:[#allocation2 + $0x70] sm:$0xf0]  ;;  %v1632_v46 = vor.u32 %v1873_v40, %v1629_v41  ;;  %v1615_v47 = vld [vmem:[#allocation2 + $0x18] sm:$0xf]  ;;  %v1871_v48 = vld [vmem:[#allocation2 + $0x20] sm:$0xf0] }
  0x2f   : > { %743 = vmatpush.bf16.msra.mxu1 %v1668_v17  ;;  %v1870_v49 = vld [vmem:[#allocation2 + $0x1c] sm:$0xf]  ;;  %v1617_v50 = vld [vmem:[#allocation2 + $0x24] sm:$0xf0]  ;;  %s2454_s22 = smov (!%p549_p6, %s2265_s22), 1  ;;  %v1660_v51 = vor.u32 %v1881_v45, %v1659_v42  ;;  %v1616_v52 = vor.u32 %v1871_v48, %v1615_v47  ;;  %s2172_s23 = smov 64  }
  0x30   : > { %755 = vmatpush.bf16.msra.mxu2 %v1684_v34  ;;  %v1647_v53 = vld [vmem:[#allocation2 + $0x50] sm:$0xf]  ;;  %v1878_v54 = vld [vmem:[#allocation2 + $0x58] sm:$0xf0]  ;;  %v1620_v55 = vor.u32 %v1870_v49, %v1617_v50  ;;  %v1603_v56 = vld [vmem:[#allocation2] sm:$0xf] }
  0x31   : > { %v1868_v57 = vld [vmem:[#allocation2 + $0x8] sm:$0xf0]  ;;  %v1867_v58 = vld [vmem:[#allocation2 + $0x4] sm:$0xf]  ;;  %v1605_v59 = vld [vmem:[#allocation2 + $0xc] sm:$0xf0]  ;;  %v1648_v60 = vor.u32 %v1878_v54, %v1647_v53 }
  0x32   : > { %731 = vmatpush.bf16.msra.mxu0 %v1652_v22  ;;  %s1599_s1 = sshll.u32 %s2454_s22, 2  ;;  %v1604_v61 = vor.u32 %v1868_v57, %v1603_v56  ;;  %v1635_v62 = vld [vmem:[#allocation2 + $0x38] sm:$0xf]  ;;  %v1875_v63 = vld [vmem:[#allocation2 + $0x40] sm:$0xf0]  ;;  %v1608_v0 = vor.u32 %v1867_v58, %v1605_v59  ;;  %s2173_s28 = smov 96  }
  0x33   : > { %744 = vmatpush.bf16.msra.mxu1 %v1656_v26  ;;  %s552_s14 = scalar_lea.vmem %s2422_s0, %s1599_s1  ;;  %v1636_v1 = vor.u32 %v1875_v63, %v1635_v62  ;;  %v1623_v3 = vld [vmem:[#allocation2 + $0x20] sm:$0xf]  ;;  %v1872_v4 = vld [vmem:[#allocation2 + $0x28] sm:$0xf0]  ;;  %v1611_v6 = vld [vmem:[#allocation2 + $0x8] sm:$0xf] }
  0x34   : > { %756 = vmatpush.bf16.msra.mxu2 %v1672_v43  ;;  %v2325_v2 = vld [vmem:[%s552_s14] sm:$0xf]  ;;  %v1624_v5 = vor.u32 %v1872_v4, %v1623_v3  ;;  %v1869_v7 = vld [vmem:[#allocation2 + $0x10] sm:$0xf0]  ;;  %s2174_s29 = smov 32   ;;  %vm807_vm1 = vcmask 1043456  }
  0x35   : > { %v1612_v8 = vor.u32 %v1869_v7, %v1611_v6  ;;  %v592_v9 = vld [vmem:[%s2424_s2] sm:$0x7]  ;;  %vm791_vm2 = vcmask 64512   ;;  %vm1014_vm3 = vcmask 523264   ;;  %vm1016_vm4 = vcmask 785408   ;;  %s2450_s17 = sld [smem:[#allocation16_spill]] }
  0x36   : > { %732 = vmatpush.bf16.msra.mxu0 %v1640_v35  ;;  %v594_v10 = vperm.slane %v592_v9, 0  ;;  %v595_v11 = vperm.slane %v592_v9, 1  ;;  %v596_v27 = vperm.slane %v592_v9, 2  ;;  %s2451_s26 = sld [smem:[#allocation17_spill]] }
  0x37   : > { %745 = vmatpush.bf16.msra.mxu1 %v1644_v39 }
  0x38   : > { %757 = vmatpush.bf16.msra.mxu2 %v1660_v51 }
  0x3a   : > { %733 = vmatpush.bf16.msra.mxu0 %v1628_v44 }
  0x3b   : > { %746 = vmatpush.bf16.msra.mxu1 %v1632_v46 }
  0x3c   : > { %758 = vmatpush.bf16.msra.mxu2 %v1648_v60  ;;  %s556_s27 = scalar_lea.vmem %s2451_s26, %s1599_s1 }
  0x3e   : > { %734 = vmatpush.bf16.msra.mxu0 %v1616_v52 }
  0x3f   : > { %747 = vmatpush.bf16.msra.mxu1 %v1620_v55 }
  0x40   : > { %759 = vmatpush.bf16.msra.mxu2 %v1636_v1 }
  0x42   : > { %735 = vmatpush.bf16.msra.mxu0 %v1604_v61 }
  0x43   : > { %748 = vmatpush.bf16.msra.mxu1 %v1608_v0 }
  0x44   : > { %760 = vmatpush.bf16.msra.mxu2 %v1624_v5 }
  0x45   : > { %736 = vmatmul.bf16.vlgmr.msra.gmra.mxu0 %v2325_v2 }
  0x46   : > { %749 = vmatmul.bf16.vlgmr.msra.gmra.mxu1 %v2325_v2 }
  0x48   : > { %761 = vmatpush.bf16.msra.mxu2 %v1612_v8 }
  0x4b   : > { %762 = vmatmul.bf16.vlgmr.msra.gmra.mxu2 %v2325_v2 }
  0xc2   : > { %v737_v12 = vpop.f32.mrf.mxu0 }
  0xc3   : > { %v738_v13 = vadd.f32 %v737_v12, %v594_v10  ;;  %v750_v14 = vpop.f32.mrf.mxu1 }
  0xc4   : > { %v751_v15 = vadd.f32 %v750_v14, %v595_v11 }
  0xc5   : > { %v767_v16 = vmul.f32 0.17677669, %v738_v13 }
  0xc6   : > { %v769_v17 = vpack.c.bf16 %v751_v15, %v751_v15 }
  0xc7   : > { %v768_v18 = vpack.c.bf16 %v767_v16, %v767_v16 }
  0xc8   : > { %v830_v19 = vunpack.c.l.b16 %v769_v17  ;;  %v776_v20 = vsel %vm771_vm0, %v769_v17, 0 }
  0xc9   : > { %785 = vmatpush.bf16.xpose.msra.mxu3 %v776_v20  ;;  %v825_v24 = vunpack.c.l.b16 %v768_v18 }
  0xca   : > { %v831_v21 = vpack.c.b16 %v830_v19, %v830_v19  ;;  %v739_v22 = vpop.f32.mrf.mxu0 }
  0xcb   : > { %v752_v23 = vpop.f32.mrf.mxu1  ;;  %v826_v25 = vpack.c.b16 %v825_v24, %v825_v24 }
  0xcc   : > { %891 = vrot.lane.b32.xlu2 %v831_v21, %s2172_s23  ;;  %832 = vrot.lane.b32.xlu1 %v831_v21, %s2173_s28 }
  0xce   : > { %v763_v26 = vpop.f32.mrf.mxu2 }
  0xcf   : > { %v764_v28 = vadd.f32 %v763_v26, %v596_v27 }
  0xd0   : > { %1697 = vmatmul.msk.bf16.vlgmr.msra.gmra.mxu3 %vm771_vm0, %v768_v18 }
  0xd1   : > { %v770_v30 = vpack.c.bf16 %v764_v28, %v764_v28 }
  0xd3   : > { %v809_v31 = vsel %vm807_vm1, %v770_v30, 0  ;;  %v866_v0 = vunpack.c.l.b16 %v770_v30 }
  0xd4   : > { %947 = vrot.lane.b32.xlu2 %v831_v21, %s2174_s29  ;;  %827 = vrot.lane.b32.xlu1 %v826_v25, %s2173_s28 }
  0xd5   : > { %818 = vmatpush.bf16.msrb.mxu3 %v809_v31  ;;  %v867_v1 = vpack.c.b16 %v866_v0, %v866_v0  ;;  %v2175_v0 = vmov 128.0  }
  0xd6   : > { %v765_v29 = vpop.f32.mrf.mxu2 }
  0xdc   : > { %945 = vrot.lane.b32.xlu1 %v826_v25, %s2174_s29 }
 0x126   : > { %v892_v32 = vpop.permute.xlu2 %891 }
 0x127   : > { %v897_v33 = vsel %vm771_vm0, %v892_v32, 0 }
 0x128   : > { %906 = vmatpush.bf16.xpose.msrb.mxu2 %v897_v33 }
 0x12e   : > { %v948_v47 = vpop.permute.xlu2 %947 }
 0x12f   : > { %v953_v49 = vsel %vm771_vm0, %v948_v47, 0  ;;  %v1893_v47 = vld [vmem:[#allocation4 + $0x10] sm:$0xff] }
 0x13e   : > { %v833_v34 = vpop.permute.xlu1 %832 }
 0x13f   : > { %v838_v35 = vsel %vm771_vm0, %v833_v34, 0 }
 0x140   : > { %847 = vmatpush.bf16.xpose.msra.mxu3 %v838_v35 }
 0x146   : > { %v828_v51 = vpop.permute.xlu1 %827 }
 0x14e   : > { %v946_v52 = vpop.permute.xlu1 %945 }
 0x153   : > { %v787_v36 = vpop.f32.mrf.mxu3 }
 0x154   : > { %v792_v37 = vsel %vm791_vm2, %v787_v36, -inf }
 0x155   : > { %793 = vmax.xlane.f32.xlu0 %v792_v37 }
 0x15b   : > { %v789_v38 = vpop.f32.mrf.mxu3 }
 0x1c8   : > { %v794_v39 = vpop.xlane.xlu0 %793 }
 0x1c9   : > { %v795_v40 = vsub.f32 %v787_v36, %v794_v39 }
 0x1cb   : > { %v796_v41 = vmul.f32 1.442695, %v795_v40 }
 0x1cd   : > { %1998 = vpow2.f32 %v796_v41 }
 0x1d3   : > { %v1999_v42 = vpop.eup %1998 }
 0x1d4   : > { %v798_v43 = vsel %vm791_vm2, %v1999_v42, 0.0 }
 0x1d5   : > { %799 = vadd.xlane.f32.xlu0 %v798_v43  ;;  %v1897_v43 = vld [vmem:[#allocation4 + $0x30] sm:$0xff] }
 0x1e9   : > { %889 = vrot.lane.b32.xlu0 %v826_v25, %s2172_s23 }
 0x248   : > { %v800_v44 = vpop.xlane.xlu0 %799 }
 0x249   : > { %2000 = vrcp.f32 %v800_v44  ;;  %v1896_v44 = vld [vmem:[#allocation4 + $0x28] sm:$0xff] }
 0x24f   : > { %v2001_v45 = vpop.eup %2000 }
 0x250   : > { %v802_v46 = vmul.f32 %v2001_v45, %v1999_v42  ;;  %v1898_v42 = vld [vmem:[#allocation4 + $0x38] sm:$0xff]  ;;  %v1895_v45 = vld [vmem:[#allocation4 + $0x20] sm:$0xff] }
 0x251   : > { %1087 = vmatpush.bf16.msrb.mxu1 %v1898_v42  ;;  %v1903_v42 = vld [vmem:[#allocation6 + $0x24] sm:$0xf] }
 0x252   : > { %v803_v48 = vpack.c.bf16 %v802_v46, %v802_v46  ;;  %v1894_v46 = vld [vmem:[#allocation4 + $0x18] sm:$0xff] }
 0x254   : > { %1698 = vmatmul.msk.bf16.vlgmr.msrb.gmra.mxu3 %vm791_vm2, %v803_v48  ;;  %v1892_v48 = vld [vmem:[#allocation4 + $0x8] sm:$0xff] }
 0x255   : > { %962 = vmatpush.bf16.xpose.msrb.mxu3 %v953_v49  ;;  %1088 = vmatpush.bf16.msrb.mxu1 %v1897_v43  ;;  %v1891_v49 = vld [vmem:[#allocation4] sm:$0xff] }
 0x259   : > { %1089 = vmatpush.bf16.msrb.mxu1 %v1896_v44  ;;  %v1757_v44 = vld [vmem:[#allocation6 + $0x28] sm:$0xf0] }
 0x25b   : > { %v890_v50 = vpop.permute.xlu0 %889 }
 0x25c   : > { %1701 = vmatmul.msk.bf16.vlgmr.msrb.gmra.mxu2 %vm771_vm0, %v890_v50 }
 0x25d   : > { %1090 = vmatpush.bf16.msrb.mxu1 %v1895_v45  ;;  %v1760_v45 = vor.u32 %v1903_v42, %v1757_v44 }
 0x261   : > { %1091 = vmatpush.bf16.msrb.mxu1 %v1894_v46  ;;  %v1747_v46 = vld [vmem:[#allocation6 + $0x10] sm:$0xf] }
 0x264   : > { %1699 = vmatmul.msk.bf16.vlgmr.msra.gmra.mxu3 %vm771_vm0, %v828_v51 }
 0x265   : > { %1092 = vmatpush.bf16.msrb.mxu1 %v1893_v47  ;;  %v1902_v47 = vld [vmem:[#allocation6 + $0x14] sm:$0xf0] }
 0x269   : > { %1093 = vmatpush.bf16.msrb.mxu1 %v1892_v48  ;;  %v1901_v48 = vld [vmem:[#allocation6 + $0x14] sm:$0xf] }
 0x26d   : > { %1094 = vmatpush.bf16.msrb.mxu1 %v1891_v49  ;;  %v1748_v49 = vor.u32 %v1902_v47, %v1747_v46 }
 0x274   : > { %1703 = vmatmul.msk.bf16.vlgmr.msrb.gmra.mxu3 %vm771_vm0, %v946_v52 }
 0x2d7   : > { %v2351_v53 = vpop.f32.mrf.mxu3 }
 0x2df   : > { %v822_v54 = vpop.f32.mrf.mxu3  ;;  %v908_v55 = vpop.f32.mrf.mxu2 }
 0x2e0   : > { %v912_v56 = vsel %vm791_vm2, %v908_v55, -inf }
 0x2e1   : > { %913 = vmax.xlane.f32.xlu1 %v912_v56 }
 0x2e7   : > { %v849_v57 = vpop.f32.mrf.mxu3  ;;  %v910_v58 = vpop.f32.mrf.mxu2 }
 0x2e8   : > { %v853_v59 = vsel %vm791_vm2, %v849_v57, -inf  ;;  %v1990_v58 = vld [vmem:[%s2426_s4] ss:$0 sm:$0xff] }
 0x2e9   : > { %854 = vmax.xlane.f32.xlu2 %v853_v59  ;;  %v559_v59 = vunpack.c.l.bf16 %v2325_v2 }
 0x2ef   : > { %v851_v60 = vpop.f32.mrf.mxu3 }
 0x2f7   : > { %v964_v61 = vpop.f32.mrf.mxu3 }
 0x2f8   : > { %v968_v62 = vsel %vm791_vm2, %v964_v61, -inf }
 0x2f9   : > { %969 = vmax.xlane.f32.xlu0 %v968_v62 }
 0x2ff   : > { %v966_v63 = vpop.f32.mrf.mxu3 }
 0x30d   : > { %924 = vrot.lane.b32.xlu0 %v867_v1, %s2172_s23 }
 0x354   : > { %v914_v3 = vpop.xlane.xlu1 %913 }
 0x355   : > { %v915_v4 = vsub.f32 %v908_v55, %v914_v3  ;;  %v1913_v3 = vld [vmem:[#allocation6 + $0x74] sm:$0xf] }
 0x357   : > { %v916_v5 = vmul.f32 1.442695, %v915_v4 }
 0x359   : > { %2002 = vpow2.f32 %v916_v5  ;;  %v1797_v5 = vld [vmem:[#allocation6 + $0x78] sm:$0xf0] }
 0x35c   : > { %v855_v6 = vpop.xlane.xlu2 %854 }
 0x35d   : > { %v856_v7 = vsub.f32 %v849_v57, %v855_v6  ;;  %v1800_v6 = vor.u32 %v1913_v3, %v1797_v5  ;;  %v1928_v3 = vld [vmem:[#allocation7 + $0x68] sm:$0xff]  ;;  %v1927_v5 = vld [vmem:[#allocation7 + $0x60] sm:$0xff] }
 0x35f   : > { %v2003_v8 = vpop.eup %2002  ;;  %v857_v9 = vmul.f32 1.442695, %v856_v7  ;;  %1254 = vmatpush.bf16.msra.mxu3 %v1800_v6 }
 0x360   : > { %v918_v10 = vsel %vm791_vm2, %v2003_v8, 0.0 }
 0x361   : > { %2004 = vpow2.f32 %v857_v9  ;;  %919 = vadd.xlane.f32.xlu1 %v918_v10 }
 0x367   : > { %v2005_v11 = vpop.eup %2004 }
 0x368   : > { %v859_v12 = vsel %vm791_vm2, %v2005_v11, 0.0 }
 0x369   : > { %860 = vadd.xlane.f32.xlu2 %v859_v12 }
 0x36c   : > { %v970_v13 = vpop.xlane.xlu0 %969 }
 0x36d   : > { %v971_v14 = vsub.f32 %v964_v61, %v970_v13 }
 0x36f   : > { %v972_v15 = vmul.f32 1.442695, %v971_v14 }
 0x371   : > { %2006 = vpow2.f32 %v972_v15 }
 0x377   : > { %v2007_v16 = vpop.eup %2006 }
 0x378   : > { %v974_v17 = vsel %vm791_vm2, %v2007_v16, 0.0 }
 0x379   : > { %975 = vadd.xlane.f32.xlu1 %v974_v17  ;;  %v1912_v17 = vld [vmem:[#allocation6 + $0x64] sm:$0xf0] }
 0x37f   : > { %v925_v18 = vpop.permute.xlu0 %924 }
 0x380   : > { %v930_v19 = vsel %vm807_vm1, %v925_v18, 0  ;;  %v1911_v18 = vld [vmem:[#allocation6 + $0x64] sm:$0xf] }
 0x381   : > { %868 = vrot.lane.b32.xlu2 %v867_v1, %s2173_s28  ;;  %939 = vmatpush.bf16.msra.mxu2 %v930_v19 }
 0x392   : > { %980 = vrot.lane.b32.xlu1 %v867_v1, %s2174_s29  ;;  %v1795_v1 = vld [vmem:[#allocation6 + $0x70] sm:$0xf] }
 0x3d4   : > { %v920_v20 = vpop.xlane.xlu1 %919 }
 0x3d5   : > { %2008 = vrcp.f32 %v920_v20  ;;  %v1789_v20 = vld [vmem:[#allocation6 + $0x68] sm:$0xf0] }
 0x3db   : > { %v2009_v21 = vpop.eup %2008 }
 0x3dc   : > { %v922_v22 = vmul.f32 %v2009_v21, %v2003_v8  ;;  %v861_v23 = vpop.xlane.xlu2 %860  ;;  %v1792_v21 = vor.u32 %v1911_v18, %v1789_v20  ;;  %v1992_v20 = vld [vmem:[%s2428_s6] ss:$0 sm:$0xff] }
 0x3dd   : > { %2010 = vrcp.f32 %v861_v23  ;;  %v1910_v23 = vld [vmem:[#allocation6 + $0x54] sm:$0xf0] }
 0x3de   : > { %v923_v24 = vpack.c.bf16 %v922_v22, %v922_v22  ;;  %1255 = vmatpush.bf16.msra.mxu3 %v1792_v21  ;;  %v1779_v22 = vld [vmem:[#allocation6 + $0x50] sm:$0xf] }
 0x3e0   : > { %1702 = vmatmul.msk.bf16.vlgmr.msra.gmra.mxu2 %vm791_vm2, %v923_v24  ;;  %v1909_v24 = vld [vmem:[#allocation6 + $0x54] sm:$0xf] }
 0x3e3   : > { %v2011_v25 = vpop.eup %2010 }
 0x3e4   : > { %v863_v26 = vmul.f32 %v2011_v25, %v2005_v11  ;;  %v869_v27 = vpop.permute.xlu2 %868  ;;  %v1780_v25 = vor.u32 %v1910_v23, %v1779_v22 }
 0x3e5   : > { %v874_v28 = vsel %vm807_vm1, %v869_v27, 0 }
 0x3e6   : > { %883 = vmatpush.bf16.msrb.mxu0 %v874_v28  ;;  %v864_v29 = vpack.c.bf16 %v863_v26, %v863_v26  ;;  %v1781_v26 = vld [vmem:[#allocation6 + $0x58] sm:$0xf0]  ;;  %v1771_v28 = vld [vmem:[#allocation6 + $0x40] sm:$0xf] }
 0x3e7   : > { %v1784_v27 = vor.u32 %v1909_v24, %v1781_v26  ;;  %v1916_v24 = vld [vmem:[#allocation7 + $0x8] sm:$0xff]  ;;  %v1915_v26 = vld [vmem:[#allocation7] sm:$0xff] }
 0x3e9   : > { %1700 = vmatmul.msk.bf16.vlgmr.msrb.gmra.mxu0 %vm791_vm2, %v864_v29  ;;  %1256 = vmatpush.bf16.msra.mxu3 %v1784_v27  ;;  %v1908_v29 = vld [vmem:[#allocation6 + $0x44] sm:$0xf0]  ;;  %v1923_v27 = vld [vmem:[#allocation7 + $0x40] sm:$0xff] }
 0x3ec   : > { %v976_v30 = vpop.xlane.xlu1 %975 }
 0x3ed   : > { %2012 = vrcp.f32 %v976_v30  ;;  %v1907_v30 = vld [vmem:[#allocation6 + $0x44] sm:$0xf] }
 0x3ee   : > { %2014 = vrcp.f32 %v2175_v0  ;;  %v1929_v0 = vld [vmem:[#allocation7 + $0x70] sm:$0xff] }
 0x3f3   : > { %v2013_v31 = vpop.eup %2012 }
 0x3f4   : > { %v978_v32 = vmul.f32 %v2013_v31, %v2007_v16  ;;  %v2015_v7 = vpop.eup %2014  ;;  %v1787_v16 = vld [vmem:[#allocation6 + $0x60] sm:$0xf]  ;;  %v1772_v31 = vor.u32 %v1908_v29, %v1771_v28 }
 0x3f5   : > { %v1106_v8 = vmul.f32 128.0, %v2015_v7  ;;  %vm1110_vm5 = vweird.f32 %v2015_v7  ;;  %v1788_v19 = vor.u32 %v1912_v17, %v1787_v16  ;;  %v1991_v17 = vld [vmem:[%s2427_s5] ss:$0 sm:$0xff] }
 0x3f6   : > { %v979_v35 = vpack.c.bf16 %v978_v32, %v978_v32  ;;  %v1773_v32 = vld [vmem:[#allocation6 + $0x48] sm:$0xf0] }
 0x3f7   : > { %v1107_v9 = vsub.f32 1.0, %v1106_v8  ;;  %v1918_v8 = vld [vmem:[#allocation7 + $0x18] sm:$0xff] }
 0x3f9   : > { %v1108_v10 = vmul.f32 %v2015_v7, %v1107_v9  ;;  %v1926_v9 = vld [vmem:[#allocation7 + $0x58] sm:$0xff] }
 0x3fb   : > { %v1109_v2 = vadd.f32 %v2015_v7, %v1108_v10 }
 0x3fd   : > { %v2377_v11 = vsel %vm1110_vm5, %v2015_v7, %v1109_v2 }
 0x404   : > { %v981_v33 = vpop.permute.xlu1 %980 }
 0x405   : > { %v986_v34 = vsel %vm807_vm1, %v981_v33, 0  ;;  %v1776_v33 = vor.u32 %v1907_v30, %v1773_v32 }
 0x406   : > { %995 = vmatpush.bf16.msra.mxu0 %v986_v34  ;;  %v1763_v34 = vld [vmem:[#allocation6 + $0x30] sm:$0xf] }
 0x407   : > { %1257 = vmatpush.bf16.msra.mxu3 %v1776_v33 }
 0x409   : > { %1704 = vmatmul.msk.bf16.vlgmr.msra.gmra.mxu0 %vm791_vm2, %v979_v35  ;;  %v1906_v35 = vld [vmem:[#allocation6 + $0x34] sm:$0xf0] }
 0x463   : > { %v941_v36 = vpop.f32.mrf.mxu2 }
 0x466   : > { %v885_v37 = vpop.f32.mrf.mxu0 }
 0x467   : > { %1002 = vrot.lane.b32.xlu2 %v885_v37, %s2174_s29  ;;  %v1764_v37 = vor.u32 %v1906_v35, %v1763_v34 }
 0x46b   : > { %v943_v38 = vpop.f32.mrf.mxu2 }
 0x46c   : > { %v1765_v38 = vld [vmem:[#allocation6 + $0x38] sm:$0xf0] }
 0x46e   : > { %v887_v39 = vpop.f32.mrf.mxu0 }
 0x46f   : > { %1006 = vrot.lane.b32.xlu2 %v941_v36, %s2172_s23  ;;  %v1905_v36 = vld [vmem:[#allocation6 + $0x34] sm:$0xf] }
 0x470   : > { %v1768_v39 = vor.u32 %v1905_v36, %v1765_v38 }
 0x472   : > { %1258 = vmatpush.bf16.msra.mxu3 %v1768_v39 }
 0x476   : > { %1259 = vmatpush.bf16.msra.mxu3 %v1760_v45 }
 0x486   : > { %v997_v40 = vpop.f32.mrf.mxu0 }
 0x487   : > { %1010 = vrot.lane.b32.xlu0 %v997_v40, %s2173_s28  ;;  %v1755_v40 = vld [vmem:[#allocation6 + $0x20] sm:$0xf]  ;;  %s2449_s28 = sld [smem:[#allocation15_spill]] }
 0x48e   : > { %v999_v41 = vpop.f32.mrf.mxu0 }
 0x48f   : > { %v1904_v41 = vld [vmem:[#allocation6 + $0x24] sm:$0xf0] }
 0x490   : > { %v1756_v43 = vor.u32 %v1904_v41, %v1755_v40  ;;  %v1993_v40 = vld [vmem:[%s2432_s10] ss:$0 sm:$0xff] }
 0x4c1   : > { %v1003_v50 = vpop.permute.xlu2 %1002 }
 0x4c2   : > { %v1013_v52 = vsel %vm771_vm0, %v2351_v53, %v1003_v50  ;;  %v1914_v53 = vld [vmem:[#allocation6 + $0x74] sm:$0xf0]  ;;  %v1749_v50 = vld [vmem:[#allocation6 + $0x18] sm:$0xf0] }
 0x4c3   : > { %v1796_v4 = vor.u32 %v1914_v53, %v1795_v1  ;;  %v1920_v53 = vld [vmem:[#allocation7 + $0x28] sm:$0xff] }
 0x4c5   : > { %1241 = vmatpush.bf16.msrb.mxu2 %v1796_v4  ;;  %v1919_v4 = vld [vmem:[#allocation7 + $0x20] sm:$0xff] }
 0x4c9   : > { %v1007_v51 = vpop.permute.xlu2 %1006  ;;  %1242 = vmatpush.bf16.msrb.mxu2 %v1788_v19 }
 0x4ca   : > { %v1015_v54 = vsel %vm1014_vm3, %v1013_v52, %v1007_v51  ;;  %v1739_v51 = vld [vmem:[#allocation6] sm:$0xf]  ;;  %v1900_v52 = vld [vmem:[#allocation6 + $0x4] sm:$0xf0] }
 0x4cd   : > { %1243 = vmatpush.bf16.msrb.mxu2 %v1780_v25  ;;  %v1924_v25 = vld [vmem:[#allocation7 + $0x48] sm:$0xff] }
 0x4d1   : > { %1244 = vmatpush.bf16.msrb.mxu2 %v1772_v31 }
 0x4d5   : > { %1245 = vmatpush.bf16.msrb.mxu2 %v1764_v37 }
 0x4d9   : > { %1246 = vmatpush.bf16.msrb.mxu2 %v1756_v43 }
 0x4dd   : > { %1247 = vmatpush.bf16.msrb.mxu2 %v1748_v49 }
 0x4f9   : > { %v1011_v55 = vpop.permute.xlu0 %1010 }
 0x4fa   : > { %v1017_v56 = vsel %vm1016_vm4, %v1015_v54, %v1011_v55  ;;  %v1752_v54 = vor.u32 %v1901_v48, %v1749_v50  ;;  %v1899_v55 = vld [vmem:[#allocation6 + $0x4] sm:$0xf] }
 0x4fb   : > { %v1018_v57 = vpack.c.bf16 %v1017_v56, %v1017_v56  ;;  %v1741_v56 = vld [vmem:[#allocation6 + $0x8] sm:$0xf0] }
 0x4fc   : > { %1260 = vmatpush.bf16.msra.mxu3 %v1752_v54 }
 0x4fd   : > { %1095 = vmatmul.bf16.vlgmr.msrb.gmra.mxu1 %v1018_v57  ;;  %v1740_v57 = vor.u32 %v1900_v52, %v1739_v51 }
 0x4ff   : > { %1248 = vmatpush.bf16.msrb.mxu2 %v1740_v57 }
 0x57a   : > { %v1096_v60 = vpop.f32.mrf.mxu1 }
 0x57b   : > { %v1097_v61 = vadd.f32 %v1990_v58, %v1096_v60  ;;  %v1744_v58 = vor.u32 %v1899_v55, %v1741_v56  ;;  %v1930_v60 = vld [vmem:[#allocation7 + $0x78] sm:$0xff] }
 0x57c   : > { %1416 = vmatpush.bf16.msra.mxu1 %v1930_v60 }
 0x57d   : > { %v1100_v62 = vadd.f32 %v1097_v61, %v559_v59  ;;  %1261 = vmatpush.bf16.msra.mxu3 %v1744_v58  ;;  %v1922_v59 = vld [vmem:[#allocation7 + $0x38] sm:$0xff] }
 0x57e   : > { %1403 = vmatpush.bf16.msrb.mxu0 %v1922_v59 }
 0x57f   : > { %1103 = vadd.xlane.f32.xlu2 %v1100_v62 }
 0x580   : > { %1417 = vmatpush.bf16.msra.mxu1 %v1929_v0 }
 0x582   : > { %v1098_v63 = vpop.f32.mrf.mxu1 }
 0x583   : > { %v1921_v63 = vld [vmem:[#allocation7 + $0x30] sm:$0xff] }
 0x584   : > { %1404 = vmatpush.bf16.msrb.mxu0 %v1921_v63  ;;  %1418 = vmatpush.bf16.msra.mxu1 %v1928_v3 }
 0x588   : > { %1405 = vmatpush.bf16.msrb.mxu0 %v1920_v53  ;;  %1419 = vmatpush.bf16.msra.mxu1 %v1927_v5 }
 0x58c   : > { %1406 = vmatpush.bf16.msrb.mxu0 %v1919_v4  ;;  %1420 = vmatpush.bf16.msra.mxu1 %v1926_v9 }
 0x590   : > { %1407 = vmatpush.bf16.msrb.mxu0 %v1918_v8 }
 0x5f2   : > { %v1104_v12 = vpop.xlane.xlu2 %1103 }
 0x5f3   : > { %v1112_v13 = vmul.f32 %v2377_v11, %v1104_v12  ;;  %v1917_v12 = vld [vmem:[#allocation7 + $0x10] sm:$0xff] }
 0x5f4   : > { %1408 = vmatpush.bf16.msrb.mxu0 %v1917_v12 }
 0x5f5   : > { %v2380_v14 = vsub.f32 %v1100_v62, %v1112_v13  ;;  %v1925_v13 = vld [vmem:[#allocation7 + $0x50] sm:$0xff] }
 0x5f6   : > { %1421 = vmatpush.bf16.msra.mxu1 %v1925_v13 }
 0x5f7   : > { %v1114_v15 = vmul.f32 %v2380_v14, %v2380_v14 }
 0x5f8   : > { %1409 = vmatpush.bf16.msrb.mxu0 %v1916_v24 }
 0x5f9   : > { %1115 = vadd.xlane.f32.xlu0 %v1114_v15 }
 0x5fa   : > { %1422 = vmatpush.bf16.msra.mxu1 %v1924_v25 }
 0x5fc   : > { %1410 = vmatpush.bf16.msrb.mxu0 %v1915_v26 }
 0x5fe   : > { %1423 = vmatpush.bf16.msra.mxu1 %v1923_v27 }
 0x66c   : > { %v1116_v61 = vpop.xlane.xlu0 %1115 }
 0x66d   : > { %v1117_v62 = vmul.f32 %v1116_v61, %v2377_v11 }
 0x66f   : > { %v1118_v1 = vadd.f32 1e-05, %v1117_v62  ;;  %v1994_v62 = vld [vmem:[%s2433_s11] ss:$0 sm:$0xff] }
 0x671   : > { %2016 = vrsqrt.f32 %v1118_v1  ;;  %vm1125_vm7 = vweird.f32 %v1118_v1 }
 0x677   : > { %v2017_v6 = vpop.eup %2016 }
 0x678   : > { %v1120_v7 = vmul.f32 %v2017_v6, %v1118_v1  ;;  %vm1126_vm6 = vweird.f32 %v2017_v6  ;;  %v1995_v1 = vld [vmem:[%s2434_s12] ss:$0 sm:$0xff] }
 0x679   : > { %vm1127_vm8 = vmor %vm1125_vm7, %vm1126_vm6 }
 0x67a   : > { %v1121_v10 = vmul.f32 %v2017_v6, %v1120_v7 }
 0x67c   : > { %v1122_v2 = vmul.f32 0.5, %v1121_v10 }
 0x67e   : > { %v1123_v15 = vsub.f32 1.5, %v1122_v2 }
 0x680   : > { %v1124_v16 = vmul.f32 %v2017_v6, %v1123_v15 }
 0x682   : > { %v1128_v18 = vsel %vm1127_vm8, %v2017_v6, %v1124_v16 }
 0x683   : > { %v1129_v19 = vmul.f32 %v1128_v18, %v2380_v14  ;;  %v1155_v14 = vld [vmem:[%s2430_s8] sm:$0x3] }
 0x684   : > { %v1157_v28 = vperm.slane %v1155_v14, 0  ;;  %v1158_v29 = vperm.slane %v1155_v14, 1  ;;  %v1996_v18 = vld [vmem:[%s2449_s28] ss:$0 sm:$0xff] }
 0x685   : > { %v1133_v21 = vmul.f32 %v1991_v17, %v1129_v19 }
 0x687   : > { %v1137_v22 = vadd.f32 %v1992_v20, %v1133_v21 }
 0x689   : > { %v1138_v23 = vpack.c.bf16 %v1137_v22, %v1137_v22 }
 0x68b   : > { %1249 = vmatmul.bf16.vlgmr.msrb.gmra.mxu2 %v1138_v23  ;;  %1262 = vmatmul.bf16.vlgmr.msra.gmra.mxu3 %v1138_v23 }
 0x70e   : > { %v1250_v30 = vpop.f32.mrf.mxu2  ;;  %v1263_v31 = vpop.f32.mrf.mxu3 }
 0x70f   : > { %v1251_v32 = vadd.f32 %v1250_v30, %v1157_v28  ;;  %v1264_v33 = vadd.f32 %v1263_v31, %v1158_v29 }
 0x711   : > { %v1267_v34 = vmax.f32 %v1251_v32, 0.0  ;;  %v1268_v35 = vmax.f32 %v1264_v33, 0.0 }
 0x713   : > { %v1269_v36 = vpack.c.bf16 %v1267_v34, %v1267_v34  ;;  %v1270_v37 = vpack.c.bf16 %v1268_v35, %v1268_v35 }
 0x715   : > { %1411 = vmatmul.bf16.vlgmr.msrb.gmra.mxu0 %v1269_v36  ;;  %1424 = vmatmul.bf16.vlgmr.msra.gmra.mxu1 %v1270_v37 }
 0x716   : > { %v1252_v38 = vpop.f32.mrf.mxu2  ;;  %v1265_v39 = vpop.f32.mrf.mxu3 }
 0x792   : > { %v1412_v41 = vpop.f32.mrf.mxu0  ;;  %v1425_v42 = vpop.f32.mrf.mxu1 }
 0x793   : > { %v1413_v43 = vadd.f32 %v1993_v40, %v1412_v41 }
 0x795   : > { %v1426_v44 = vadd.f32 %v1425_v42, %v1413_v43 }
 0x797   : > { %v1429_v45 = vadd.f32 %v1426_v44, %v1137_v22 }
 0x799   : > { %1432 = vadd.xlane.f32.xlu1 %v1429_v45 }
 0x79a   : > { %v1414_v46 = vpop.f32.mrf.mxu0  ;;  %v1427_v47 = vpop.f32.mrf.mxu1 }
 0x80c   : > { %v1433_v48 = vpop.xlane.xlu1 %1432 }
 0x80d   : > { %v1434_v49 = vmul.f32 %v1433_v48, %v2377_v11 }
 0x80f   : > { %v1435_v50 = vsub.f32 %v1429_v45, %v1434_v49 }
 0x811   : > { %v1436_v51 = vmul.f32 %v1435_v50, %v1435_v50 }
 0x813   : > { %1437 = vadd.xlane.f32.xlu2 %v1436_v51 }
 0x886   : > { %v1438_v52 = vpop.xlane.xlu2 %1437 }
 0x887   : > { %v1439_v54 = vmul.f32 %v1438_v52, %v2377_v11 }
 0x889   : > { %v1440_v55 = vadd.f32 1e-05, %v1439_v54 }
 0x88b   : > { %2018 = vrsqrt.f32 %v1440_v55  ;;  %vm1447_vm10 = vweird.f32 %v1440_v55 }
 0x891   : > { %v2019_v56 = vpop.eup %2018 }
 0x892   : > { %v1442_v57 = vmul.f32 %v2019_v56, %v1440_v55  ;;  %vm1448_vm9 = vweird.f32 %v2019_v56 }
 0x893   : > { %vm1449_vm11 = vmor %vm1447_vm10, %vm1448_vm9 }
 0x894   : > { %v1443_v58 = vmul.f32 %v2019_v56, %v1442_v57 }
 0x896   : > { %v1444_v59 = vmul.f32 0.5, %v1443_v58 }
 0x898   : > { %v1445_v60 = vsub.f32 1.5, %v1444_v59 }
 0x89a   : > { %v1446_v61 = vmul.f32 %v2019_v56, %v1445_v60 }
 0x89c   : > { %v1450_v63 = vsel %vm1449_vm11, %v2019_v56, %v1446_v61 }
 0x89d   : > { %v1451_v0 = vmul.f32 %v1450_v63, %v1435_v50 }
 0x89f   : > { %v1455_v53 = vmul.f32 %v1994_v62, %v1451_v0 }
 0x8a1   : > { %v1459_v3 = vadd.f32 %v1995_v1, %v1455_v53 }
 0x8a3   : > { %1462 = vadd.xlane.f32.xlu0 %v1459_v3 }
 0x916   : > { %v1463_v4 = vpop.xlane.xlu0 %1462 }
 0x917   : > { %v1464_v5 = vmul.f32 %v1463_v4, %v2377_v11 }
 0x919   : > { %v1465_v6 = vsub.f32 %v1459_v3, %v1464_v5 }
 0x91b   : > { %v1466_v7 = vmul.f32 %v1465_v6, %v1465_v6 }
 0x91d   : > { %1467 = vadd.xlane.f32.xlu1 %v1466_v7 }
 0x990   : > { %v1468_v8 = vpop.xlane.xlu1 %1467 }
 0x991   : > { %v1469_v9 = vmul.f32 %v1468_v8, %v2377_v11  ;;  %v1997_v11 = vld [vmem:[%s2450_s17] ss:$0 sm:$0xff] }
 0x993   : > { %v1470_v10 = vadd.f32 1e-05, %v1469_v9 }
 0x995   : > { %2020 = vrsqrt.f32 %v1470_v10  ;;  %vm1477_vm13 = vweird.f32 %v1470_v10 }
 0x99b   : > { %v2021_v2 = vpop.eup %2020 }
 0x99c   : > { %v1472_v12 = vmul.f32 %v2021_v2, %v1470_v10  ;;  %vm1478_vm12 = vweird.f32 %v2021_v2 }
 0x99d   : > { %vm1479_vm14 = vmor %vm1477_vm13, %vm1478_vm12 }
 0x99e   : > { %v1473_v13 = vmul.f32 %v2021_v2, %v1472_v12 }
 0x9a0   : > { %v1474_v15 = vmul.f32 0.5, %v1473_v13 }
 0x9a2   : > { %v1475_v16 = vsub.f32 1.5, %v1474_v15 }
 0x9a4   : > { %v1476_v17 = vmul.f32 %v2021_v2, %v1475_v16 }
 0x9a6   : > { %v1480_v19 = vsel %vm1479_vm14, %v2021_v2, %v1476_v17 }
 0x9a7   : > { %v1481_v20 = vmul.f32 %v1480_v19, %v1465_v6 }
 0x9a9   : > { %v1485_v21 = vmul.f32 %v1996_v18, %v1481_v20 }
 0x9ab   : > { %v1489_v22 = vadd.f32 %v1997_v11, %v1485_v21 }
 0x9ad   : > { %v1490_v23 = vpack.c.bf16 %v1489_v22, %v1489_v22 }
 0x9af   : > { %1491 = vst [vmem:[%s556_s27] sm:$0xf] %v1490_v23 }
 0x9b0 PF: > { %s2452_s30 = sld [smem:[#allocation12_spill]] }
 0x9b6   : > { %s28_s18 = sadd.s32 1, %s2452_s30  }
 0x9b7   : > { %p25_p7 = scmp.ge.s32.totalorder %s28_s18, 4  }
 0x9b9   :  { %27 = sbr.rel (!%p25_p7) target bundleno = 9 (0x9), region = 127 }
 0x9be   :  { %1511 = vsyncpa [#allocation3], 1 }
 0x9bf   :  { %1513 = vsyncpa [#allocation3 + $0x1], 1 }
 0x9c0   :  { %1514 = vsyncpa [#allocation5], 1 }
 0x9c1   :  { %1515 = vsyncpa [#allocation8], 1 }

// kernel: transformer_seq2seq_forward.5
= control target key start
LH: loop header
LB: loop body
LE: loop exit
PB: predicated region body
PF: predicated region fallthrough
CT: control target
= control target key end

     0   :  { %s2257_s0 = inlined_call_operand.vmem [shape: bf16[2,8,128], index: 0, kind: input, shape index: {}]   ;;  %s2258_s1 = inlined_call_operand.hbm [shape: bf16[128,384], index: 1, kind: input, shape index: {}]   ;;  %s2259_s2 = inlined_call_operand.vmem [shape: f32[1,384], index: 2, kind: input, shape index: {}]   ;;  %s2260_s3 = inlined_call_operand.vmem [shape: bf16[128,128], index: 3, kind: input, shape index: {}]   ;;  %s2261_s4 = inlined_call_operand.vmem [shape: f32[1,128], index: 4, kind: input, shape index: {}]   ;;  %s2262_s5 = inlined_call_operand.vmem [shape: f32[1,128], index: 5, kind: input, shape index: {}]   ;;  %s2263_s6 = inlined_call_operand.vmem [shape: f32[1,128], index: 6, kind: input, shape index: {}]   ;;  %s2264_s7 = inlined_call_operand.hbm [shape: bf16[128,256], index: 7, kind: input, shape index: {}]   ;;  %s2265_s8 = inlined_call_operand.vmem [shape: f32[1,256], index: 8, kind: input, shape index: {}]   ;;  %s2266_s9 = inlined_call_operand.hbm [shape: bf16[256,128], index: 9, kind: input, shape index: {}]   ;;  %s2267_s10 = inlined_call_operand.vmem [shape: f32[1,128], index: 10, kind: input, shape index: {}]   ;;  %s2268_s11 = inlined_call_operand.vmem [shape: f32[1,128], index: 11, kind: input, shape index: {}]   ;;  %s2269_s12 = inlined_call_operand.vmem [shape: f32[1,128], index: 12, kind: input, shape index: {}]   ;;  %s2270_s13 = inlined_call_operand.vmem [shape: bf16[2,8,128], index: 13, kind: output, shape index: {}]  }
   0x1   :  { %2272 = sst [smem:[#allocation10_spill]] %s2258_s1 }
   0x2   :  { %2273 = sst [smem:[#allocation11_spill]] %s2264_s7 }
   0x3   :  { %18 = vsyncpa [#allocation3], 0 }
   0x4   :  { %19 = vsyncpa [#allocation5], 0  ;;  %s2084_s25 = smov 0  }
   0x5 LB: > { %2274 = sst [smem:[#allocation9_spill]] %s1999_s25  ;;  %s2093_s29 = sadd.s32 4294967295, %s1999_s25   ;;  %s1999_s25 = sphi %s2084_s25, %s25_s25  }
   0x6   : > { %s2275_s7 = sld [smem:[#allocation11_spill]]  ;;  %p1477_p0 = scmp.ge.s32.totalorder %s1999_s25, 1 }
   0x7   : > { %p334_p1 = scmp.lt.s32.totalorder %s1999_s25, 3  ;;  %p1840_p2 = scmp.eq.s32.totalorder %s2093_s29, 0 }
   0x8   : > { %s2001_s14 = smov [#allocation4]   ;;  %s2277_s1 = sld [smem:[#allocation10_spill]] }
   0x9   : > { %p2098_p3 = pnand %p1477_p0, %p334_p1  ;;  %s376_s15 = sshll.u32 %s2001_s14, 4  ;;  %s377_s15 = int_to_ptr.vmem [resolvable:$true] %s376_s15 }
   0xa   : > { %s2002_s20 = smov [#allocation2]   ;;  %s2003_s22 = smov 128  }
   0xb   : > { %p1830_p4 = pneg %p2098_p3  ;;  %s347_s21 = sshll.u32 %s2002_s20, 4  ;;  %s348_s21 = int_to_ptr.vmem [resolvable:$true] %s347_s21 }
   0xc   : > { %s374_s28 = sshll.u32 %s2275_s7, 4  ;;  %s2004_s23 = smov 8   ;;  %s375_s28 = int_to_ptr.hbm [resolvable:$true] %s374_s28 }
   0xd   : > { %p2109_p5 = pnand %p1840_p2, %p1830_p4  ;;  %s391_s27 = sshll.u32 %s2266_s9, 4  ;;  %s392_s27 = int_to_ptr.hbm [resolvable:$true] %s391_s27 }
   0xe   : > { %s345_s18 = sshll.u32 %s2277_s1, 4  ;;  %s2005_s14 = smov 192   ;;  %s346_s18 = int_to_ptr.hbm [resolvable:$true] %s345_s18 }
   0xf   : > { %1836 = dma.hbm_to_vmem [thread:$0]  (!%p2109_p5), %s375_s28, 2048, %s377_s15, [#allocation5], %s2003_s22, %s2003_s22, %s2004_s23  }
  0x10   : > { %s2006_s16 = smov 12   ;;  %s2007_s17 = smov [#allocation6]  }
  0x11   : > { %1833 = dma.hbm_to_vmem [thread:$0]  (!%p2109_p5), %s346_s18, 3072, %s348_s21, [#allocation3], %s2005_s14, %s2005_s14, %s2006_s16  }
  0x12   : > { %s393_s1 = sshll.u32 %s2007_s17, 4  ;;  %s2008_s7 = smov 64   ;;  %s394_s1 = int_to_ptr.vmem [resolvable:$true] %s393_s1 }
  0x13   : > { %s2009_s25 = smov 4   ;;  %425 = sbr.rel (%p2098_p3) target bundleno = 2206 (0x89e), region = 72 }
  0x14   : > { %1839 = dma.hbm_to_vmem [thread:$0]  (!%p2109_p5), %s392_s27, 2048, %s394_s1, [#allocation5], %s2008_s7, %s2008_s7, %s2009_s25  }
  0x18   : > { %1990 = dma.done.wait (%p1840_p2), [#allocation3], 3072  }
  0x19   : > { %1992 = vsyncadd (%p1840_p2), [#allocation3], 4294964224 }
  0x1a   : > { %1994 = dma.done.wait (%p1840_p2), [#allocation5], 4096  }
  0x1b   : > { %1996 = vsyncadd (%p1840_p2), [#allocation5], 4294963200  ;;  %v1574_v0 = vld [vmem:[#allocation2 + $0xa8] sm:$0xf]  ;;  %v1776_v1 = vld [vmem:[#allocation2 + $0xb0] sm:$0xf0] }
  0x1c   : > { %v1775_v2 = vld [vmem:[#allocation2 + $0xac] sm:$0xf]  ;;  %v1575_v3 = vor.u32 %v1776_v1, %v1574_v0  ;;  %v1576_v4 = vld [vmem:[#allocation2 + $0xb4] sm:$0xf0]  ;;  %v1562_v5 = vld [vmem:[#allocation2 + $0x90] sm:$0xf] }
  0x1d   : > { %v1773_v6 = vld [vmem:[#allocation2 + $0x98] sm:$0xf0]  ;;  %v1579_v7 = vor.u32 %v1775_v2, %v1576_v4  ;;  %v1772_v8 = vld [vmem:[#allocation2 + $0x94] sm:$0xf]  ;;  %v1564_v9 = vld [vmem:[#allocation2 + $0x9c] sm:$0xf0] }
  0x1e   : > { %657 = vmatpush.bf16.msra.mxu0 %v1575_v3  ;;  %v1563_v10 = vor.u32 %v1773_v6, %v1562_v5  ;;  %v1567_v11 = vor.u32 %v1772_v8, %v1564_v9  ;;  %v1550_v12 = vld [vmem:[#allocation2 + $0x78] sm:$0xf]  ;;  %v1770_v13 = vld [vmem:[#allocation2 + $0x80] sm:$0xf0]  ;;  %v1769_v14 = vld [vmem:[#allocation2 + $0x7c] sm:$0xf] }
  0x1f   : > { %670 = vmatpush.bf16.msra.mxu1 %v1579_v7  ;;  %v1552_v15 = vld [vmem:[#allocation2 + $0x84] sm:$0xf0]  ;;  %v1551_v16 = vor.u32 %v1770_v13, %v1550_v12  ;;  %v1538_v18 = vld [vmem:[#allocation2 + $0x60] sm:$0xf]  ;;  %v1767_v19 = vld [vmem:[#allocation2 + $0x68] sm:$0xf0] }
  0x20   : > { %v1555_v17 = vor.u32 %v1769_v14, %v1552_v15  ;;  %v1766_v20 = vld [vmem:[#allocation2 + $0x64] sm:$0xf]  ;;  %v1540_v21 = vld [vmem:[#allocation2 + $0x6c] sm:$0xf0]  ;;  %v1539_v22 = vor.u32 %v1767_v19, %v1538_v18  ;;  %v1777_v24 = vld [vmem:[#allocation2 + $0xb8] sm:$0xf0] }
  0x21   : > { %v1582_v23 = vld [vmem:[#allocation2 + $0xb0] sm:$0xf]  ;;  %v1570_v25 = vld [vmem:[#allocation2 + $0x98] sm:$0xf]  ;;  %v1543_v26 = vor.u32 %v1766_v20, %v1540_v21  ;;  %v1526_v27 = vld [vmem:[#allocation2 + $0x48] sm:$0xf] }
  0x22   : > { %658 = vmatpush.bf16.msra.mxu0 %v1563_v10  ;;  %v1764_v28 = vld [vmem:[#allocation2 + $0x50] sm:$0xf0]  ;;  %v1583_v29 = vor.u32 %v1777_v24, %v1582_v23  ;;  %v1774_v30 = vld [vmem:[#allocation2 + $0xa0] sm:$0xf0]  ;;  %v1763_v31 = vld [vmem:[#allocation2 + $0x4c] sm:$0xf] }
  0x23   : > { %671 = vmatpush.bf16.msra.mxu1 %v1567_v11  ;;  %v1528_v32 = vld [vmem:[#allocation2 + $0x54] sm:$0xf0]  ;;  %p478_p6 = scmp.lt.s32.totalorder %s2093_s29, 1  ;;  %v1571_v33 = vor.u32 %v1774_v30, %v1570_v25  ;;  %v1527_v34 = vor.u32 %v1764_v28, %v1526_v27  ;;  %v1514_v35 = vld [vmem:[#allocation2 + $0x30] sm:$0xf]  ;;  %vm700_vm0 = vcmask 261120  }
  0x24   : > { %683 = vmatpush.bf16.msra.mxu2 %v1583_v29  ;;  %v1558_v36 = vld [vmem:[#allocation2 + $0x80] sm:$0xf]  ;;  %v1771_v37 = vld [vmem:[#allocation2 + $0x88] sm:$0xf0]  ;;  %v1531_v38 = vor.u32 %v1763_v31, %v1528_v32  ;;  %v1761_v39 = vld [vmem:[#allocation2 + $0x38] sm:$0xf0] }
  0x25   : > { %v1760_v40 = vld [vmem:[#allocation2 + $0x34] sm:$0xf]  ;;  %v1516_v41 = vld [vmem:[#allocation2 + $0x3c] sm:$0xf0]  ;;  %v1559_v42 = vor.u32 %v1771_v37, %v1558_v36  ;;  %v1515_v43 = vor.u32 %v1761_v39, %v1514_v35  ;;  %v1546_v44 = vld [vmem:[#allocation2 + $0x68] sm:$0xf] }
  0x26   : > { %659 = vmatpush.bf16.msra.mxu0 %v1551_v16  ;;  %v1768_v45 = vld [vmem:[#allocation2 + $0x70] sm:$0xf0]  ;;  %v1519_v46 = vor.u32 %v1760_v40, %v1516_v41  ;;  %v1502_v47 = vld [vmem:[#allocation2 + $0x18] sm:$0xf]  ;;  %v1758_v48 = vld [vmem:[#allocation2 + $0x20] sm:$0xf0] }
  0x27   : > { %672 = vmatpush.bf16.msra.mxu1 %v1555_v17  ;;  %v1757_v49 = vld [vmem:[#allocation2 + $0x1c] sm:$0xf]  ;;  %v1504_v50 = vld [vmem:[#allocation2 + $0x24] sm:$0xf0]  ;;  %s2281_s29 = smov (!%p478_p6, %s2093_s29), 1  ;;  %v1547_v51 = vor.u32 %v1768_v45, %v1546_v44  ;;  %v1503_v52 = vor.u32 %v1758_v48, %v1502_v47  ;;  %s2010_s18 = smov 64  }
  0x28   : > { %684 = vmatpush.bf16.msra.mxu2 %v1571_v33  ;;  %v1534_v53 = vld [vmem:[#allocation2 + $0x50] sm:$0xf]  ;;  %v1765_v54 = vld [vmem:[#allocation2 + $0x58] sm:$0xf0]  ;;  %v1507_v55 = vor.u32 %v1757_v49, %v1504_v50  ;;  %v1490_v56 = vld [vmem:[#allocation2] sm:$0xf] }
  0x29   : > { %v1755_v57 = vld [vmem:[#allocation2 + $0x8] sm:$0xf0]  ;;  %v1754_v58 = vld [vmem:[#allocation2 + $0x4] sm:$0xf]  ;;  %v1492_v59 = vld [vmem:[#allocation2 + $0xc] sm:$0xf0]  ;;  %v1535_v60 = vor.u32 %v1765_v54, %v1534_v53 }
  0x2a   : > { %660 = vmatpush.bf16.msra.mxu0 %v1539_v22  ;;  %s1486_s1 = sshll.u32 %s2281_s29, 2  ;;  %v1491_v61 = vor.u32 %v1755_v57, %v1490_v56  ;;  %v1522_v62 = vld [vmem:[#allocation2 + $0x38] sm:$0xf]  ;;  %v1762_v63 = vld [vmem:[#allocation2 + $0x40] sm:$0xf0]  ;;  %v1495_v0 = vor.u32 %v1754_v58, %v1492_v59  ;;  %s2011_s19 = smov 96  }
  0x2b   : > { %673 = vmatpush.bf16.msra.mxu1 %v1543_v26  ;;  %s481_s28 = scalar_lea.vmem %s2257_s0, %s1486_s1  ;;  %v1523_v1 = vor.u32 %v1762_v63, %v1522_v62  ;;  %v1510_v3 = vld [vmem:[#allocation2 + $0x20] sm:$0xf]  ;;  %v1759_v4 = vld [vmem:[#allocation2 + $0x28] sm:$0xf0]  ;;  %v1498_v6 = vld [vmem:[#allocation2 + $0x8] sm:$0xf] }
  0x2c   : > { %685 = vmatpush.bf16.msra.mxu2 %v1559_v42  ;;  %v2144_v2 = vld [vmem:[%s481_s28] sm:$0xf]  ;;  %v1511_v5 = vor.u32 %v1759_v4, %v1510_v3  ;;  %v1756_v7 = vld [vmem:[#allocation2 + $0x10] sm:$0xf0]  ;;  %s2012_s20 = smov 32   ;;  %vm736_vm1 = vcmask 1043456  }
  0x2d   : > { %v1499_v8 = vor.u32 %v1756_v7, %v1498_v6  ;;  %v521_v9 = vld [vmem:[%s2259_s2] sm:$0x7]  ;;  %vm720_vm2 = vcmask 64512   ;;  %vm943_vm3 = vcmask 523264   ;;  %vm945_vm4 = vcmask 785408  }
  0x2e   : > { %661 = vmatpush.bf16.msra.mxu0 %v1527_v34  ;;  %v523_v10 = vperm.slane %v521_v9, 0  ;;  %v524_v11 = vperm.slane %v521_v9, 1  ;;  %v525_v27 = vperm.slane %v521_v9, 2 }
  0x2f   : > { %674 = vmatpush.bf16.msra.mxu1 %v1531_v38 }
  0x30   : > { %686 = vmatpush.bf16.msra.mxu2 %v1547_v51 }
  0x32   : > { %662 = vmatpush.bf16.msra.mxu0 %v1515_v43 }
  0x33   : > { %675 = vmatpush.bf16.msra.mxu1 %v1519_v46 }
  0x34   : > { %687 = vmatpush.bf16.msra.mxu2 %v1535_v60 }
  0x36   : > { %663 = vmatpush.bf16.msra.mxu0 %v1503_v52 }
  0x37   : > { %676 = vmatpush.bf16.msra.mxu1 %v1507_v55 }
  0x38   : > { %688 = vmatpush.bf16.msra.mxu2 %v1523_v1 }
  0x3a   : > { %664 = vmatpush.bf16.msra.mxu0 %v1491_v61 }
  0x3b   : > { %677 = vmatpush.bf16.msra.mxu1 %v1495_v0 }
  0x3c   : > { %689 = vmatpush.bf16.msra.mxu2 %v1511_v5 }
  0x3d   : > { %665 = vmatmul.bf16.vlgmr.msra.gmra.mxu0 %v2144_v2 }
  0x3e   : > { %678 = vmatmul.bf16.vlgmr.msra.gmra.mxu1 %v2144_v2 }
  0x40   : > { %690 = vmatpush.bf16.msra.mxu2 %v1499_v8 }
  0x43   : > { %691 = vmatmul.bf16.vlgmr.msra.gmra.mxu2 %v2144_v2 }
  0xba   : > { %v666_v12 = vpop.f32.mrf.mxu0 }
  0xbb   : > { %v667_v13 = vadd.f32 %v666_v12, %v523_v10  ;;  %v679_v14 = vpop.f32.mrf.mxu1 }
  0xbc   : > { %v680_v15 = vadd.f32 %v679_v14, %v524_v11 }
  0xbd   : > { %v696_v16 = vmul.f32 0.17677669, %v667_v13 }
  0xbe   : > { %v698_v17 = vpack.c.bf16 %v680_v15, %v680_v15 }
  0xbf   : > { %v697_v18 = vpack.c.bf16 %v696_v16, %v696_v16 }
  0xc0   : > { %v759_v19 = vunpack.c.l.b16 %v698_v17  ;;  %v705_v20 = vsel %vm700_vm0, %v698_v17, 0 }
  0xc1   : > { %714 = vmatpush.bf16.xpose.msra.mxu3 %v705_v20  ;;  %v754_v24 = vunpack.c.l.b16 %v697_v18 }
  0xc2   : > { %v760_v21 = vpack.c.b16 %v759_v19, %v759_v19  ;;  %v668_v22 = vpop.f32.mrf.mxu0 }
  0xc3   : > { %v681_v23 = vpop.f32.mrf.mxu1  ;;  %v755_v25 = vpack.c.b16 %v754_v24, %v754_v24 }
  0xc4   : > { %820 = vrot.lane.b32.xlu2 %v760_v21, %s2010_s18  ;;  %761 = vrot.lane.b32.xlu1 %v760_v21, %s2011_s19 }
  0xc6   : > { %v692_v26 = vpop.f32.mrf.mxu2 }
  0xc7   : > { %v693_v28 = vadd.f32 %v692_v26, %v525_v27 }
  0xc8   : > { %1584 = vmatmul.msk.bf16.vlgmr.msra.gmra.mxu3 %vm700_vm0, %v697_v18 }
  0xc9   : > { %v699_v30 = vpack.c.bf16 %v693_v28, %v693_v28 }
  0xcb   : > { %v738_v31 = vsel %vm736_vm1, %v699_v30, 0  ;;  %v795_v0 = vunpack.c.l.b16 %v699_v30 }
  0xcc   : > { %876 = vrot.lane.b32.xlu2 %v760_v21, %s2012_s20  ;;  %756 = vrot.lane.b32.xlu1 %v755_v25, %s2011_s19 }
  0xcd   : > { %747 = vmatpush.bf16.msrb.mxu3 %v738_v31  ;;  %v796_v1 = vpack.c.b16 %v795_v0, %v795_v0  ;;  %v2013_v0 = vmov 128.0  }
  0xce   : > { %v694_v29 = vpop.f32.mrf.mxu2 }
  0xd4   : > { %874 = vrot.lane.b32.xlu1 %v755_v25, %s2012_s20 }
 0x11e   : > { %v821_v32 = vpop.permute.xlu2 %820 }
 0x11f   : > { %v826_v33 = vsel %vm700_vm0, %v821_v32, 0 }
 0x120   : > { %835 = vmatpush.bf16.xpose.msrb.mxu2 %v826_v33 }
 0x126   : > { %v877_v47 = vpop.permute.xlu2 %876 }
 0x127   : > { %v882_v49 = vsel %vm700_vm0, %v877_v47, 0  ;;  %v1780_v47 = vld [vmem:[%s2260_s3 + $0x10] sm:$0xff] }
 0x136   : > { %v762_v34 = vpop.permute.xlu1 %761 }
 0x137   : > { %v767_v35 = vsel %vm700_vm0, %v762_v34, 0 }
 0x138   : > { %776 = vmatpush.bf16.xpose.msra.mxu3 %v767_v35 }
 0x13e   : > { %v757_v51 = vpop.permute.xlu1 %756 }
 0x146   : > { %v875_v52 = vpop.permute.xlu1 %874 }
 0x14b   : > { %v716_v36 = vpop.f32.mrf.mxu3 }
 0x14c   : > { %v721_v37 = vsel %vm720_vm2, %v716_v36, -inf }
 0x14d   : > { %722 = vmax.xlane.f32.xlu0 %v721_v37 }
 0x153   : > { %v718_v38 = vpop.f32.mrf.mxu3 }
 0x1c0   : > { %v723_v39 = vpop.xlane.xlu0 %722 }
 0x1c1   : > { %v724_v40 = vsub.f32 %v716_v36, %v723_v39 }
 0x1c3   : > { %v725_v41 = vmul.f32 1.442695, %v724_v40 }
 0x1c5   : > { %1873 = vpow2.f32 %v725_v41 }
 0x1cb   : > { %v1874_v42 = vpop.eup %1873 }
 0x1cc   : > { %v727_v43 = vsel %vm720_vm2, %v1874_v42, 0.0 }
 0x1cd   : > { %728 = vadd.xlane.f32.xlu0 %v727_v43  ;;  %v1784_v43 = vld [vmem:[%s2260_s3 + $0x30] sm:$0xff] }
 0x1e1   : > { %818 = vrot.lane.b32.xlu0 %v755_v25, %s2010_s18 }
 0x240   : > { %v729_v44 = vpop.xlane.xlu0 %728 }
 0x241   : > { %1875 = vrcp.f32 %v729_v44  ;;  %v1783_v44 = vld [vmem:[%s2260_s3 + $0x28] sm:$0xff] }
 0x247   : > { %v1876_v45 = vpop.eup %1875 }
 0x248   : > { %v731_v46 = vmul.f32 %v1876_v45, %v1874_v42  ;;  %v1785_v42 = vld [vmem:[%s2260_s3 + $0x38] sm:$0xff]  ;;  %v1782_v45 = vld [vmem:[%s2260_s3 + $0x20] sm:$0xff] }
 0x249   : > { %1016 = vmatpush.bf16.msrb.mxu1 %v1785_v42  ;;  %v1790_v42 = vld [vmem:[#allocation4 + $0x24] sm:$0xf] }
 0x24a   : > { %v732_v48 = vpack.c.bf16 %v731_v46, %v731_v46  ;;  %v1781_v46 = vld [vmem:[%s2260_s3 + $0x18] sm:$0xff] }
 0x24c   : > { %1585 = vmatmul.msk.bf16.vlgmr.msrb.gmra.mxu3 %vm720_vm2, %v732_v48  ;;  %v1779_v48 = vld [vmem:[%s2260_s3 + $0x8] sm:$0xff] }
 0x24d   : > { %891 = vmatpush.bf16.xpose.msrb.mxu3 %v882_v49  ;;  %1017 = vmatpush.bf16.msrb.mxu1 %v1784_v43  ;;  %v1778_v49 = vld [vmem:[%s2260_s3] sm:$0xff] }
 0x251   : > { %1018 = vmatpush.bf16.msrb.mxu1 %v1783_v44  ;;  %v1644_v44 = vld [vmem:[#allocation4 + $0x28] sm:$0xf0] }
 0x253   : > { %v819_v50 = vpop.permute.xlu0 %818 }
 0x254   : > { %1588 = vmatmul.msk.bf16.vlgmr.msrb.gmra.mxu2 %vm700_vm0, %v819_v50 }
 0x255   : > { %1019 = vmatpush.bf16.msrb.mxu1 %v1782_v45  ;;  %v1647_v45 = vor.u32 %v1790_v42, %v1644_v44 }
 0x259   : > { %1020 = vmatpush.bf16.msrb.mxu1 %v1781_v46  ;;  %v1634_v46 = vld [vmem:[#allocation4 + $0x10] sm:$0xf] }
 0x25c   : > { %1586 = vmatmul.msk.bf16.vlgmr.msra.gmra.mxu3 %vm700_vm0, %v757_v51 }
 0x25d   : > { %1021 = vmatpush.bf16.msrb.mxu1 %v1780_v47  ;;  %v1789_v47 = vld [vmem:[#allocation4 + $0x14] sm:$0xf0] }
 0x261   : > { %1022 = vmatpush.bf16.msrb.mxu1 %v1779_v48  ;;  %v1788_v48 = vld [vmem:[#allocation4 + $0x14] sm:$0xf] }
 0x265   : > { %1023 = vmatpush.bf16.msrb.mxu1 %v1778_v49  ;;  %v1635_v49 = vor.u32 %v1789_v47, %v1634_v46 }
 0x26c   : > { %1590 = vmatmul.msk.bf16.vlgmr.msrb.gmra.mxu3 %vm700_vm0, %v875_v52 }
 0x2cf   : > { %v2170_v53 = vpop.f32.mrf.mxu3 }
 0x2d7   : > { %v751_v54 = vpop.f32.mrf.mxu3  ;;  %v837_v55 = vpop.f32.mrf.mxu2 }
 0x2d8   : > { %v841_v56 = vsel %vm720_vm2, %v837_v55, -inf }
 0x2d9   : > { %842 = vmax.xlane.f32.xlu1 %v841_v56 }
 0x2df   : > { %v778_v57 = vpop.f32.mrf.mxu3  ;;  %v839_v58 = vpop.f32.mrf.mxu2 }
 0x2e0   : > { %v782_v59 = vsel %vm720_vm2, %v778_v57, -inf  ;;  %v1867_v58 = vld [vmem:[%s2261_s4] ss:$0 sm:$0xff] }
 0x2e1   : > { %783 = vmax.xlane.f32.xlu2 %v782_v59  ;;  %v488_v59 = vunpack.c.l.bf16 %v2144_v2 }
 0x2e7   : > { %v780_v60 = vpop.f32.mrf.mxu3 }
 0x2ef   : > { %v893_v61 = vpop.f32.mrf.mxu3 }
 0x2f0   : > { %v897_v62 = vsel %vm720_vm2, %v893_v61, -inf }
 0x2f1   : > { %898 = vmax.xlane.f32.xlu0 %v897_v62 }
 0x2f7   : > { %v895_v63 = vpop.f32.mrf.mxu3 }
 0x305   : > { %853 = vrot.lane.b32.xlu0 %v796_v1, %s2010_s18 }
 0x34c   : > { %v843_v3 = vpop.xlane.xlu1 %842 }
 0x34d   : > { %v844_v4 = vsub.f32 %v837_v55, %v843_v3  ;;  %v1800_v3 = vld [vmem:[#allocation4 + $0x74] sm:$0xf] }
 0x34f   : > { %v845_v5 = vmul.f32 1.442695, %v844_v4 }
 0x351   : > { %1877 = vpow2.f32 %v845_v5  ;;  %v1684_v5 = vld [vmem:[#allocation4 + $0x78] sm:$0xf0] }
 0x354   : > { %v784_v6 = vpop.xlane.xlu2 %783 }
 0x355   : > { %v785_v7 = vsub.f32 %v778_v57, %v784_v6  ;;  %v1687_v6 = vor.u32 %v1800_v3, %v1684_v5  ;;  %v1815_v3 = vld [vmem:[#allocation6 + $0x68] sm:$0xff]  ;;  %v1814_v5 = vld [vmem:[#allocation6 + $0x60] sm:$0xff] }
 0x357   : > { %v1878_v8 = vpop.eup %1877  ;;  %v786_v9 = vmul.f32 1.442695, %v785_v7  ;;  %1183 = vmatpush.bf16.msra.mxu3 %v1687_v6 }
 0x358   : > { %v847_v10 = vsel %vm720_vm2, %v1878_v8, 0.0 }
 0x359   : > { %1879 = vpow2.f32 %v786_v9  ;;  %848 = vadd.xlane.f32.xlu1 %v847_v10 }
 0x35f   : > { %v1880_v11 = vpop.eup %1879 }
 0x360   : > { %v788_v12 = vsel %vm720_vm2, %v1880_v11, 0.0 }
 0x361   : > { %789 = vadd.xlane.f32.xlu2 %v788_v12 }
 0x364   : > { %v899_v13 = vpop.xlane.xlu0 %898 }
 0x365   : > { %v900_v14 = vsub.f32 %v893_v61, %v899_v13 }
 0x367   : > { %v901_v15 = vmul.f32 1.442695, %v900_v14 }
 0x369   : > { %1881 = vpow2.f32 %v901_v15 }
 0x36f   : > { %v1882_v16 = vpop.eup %1881 }
 0x370   : > { %v903_v17 = vsel %vm720_vm2, %v1882_v16, 0.0 }
 0x371   : > { %904 = vadd.xlane.f32.xlu1 %v903_v17  ;;  %v1799_v17 = vld [vmem:[#allocation4 + $0x64] sm:$0xf0] }
 0x377   : > { %v854_v18 = vpop.permute.xlu0 %853 }
 0x378   : > { %v859_v19 = vsel %vm736_vm1, %v854_v18, 0  ;;  %v1798_v18 = vld [vmem:[#allocation4 + $0x64] sm:$0xf] }
 0x379   : > { %797 = vrot.lane.b32.xlu2 %v796_v1, %s2011_s19  ;;  %868 = vmatpush.bf16.msra.mxu2 %v859_v19 }
 0x38a   : > { %909 = vrot.lane.b32.xlu1 %v796_v1, %s2012_s20  ;;  %v1682_v1 = vld [vmem:[#allocation4 + $0x70] sm:$0xf] }
 0x3cc   : > { %v849_v20 = vpop.xlane.xlu1 %848 }
 0x3cd   : > { %1883 = vrcp.f32 %v849_v20  ;;  %v1676_v20 = vld [vmem:[#allocation4 + $0x68] sm:$0xf0] }
 0x3d3   : > { %v1884_v21 = vpop.eup %1883 }
 0x3d4   : > { %v851_v22 = vmul.f32 %v1884_v21, %v1878_v8  ;;  %v790_v23 = vpop.xlane.xlu2 %789  ;;  %v1679_v21 = vor.u32 %v1798_v18, %v1676_v20  ;;  %v1869_v20 = vld [vmem:[%s2263_s6] ss:$0 sm:$0xff] }
 0x3d5   : > { %1885 = vrcp.f32 %v790_v23  ;;  %v1797_v23 = vld [vmem:[#allocation4 + $0x54] sm:$0xf0] }
 0x3d6   : > { %v852_v24 = vpack.c.bf16 %v851_v22, %v851_v22  ;;  %1184 = vmatpush.bf16.msra.mxu3 %v1679_v21  ;;  %v1666_v22 = vld [vmem:[#allocation4 + $0x50] sm:$0xf] }
 0x3d8   : > { %1589 = vmatmul.msk.bf16.vlgmr.msra.gmra.mxu2 %vm720_vm2, %v852_v24  ;;  %v1796_v24 = vld [vmem:[#allocation4 + $0x54] sm:$0xf] }
 0x3db   : > { %v1886_v25 = vpop.eup %1885 }
 0x3dc   : > { %v792_v26 = vmul.f32 %v1886_v25, %v1880_v11  ;;  %v798_v27 = vpop.permute.xlu2 %797  ;;  %v1667_v25 = vor.u32 %v1797_v23, %v1666_v22 }
 0x3dd   : > { %v803_v28 = vsel %vm736_vm1, %v798_v27, 0 }
 0x3de   : > { %812 = vmatpush.bf16.msrb.mxu0 %v803_v28  ;;  %v793_v29 = vpack.c.bf16 %v792_v26, %v792_v26  ;;  %v1668_v26 = vld [vmem:[#allocation4 + $0x58] sm:$0xf0]  ;;  %v1658_v28 = vld [vmem:[#allocation4 + $0x40] sm:$0xf] }
 0x3df   : > { %v1671_v27 = vor.u32 %v1796_v24, %v1668_v26  ;;  %v1803_v24 = vld [vmem:[#allocation6 + $0x8] sm:$0xff]  ;;  %v1802_v26 = vld [vmem:[#allocation6] sm:$0xff] }
 0x3e1   : > { %1587 = vmatmul.msk.bf16.vlgmr.msrb.gmra.mxu0 %vm720_vm2, %v793_v29  ;;  %1185 = vmatpush.bf16.msra.mxu3 %v1671_v27  ;;  %v1795_v29 = vld [vmem:[#allocation4 + $0x44] sm:$0xf0]  ;;  %v1810_v27 = vld [vmem:[#allocation6 + $0x40] sm:$0xff] }
 0x3e4   : > { %v905_v30 = vpop.xlane.xlu1 %904 }
 0x3e5   : > { %1887 = vrcp.f32 %v905_v30  ;;  %v1794_v30 = vld [vmem:[#allocation4 + $0x44] sm:$0xf] }
 0x3e6   : > { %1889 = vrcp.f32 %v2013_v0  ;;  %v1816_v0 = vld [vmem:[#allocation6 + $0x70] sm:$0xff] }
 0x3eb   : > { %v1888_v31 = vpop.eup %1887 }
 0x3ec   : > { %v907_v32 = vmul.f32 %v1888_v31, %v1882_v16  ;;  %v1890_v7 = vpop.eup %1889  ;;  %v1674_v16 = vld [vmem:[#allocation4 + $0x60] sm:$0xf]  ;;  %v1659_v31 = vor.u32 %v1795_v29, %v1658_v28 }
 0x3ed   : > { %v1035_v8 = vmul.f32 128.0, %v1890_v7  ;;  %vm1039_vm5 = vweird.f32 %v1890_v7  ;;  %v1675_v19 = vor.u32 %v1799_v17, %v1674_v16  ;;  %v1868_v17 = vld [vmem:[%s2262_s5] ss:$0 sm:$0xff] }
 0x3ee   : > { %v908_v35 = vpack.c.bf16 %v907_v32, %v907_v32  ;;  %v1660_v32 = vld [vmem:[#allocation4 + $0x48] sm:$0xf0] }
 0x3ef   : > { %v1036_v9 = vsub.f32 1.0, %v1035_v8  ;;  %v1805_v8 = vld [vmem:[#allocation6 + $0x18] sm:$0xff] }
 0x3f1   : > { %v1037_v10 = vmul.f32 %v1890_v7, %v1036_v9  ;;  %v1813_v9 = vld [vmem:[#allocation6 + $0x58] sm:$0xff] }
 0x3f3   : > { %v1038_v2 = vadd.f32 %v1890_v7, %v1037_v10 }
 0x3f5   : > { %v2220_v11 = vsel %vm1039_vm5, %v1890_v7, %v1038_v2 }
 0x3fc   : > { %v910_v33 = vpop.permute.xlu1 %909 }
 0x3fd   : > { %v915_v34 = vsel %vm736_vm1, %v910_v33, 0  ;;  %v1663_v33 = vor.u32 %v1794_v30, %v1660_v32 }
 0x3fe   : > { %924 = vmatpush.bf16.msra.mxu0 %v915_v34  ;;  %v1650_v34 = vld [vmem:[#allocation4 + $0x30] sm:$0xf] }
 0x3ff   : > { %1186 = vmatpush.bf16.msra.mxu3 %v1663_v33 }
 0x401   : > { %1591 = vmatmul.msk.bf16.vlgmr.msra.gmra.mxu0 %vm720_vm2, %v908_v35  ;;  %v1793_v35 = vld [vmem:[#allocation4 + $0x34] sm:$0xf0] }
 0x45b   : > { %v870_v36 = vpop.f32.mrf.mxu2 }
 0x45e   : > { %v814_v37 = vpop.f32.mrf.mxu0 }
 0x45f   : > { %931 = vrot.lane.b32.xlu2 %v814_v37, %s2012_s20  ;;  %v1651_v37 = vor.u32 %v1793_v35, %v1650_v34 }
 0x463   : > { %v872_v38 = vpop.f32.mrf.mxu2 }
 0x464   : > { %v1652_v38 = vld [vmem:[#allocation4 + $0x38] sm:$0xf0] }
 0x466   : > { %v816_v39 = vpop.f32.mrf.mxu0 }
 0x467   : > { %935 = vrot.lane.b32.xlu2 %v870_v36, %s2010_s18  ;;  %v1792_v36 = vld [vmem:[#allocation4 + $0x34] sm:$0xf] }
 0x468   : > { %v1655_v39 = vor.u32 %v1792_v36, %v1652_v38 }
 0x46a   : > { %1187 = vmatpush.bf16.msra.mxu3 %v1655_v39 }
 0x46e   : > { %1188 = vmatpush.bf16.msra.mxu3 %v1647_v45 }
 0x47e   : > { %v926_v40 = vpop.f32.mrf.mxu0 }
 0x47f   : > { %939 = vrot.lane.b32.xlu0 %v926_v40, %s2011_s19  ;;  %v1642_v40 = vld [vmem:[#allocation4 + $0x20] sm:$0xf]  ;;  %s485_s19 = scalar_lea.vmem %s2270_s13, %s1486_s1 }
 0x486   : > { %v928_v41 = vpop.f32.mrf.mxu0 }
 0x487   : > { %v1791_v41 = vld [vmem:[#allocation4 + $0x24] sm:$0xf0] }
 0x488   : > { %v1643_v43 = vor.u32 %v1791_v41, %v1642_v40  ;;  %v1870_v40 = vld [vmem:[%s2267_s10] ss:$0 sm:$0xff] }
 0x4b9   : > { %v932_v50 = vpop.permute.xlu2 %931 }
 0x4ba   : > { %v942_v52 = vsel %vm700_vm0, %v2170_v53, %v932_v50  ;;  %v1801_v53 = vld [vmem:[#allocation4 + $0x74] sm:$0xf0]  ;;  %v1636_v50 = vld [vmem:[#allocation4 + $0x18] sm:$0xf0] }
 0x4bb   : > { %v1683_v4 = vor.u32 %v1801_v53, %v1682_v1  ;;  %v1807_v53 = vld [vmem:[#allocation6 + $0x28] sm:$0xff] }
 0x4bd   : > { %1170 = vmatpush.bf16.msrb.mxu2 %v1683_v4  ;;  %v1806_v4 = vld [vmem:[#allocation6 + $0x20] sm:$0xff] }
 0x4c1   : > { %v936_v51 = vpop.permute.xlu2 %935  ;;  %1171 = vmatpush.bf16.msrb.mxu2 %v1675_v19 }
 0x4c2   : > { %v944_v54 = vsel %vm943_vm3, %v942_v52, %v936_v51  ;;  %v1626_v51 = vld [vmem:[#allocation4] sm:$0xf]  ;;  %v1787_v52 = vld [vmem:[#allocation4 + $0x4] sm:$0xf0] }
 0x4c5   : > { %1172 = vmatpush.bf16.msrb.mxu2 %v1667_v25  ;;  %v1811_v25 = vld [vmem:[#allocation6 + $0x48] sm:$0xff] }
 0x4c9   : > { %1173 = vmatpush.bf16.msrb.mxu2 %v1659_v31 }
 0x4cd   : > { %1174 = vmatpush.bf16.msrb.mxu2 %v1651_v37 }
 0x4d1   : > { %1175 = vmatpush.bf16.msrb.mxu2 %v1643_v43 }
 0x4d5   : > { %1176 = vmatpush.bf16.msrb.mxu2 %v1635_v49 }
 0x4f1   : > { %v940_v55 = vpop.permute.xlu0 %939 }
 0x4f2   : > { %v946_v56 = vsel %vm945_vm4, %v944_v54, %v940_v55  ;;  %v1639_v54 = vor.u32 %v1788_v48, %v1636_v50  ;;  %v1786_v55 = vld [vmem:[#allocation4 + $0x4] sm:$0xf] }
 0x4f3   : > { %v947_v57 = vpack.c.bf16 %v946_v56, %v946_v56  ;;  %v1628_v56 = vld [vmem:[#allocation4 + $0x8] sm:$0xf0] }
 0x4f4   : > { %1189 = vmatpush.bf16.msra.mxu3 %v1639_v54 }
 0x4f5   : > { %1024 = vmatmul.bf16.vlgmr.msrb.gmra.mxu1 %v947_v57  ;;  %v1627_v57 = vor.u32 %v1787_v52, %v1626_v51 }
 0x4f7   : > { %1177 = vmatpush.bf16.msrb.mxu2 %v1627_v57 }
 0x572   : > { %v1025_v60 = vpop.f32.mrf.mxu1 }
 0x573   : > { %v1026_v61 = vadd.f32 %v1867_v58, %v1025_v60  ;;  %v1631_v58 = vor.u32 %v1786_v55, %v1628_v56  ;;  %v1817_v60 = vld [vmem:[#allocation6 + $0x78] sm:$0xff] }
 0x574   : > { %1345 = vmatpush.bf16.msra.mxu1 %v1817_v60 }
 0x575   : > { %v1029_v62 = vadd.f32 %v1026_v61, %v488_v59  ;;  %1190 = vmatpush.bf16.msra.mxu3 %v1631_v58  ;;  %v1809_v59 = vld [vmem:[#allocation6 + $0x38] sm:$0xff] }
 0x576   : > { %1332 = vmatpush.bf16.msrb.mxu0 %v1809_v59 }
 0x577   : > { %1032 = vadd.xlane.f32.xlu2 %v1029_v62 }
 0x578   : > { %1346 = vmatpush.bf16.msra.mxu1 %v1816_v0 }
 0x57a   : > { %v1027_v63 = vpop.f32.mrf.mxu1 }
 0x57b   : > { %v1808_v63 = vld [vmem:[#allocation6 + $0x30] sm:$0xff] }
 0x57c   : > { %1333 = vmatpush.bf16.msrb.mxu0 %v1808_v63  ;;  %1347 = vmatpush.bf16.msra.mxu1 %v1815_v3 }
 0x580   : > { %1334 = vmatpush.bf16.msrb.mxu0 %v1807_v53  ;;  %1348 = vmatpush.bf16.msra.mxu1 %v1814_v5 }
 0x584   : > { %1335 = vmatpush.bf16.msrb.mxu0 %v1806_v4  ;;  %1349 = vmatpush.bf16.msra.mxu1 %v1813_v9 }
 0x588   : > { %1336 = vmatpush.bf16.msrb.mxu0 %v1805_v8 }
 0x5ea   : > { %v1033_v12 = vpop.xlane.xlu2 %1032 }
 0x5eb   : > { %v1041_v13 = vmul.f32 %v2220_v11, %v1033_v12  ;;  %v1804_v12 = vld [vmem:[#allocation6 + $0x10] sm:$0xff] }
 0x5ec   : > { %1337 = vmatpush.bf16.msrb.mxu0 %v1804_v12 }
 0x5ed   : > { %v2223_v14 = vsub.f32 %v1029_v62, %v1041_v13  ;;  %v1812_v13 = vld [vmem:[#allocation6 + $0x50] sm:$0xff] }
 0x5ee   : > { %1350 = vmatpush.bf16.msra.mxu1 %v1812_v13 }
 0x5ef   : > { %v1043_v15 = vmul.f32 %v2223_v14, %v2223_v14 }
 0x5f0   : > { %1338 = vmatpush.bf16.msrb.mxu0 %v1803_v24 }
 0x5f1   : > { %1044 = vadd.xlane.f32.xlu0 %v1043_v15 }
 0x5f2   : > { %1351 = vmatpush.bf16.msra.mxu1 %v1811_v25 }
 0x5f4   : > { %1339 = vmatpush.bf16.msrb.mxu0 %v1802_v26 }
 0x5f6   : > { %1352 = vmatpush.bf16.msra.mxu1 %v1810_v27 }
 0x664   : > { %v1045_v61 = vpop.xlane.xlu0 %1044 }
 0x665   : > { %v1046_v62 = vmul.f32 %v1045_v61, %v2220_v11 }
 0x667   : > { %v1047_v1 = vadd.f32 1e-05, %v1046_v62  ;;  %v1871_v62 = vld [vmem:[%s2268_s11] ss:$0 sm:$0xff] }
 0x669   : > { %1891 = vrsqrt.f32 %v1047_v1  ;;  %vm1054_vm7 = vweird.f32 %v1047_v1 }
 0x66f   : > { %v1892_v6 = vpop.eup %1891 }
 0x670   : > { %v1049_v7 = vmul.f32 %v1892_v6, %v1047_v1  ;;  %vm1055_vm6 = vweird.f32 %v1892_v6 }
 0x671   : > { %vm1056_vm8 = vmor %vm1054_vm7, %vm1055_vm6 }
 0x672   : > { %v1050_v10 = vmul.f32 %v1892_v6, %v1049_v7 }
 0x674   : > { %v1051_v2 = vmul.f32 0.5, %v1050_v10 }
 0x676   : > { %v1052_v15 = vsub.f32 1.5, %v1051_v2 }
 0x678   : > { %v1053_v16 = vmul.f32 %v1892_v6, %v1052_v15 }
 0x67a   : > { %v1057_v18 = vsel %vm1056_vm8, %v1892_v6, %v1053_v16 }
 0x67b   : > { %v1058_v19 = vmul.f32 %v1057_v18, %v2223_v14  ;;  %v1084_v14 = vld [vmem:[%s2265_s8] sm:$0x3] }
 0x67c   : > { %v1086_v28 = vperm.slane %v1084_v14, 0  ;;  %v1087_v29 = vperm.slane %v1084_v14, 1 }
 0x67d   : > { %v1062_v21 = vmul.f32 %v1868_v17, %v1058_v19 }
 0x67f   : > { %v1066_v22 = vadd.f32 %v1869_v20, %v1062_v21 }
 0x681   : > { %v1067_v23 = vpack.c.bf16 %v1066_v22, %v1066_v22 }
 0x683   : > { %1178 = vmatmul.bf16.vlgmr.msrb.gmra.mxu2 %v1067_v23  ;;  %1191 = vmatmul.bf16.vlgmr.msra.gmra.mxu3 %v1067_v23 }
 0x706   : > { %v1179_v30 = vpop.f32.mrf.mxu2  ;;  %v1192_v31 = vpop.f32.mrf.mxu3 }
 0x707   : > { %v1180_v32 = vadd.f32 %v1179_v30, %v1086_v28  ;;  %v1193_v33 = vadd.f32 %v1192_v31, %v1087_v29 }
 0x709   : > { %v1196_v34 = vmax.f32 %v1180_v32, 0.0  ;;  %v1197_v35 = vmax.f32 %v1193_v33, 0.0 }
 0x70b   : > { %v1198_v36 = vpack.c.bf16 %v1196_v34, %v1196_v34  ;;  %v1199_v37 = vpack.c.bf16 %v1197_v35, %v1197_v35 }
 0x70d   : > { %1340 = vmatmul.bf16.vlgmr.msrb.gmra.mxu0 %v1198_v36  ;;  %1353 = vmatmul.bf16.vlgmr.msra.gmra.mxu1 %v1199_v37 }
 0x70e   : > { %v1181_v38 = vpop.f32.mrf.mxu2  ;;  %v1194_v39 = vpop.f32.mrf.mxu3 }
 0x78a   : > { %v1341_v41 = vpop.f32.mrf.mxu0  ;;  %v1354_v42 = vpop.f32.mrf.mxu1 }
 0x78b   : > { %v1342_v43 = vadd.f32 %v1870_v40, %v1341_v41 }
 0x78d   : > { %v1355_v44 = vadd.f32 %v1354_v42, %v1342_v43 }
 0x78f   : > { %v1358_v45 = vadd.f32 %v1355_v44, %v1066_v22 }
 0x791   : > { %1361 = vadd.xlane.f32.xlu1 %v1358_v45 }
 0x792   : > { %v1343_v46 = vpop.f32.mrf.mxu0  ;;  %v1356_v47 = vpop.f32.mrf.mxu1 }
 0x804   : > { %v1362_v48 = vpop.xlane.xlu1 %1361 }
 0x805   : > { %v1363_v49 = vmul.f32 %v1362_v48, %v2220_v11 }
 0x807   : > { %v1364_v50 = vsub.f32 %v1358_v45, %v1363_v49 }
 0x809   : > { %v1365_v51 = vmul.f32 %v1364_v50, %v1364_v50 }
 0x80b   : > { %1366 = vadd.xlane.f32.xlu2 %v1365_v51 }
 0x87e   : > { %v1367_v52 = vpop.xlane.xlu2 %1366 }
 0x87f   : > { %v1368_v54 = vmul.f32 %v1367_v52, %v2220_v11  ;;  %v1872_v11 = vld [vmem:[%s2269_s12] ss:$0 sm:$0xff] }
 0x881   : > { %v1369_v55 = vadd.f32 1e-05, %v1368_v54 }
 0x883   : > { %1893 = vrsqrt.f32 %v1369_v55  ;;  %vm1376_vm10 = vweird.f32 %v1369_v55 }
 0x889   : > { %v1894_v56 = vpop.eup %1893 }
 0x88a   : > { %v1371_v57 = vmul.f32 %v1894_v56, %v1369_v55  ;;  %vm1377_vm9 = vweird.f32 %v1894_v56 }
 0x88b   : > { %vm1378_vm11 = vmor %vm1376_vm10, %vm1377_vm9 }
 0x88c   : > { %v1372_v58 = vmul.f32 %v1894_v56, %v1371_v57 }
 0x88e   : > { %v1373_v59 = vmul.f32 0.5, %v1372_v58 }
 0x890   : > { %v1374_v60 = vsub.f32 1.5, %v1373_v59 }
 0x892   : > { %v1375_v61 = vmul.f32 %v1894_v56, %v1374_v60 }
 0x894   : > { %v1379_v63 = vsel %vm1378_vm11, %v1894_v56, %v1375_v61 }
 0x895   : > { %v1380_v0 = vmul.f32 %v1379_v63, %v1364_v50 }
 0x897   : > { %v1384_v1 = vmul.f32 %v1871_v62, %v1380_v0 }
 0x899   : > { %v1388_v53 = vadd.f32 %v1872_v11, %v1384_v1 }
 0x89b   : > { %v1389_v3 = vpack.c.bf16 %v1388_v53, %v1388_v53 }
 0x89d   : > { %1390 = vst [vmem:[%s485_s19] sm:$0xf] %v1389_v3 }
 0x89e PF: > { %s2279_s20 = sld [smem:[#allocation9_spill]] }
 0x8a4   : > { %s25_s25 = sadd.s32 1, %s2279_s20  }
 0x8a5   : > { %p22_p7 = scmp.ge.s32.totalorder %s25_s25, 4  }
 0x8a7   :  { %24 = sbr.rel (!%p22_p7) target bundleno = 5 (0x5), region = 115 }
 0x8ac   :  { %1410 = vsyncpa [#allocation3], 1 }
 0x8ad   :  { %1412 = vsyncpa [#allocation3 + $0x1], 1 }
 0x8ae   :  { %1413 = vsyncpa [#allocation5], 1 }

// kernel: transformer_seq2seq_forward.7
= control target key start
LH: loop header
LB: loop body
LE: loop exit
PB: predicated region body
PF: predicated region fallthrough
CT: control target
= control target key end

     0   :  { %s3930_s0 = inlined_call_operand.vmem [shape: bf16[2,8,128], index: 0, kind: input, shape index: {}]   ;;  %s3931_s1 = inlined_call_operand.vmem [shape: bf16[2,8,128], index: 1, kind: input, shape index: {}]   ;;  %s3932_s2 = inlined_call_operand.vmem [shape: f32[2,8,8], index: 2, kind: input, shape index: {}]   ;;  %s3933_s3 = inlined_call_operand.hbm [shape: bf16[128,384], index: 3, kind: input, shape index: {}]   ;;  %s3934_s4 = inlined_call_operand.vmem [shape: f32[1,384], index: 4, kind: input, shape index: {}]   ;;  %s3935_s5 = inlined_call_operand.vmem [shape: bf16[128,128], index: 5, kind: input, shape index: {}]   ;;  %s3936_s6 = inlined_call_operand.vmem [shape: f32[1,128], index: 6, kind: input, shape index: {}]   ;;  %s3937_s7 = inlined_call_operand.vmem [shape: f32[1,128], index: 7, kind: input, shape index: {}]   ;;  %s3938_s8 = inlined_call_operand.vmem [shape: f32[1,128], index: 8, kind: input, shape index: {}]   ;;  %s3939_s9 = inlined_call_operand.hbm [shape: bf16[128,128], index: 9, kind: input, shape index: {}]   ;;  %s3940_s10 = inlined_call_operand.vmem [shape: f32[1,128], index: 10, kind: input, shape index: {}]   ;;  %s3941_s11 = inlined_call_operand.hbm [shape: bf16[128,256], index: 11, kind: input, shape index: {}]   ;;  %s3942_s12 = inlined_call_operand.vmem [shape: f32[1,256], index: 12, kind: input, shape index: {}]   ;;  %s3943_s13 = inlined_call_operand.hbm [shape: bf16[128,128], index: 13, kind: input, shape index: {}]   ;;  %s3944_s14 = inlined_call_operand.vmem [shape: f32[1,128], index: 14, kind: input, shape index: {}]   ;;  %s3945_s15 = inlined_call_operand.vmem [shape: f32[1,128], index: 15, kind: input, shape index: {}]   ;;  %s3946_s16 = inlined_call_operand.vmem [shape: f32[1,128], index: 16, kind: input, shape index: {}]   ;;  %s3947_s17 = inlined_call_operand.hbm [shape: bf16[128,256], index: 17, kind: input, shape index: {}]   ;;  %s3948_s18 = inlined_call_operand.vmem [shape: f32[1,256], index: 18, kind: input, shape index: {}]   ;;  %s3949_s19 = inlined_call_operand.hbm [shape: bf16[256,128], index: 19, kind: input, shape index: {}]   ;;  %s3950_s20 = inlined_call_operand.hbm [shape: f32[1,128], index: 20, kind: input, shape index: {}]   ;;  %s3951_s21 = inlined_call_operand.hbm [shape: f32[1,128], index: 21, kind: input, shape index: {}]   ;;  %s3952_s22 = inlined_call_operand.hbm [shape: f32[1,128], index: 22, kind: input, shape index: {}]   ;;  %s3953_s23 = inlined_call_operand.vmem [shape: bf16[2,8,128], index: 23, kind: output, shape index: {}]  }
   0x1   :  { %3956 = sst [smem:[#allocation22_spill]] %s3930_s0 }
   0x2   :  { %3957 = sst [smem:[#allocation23_spill]] %s3931_s1 }
   0x3   :  { %3958 = sst [smem:[#allocation24_spill]] %s3932_s2 }
   0x4   :  { %3959 = sst [smem:[#allocation25_spill]] %s3933_s3 }
   0x5   :  { %3960 = sst [smem:[#allocation26_spill]] %s3934_s4 }
   0x6   :  { %3961 = sst [smem:[#allocation27_spill]] %s3935_s5 }
   0x7   :  { %3962 = sst [smem:[#allocation28_spill]] %s3936_s6 }
   0x8   :  { %3963 = sst [smem:[#allocation29_spill]] %s3937_s7 }
   0x9   :  { %3964 = sst [smem:[#allocation30_spill]] %s3939_s9 }
   0xa   :  { %3965 = sst [smem:[#allocation31_spill]] %s3943_s13 }
   0xb   :  { %3966 = sst [smem:[#allocation32_spill]] %s3948_s18 }
   0xc   :  { %3967 = sst [smem:[#allocation33_spill]] %s3949_s19 }
   0xd   :  { %3968 = sst [smem:[#allocation34_spill]] %s3953_s23 }
   0xe   :  { %28 = vsyncpa [#allocation3], 0 }
   0xf   :  { %29 = vsyncpa [#allocation5], 0 }
  0x10   :  { %30 = vsyncpa [#allocation8], 0 }
  0x11   :  { %31 = vsyncpa [#allocation11], 0 }
  0x12   :  { %32 = vsyncpa [#allocation14], 0  ;;  %s3645_s4 = smov 0  }
  0x13 LB: > { %3969 = sst [smem:[#allocation21_spill]] %s3504_s4  ;;  %s3654_s5 = sadd.s32 4294967295, %s3504_s4   ;;  %s3504_s4 = sphi %s3645_s4, %s38_s4  }
  0x14   : > { %s3970_s9 = sld [smem:[#allocation30_spill]]  ;;  %p2526_p0 = scmp.ge.s32.totalorder %s3504_s4, 1 }
  0x15   : > { %p567_p1 = scmp.lt.s32.totalorder %s3504_s4, 3  ;;  %p3113_p2 = scmp.eq.s32.totalorder %s3654_s5, 0 }
  0x16   : > { %s3506_s26 = smov [#allocation4]   ;;  %s3972_s13 = sld [smem:[#allocation31_spill]] }
  0x17   : > { %p3659_p3 = pnand %p2526_p0, %p567_p1  ;;  %s609_s2 = sshll.u32 %s3506_s26, 4  ;;  %s610_s2 = int_to_ptr.vmem [resolvable:$true] %s609_s2 }
  0x18   : > { %s3507_s29 = smov [#allocation7]   ;;  %s3974_s19 = sld [smem:[#allocation33_spill]] }
  0x19   : > { %p3085_p4 = pneg %p3659_p3  ;;  %s643_s3 = sshll.u32 %s3507_s29, 4  ;;  %s644_s3 = int_to_ptr.vmem [resolvable:$true] %s643_s3 }
  0x1a   : > { %s607_s25 = sshll.u32 %s3970_s9, 4  ;;  %s3508_s26 = smov 64   ;;  %s608_s25 = int_to_ptr.hbm [resolvable:$true] %s607_s25 }
  0x1b   : > { %p3670_p5 = pnand %p3113_p2, %p3085_p4  ;;  %s3509_s6 = smov 4  }
  0x1c   : > { %s641_s7 = sshll.u32 %s3972_s13, 4  ;;  %s3510_s27 = smov [#allocation10]   ;;  %s642_s7 = int_to_ptr.hbm [resolvable:$true] %s641_s7 }
  0x1d   : > { %3091 = dma.hbm_to_vmem [thread:$0]  (!%p3670_p5), %s608_s25, 1024, %s610_s2, [#allocation5], %s3508_s26, %s3508_s26, %s3509_s6  }
  0x1e   : > { %s681_s24 = sshll.u32 %s3974_s19, 4  ;;  %s683_s9 = sshll.u32 %s3510_s27, 4  ;;  %s682_s24 = int_to_ptr.hbm [resolvable:$true] %s681_s24  ;;  %s684_s9 = int_to_ptr.vmem [resolvable:$true] %s683_s9 }
  0x1f   : > { %3097 = dma.hbm_to_vmem [thread:$0]  (!%p3670_p5), %s642_s7, 1024, %s644_s3, [#allocation8], %s3508_s26, %s3508_s26, %s3509_s6  }
  0x20   : > { %s708_s29 = sshll.u32 %s3951_s21, 4  ;;  %s3975_s19 = sld [smem:[#allocation25_spill]]  ;;  %s709_s29 = int_to_ptr.hbm [resolvable:$true] %s708_s29 }
  0x21   : > { %3103 = dma.hbm_to_vmem [thread:$0]  (!%p3670_p5), %s682_s24, 2048, %s684_s9, [#allocation11], %s3508_s26, %s3508_s26, %s3509_s6  }
  0x22   : > { %s3511_s18 = smov [#allocation13]   ;;  %s3512_s2 = smov [#allocation2]  }
  0x23   : > { %s710_s25 = sshll.u32 %s3511_s18, 4  ;;  %s580_s7 = sshll.u32 %s3512_s2, 4  ;;  %s711_s25 = int_to_ptr.vmem [resolvable:$true] %s710_s25  ;;  %s581_s7 = int_to_ptr.vmem [resolvable:$true] %s580_s7 }
  0x24   : > { %3109 = dma.hbm_to_vmem [thread:$0]  (!%p3670_p5), %s709_s29, 16, %s711_s25, [#allocation14]  }
  0x25   : > { %s3513_s13 = smov 192   ;;  %s3514_s4 = smov 12  }
  0x26   : > { %s578_s23 = sshll.u32 %s3975_s19, 4  ;;  %s624_s24 = sshll.u32 %s3941_s11, 4  ;;  %s579_s23 = int_to_ptr.hbm [resolvable:$true] %s578_s23  ;;  %s625_s24 = int_to_ptr.hbm [resolvable:$true] %s624_s24 }
  0x27   : > { %3088 = dma.hbm_to_vmem [thread:$0]  (!%p3670_p5), %s579_s23, 3072, %s581_s7, [#allocation3], %s3513_s13, %s3513_s13, %s3514_s4  }
  0x28   : > { %s3515_s19 = smov [#allocation6]   ;;  %s664_s27 = sshll.u32 %s3947_s17, 4  ;;  %s665_s27 = int_to_ptr.hbm [resolvable:$true] %s664_s27 }
  0x29   : > { %s626_s18 = sshll.u32 %s3515_s19, 4  ;;  %s3516_s29 = smov 128   ;;  %s627_s18 = int_to_ptr.vmem [resolvable:$true] %s626_s18 }
  0x2a   : > { %s3517_s0 = smov 8   ;;  %s3518_s23 = smov [#allocation9]  }
  0x2b   : > { %3094 = dma.hbm_to_vmem [thread:$0]  (!%p3670_p5), %s625_s24, 2048, %s627_s18, [#allocation5], %s3516_s29, %s3516_s29, %s3517_s0  }
  0x2c   : > { %s666_s30 = sshll.u32 %s3518_s23, 4  ;;  %s696_s7 = sshll.u32 %s3950_s20, 4  ;;  %s667_s30 = int_to_ptr.vmem [resolvable:$true] %s666_s30  ;;  %s697_s7 = int_to_ptr.hbm [resolvable:$true] %s696_s7 }
  0x2d   : > { %3100 = dma.hbm_to_vmem [thread:$0]  (!%p3670_p5), %s665_s27, 2048, %s667_s30, [#allocation8], %s3516_s29, %s3516_s29, %s3517_s0  }
  0x2e   : > { %s720_s3 = sshll.u32 %s3952_s22, 4  ;;  %s3519_s9 = smov [#allocation12]   ;;  %s721_s3 = int_to_ptr.hbm [resolvable:$true] %s720_s3 }
  0x2f   : > { %s698_s19 = sshll.u32 %s3519_s9, 4  ;;  %s3520_s24 = smov [#allocation15]   ;;  %s699_s19 = int_to_ptr.vmem [resolvable:$true] %s698_s19 }
  0x30   : > { %3106 = dma.hbm_to_vmem [thread:$0]  (!%p3670_p5), %s697_s7, 16, %s699_s19, [#allocation11]  }
  0x31   : > { %s722_s18 = sshll.u32 %s3520_s24, 4  ;;  %756 = sbr.rel (%p3659_p3) target bundleno = 3576 (0xdf8), region = 112  ;;  %s723_s18 = int_to_ptr.vmem [resolvable:$true] %s722_s18 }
  0x32   : > { %3112 = dma.hbm_to_vmem [thread:$0]  (!%p3670_p5), %s721_s3, 16, %s723_s18, [#allocation14]  }
  0x36   : > { %3483 = dma.done.wait (%p3113_p2), [#allocation3], 3072  }
  0x37   : > { %3485 = vsyncadd (%p3113_p2), [#allocation3], 4294964224 }
  0x38   : > { %3487 = dma.done.wait (%p3113_p2), [#allocation5], 3072  }
  0x39   : > { %3489 = vsyncadd (%p3113_p2), [#allocation5], 4294964224 }
  0x3a   : > { %3491 = dma.done.wait (%p3113_p2), [#allocation8], 3072  }
  0x3b   : > { %3493 = vsyncadd (%p3113_p2), [#allocation8], 4294964224 }
  0x3c   : > { %3495 = dma.done.wait (%p3113_p2), [#allocation11], 2064  }
  0x3d   : > { %3497 = vsyncadd (%p3113_p2), [#allocation11], 4294965232 }
  0x3e   : > { %3499 = dma.done.wait (%p3113_p2), [#allocation14], 32  }
  0x3f   : > { %3501 = vsyncadd (%p3113_p2), [#allocation14], 4294967264  ;;  %v2637_v0 = vld [vmem:[#allocation2 + $0xa8] sm:$0xf]  ;;  %v2975_v1 = vld [vmem:[#allocation2 + $0xb0] sm:$0xf0] }
  0x40   : > { %v2974_v2 = vld [vmem:[#allocation2 + $0xac] sm:$0xf]  ;;  %v2638_v3 = vor.u32 %v2975_v1, %v2637_v0  ;;  %v2639_v4 = vld [vmem:[#allocation2 + $0xb4] sm:$0xf0]  ;;  %v2625_v5 = vld [vmem:[#allocation2 + $0x90] sm:$0xf] }
  0x41   : > { %v2972_v6 = vld [vmem:[#allocation2 + $0x98] sm:$0xf0]  ;;  %v2642_v7 = vor.u32 %v2974_v2, %v2639_v4  ;;  %v2971_v8 = vld [vmem:[#allocation2 + $0x94] sm:$0xf]  ;;  %v2627_v9 = vld [vmem:[#allocation2 + $0x9c] sm:$0xf0] }
  0x42   : > { %1055 = vmatpush.bf16.msra.mxu0 %v2638_v3  ;;  %v2626_v10 = vor.u32 %v2972_v6, %v2625_v5  ;;  %v2630_v11 = vor.u32 %v2971_v8, %v2627_v9  ;;  %v2613_v12 = vld [vmem:[#allocation2 + $0x78] sm:$0xf]  ;;  %v2969_v13 = vld [vmem:[#allocation2 + $0x80] sm:$0xf0]  ;;  %v2968_v14 = vld [vmem:[#allocation2 + $0x7c] sm:$0xf] }
  0x43   : > { %1068 = vmatpush.bf16.msra.mxu1 %v2642_v7  ;;  %v2615_v15 = vld [vmem:[#allocation2 + $0x84] sm:$0xf0]  ;;  %v2614_v16 = vor.u32 %v2969_v13, %v2613_v12  ;;  %v2601_v18 = vld [vmem:[#allocation2 + $0x60] sm:$0xf]  ;;  %v2966_v19 = vld [vmem:[#allocation2 + $0x68] sm:$0xf0] }
  0x44   : > { %v2618_v17 = vor.u32 %v2968_v14, %v2615_v15  ;;  %v2965_v20 = vld [vmem:[#allocation2 + $0x64] sm:$0xf]  ;;  %v2603_v21 = vld [vmem:[#allocation2 + $0x6c] sm:$0xf0]  ;;  %v2602_v22 = vor.u32 %v2966_v19, %v2601_v18  ;;  %v2976_v24 = vld [vmem:[#allocation2 + $0xb8] sm:$0xf0] }
  0x45   : > { %v2645_v23 = vld [vmem:[#allocation2 + $0xb0] sm:$0xf]  ;;  %v2633_v25 = vld [vmem:[#allocation2 + $0x98] sm:$0xf]  ;;  %v2606_v26 = vor.u32 %v2965_v20, %v2603_v21  ;;  %v2589_v27 = vld [vmem:[#allocation2 + $0x48] sm:$0xf] }
  0x46   : > { %1056 = vmatpush.bf16.msra.mxu0 %v2626_v10  ;;  %v2963_v28 = vld [vmem:[#allocation2 + $0x50] sm:$0xf0]  ;;  %v2646_v29 = vor.u32 %v2976_v24, %v2645_v23  ;;  %v2973_v30 = vld [vmem:[#allocation2 + $0xa0] sm:$0xf0]  ;;  %v2962_v31 = vld [vmem:[#allocation2 + $0x4c] sm:$0xf] }
  0x47   : > { %1069 = vmatpush.bf16.msra.mxu1 %v2630_v11  ;;  %v2591_v32 = vld [vmem:[#allocation2 + $0x54] sm:$0xf0]  ;;  %v2577_v33 = vld [vmem:[#allocation2 + $0x30] sm:$0xf]  ;;  %p867_p6 = scmp.lt.s32.totalorder %s3654_s5, 1  ;;  %v2634_v34 = vor.u32 %v2973_v30, %v2633_v25  ;;  %v2590_v35 = vor.u32 %v2963_v28, %v2589_v27  ;;  %s3976_s6 = sld [smem:[#allocation22_spill]] }
  0x48   : > { %1081 = vmatpush.bf16.msra.mxu2 %v2646_v29  ;;  %v2960_v36 = vld [vmem:[#allocation2 + $0x38] sm:$0xf0]  ;;  %v2621_v37 = vld [vmem:[#allocation2 + $0x80] sm:$0xf]  ;;  %v2970_v38 = vld [vmem:[#allocation2 + $0x88] sm:$0xf0]  ;;  %v2594_v39 = vor.u32 %v2962_v31, %v2591_v32 }
  0x49   : > { %v2959_v40 = vld [vmem:[#allocation2 + $0x34] sm:$0xf]  ;;  %v2579_v41 = vld [vmem:[#allocation2 + $0x3c] sm:$0xf0]  ;;  %v2609_v42 = vld [vmem:[#allocation2 + $0x68] sm:$0xf]  ;;  %v2622_v44 = vor.u32 %v2970_v38, %v2621_v37  ;;  %v2578_v45 = vor.u32 %v2960_v36, %v2577_v33 }
  0x4a   : > { %1057 = vmatpush.bf16.msra.mxu0 %v2614_v16  ;;  %v2967_v43 = vld [vmem:[#allocation2 + $0x70] sm:$0xf0]  ;;  %v2582_v46 = vor.u32 %v2959_v40, %v2579_v41  ;;  %v2565_v47 = vld [vmem:[#allocation2 + $0x18] sm:$0xf]  ;;  %v2957_v48 = vld [vmem:[#allocation2 + $0x20] sm:$0xf0] }
  0x4b   : > { %1070 = vmatpush.bf16.msra.mxu1 %v2618_v17  ;;  %v2956_v49 = vld [vmem:[#allocation2 + $0x1c] sm:$0xf]  ;;  %v2567_v50 = vld [vmem:[#allocation2 + $0x24] sm:$0xf0]  ;;  %s3987_s5 = smov (!%p867_p6, %s3654_s5), 1  ;;  %v2610_v51 = vor.u32 %v2967_v43, %v2609_v42  ;;  %v2566_v52 = vor.u32 %v2957_v48, %v2565_v47  ;;  %s3977_s23 = sld [smem:[#allocation26_spill]] }
  0x4c   : > { %1082 = vmatpush.bf16.msra.mxu2 %v2634_v34  ;;  %v2597_v53 = vld [vmem:[#allocation2 + $0x50] sm:$0xf]  ;;  %v2964_v54 = vld [vmem:[#allocation2 + $0x58] sm:$0xf0]  ;;  %v2570_v55 = vor.u32 %v2956_v49, %v2567_v50  ;;  %v2553_v56 = vld [vmem:[#allocation2] sm:$0xf] }
  0x4d   : > { %v2954_v57 = vld [vmem:[#allocation2 + $0x8] sm:$0xf0]  ;;  %v2953_v58 = vld [vmem:[#allocation2 + $0x4] sm:$0xf]  ;;  %v2555_v59 = vld [vmem:[#allocation2 + $0xc] sm:$0xf0]  ;;  %v2598_v60 = vor.u32 %v2964_v54, %v2597_v53 }
  0x4e   : > { %1058 = vmatpush.bf16.msra.mxu0 %v2602_v22  ;;  %s3742_s1 = sshll.u32 %s3987_s5, 2  ;;  %v2554_v61 = vor.u32 %v2954_v57, %v2553_v56  ;;  %v2585_v62 = vld [vmem:[#allocation2 + $0x38] sm:$0xf]  ;;  %v2961_v63 = vld [vmem:[#allocation2 + $0x40] sm:$0xf0]  ;;  %v2558_v0 = vor.u32 %v2953_v58, %v2555_v59  ;;  %vm1099_vm0 = vcmask 261120  }
  0x4f   : > { %1071 = vmatpush.bf16.msra.mxu1 %v2606_v26  ;;  %s870_s27 = scalar_lea.vmem %s3976_s6, %s3742_s1  ;;  %v2586_v1 = vor.u32 %v2961_v63, %v2585_v62  ;;  %v2573_v3 = vld [vmem:[#allocation2 + $0x20] sm:$0xf]  ;;  %v2958_v4 = vld [vmem:[#allocation2 + $0x28] sm:$0xf0]  ;;  %v2561_v6 = vld [vmem:[#allocation2 + $0x8] sm:$0xf] }
  0x50   : > { %1083 = vmatpush.bf16.msra.mxu2 %v2622_v44  ;;  %v3748_v2 = vld [vmem:[%s870_s27] sm:$0xf]  ;;  %v2574_v5 = vor.u32 %v2958_v4, %v2573_v3  ;;  %v2955_v7 = vld [vmem:[#allocation2 + $0x10] sm:$0xf0]  ;;  %s3521_s30 = smov 64   ;;  %s3522_s25 = smov 96  }
  0x51   : > { %v2562_v8 = vor.u32 %v2955_v7, %v2561_v6  ;;  %v919_v9 = vld [vmem:[%s3977_s23] sm:$0x7]  ;;  %s3523_s2 = smov 32   ;;  %vm1135_vm1 = vcmask 1043456   ;;  %s2549_s7 = sshll.u32 %s3987_s5, 3  ;;  %vm1119_vm2 = vcmask 64512  }
  0x52   : > { %1059 = vmatpush.bf16.msra.mxu0 %v2590_v35  ;;  %v921_v10 = vperm.slane %v919_v9, 0  ;;  %v922_v11 = vperm.slane %v919_v9, 1  ;;  %v923_v27 = vperm.slane %v919_v9, 2  ;;  %s3978_s3 = sld [smem:[#allocation24_spill]]  ;;  %vm1342_vm3 = vcmask 523264  }
  0x53   : > { %1072 = vmatpush.bf16.msra.mxu1 %v2594_v39  ;;  %s3979_s24 = sld [smem:[#allocation27_spill]]  ;;  %vm1344_vm4 = vcmask 785408  }
  0x54   : > { %1084 = vmatpush.bf16.msra.mxu2 %v2610_v51  ;;  %s3980_s28 = sld [smem:[#allocation28_spill]] }
  0x55   : > { %s3981_s27 = sld [smem:[#allocation23_spill]] }
  0x56   : > { %1060 = vmatpush.bf16.msra.mxu0 %v2578_v45 }
  0x57   : > { %1073 = vmatpush.bf16.msra.mxu1 %v2582_v46 }
  0x58   : > { %1085 = vmatpush.bf16.msra.mxu2 %v2598_v60  ;;  %s878_s9 = scalar_lea.vmem %s3978_s3, %s2549_s7  ;;  %s3982_s7 = sld [smem:[#allocation29_spill]] }
  0x59   : > { %v1094_v36 = vld [vmem:[%s878_s9] sm:$0xff] }
  0x5a   : > { %1061 = vmatpush.bf16.msra.mxu0 %v2566_v52 }
  0x5b   : > { %1074 = vmatpush.bf16.msra.mxu1 %v2570_v55  ;;  %s874_s29 = scalar_lea.vmem %s3981_s27, %s3742_s1 }
  0x5c   : > { %1086 = vmatpush.bf16.msra.mxu2 %v2586_v1 }
  0x5e   : > { %1062 = vmatpush.bf16.msra.mxu0 %v2554_v61 }
  0x5f   : > { %1075 = vmatpush.bf16.msra.mxu1 %v2558_v0 }
  0x60   : > { %1087 = vmatpush.bf16.msra.mxu2 %v2574_v5 }
  0x61   : > { %1063 = vmatmul.bf16.vlgmr.msra.gmra.mxu0 %v3748_v2 }
  0x62   : > { %1076 = vmatmul.bf16.vlgmr.msra.gmra.mxu1 %v3748_v2 }
  0x64   : > { %1088 = vmatpush.bf16.msra.mxu2 %v2562_v8 }
  0x67   : > { %1089 = vmatmul.bf16.vlgmr.msra.gmra.mxu2 %v3748_v2 }
  0xde   : > { %v1064_v12 = vpop.f32.mrf.mxu0 }
  0xdf   : > { %v1065_v13 = vadd.f32 %v1064_v12, %v921_v10  ;;  %v1077_v14 = vpop.f32.mrf.mxu1 }
  0xe0   : > { %v1078_v15 = vadd.f32 %v1077_v14, %v922_v11 }
  0xe1   : > { %v1095_v16 = vmul.f32 0.17677669, %v1065_v13 }
  0xe2   : > { %v1097_v17 = vpack.c.bf16 %v1078_v15, %v1078_v15 }
  0xe3   : > { %v1096_v18 = vpack.c.bf16 %v1095_v16, %v1095_v16 }
  0xe4   : > { %v1158_v19 = vunpack.c.l.b16 %v1097_v17  ;;  %v1104_v20 = vsel %vm1099_vm0, %v1097_v17, 0 }
  0xe5   : > { %1113 = vmatpush.bf16.xpose.msra.mxu3 %v1104_v20  ;;  %v1153_v24 = vunpack.c.l.b16 %v1096_v18 }
  0xe6   : > { %v1159_v21 = vpack.c.b16 %v1158_v19, %v1158_v19  ;;  %v1066_v22 = vpop.f32.mrf.mxu0 }
  0xe7   : > { %v1079_v23 = vpop.f32.mrf.mxu1  ;;  %v1154_v25 = vpack.c.b16 %v1153_v24, %v1153_v24 }
  0xe8   : > { %1219 = vrot.lane.b32.xlu2 %v1159_v21, %s3521_s30  ;;  %1160 = vrot.lane.b32.xlu1 %v1159_v21, %s3522_s25 }
  0xea   : > { %v1090_v26 = vpop.f32.mrf.mxu2 }
  0xeb   : > { %v1091_v28 = vadd.f32 %v1090_v26, %v923_v27 }
  0xec   : > { %2647 = vmatmul.msk.bf16.vlgmr.msra.gmra.mxu3 %vm1099_vm0, %v1096_v18 }
  0xed   : > { %v1098_v30 = vpack.c.bf16 %v1091_v28, %v1091_v28 }
  0xef   : > { %v1137_v31 = vsel %vm1135_vm1, %v1098_v30, 0  ;;  %v1194_v6 = vunpack.c.l.b16 %v1098_v30 }
  0xf0   : > { %1275 = vrot.lane.b32.xlu2 %v1159_v21, %s3523_s2  ;;  %1155 = vrot.lane.b32.xlu1 %v1154_v25, %s3522_s25 }
  0xf1   : > { %1146 = vmatpush.bf16.msrb.mxu3 %v1137_v31  ;;  %v1195_v7 = vpack.c.b16 %v1194_v6, %v1194_v6  ;;  %v3524_v6 = vmov 128.0  }
  0xf2   : > { %v1092_v29 = vpop.f32.mrf.mxu2 }
  0xf8   : > { %1273 = vrot.lane.b32.xlu1 %v1154_v25, %s3523_s2 }
 0x142   : > { %v1220_v32 = vpop.permute.xlu2 %1219 }
 0x143   : > { %v1225_v33 = vsel %vm1099_vm0, %v1220_v32, 0 }
 0x144   : > { %1234 = vmatpush.bf16.xpose.msrb.mxu2 %v1225_v33 }
 0x14a   : > { %v1276_v49 = vpop.permute.xlu2 %1275 }
 0x14b   : > { %v1281_v51 = vsel %vm1099_vm0, %v1276_v49, 0  ;;  %v2982_v49 = vld [vmem:[%s3979_s24 + $0x28] sm:$0xff] }
 0x15a   : > { %v1161_v34 = vpop.permute.xlu1 %1160 }
 0x15b   : > { %v1166_v35 = vsel %vm1099_vm0, %v1161_v34, 0 }
 0x15c   : > { %1175 = vmatpush.bf16.xpose.msra.mxu3 %v1166_v35 }
 0x162   : > { %v1156_v53 = vpop.permute.xlu1 %1155 }
 0x16a   : > { %v1274_v54 = vpop.permute.xlu1 %1273 }
 0x16f   : > { %v1115_v37 = vpop.f32.mrf.mxu3 }
 0x170   : > { %v1116_v38 = vadd.f32 %v1115_v37, %v1094_v36 }
 0x172   : > { %v1120_v39 = vsel %vm1119_vm2, %v1116_v38, -inf }
 0x173   : > { %1121 = vmax.xlane.f32.xlu0 %v1120_v39 }
 0x177   : > { %v1117_v40 = vpop.f32.mrf.mxu3 }
 0x1e6   : > { %v1122_v41 = vpop.xlane.xlu0 %1121 }
 0x1e7   : > { %v1123_v42 = vsub.f32 %v1116_v38, %v1122_v41 }
 0x1e9   : > { %v1124_v43 = vmul.f32 1.442695, %v1123_v42 }
 0x1eb   : > { %3168 = vpow2.f32 %v1124_v43 }
 0x1f1   : > { %v3169_v44 = vpop.eup %3168 }
 0x1f2   : > { %v1126_v45 = vsel %vm1119_vm2, %v3169_v44, 0.0 }
 0x1f3   : > { %1127 = vadd.xlane.f32.xlu0 %v1126_v45 }
 0x207   : > { %1217 = vrot.lane.b32.xlu0 %v1154_v25, %s3521_s30 }
 0x266   : > { %v1128_v46 = vpop.xlane.xlu0 %1127 }
 0x267   : > { %3170 = vrcp.f32 %v1128_v46 }
 0x26d   : > { %v3171_v47 = vpop.eup %3170 }
 0x26e   : > { %v1130_v48 = vmul.f32 %v3171_v47, %v3169_v44  ;;  %v2984_v47 = vld [vmem:[%s3979_s24 + $0x38] sm:$0xff] }
 0x26f   : > { %1415 = vmatpush.bf16.msrb.mxu1 %v2984_v47  ;;  %v2985_v47 = vld [vmem:[#allocation4] sm:$0xff] }
 0x270   : > { %v1131_v50 = vpack.c.bf16 %v1130_v48, %v1130_v48  ;;  %v2983_v48 = vld [vmem:[%s3979_s24 + $0x30] sm:$0xff] }
 0x272   : > { %2648 = vmatmul.msk.bf16.vlgmr.msrb.gmra.mxu3 %vm1119_vm2, %v1131_v50  ;;  %v2981_v50 = vld [vmem:[%s3979_s24 + $0x20] sm:$0xff] }
 0x273   : > { %1290 = vmatpush.bf16.xpose.msrb.mxu3 %v1281_v51  ;;  %1416 = vmatpush.bf16.msrb.mxu1 %v2983_v48  ;;  %v2980_v51 = vld [vmem:[%s3979_s24 + $0x18] sm:$0xff] }
 0x277   : > { %1417 = vmatpush.bf16.msrb.mxu1 %v2982_v49 }
 0x279   : > { %v1218_v52 = vpop.permute.xlu0 %1217 }
 0x27a   : > { %2651 = vmatmul.msk.bf16.vlgmr.msrb.gmra.mxu2 %vm1099_vm0, %v1218_v52  ;;  %v2979_v52 = vld [vmem:[%s3979_s24 + $0x10] sm:$0xff] }
 0x27b   : > { %1418 = vmatpush.bf16.msrb.mxu1 %v2981_v50 }
 0x27f   : > { %1419 = vmatpush.bf16.msrb.mxu1 %v2980_v51 }
 0x282   : > { %2649 = vmatmul.msk.bf16.vlgmr.msra.gmra.mxu3 %vm1099_vm0, %v1156_v53  ;;  %v2978_v53 = vld [vmem:[%s3979_s24 + $0x8] sm:$0xff] }
 0x283   : > { %1420 = vmatpush.bf16.msrb.mxu1 %v2979_v52 }
 0x287   : > { %1421 = vmatpush.bf16.msrb.mxu1 %v2978_v53 }
 0x292   : > { %2653 = vmatmul.msk.bf16.vlgmr.msrb.gmra.mxu3 %vm1099_vm0, %v1274_v54  ;;  %v2977_v54 = vld [vmem:[%s3979_s24] sm:$0xff] }
 0x293   : > { %1422 = vmatpush.bf16.msrb.mxu1 %v2977_v54 }
 0x2f5   : > { %v3778_v55 = vpop.f32.mrf.mxu3 }
 0x2fd   : > { %v1150_v56 = vpop.f32.mrf.mxu3  ;;  %v1236_v57 = vpop.f32.mrf.mxu2 }
 0x2fe   : > { %v1237_v58 = vadd.f32 %v1236_v57, %v1094_v36 }
 0x300   : > { %v1240_v59 = vsel %vm1119_vm2, %v1237_v58, -inf }
 0x301   : > { %1241 = vmax.xlane.f32.xlu1 %v1240_v59 }
 0x305   : > { %v1177_v60 = vpop.f32.mrf.mxu3  ;;  %v1238_v61 = vpop.f32.mrf.mxu2 }
 0x306   : > { %v1178_v62 = vadd.f32 %v1177_v60, %v1094_v36 }
 0x308   : > { %v1181_v63 = vsel %vm1119_vm2, %v1178_v62, -inf }
 0x309   : > { %1182 = vmax.xlane.f32.xlu2 %v1181_v63  ;;  %v3158_v63 = vld [vmem:[%s3980_s28] ss:$0 sm:$0xff] }
 0x30d   : > { %v1179_v0 = vpop.f32.mrf.mxu3 }
 0x30e   : > { %v886_v0 = vunpack.c.l.bf16 %v3748_v2 }
 0x315   : > { %v1292_v1 = vpop.f32.mrf.mxu3 }
 0x316   : > { %v1293_v3 = vadd.f32 %v1292_v1, %v1094_v36 }
 0x318   : > { %v1296_v4 = vsel %vm1119_vm2, %v1293_v3, -inf }
 0x319   : > { %1297 = vmax.xlane.f32.xlu0 %v1296_v4 }
 0x31d   : > { %v1294_v5 = vpop.f32.mrf.mxu3 }
 0x32d   : > { %1252 = vrot.lane.b32.xlu0 %v1195_v7, %s3521_s30 }
 0x374   : > { %v1242_v8 = vpop.xlane.xlu1 %1241 }
 0x375   : > { %v1243_v9 = vsub.f32 %v1237_v58, %v1242_v8  ;;  %v2769_v8 = vld [vmem:[#allocation6 + $0x60] sm:$0xf] }
 0x377   : > { %v1244_v10 = vmul.f32 1.442695, %v1243_v9 }
 0x379   : > { %3172 = vpow2.f32 %v1244_v10  ;;  %v3006_v10 = vld [vmem:[#allocation6 + $0x64] sm:$0xf0] }
 0x37c   : > { %v1183_v11 = vpop.xlane.xlu2 %1182 }
 0x37d   : > { %v1184_v12 = vsub.f32 %v1178_v62, %v1183_v11  ;;  %v2770_v11 = vor.u32 %v3006_v10, %v2769_v8  ;;  %v3161_v10 = vld [vmem:[%s3940_s10] ss:$0 sm:$0xff] }
 0x37f   : > { %v3173_v13 = vpop.eup %3172  ;;  %v1185_v14 = vmul.f32 1.442695, %v1184_v12 }
 0x380   : > { %v1246_v15 = vsel %vm1119_vm2, %v3173_v13, 0.0 }
 0x381   : > { %3174 = vpow2.f32 %v1185_v14  ;;  %1247 = vadd.xlane.f32.xlu1 %v1246_v15  ;;  %v3004_v14 = vld [vmem:[#allocation6 + $0x54] sm:$0xf0] }
 0x382   : > { %v2992_v15 = vld [vmem:[#allocation4 + $0x38] sm:$0xff] }
 0x387   : > { %v3175_v16 = vpop.eup %3174 }
 0x388   : > { %v1187_v17 = vsel %vm1119_vm2, %v3175_v16, 0.0 }
 0x389   : > { %1188 = vadd.xlane.f32.xlu2 %v1187_v17  ;;  %v2753_v17 = vld [vmem:[#allocation6 + $0x40] sm:$0xf] }
 0x38c   : > { %v1298_v18 = vpop.xlane.xlu0 %1297 }
 0x38d   : > { %v1299_v19 = vsub.f32 %v1293_v3, %v1298_v18  ;;  %v3002_v18 = vld [vmem:[#allocation6 + $0x44] sm:$0xf0] }
 0x38f   : > { %v1300_v20 = vmul.f32 1.442695, %v1299_v19 }
 0x391   : > { %3176 = vpow2.f32 %v1300_v20  ;;  %v2754_v20 = vor.u32 %v3002_v18, %v2753_v17 }
 0x397   : > { %v3177_v21 = vpop.eup %3176 }
 0x398   : > { %v1302_v22 = vsel %vm1119_vm2, %v3177_v21, 0.0 }
 0x399   : > { %1303 = vadd.xlane.f32.xlu1 %v1302_v22  ;;  %v3000_v22 = vld [vmem:[#allocation6 + $0x34] sm:$0xf0] }
 0x39f   : > { %v1253_v23 = vpop.permute.xlu0 %1252 }
 0x3a0   : > { %v1258_v24 = vsel %vm1135_vm1, %v1253_v23, 0 }
 0x3a1   : > { %1196 = vrot.lane.b32.xlu2 %v1195_v7, %s3522_s25  ;;  %1267 = vmatpush.bf16.msra.mxu2 %v1258_v24 }
 0x3a5   : > { %1535 = vmatpush.bf16.msrb.mxu2 %v2992_v15 }
 0x3b2   : > { %1308 = vrot.lane.b32.xlu1 %v1195_v7, %s3523_s2  ;;  %v3008_v7 = vld [vmem:[#allocation6 + $0x74] sm:$0xf0] }
 0x3f4   : > { %v1248_v25 = vpop.xlane.xlu1 %1247 }
 0x3f5   : > { %3178 = vrcp.f32 %v1248_v25  ;;  %v2737_v25 = vld [vmem:[#allocation6 + $0x20] sm:$0xf] }
 0x3fb   : > { %v3179_v26 = vpop.eup %3178 }
 0x3fc   : > { %v1250_v27 = vmul.f32 %v3179_v26, %v3173_v13  ;;  %v1189_v28 = vpop.xlane.xlu2 %1188  ;;  %v2761_v13 = vld [vmem:[#allocation6 + $0x50] sm:$0xf]  ;;  %v2998_v26 = vld [vmem:[#allocation6 + $0x24] sm:$0xf0] }
 0x3fd   : > { %3180 = vrcp.f32 %v1189_v28  ;;  %v2738_v28 = vor.u32 %v2998_v26, %v2737_v25  ;;  %v2771_v25 = vld [vmem:[#allocation6 + $0x68] sm:$0xf0] }
 0x3fe   : > { %v1251_v29 = vpack.c.bf16 %v1250_v27, %v1250_v27 }
 0x400   : > { %2652 = vmatmul.msk.bf16.vlgmr.msra.gmra.mxu2 %vm1119_vm2, %v1251_v29 }
 0x403   : > { %v3181_v30 = vpop.eup %3180 }
 0x404   : > { %v1191_v31 = vmul.f32 %v3181_v30, %v3175_v16  ;;  %v1197_v32 = vpop.permute.xlu2 %1196  ;;  %v2762_v16 = vor.u32 %v3004_v14, %v2761_v13 }
 0x405   : > { %v1202_v33 = vsel %vm1135_vm1, %v1197_v32, 0 }
 0x406   : > { %1211 = vmatpush.bf16.msrb.mxu0 %v1202_v33  ;;  %v1192_v34 = vpack.c.bf16 %v1191_v31, %v1191_v31 }
 0x409   : > { %2650 = vmatmul.msk.bf16.vlgmr.msrb.gmra.mxu0 %vm1119_vm2, %v1192_v34  ;;  %v2729_v34 = vld [vmem:[#allocation6 + $0x10] sm:$0xf] }
 0x40c   : > { %v1304_v35 = vpop.xlane.xlu1 %1303 }
 0x40d   : > { %3182 = vrcp.f32 %v1304_v35  ;;  %v2996_v35 = vld [vmem:[#allocation6 + $0x14] sm:$0xf0] }
 0x40e   : > { %3184 = vrcp.f32 %v3524_v6 }
 0x413   : > { %v3183_v36 = vpop.eup %3182 }
 0x414   : > { %v1306_v37 = vmul.f32 %v3183_v36, %v3177_v21  ;;  %v3185_v12 = vpop.eup %3184  ;;  %v2745_v21 = vld [vmem:[#allocation6 + $0x30] sm:$0xf]  ;;  %v2730_v36 = vor.u32 %v2996_v35, %v2729_v34  ;;  %v2999_v34 = vld [vmem:[#allocation6 + $0x34] sm:$0xf]  ;;  %v2747_v35 = vld [vmem:[#allocation6 + $0x38] sm:$0xf0] }
 0x415   : > { %v1434_v2 = vmul.f32 128.0, %v3185_v12  ;;  %v2746_v24 = vor.u32 %v3000_v22, %v2745_v21  ;;  %vm1438_vm5 = vweird.f32 %v3185_v12  ;;  %v3007_v21 = vld [vmem:[#allocation6 + $0x74] sm:$0xf]  ;;  %v2779_v22 = vld [vmem:[#allocation6 + $0x78] sm:$0xf0] }
 0x416   : > { %v1307_v40 = vpack.c.bf16 %v1306_v37, %v1306_v37  ;;  %v2991_v37 = vld [vmem:[#allocation4 + $0x30] sm:$0xff] }
 0x417   : > { %v1435_v19 = vsub.f32 1.0, %v1434_v2  ;;  %1536 = vmatpush.bf16.msrb.mxu2 %v2991_v37  ;;  %v2750_v37 = vor.u32 %v2999_v34, %v2747_v35 }
 0x419   : > { %v1436_v23 = vmul.f32 %v3185_v12, %v1435_v19 }
 0x41b   : > { %v1437_v27 = vadd.f32 %v3185_v12, %v1436_v23  ;;  %v3005_v23 = vld [vmem:[#allocation6 + $0x64] sm:$0xf] }
 0x41c   : > { %v2774_v26 = vor.u32 %v3005_v23, %v2771_v25 }
 0x41d   : > { %v3830_v29 = vsel %vm1438_vm5, %v3185_v12, %v1437_v27  ;;  %v3003_v27 = vld [vmem:[#allocation6 + $0x54] sm:$0xf] }
 0x424   : > { %v1309_v38 = vpop.permute.xlu1 %1308 }
 0x425   : > { %v1314_v39 = vsel %vm1135_vm1, %v1309_v38, 0  ;;  %v2721_v38 = vld [vmem:[#allocation6] sm:$0xf] }
 0x426   : > { %1323 = vmatpush.bf16.msra.mxu0 %v1314_v39  ;;  %v2994_v39 = vld [vmem:[#allocation6 + $0x4] sm:$0xf0] }
 0x429   : > { %2654 = vmatmul.msk.bf16.vlgmr.msra.gmra.mxu0 %vm1119_vm2, %v1307_v40  ;;  %v2722_v40 = vor.u32 %v2994_v39, %v2721_v38  ;;  %v2997_v38 = vld [vmem:[#allocation6 + $0x24] sm:$0xf]  ;;  %v2739_v39 = vld [vmem:[#allocation6 + $0x28] sm:$0xf0] }
 0x483   : > { %v1269_v41 = vpop.f32.mrf.mxu2 }
 0x486   : > { %v1213_v42 = vpop.f32.mrf.mxu0 }
 0x487   : > { %1330 = vrot.lane.b32.xlu2 %v1213_v42, %s3523_s2  ;;  %v3837_v42 = vld [vmem:[%s874_s29] sm:$0xf]  ;;  %s3983_s29 = sld [smem:[#allocation32_spill]] }
 0x48b   : > { %v1271_v43 = vpop.f32.mrf.mxu2 }
 0x48c   : > { %v2989_v43 = vld [vmem:[#allocation4 + $0x20] sm:$0xff] }
 0x48e   : > { %v1215_v44 = vpop.f32.mrf.mxu0 }
 0x48f   : > { %1334 = vrot.lane.b32.xlu2 %v1269_v41, %s3521_s30  ;;  %v2990_v41 = vld [vmem:[#allocation4 + $0x28] sm:$0xff]  ;;  %v2988_v44 = vld [vmem:[#allocation4 + $0x18] sm:$0xff] }
 0x490   : > { %1537 = vmatpush.bf16.msrb.mxu2 %v2990_v41  ;;  %v2995_v41 = vld [vmem:[#allocation6 + $0x14] sm:$0xf] }
 0x494   : > { %1538 = vmatpush.bf16.msrb.mxu2 %v2989_v43  ;;  %v2731_v43 = vld [vmem:[#allocation6 + $0x18] sm:$0xf0] }
 0x498   : > { %1539 = vmatpush.bf16.msrb.mxu2 %v2988_v44 }
 0x4a6   : > { %v1325_v45 = vpop.f32.mrf.mxu0 }
 0x4a7   : > { %1338 = vrot.lane.b32.xlu0 %v1325_v45, %s3522_s25  ;;  %v2987_v45 = vld [vmem:[#allocation4 + $0x10] sm:$0xff] }
 0x4a8   : > { %1540 = vmatpush.bf16.msrb.mxu2 %v2987_v45 }
 0x4ae   : > { %v1327_v46 = vpop.f32.mrf.mxu0 }
 0x4af   : > { %v2986_v46 = vld [vmem:[#allocation4 + $0x8] sm:$0xff] }
 0x4b0   : > { %1541 = vmatpush.bf16.msrb.mxu2 %v2986_v46 }
 0x4b4   : > { %1542 = vmatpush.bf16.msrb.mxu2 %v2985_v47  ;;  %v2734_v47 = vor.u32 %v2995_v41, %v2731_v43 }
 0x4e1   : > { %v1331_v56 = vpop.permute.xlu2 %1330 }
 0x4e2   : > { %v1341_v58 = vsel %vm1099_vm0, %v3778_v55, %v1331_v56  ;;  %v2777_v55 = vld [vmem:[#allocation6 + $0x70] sm:$0xf] }
 0x4e3   : > { %v2778_v9 = vor.u32 %v3008_v7, %v2777_v55 }
 0x4e5   : > { %1650 = vmatpush.bf16.msra.mxu3 %v2778_v9 }
 0x4e9   : > { %v1335_v57 = vpop.permute.xlu2 %1334  ;;  %1651 = vmatpush.bf16.msra.mxu3 %v2770_v11 }
 0x4ea   : > { %v1343_v59 = vsel %vm1342_vm3, %v1341_v58, %v1335_v57  ;;  %v3159_v58 = vld [vmem:[%s3982_s7] ss:$0 sm:$0xff]  ;;  %s3984_s7 = sld [smem:[#allocation34_spill]] }
 0x4ed   : > { %1652 = vmatpush.bf16.msra.mxu3 %v2762_v16 }
 0x4f0   : > { %s882_s13 = scalar_lea.vmem %s3984_s7, %s3742_s1 }
 0x4f1   : > { %1653 = vmatpush.bf16.msra.mxu3 %v2754_v20 }
 0x4f5   : > { %1654 = vmatpush.bf16.msra.mxu3 %v2746_v24  ;;  %v2782_v24 = vor.u32 %v3007_v21, %v2779_v22 }
 0x4f7   : > { %1663 = vmatpush.bf16.msrb.mxu0 %v2782_v24 }
 0x4f9   : > { %1655 = vmatpush.bf16.msra.mxu3 %v2738_v28  ;;  %v2763_v28 = vld [vmem:[#allocation6 + $0x58] sm:$0xf0] }
 0x4fb   : > { %1664 = vmatpush.bf16.msrb.mxu0 %v2774_v26 }
 0x4fd   : > { %1656 = vmatpush.bf16.msra.mxu3 %v2730_v36 }
 0x501   : > { %1657 = vmatpush.bf16.msra.mxu3 %v2722_v40  ;;  %v2742_v40 = vor.u32 %v2997_v38, %v2739_v39 }
 0x504   : > { %1658 = vmatmul.bf16.vlgmr.msra.gmra.mxu3 %v3837_v42 }
 0x519   : > { %v1339_v60 = vpop.permute.xlu0 %1338 }
 0x51a   : > { %v1345_v61 = vsel %vm1344_vm4, %v1343_v59, %v1339_v60 }
 0x51b   : > { %v1346_v62 = vpack.c.bf16 %v1345_v61, %v1345_v61  ;;  %v3160_v61 = vld [vmem:[%s3938_s8] ss:$0 sm:$0xff] }
 0x51d   : > { %1423 = vmatmul.bf16.vlgmr.msrb.gmra.mxu1 %v1346_v62 }
 0x59a   : > { %v1424_v1 = vpop.f32.mrf.mxu1 }
 0x59b   : > { %v1425_v3 = vadd.f32 %v3158_v63, %v1424_v1  ;;  %v3854_v1 = vld [vmem:[%s3942_s12] sm:$0x3] }
 0x59d   : > { %v1428_v4 = vadd.f32 %v1425_v3, %v886_v0  ;;  %v1566_v3 = vperm.slane %v3854_v1, 0 }
 0x59f   : > { %1431 = vadd.xlane.f32.xlu2 %v1428_v4 }
 0x5a2   : > { %v1426_v5 = vpop.f32.mrf.mxu1 }
 0x612   : > { %v1432_v30 = vpop.xlane.xlu2 %1431 }
 0x613   : > { %v1440_v31 = vmul.f32 %v3830_v29, %v1432_v30  ;;  %v2766_v30 = vor.u32 %v3003_v27, %v2763_v28 }
 0x615   : > { %v1441_v32 = vsub.f32 %v1428_v4, %v1440_v31  ;;  %v1659_v4 = vpop.f32.mrf.mxu3  ;;  %v3001_v31 = vld [vmem:[#allocation6 + $0x44] sm:$0xf]  ;;  %1665 = vmatpush.bf16.msrb.mxu0 %v2766_v30 }
 0x616   : > { %v1660_v5 = vadd.f32 %v1659_v4, %v1566_v3 }
 0x617   : > { %v1442_v33 = vmul.f32 %v1441_v32, %v1441_v32 }
 0x618   : > { %v1678_v6 = vpack.c.bf16 %v1660_v5, %v1660_v5 }
 0x619   : > { %1443 = vadd.xlane.f32.xlu0 %v1442_v33 }
 0x61a   : > { %v1684_v55 = vsel %vm1099_vm0, %v1678_v6, 0  ;;  %v1736_v7 = vunpack.c.l.b16 %v1678_v6 }
 0x61b   : > { %1693 = vmatpush.bf16.xpose.msra.mxu1 %v1684_v55 }
 0x61c   : > { %v1737_v8 = vpack.c.b16 %v1736_v7, %v1736_v7 }
 0x61d   : > { %v1661_v9 = vpop.f32.mrf.mxu3 }
 0x61e   : > { %1738 = vrot.lane.b32.xlu1 %v1737_v8, %s3522_s25 }
 0x626   : > { %1797 = vrot.lane.b32.xlu1 %v1737_v8, %s3521_s30 }
 0x68c   : > { %v1444_v48 = vpop.xlane.xlu0 %1443 }
 0x68d   : > { %v1445_v49 = vmul.f32 %v1444_v48, %v3830_v29 }
 0x68f   : > { %v1446_v50 = vadd.f32 1e-05, %v1445_v49  ;;  %v2993_v49 = vld [vmem:[#allocation6 + $0x4] sm:$0xf] }
 0x690   : > { %v1739_v17 = vpop.permute.xlu1 %1738 }
 0x691   : > { %3186 = vrsqrt.f32 %v1446_v50  ;;  %vm1453_vm7 = vweird.f32 %v1446_v50  ;;  %v1744_v18 = vsel %vm1099_vm0, %v1739_v17, 0 }
 0x692   : > { %1753 = vmatpush.bf16.xpose.msrb.mxu3 %v1744_v18 }
 0x697   : > { %v3187_v51 = vpop.eup %3186 }
 0x698   : > { %v1448_v52 = vmul.f32 %v3187_v51, %v1446_v50  ;;  %vm1454_vm6 = vweird.f32 %v3187_v51  ;;  %v1798_v19 = vpop.permute.xlu1 %1797  ;;  %v2723_v50 = vld [vmem:[#allocation6 + $0x8] sm:$0xf0] }
 0x699   : > { %vm1455_vm8 = vmor %vm1453_vm7, %vm1454_vm6  ;;  %v1803_v20 = vsel %vm1099_vm0, %v1798_v19, 0 }
 0x69a   : > { %v1449_v53 = vmul.f32 %v3187_v51, %v1448_v52  ;;  %1812 = vmatpush.bf16.xpose.msrb.mxu1 %v1803_v20 }
 0x69c   : > { %v1450_v54 = vmul.f32 0.5, %v1449_v53 }
 0x69e   : > { %v1451_v56 = vsub.f32 1.5, %v1450_v54 }
 0x6a0   : > { %v1452_v57 = vmul.f32 %v3187_v51, %v1451_v56 }
 0x6a2   : > { %v1456_v59 = vsel %vm1455_vm8, %v3187_v51, %v1452_v57  ;;  %v2726_v51 = vor.u32 %v2993_v49, %v2723_v50 }
 0x6a3   : > { %v1457_v60 = vmul.f32 %v1456_v59, %v1441_v32  ;;  %v2755_v32 = vld [vmem:[#allocation6 + $0x48] sm:$0xf0] }
 0x6a4   : > { %v2758_v33 = vor.u32 %v3001_v31, %v2755_v32 }
 0x6a5   : > { %v1461_v62 = vmul.f32 %v3159_v58, %v1457_v60 }
 0x6a6   : > { %1666 = vmatpush.bf16.msrb.mxu0 %v2758_v33 }
 0x6a7   : > { %v3847_v63 = vadd.f32 %v3160_v61, %v1461_v62 }
 0x6a9   : > { %v1466_v0 = vpack.c.bf16 %v3847_v63, %v3847_v63 }
 0x6aa   : > { %1667 = vmatpush.bf16.msrb.mxu0 %v2750_v37 }
 0x6ab   : > { %1543 = vmatmul.bf16.vlgmr.msrb.gmra.mxu2 %v1466_v0  ;;  %v1567_v0 = vperm.slane %v3854_v1, 1 }
 0x6ae   : > { %1668 = vmatpush.bf16.msrb.mxu0 %v2742_v40 }
 0x6b2   : > { %1669 = vmatpush.bf16.msrb.mxu0 %v2734_v47 }
 0x6b6   : > { %1670 = vmatpush.bf16.msrb.mxu0 %v2726_v51 }
 0x6b9   : > { %1671 = vmatmul.bf16.vlgmr.msrb.gmra.mxu0 %v3837_v42 }
 0x72e   : > { %v1544_v11 = vpop.f32.mrf.mxu2 }
 0x72f   : > { %v1545_v12 = vadd.f32 %v3161_v10, %v1544_v11 }
 0x731   : > { %v1676_v13 = vmul.f32 0.17677669, %v1545_v12 }
 0x733   : > { %v1677_v14 = vpack.c.bf16 %v1676_v13, %v1676_v13 }
 0x735   : > { %v1731_v15 = vunpack.c.l.b16 %v1677_v14  ;;  %2783 = vmatmul.msk.bf16.vlgmr.msra.gmra.mxu1 %vm1099_vm0, %v1677_v14 }
 0x736   : > { %v1546_v2 = vpop.f32.mrf.mxu2  ;;  %v1672_v5 = vpop.f32.mrf.mxu0 }
 0x737   : > { %v1732_v16 = vpack.c.b16 %v1731_v15, %v1731_v15  ;;  %v1673_v6 = vadd.f32 %v1672_v5, %v1567_v0  ;;  %v3014_v0 = vld [vmem:[#allocation7 + $0x28] sm:$0xff]  ;;  %v3011_v5 = vld [vmem:[#allocation7 + $0x10] sm:$0xff] }
 0x739   : > { %1851 = vrot.lane.b32.xlu2 %v1732_v16, %s3523_s2  ;;  %1733 = vrot.lane.b32.xlu1 %v1732_v16, %s3522_s25  ;;  %v1679_v55 = vpack.c.bf16 %v1673_v6, %v1673_v6  ;;  %v3010_v6 = vld [vmem:[#allocation7 + $0x8] sm:$0xff] }
 0x73b   : > { %v1715_v7 = vsel %vm1135_vm1, %v1679_v55, 0  ;;  %v1772_v1 = vunpack.c.l.b16 %v1679_v55  ;;  %v3009_v55 = vld [vmem:[#allocation7] sm:$0xff] }
 0x73c   : > { %1724 = vmatpush.bf16.msra.mxu2 %v1715_v7 }
 0x73d   : > { %v1773_v13 = vpack.c.b16 %v1772_v1, %v1772_v1  ;;  %v3162_v1 = vld [vmem:[%s3944_s14] ss:$0 sm:$0xff] }
 0x73e   : > { %v1674_v10 = vpop.f32.mrf.mxu0 }
 0x741   : > { %1853 = vrot.lane.b32.xlu1 %v1737_v8, %s3523_s2 }
 0x749   : > { %1795 = vrot.lane.b32.xlu1 %v1732_v16, %s3521_s30 }
 0x793   : > { %v1852_v53 = vpop.permute.xlu2 %1851 }
 0x7ab   : > { %v1734_v36 = vpop.permute.xlu1 %1733 }
 0x7ac   : > { %2785 = vmatmul.msk.bf16.vlgmr.msrb.gmra.mxu3 %vm1099_vm0, %v1734_v36 }
 0x7b2   : > { %v1695_v44 = vpop.f32.mrf.mxu1 }
 0x7b3   : > { %v1854_v45 = vpop.permute.xlu1 %1853  ;;  %v1699_v46 = vsel %vm1119_vm2, %v1695_v44, -inf }
 0x7b4   : > { %v1859_v48 = vsel %vm1099_vm0, %v1854_v45, 0  ;;  %1700 = vmax.xlane.f32.xlu1 %v1699_v46 }
 0x7b5   : > { %1868 = vmatpush.bf16.xpose.msra.mxu3 %v1859_v48 }
 0x7ba   : > { %v1697_v52 = vpop.f32.mrf.mxu1 }
 0x7bb   : > { %v1796_v54 = vpop.permute.xlu1 %1795 }
 0x7bc   : > { %2787 = vmatmul.msk.bf16.vlgmr.msrb.gmra.mxu1 %vm1099_vm0, %v1796_v54  ;;  %2789 = vmatmul.msk.bf16.vlgmr.msra.gmra.mxu3 %vm1099_vm0, %v1852_v53 }
 0x827   : > { %v1701_v56 = vpop.xlane.xlu1 %1700 }
 0x828   : > { %v1702_v57 = vsub.f32 %v1695_v44, %v1701_v56 }
 0x82a   : > { %v1703_v58 = vmul.f32 1.442695, %v1702_v57 }
 0x82c   : > { %3188 = vpow2.f32 %v1703_v58 }
 0x82f   : > { %v1755_v59 = vpop.f32.mrf.mxu3 }
 0x830   : > { %v1759_v9 = vsel %vm1119_vm2, %v1755_v59, -inf }
 0x832   : > { %v3189_v60 = vpop.eup %3188 }
 0x833   : > { %v1705_v61 = vsel %vm1119_vm2, %v3189_v60, 0.0 }
 0x834   : > { %1706 = vadd.xlane.f32.xlu2 %v1705_v61  ;;  %v3016_v61 = vld [vmem:[#allocation7 + $0x38] sm:$0xff] }
 0x835   : > { %1991 = vmatpush.bf16.msra.mxu1 %v3016_v61 }
 0x837   : > { %v1757_v62 = vpop.f32.mrf.mxu3 }
 0x838   : > { %v3015_v62 = vld [vmem:[#allocation7 + $0x30] sm:$0xff] }
 0x839   : > { %v1814_v3 = vpop.f32.mrf.mxu1  ;;  %1992 = vmatpush.bf16.msra.mxu1 %v3015_v62  ;;  %v2835_v62 = vld [vmem:[#allocation9 + $0x18] sm:$0xf0] }
 0x83a   : > { %v1818_v4 = vsel %vm1119_vm2, %v1814_v3, -inf }
 0x83b   : > { %1819 = vmax.xlane.f32.xlu0 %v1818_v4  ;;  %v3012_v4 = vld [vmem:[#allocation7 + $0x18] sm:$0xff] }
 0x83d   : > { %1993 = vmatpush.bf16.msra.mxu1 %v3014_v0  ;;  %v2825_v0 = vld [vmem:[#allocation9] sm:$0xf] }
 0x83f   : > { %v1870_v42 = vpop.f32.mrf.mxu3 }
 0x840   : > { %v1874_v12 = vsel %vm1119_vm2, %v1870_v42, -inf }
 0x841   : > { %v1816_v8 = vpop.f32.mrf.mxu1 }
 0x843   : > { %1760 = vmax.xlane.f32.xlu0 %v1759_v9 }
 0x847   : > { %v1872_v11 = vpop.f32.mrf.mxu3 }
 0x84b   : > { %1875 = vmax.xlane.f32.xlu0 %v1874_v12 }
 0x85f   : > { %1774 = vrot.lane.b32.xlu0 %v1773_v13, %s3522_s25 }
 0x8a7   : > { %v1707_v14 = vpop.xlane.xlu2 %1706 }
 0x8a8   : > { %3190 = vrcp.f32 %v1707_v14 }
 0x8ae   : > { %v3191_v15 = vpop.eup %3190  ;;  %v1820_v2 = vpop.xlane.xlu0 %1819 }
 0x8af   : > { %v1709_v16 = vmul.f32 %v3191_v15, %v3189_v60  ;;  %v1821_v17 = vsub.f32 %v1814_v3, %v1820_v2  ;;  %v3013_v3 = vld [vmem:[#allocation7 + $0x20] sm:$0xff] }
 0x8b0   : > { %1994 = vmatpush.bf16.msra.mxu1 %v3013_v3  ;;  %v3018_v3 = vld [vmem:[#allocation9 + $0x4] sm:$0xf0] }
 0x8b1   : > { %v1710_v18 = vpack.c.bf16 %v1709_v16, %v1709_v16  ;;  %v1822_v19 = vmul.f32 1.442695, %v1821_v17  ;;  %v2881_v16 = vld [vmem:[#allocation9 + $0x70] sm:$0xf]  ;;  %v3032_v17 = vld [vmem:[#allocation9 + $0x74] sm:$0xf0] }
 0x8b3   : > { %3192 = vpow2.f32 %v1822_v19  ;;  %2784 = vmatmul.msk.bf16.vlgmr.msra.gmra.mxu2 %vm1119_vm2, %v1710_v18  ;;  %v3031_v18 = vld [vmem:[#allocation9 + $0x74] sm:$0xf]  ;;  %v2882_v19 = vor.u32 %v3032_v17, %v2881_v16 }
 0x8b4   : > { %1995 = vmatpush.bf16.msra.mxu1 %v3012_v4 }
 0x8b6   : > { %v1761_v20 = vpop.xlane.xlu0 %1760 }
 0x8b7   : > { %v1762_v21 = vsub.f32 %v1755_v59, %v1761_v20  ;;  %v2883_v20 = vld [vmem:[#allocation9 + $0x78] sm:$0xf0] }
 0x8b8   : > { %1996 = vmatpush.bf16.msra.mxu1 %v3011_v5  ;;  %v3017_v5 = vld [vmem:[#allocation9 + $0x4] sm:$0xf] }
 0x8b9   : > { %v3193_v22 = vpop.eup %3192  ;;  %v1763_v23 = vmul.f32 1.442695, %v1762_v21  ;;  %v2886_v21 = vor.u32 %v3031_v18, %v2883_v20  ;;  %v3036_v18 = vld [vmem:[#allocation10 + $0x18] sm:$0xff] }
 0x8ba   : > { %v1824_v24 = vsel %vm1119_vm2, %v3193_v22, 0.0 }
 0x8bb   : > { %3194 = vpow2.f32 %v1763_v23  ;;  %1825 = vadd.xlane.f32.xlu1 %v1824_v24  ;;  %2151 = vmatpush.bf16.msrb.mxu3 %v2886_v21 }
 0x8bc   : > { %1997 = vmatpush.bf16.msra.mxu1 %v3010_v6  ;;  %v2827_v6 = vld [vmem:[#allocation9 + $0x8] sm:$0xf0] }
 0x8be   : > { %v1876_v25 = vpop.xlane.xlu0 %1875 }
 0x8bf   : > { %v1877_v26 = vsub.f32 %v1870_v42, %v1876_v25 }
 0x8c0   : > { %1998 = vmatpush.bf16.msra.mxu1 %v3009_v55  ;;  %v2826_v55 = vor.u32 %v3018_v3, %v2825_v0 }
 0x8c1   : > { %v3195_v27 = vpop.eup %3194  ;;  %v1878_v28 = vmul.f32 1.442695, %v1877_v26  ;;  %v3030_v26 = vld [vmem:[#allocation9 + $0x64] sm:$0xf0] }
 0x8c2   : > { %v1765_v30 = vsel %vm1119_vm2, %v3195_v27, 0.0 }
 0x8c3   : > { %3196 = vpow2.f32 %v1878_v28  ;;  %1766 = vadd.xlane.f32.xlu0 %v1765_v30  ;;  %v2875_v30 = vld [vmem:[#allocation9 + $0x68] sm:$0xf0] }
 0x8c9   : > { %v3197_v31 = vpop.eup %3196 }
 0x8ca   : > { %v1880_v32 = vsel %vm1119_vm2, %v3197_v31, 0.0 }
 0x8cb   : > { %1881 = vadd.xlane.f32.xlu1 %v1880_v32  ;;  %v2865_v32 = vld [vmem:[#allocation9 + $0x50] sm:$0xf] }
 0x8d1   : > { %v1775_v33 = vpop.permute.xlu0 %1774 }
 0x8d2   : > { %v1780_v34 = vsel %vm1135_vm1, %v1775_v33, 0  ;;  %v3028_v33 = vld [vmem:[#allocation9 + $0x54] sm:$0xf0] }
 0x8d3   : > { %1789 = vmatpush.bf16.msra.mxu0 %v1780_v34  ;;  %v3027_v34 = vld [vmem:[#allocation9 + $0x54] sm:$0xf] }
 0x8d7   : > { %1830 = vrot.lane.b32.xlu0 %v1773_v13, %s3521_s30 }
 0x8e4   : > { %1886 = vrot.lane.b32.xlu1 %v1773_v13, %s3523_s2 }
 0x92e   : > { %v1826_v37 = vpop.xlane.xlu1 %1825 }
 0x936   : > { %v1726_v35 = vpop.f32.mrf.mxu2  ;;  %v1767_v36 = vpop.xlane.xlu0 %1766 }
 0x937   : > { %3198 = vrcp.f32 %v1767_v36  ;;  %v2867_v36 = vld [vmem:[#allocation9 + $0x58] sm:$0xf0] }
 0x938   : > { %3200 = vrcp.f32 %v1826_v37  ;;  %v2870_v37 = vor.u32 %v3027_v34, %v2867_v36  ;;  %v3034_v34 = vld [vmem:[#allocation10 + $0x8] sm:$0xff]  ;;  %v3033_v36 = vld [vmem:[#allocation10] sm:$0xff] }
 0x93d   : > { %v3199_v38 = vpop.eup %3198 }
 0x93e   : > { %v1769_v39 = vmul.f32 %v3199_v38, %v3195_v27  ;;  %v1728_v40 = vpop.f32.mrf.mxu2  ;;  %v3201_v43 = vpop.eup %3200  ;;  %v3029_v27 = vld [vmem:[#allocation9 + $0x64] sm:$0xf]  ;;  %v2857_v38 = vld [vmem:[#allocation9 + $0x40] sm:$0xf] }
 0x93f   : > { %v1828_v44 = vmul.f32 %v3201_v43, %v3193_v22  ;;  %v1882_v45 = vpop.xlane.xlu1 %1881  ;;  %v3025_v40 = vld [vmem:[#allocation9 + $0x44] sm:$0xf]  ;;  %v2859_v43 = vld [vmem:[#allocation9 + $0x48] sm:$0xf0] }
 0x940   : > { %v1770_v41 = vpack.c.bf16 %v1769_v39, %v1769_v39  ;;  %3202 = vrcp.f32 %v1882_v45  ;;  %v3026_v39 = vld [vmem:[#allocation9 + $0x44] sm:$0xf0]  ;;  %v2849_v45 = vld [vmem:[#allocation9 + $0x30] sm:$0xf] }
 0x941   : > { %v1829_v48 = vpack.c.bf16 %v1828_v44, %v1828_v44  ;;  %v2862_v44 = vor.u32 %v3025_v40, %v2859_v43 }
 0x942   : > { %2786 = vmatmul.msk.bf16.vlgmr.msra.gmra.mxu0 %vm1119_vm2, %v1770_v41  ;;  %v2858_v41 = vor.u32 %v3026_v39, %v2857_v38 }
 0x946   : > { %v3203_v49 = vpop.eup %3202 }
 0x947   : > { %v1884_v50 = vmul.f32 %v3203_v49, %v3197_v31  ;;  %v2878_v31 = vor.u32 %v3029_v27, %v2875_v30  ;;  %v2851_v49 = vld [vmem:[#allocation9 + $0x38] sm:$0xf0]  ;;  %v3164_v30 = vld [vmem:[%s3946_s16] ss:$0 sm:$0xff] }
 0x949   : > { %v1831_v46 = vpop.permute.xlu0 %1830  ;;  %v1885_v53 = vpack.c.bf16 %v1884_v50, %v1884_v50  ;;  %2152 = vmatpush.bf16.msrb.mxu3 %v2878_v31 }
 0x94a   : > { %v1836_v47 = vsel %vm1135_vm1, %v1831_v46, 0  ;;  %v3024_v46 = vld [vmem:[#allocation9 + $0x34] sm:$0xf0] }
 0x94b   : > { %1845 = vmatpush.bf16.msrb.mxu2 %v1836_v47  ;;  %v3023_v47 = vld [vmem:[#allocation9 + $0x34] sm:$0xf] }
 0x94c   : > { %v2854_v50 = vor.u32 %v3023_v47, %v2851_v49 }
 0x94d   : > { %2153 = vmatpush.bf16.msrb.mxu3 %v2870_v37  ;;  %v3041_v37 = vld [vmem:[#allocation10 + $0x40] sm:$0xff] }
 0x94e   : > { %2788 = vmatmul.msk.bf16.vlgmr.msrb.gmra.mxu2 %vm1119_vm2, %v1829_v48  ;;  %v2850_v48 = vor.u32 %v3024_v46, %v2849_v45 }
 0x94f   : > { %2138 = vmatpush.bf16.msra.mxu2 %v2882_v19  ;;  %v3044_v19 = vld [vmem:[#allocation10 + $0x58] sm:$0xff] }
 0x951   : > { %2154 = vmatpush.bf16.msrb.mxu3 %v2862_v44 }
 0x955   : > { %2155 = vmatpush.bf16.msrb.mxu3 %v2854_v50 }
 0x956   : > { %v1887_v51 = vpop.permute.xlu1 %1886 }
 0x957   : > { %v1892_v52 = vsel %vm1135_vm1, %v1887_v51, 0  ;;  %v2841_v51 = vld [vmem:[#allocation9 + $0x20] sm:$0xf] }
 0x958   : > { %1901 = vmatpush.bf16.msrb.mxu0 %v1892_v52  ;;  %v3022_v52 = vld [vmem:[#allocation9 + $0x24] sm:$0xf0] }
 0x95b   : > { %2790 = vmatmul.msk.bf16.vlgmr.msrb.gmra.mxu0 %vm1119_vm2, %v1885_v53  ;;  %v3021_v53 = vld [vmem:[#allocation9 + $0x24] sm:$0xf] }
 0x9bf   : > { %v1791_v54 = vpop.f32.mrf.mxu0 }
 0x9c0   : > { %1908 = vrot.lane.b32.xlu0 %v1791_v54, %s3523_s2  ;;  %v2842_v54 = vor.u32 %v3022_v52, %v2841_v51  ;;  %v3165_v51 = vld [vmem:[#allocation12] ss:$0 sm:$0xff] }
 0x9c7   : > { %v1793_v56 = vpop.f32.mrf.mxu0 }
 0x9c8   : > { %v2843_v56 = vld [vmem:[#allocation9 + $0x28] sm:$0xf0] }
 0x9d1   : > { %v1847_v57 = vpop.f32.mrf.mxu2 }
 0x9d2   : > { %1912 = vrot.lane.b32.xlu2 %v1847_v57, %s3521_s30  ;;  %v2846_v57 = vor.u32 %v3021_v53, %v2843_v56 }
 0x9d4   : > { %2156 = vmatpush.bf16.msrb.mxu3 %v2846_v57 }
 0x9d8   : > { %v1903_v58 = vpop.f32.mrf.mxu0 }
 0x9d9   : > { %1916 = vrot.lane.b32.xlu0 %v1903_v58, %s3522_s25  ;;  %v1849_v59 = vpop.f32.mrf.mxu2  ;;  %v2833_v58 = vld [vmem:[#allocation9 + $0x10] sm:$0xf] }
 0x9da   : > { %v3020_v59 = vld [vmem:[#allocation9 + $0x14] sm:$0xf0] }
 0x9db   : > { %v2834_v61 = vor.u32 %v3020_v59, %v2833_v58 }
 0x9e0   : > { %v1905_v60 = vpop.f32.mrf.mxu0 }
 0x9e1   : > { %v3019_v60 = vld [vmem:[#allocation9 + $0x14] sm:$0xf] }
 0x9e2   : > { %v2838_v4 = vor.u32 %v3019_v60, %v2835_v62 }
 0x9e4   : > { %2157 = vmatpush.bf16.msrb.mxu3 %v2838_v4 }
 0xa2c   : > { %v1913_v8 = vpop.permute.xlu2 %1912 }
 0xa32   : > { %v1909_v42 = vpop.permute.xlu0 %1908 }
 0xa33   : > { %v1919_v7 = vsel %vm1099_vm0, %v1726_v35, %v1909_v42  ;;  %v2866_v35 = vor.u32 %v3028_v33, %v2865_v32  ;;  %v2830_v42 = vor.u32 %v3017_v5, %v2827_v6 }
 0xa34   : > { %v1920_v9 = vsel %vm1342_vm3, %v1919_v7, %v1913_v8  ;;  %v3040_v7 = vld [vmem:[#allocation10 + $0x38] sm:$0xff] }
 0xa35   : > { %2158 = vmatpush.bf16.msrb.mxu3 %v2830_v42  ;;  %v3048_v8 = vld [vmem:[#allocation10 + $0x78] sm:$0xff]  ;;  %2300 = vmatpush.bf16.msra.mxu0 %v3040_v7 }
 0xa36   : > { %2313 = vmatpush.bf16.msrb.mxu1 %v3048_v8 }
 0xa4b   : > { %v1917_v10 = vpop.permute.xlu0 %1916 }
 0xa4c   : > { %v1921_v11 = vsel %vm1344_vm4, %v1920_v9, %v1917_v10 }
 0xa4d   : > { %v1922_v12 = vpack.c.bf16 %v1921_v11, %v1921_v11  ;;  %v3039_v11 = vld [vmem:[#allocation10 + $0x30] sm:$0xff] }
 0xa4e   : > { %2301 = vmatpush.bf16.msra.mxu0 %v3039_v11 }
 0xa4f   : > { %1999 = vmatmul.bf16.vlgmr.msra.gmra.mxu1 %v1922_v12  ;;  %v3047_v12 = vld [vmem:[#allocation10 + $0x70] sm:$0xff] }
 0xa50   : > { %2314 = vmatpush.bf16.msrb.mxu1 %v3047_v12  ;;  %v3167_v12 = vld [vmem:[#allocation15] ss:$0 sm:$0xff] }
 0xacc   : > { %v2000_v13 = vpop.f32.mrf.mxu1 }
 0xacd   : > { %v2001_v14 = vadd.f32 %v3162_v1, %v2000_v13  ;;  %v3038_v13 = vld [vmem:[#allocation10 + $0x28] sm:$0xff] }
 0xace   : > { %2302 = vmatpush.bf16.msra.mxu0 %v3038_v13 }
 0xacf   : > { %v2004_v15 = vadd.f32 %v2001_v14, %v3847_v63  ;;  %v2873_v63 = vld [vmem:[#allocation9 + $0x60] sm:$0xf]  ;;  %v3046_v14 = vld [vmem:[#allocation10 + $0x68] sm:$0xff] }
 0xad0   : > { %v2874_v28 = vor.u32 %v3030_v26, %v2873_v63  ;;  %2315 = vmatpush.bf16.msrb.mxu1 %v3046_v14  ;;  %v3163_v26 = vld [vmem:[%s3945_s15] ss:$0 sm:$0xff] }
 0xad1   : > { %2007 = vadd.xlane.f32.xlu0 %v2004_v15 }
 0xad2   : > { %2139 = vmatpush.bf16.msra.mxu2 %v2874_v28 }
 0xad4   : > { %v2002_v2 = vpop.f32.mrf.mxu1 }
 0xad5   : > { %v3045_v2 = vld [vmem:[#allocation10 + $0x60] sm:$0xff] }
 0xad6   : > { %2140 = vmatpush.bf16.msra.mxu2 %v2866_v35  ;;  %2316 = vmatpush.bf16.msrb.mxu1 %v3045_v2  ;;  %v3042_v35 = vld [vmem:[#allocation10 + $0x48] sm:$0xff] }
 0xada   : > { %2141 = vmatpush.bf16.msra.mxu2 %v2858_v41  ;;  %2317 = vmatpush.bf16.msrb.mxu1 %v3044_v19 }
 0xade   : > { %2142 = vmatpush.bf16.msra.mxu2 %v2850_v48 }
 0xae2   : > { %2143 = vmatpush.bf16.msra.mxu2 %v2842_v54 }
 0xae6   : > { %2144 = vmatpush.bf16.msra.mxu2 %v2834_v61 }
 0xaea   : > { %2145 = vmatpush.bf16.msra.mxu2 %v2826_v55 }
 0xb44   : > { %v2008_v22 = vpop.xlane.xlu0 %2007 }
 0xb45   : > { %v2009_v23 = vmul.f32 %v2008_v22, %v3830_v29  ;;  %v3035_v22 = vld [vmem:[#allocation10 + $0x10] sm:$0xff] }
 0xb47   : > { %v3906_v24 = vsub.f32 %v2004_v15, %v2009_v23  ;;  %v3037_v15 = vld [vmem:[#allocation10 + $0x20] sm:$0xff]  ;;  %v3043_v23 = vld [vmem:[#allocation10 + $0x50] sm:$0xff] }
 0xb48   : > { %2303 = vmatpush.bf16.msra.mxu0 %v3037_v15  ;;  %2318 = vmatpush.bf16.msrb.mxu1 %v3043_v23 }
 0xb49   : > { %v2011_v25 = vmul.f32 %v3906_v24, %v3906_v24 }
 0xb4b   : > { %2012 = vadd.xlane.f32.xlu1 %v2011_v25 }
 0xb4c   : > { %2304 = vmatpush.bf16.msra.mxu0 %v3036_v18  ;;  %2319 = vmatpush.bf16.msrb.mxu1 %v3042_v35 }
 0xb50   : > { %2305 = vmatpush.bf16.msra.mxu0 %v3035_v22  ;;  %2320 = vmatpush.bf16.msrb.mxu1 %v3041_v37 }
 0xb54   : > { %2306 = vmatpush.bf16.msra.mxu0 %v3034_v34 }
 0xb58   : > { %2307 = vmatpush.bf16.msra.mxu0 %v3033_v36 }
 0xbbe   : > { %v2013_v9 = vpop.xlane.xlu1 %2012 }
 0xbbf   : > { %v2014_v10 = vmul.f32 %v2013_v9, %v3830_v29 }
 0xbc1   : > { %v2015_v1 = vadd.f32 1e-05, %v2014_v10  ;;  %v3166_v10 = vld [vmem:[#allocation13] ss:$0 sm:$0xff] }
 0xbc3   : > { %3204 = vrsqrt.f32 %v2015_v1  ;;  %vm2022_vm10 = vweird.f32 %v2015_v1 }
 0xbc9   : > { %v3205_v16 = vpop.eup %3204 }
 0xbca   : > { %v2017_v17 = vmul.f32 %v3205_v16, %v2015_v1  ;;  %vm2023_vm9 = vweird.f32 %v3205_v16 }
 0xbcb   : > { %vm2024_vm11 = vmor %vm2022_vm10, %vm2023_vm9 }
 0xbcc   : > { %v2018_v20 = vmul.f32 %v3205_v16, %v2017_v17 }
 0xbce   : > { %v2019_v21 = vmul.f32 0.5, %v2018_v20 }
 0xbd0   : > { %v2020_v25 = vsub.f32 1.5, %v2019_v21 }
 0xbd2   : > { %v2021_v63 = vmul.f32 %v3205_v16, %v2020_v25 }
 0xbd4   : > { %v2025_v27 = vsel %vm2024_vm11, %v3205_v16, %v2021_v63 }
 0xbd5   : > { %v2026_v28 = vmul.f32 %v2025_v27, %v3906_v24  ;;  %v2052_v24 = vld [vmem:[%s3983_s29] sm:$0x3] }
 0xbd6   : > { %v2054_v38 = vperm.slane %v2052_v24, 0  ;;  %v2055_v39 = vperm.slane %v2052_v24, 1 }
 0xbd7   : > { %v2030_v31 = vmul.f32 %v3163_v26, %v2026_v28 }
 0xbd9   : > { %v2034_v32 = vadd.f32 %v3164_v30, %v2030_v31 }
 0xbdb   : > { %v2035_v33 = vpack.c.bf16 %v2034_v32, %v2034_v32 }
 0xbdd   : > { %2146 = vmatmul.bf16.vlgmr.msra.gmra.mxu2 %v2035_v33  ;;  %2159 = vmatmul.bf16.vlgmr.msrb.gmra.mxu3 %v2035_v33 }
 0xc60   : > { %v2147_v40 = vpop.f32.mrf.mxu2  ;;  %v2160_v41 = vpop.f32.mrf.mxu3 }
 0xc61   : > { %v2148_v43 = vadd.f32 %v2147_v40, %v2054_v38  ;;  %v2161_v44 = vadd.f32 %v2160_v41, %v2055_v39 }
 0xc63   : > { %v2164_v45 = vmax.f32 %v2148_v43, 0.0  ;;  %v2165_v46 = vmax.f32 %v2161_v44, 0.0 }
 0xc65   : > { %v2166_v47 = vpack.c.bf16 %v2164_v45, %v2164_v45  ;;  %v2167_v48 = vpack.c.bf16 %v2165_v46, %v2165_v46 }
 0xc67   : > { %2308 = vmatmul.bf16.vlgmr.msra.gmra.mxu0 %v2166_v47  ;;  %2321 = vmatmul.bf16.vlgmr.msrb.gmra.mxu1 %v2167_v48 }
 0xc68   : > { %v2149_v49 = vpop.f32.mrf.mxu2  ;;  %v2162_v50 = vpop.f32.mrf.mxu3 }
 0xce4   : > { %v2309_v52 = vpop.f32.mrf.mxu0  ;;  %v2322_v53 = vpop.f32.mrf.mxu1 }
 0xce5   : > { %v2310_v54 = vadd.f32 %v3165_v51, %v2309_v52 }
 0xce7   : > { %v2323_v56 = vadd.f32 %v2322_v53, %v2310_v54 }
 0xce9   : > { %v2326_v57 = vadd.f32 %v2323_v56, %v2034_v32 }
 0xceb   : > { %2329 = vadd.xlane.f32.xlu2 %v2326_v57 }
 0xcec   : > { %v2311_v58 = vpop.f32.mrf.mxu0  ;;  %v2324_v59 = vpop.f32.mrf.mxu1 }
 0xd5e   : > { %v2330_v60 = vpop.xlane.xlu2 %2329 }
 0xd5f   : > { %v2331_v61 = vmul.f32 %v2330_v60, %v3830_v29 }
 0xd61   : > { %v2332_v62 = vsub.f32 %v2326_v57, %v2331_v61 }
 0xd63   : > { %v2333_v0 = vmul.f32 %v2332_v62, %v2332_v62 }
 0xd65   : > { %2334 = vadd.xlane.f32.xlu0 %v2333_v0 }
 0xdd8   : > { %v2335_v3 = vpop.xlane.xlu0 %2334 }
 0xdd9   : > { %v2336_v4 = vmul.f32 %v2335_v3, %v3830_v29 }
 0xddb   : > { %v2337_v5 = vadd.f32 1e-05, %v2336_v4 }
 0xddd   : > { %3206 = vrsqrt.f32 %v2337_v5  ;;  %vm2344_vm13 = vweird.f32 %v2337_v5 }
 0xde3   : > { %v3207_v6 = vpop.eup %3206 }
 0xde4   : > { %v2339_v55 = vmul.f32 %v3207_v6, %v2337_v5  ;;  %vm2345_vm12 = vweird.f32 %v3207_v6 }
 0xde5   : > { %vm2346_vm14 = vmor %vm2344_vm13, %vm2345_vm12 }
 0xde6   : > { %v2340_v42 = vmul.f32 %v3207_v6, %v2339_v55 }
 0xde8   : > { %v2341_v7 = vmul.f32 0.5, %v2340_v42 }
 0xdea   : > { %v2342_v8 = vsub.f32 1.5, %v2341_v7 }
 0xdec   : > { %v2343_v9 = vmul.f32 %v3207_v6, %v2342_v8 }
 0xdee   : > { %v2347_v11 = vsel %vm2346_vm14, %v3207_v6, %v2343_v9 }
 0xdef   : > { %v2348_v1 = vmul.f32 %v2347_v11, %v2332_v62 }
 0xdf1   : > { %v2352_v13 = vmul.f32 %v3166_v10, %v2348_v1 }
 0xdf3   : > { %v2356_v14 = vadd.f32 %v3167_v12, %v2352_v13 }
 0xdf5   : > { %v2357_v29 = vpack.c.bf16 %v2356_v14, %v2356_v14 }
 0xdf7   : > { %2358 = vst [vmem:[%s882_s13] sm:$0xf] %v2357_v29 }
 0xdf8 PF: > { %s3985_s4 = sld [smem:[#allocation21_spill]] }
 0xdfe   : > { %s38_s4 = sadd.s32 1, %s3985_s4  }
 0xdff   : > { %p35_p7 = scmp.ge.s32.totalorder %s38_s4, 4  }
 0xe01   :  { %37 = sbr.rel (!%p35_p7) target bundleno = 19 (0x13), region = 185 }
 0xe06   :  { %2378 = vsyncpa [#allocation3], 1 }
 0xe07   :  { %2380 = vsyncpa [#allocation3 + $0x1], 1 }
 0xe08   :  { %2381 = vsyncpa [#allocation5], 1 }
 0xe09   :  { %2382 = vsyncpa [#allocation8], 1 }
 0xe0a   :  { %2383 = vsyncpa [#allocation11], 1 }
 0xe0b   :  { %2384 = vsyncpa [#allocation14], 1 }

// kernel: transformer_seq2seq_forward.8
= control target key start
LH: loop header
LB: loop body
LE: loop exit
PB: predicated region body
PF: predicated region fallthrough
CT: control target
= control target key end

     0   :  { %s4513_s0 = inlined_call_operand.vmem [shape: bf16[2,8,128], index: 0, kind: input, shape index: {}]   ;;  %s4514_s1 = inlined_call_operand.vmem [shape: bf16[2,8,128], index: 1, kind: input, shape index: {}]   ;;  %s4515_s2 = inlined_call_operand.vmem [shape: f32[2,8,8], index: 2, kind: input, shape index: {}]   ;;  %s4516_s3 = inlined_call_operand.hbm [shape: bf16[128,384], index: 3, kind: input, shape index: {}]   ;;  %s4517_s4 = inlined_call_operand.vmem [shape: f32[1,384], index: 4, kind: input, shape index: {}]   ;;  %s4518_s5 = inlined_call_operand.hbm [shape: bf16[128,128], index: 5, kind: input, shape index: {}]   ;;  %s4519_s6 = inlined_call_operand.hbm [shape: f32[1,128], index: 6, kind: input, shape index: {}]   ;;  %s4520_s7 = inlined_call_operand.hbm [shape: f32[1,128], index: 7, kind: input, shape index: {}]   ;;  %s4521_s8 = inlined_call_operand.hbm [shape: f32[1,128], index: 8, kind: input, shape index: {}]   ;;  %s4522_s9 = inlined_call_operand.hbm [shape: bf16[128,128], index: 9, kind: input, shape index: {}]   ;;  %s4523_s10 = inlined_call_operand.hbm [shape: f32[1,128], index: 10, kind: input, shape index: {}]   ;;  %s4524_s11 = inlined_call_operand.hbm [shape: bf16[128,256], index: 11, kind: input, shape index: {}]   ;;  %s4525_s12 = inlined_call_operand.vmem [shape: f32[1,256], index: 12, kind: input, shape index: {}]   ;;  %s4526_s13 = inlined_call_operand.hbm [shape: bf16[128,128], index: 13, kind: input, shape index: {}]   ;;  %s4527_s14 = inlined_call_operand.hbm [shape: f32[1,128], index: 14, kind: input, shape index: {}]   ;;  %s4528_s15 = inlined_call_operand.hbm [shape: f32[1,128], index: 15, kind: input, shape index: {}]   ;;  %s4529_s16 = inlined_call_operand.hbm [shape: f32[1,128], index: 16, kind: input, shape index: {}]   ;;  %s4530_s17 = inlined_call_operand.hbm [shape: bf16[128,256], index: 17, kind: input, shape index: {}]   ;;  %s4531_s18 = inlined_call_operand.vmem [shape: f32[1,256], index: 18, kind: input, shape index: {}]   ;;  %s4532_s19 = inlined_call_operand.hbm [shape: bf16[256,128], index: 19, kind: input, shape index: {}]   ;;  %s4533_s20 = inlined_call_operand.hbm [shape: f32[1,128], index: 20, kind: input, shape index: {}]   ;;  %s4534_s21 = inlined_call_operand.hbm [shape: f32[1,128], index: 21, kind: input, shape index: {}]   ;;  %s4535_s22 = inlined_call_operand.hbm [shape: f32[1,128], index: 22, kind: input, shape index: {}]   ;;  %s4536_s23 = inlined_call_operand.vmem [shape: bf16[2,8,128], index: 23, kind: output, shape index: {}]  }
   0x1   :  { %4544 = sst [smem:[#allocation38_spill]] %s4513_s0 }
   0x2   :  { %4545 = sst [smem:[#allocation39_spill]] %s4514_s1 }
   0x3   :  { %4546 = sst [smem:[#allocation40_spill]] %s4515_s2 }
   0x4   :  { %4547 = sst [smem:[#allocation41_spill]] %s4516_s3 }
   0x5   :  { %4548 = sst [smem:[#allocation42_spill]] %s4517_s4 }
   0x6   :  { %4549 = sst [smem:[#allocation43_spill]] %s4518_s5 }
   0x7   :  { %4550 = sst [smem:[#allocation44_spill]] %s4519_s6 }
   0x8   :  { %4551 = sst [smem:[#allocation45_spill]] %s4520_s7 }
   0x9   :  { %4552 = sst [smem:[#allocation46_spill]] %s4522_s9 }
   0xa   :  { %4553 = sst [smem:[#allocation47_spill]] %s4524_s11 }
   0xb   :  { %4554 = sst [smem:[#allocation48_spill]] %s4527_s14 }
   0xc   :  { %4555 = sst [smem:[#allocation49_spill]] %s4529_s16 }
   0xd   :  { %4556 = sst [smem:[#allocation50_spill]] %s4531_s18 }
   0xe   :  { %4557 = sst [smem:[#allocation51_spill]] %s4536_s23 }
   0xf   :  { %28 = vsyncpa [#allocation3], 0 }
  0x10   :  { %29 = vsyncpa [#allocation5], 0 }
  0x11   :  { %30 = vsyncpa [#allocation8], 0 }
  0x12   :  { %31 = vsyncpa [#allocation11], 0 }
  0x13   :  { %32 = vsyncpa [#allocation14], 0 }
  0x14   :  { %33 = vsyncpa [#allocation17], 0 }
  0x15   :  { %34 = vsyncpa [#allocation20], 0 }
  0x16   :  { %35 = vsyncpa [#allocation23], 0 }
  0x17   :  { %36 = vsyncpa [#allocation26], 0  ;;  %s4199_s4 = smov 0  }
  0x18 LB: > { %4558 = sst [smem:[#allocation37_spill]] %s4050_s4  ;;  %s4208_s1 = sadd.s32 4294967295, %s4050_s4   ;;  %s4050_s4 = sphi %s4199_s4, %s42_s4  }
  0x19   : > { %s4559_s25 = sld [smem:[#allocation43_spill]]  ;;  %p2720_p0 = scmp.ge.s32.totalorder %s4050_s4, 1 }
  0x1a   : > { %p571_p1 = scmp.lt.s32.totalorder %s4050_s4, 3  ;;  %p3379_p2 = scmp.eq.s32.totalorder %s4208_s1, 0 }
  0x1b   : > { %s4052_s2 = smov [#allocation4]   ;;  %s4561_s28 = sld [smem:[#allocation45_spill]] }
  0x1c   : > { %p4213_p3 = pnand %p2720_p0, %p571_p1  ;;  %s601_s6 = sshll.u32 %s4052_s2, 4  ;;  %s602_s6 = int_to_ptr.vmem [resolvable:$true] %s601_s6 }
  0x1d   : > { %s4053_s0 = smov [#allocation7]   ;;  %s4563_s9 = sld [smem:[#allocation46_spill]] }
  0x1e   : > { %p3327_p4 = pneg %p4213_p3  ;;  %s628_s30 = sshll.u32 %s4053_s0, 4  ;;  %s629_s30 = int_to_ptr.vmem [resolvable:$true] %s628_s30 }
  0x1f   : > { %s599_s5 = sshll.u32 %s4559_s25, 4  ;;  %s4538_s4 = smov 64   ;;  %s600_s5 = int_to_ptr.hbm [resolvable:$true] %s599_s5 }
  0x20   : > { %p4224_p5 = pnand %p3379_p2, %p3327_p4  ;;  %s4540_s23 = smov 4  }
  0x21   : > { %s626_s29 = sshll.u32 %s4561_s28, 4  ;;  %s4056_s27 = smov [#allocation10]   ;;  %s627_s29 = int_to_ptr.hbm [resolvable:$true] %s626_s29 }
  0x22   : > { %3333 = dma.hbm_to_vmem [thread:$0]  (!%p4224_p5), %s600_s5, 1024, %s602_s6, [#allocation5], %s4538_s4, %s4538_s4, %s4540_s23  }
  0x23   : > { %s649_s2 = sshll.u32 %s4563_s9, 4  ;;  %s651_s7 = sshll.u32 %s4056_s27, 4  ;;  %s650_s2 = int_to_ptr.hbm [resolvable:$true] %s649_s2  ;;  %s652_s7 = int_to_ptr.vmem [resolvable:$true] %s651_s7 }
  0x24   : > { %3339 = dma.hbm_to_vmem [thread:$0]  (!%p4224_p5), %s627_s29, 16, %s629_s30, [#allocation8]  }
  0x25   : > { %s4564_s11 = sld [smem:[#allocation47_spill]]  ;;  %s4057_s24 = smov [#allocation13]  }
  0x26   : > { %3345 = dma.hbm_to_vmem [thread:$0]  (!%p4224_p5), %s650_s2, 1024, %s652_s7, [#allocation11], %s4538_s4, %s4538_s4, %s4540_s23  }
  0x27   : > { %s677_s25 = sshll.u32 %s4057_s24, 4  ;;  %s4565_s14 = sld [smem:[#allocation48_spill]]  ;;  %s678_s25 = int_to_ptr.vmem [resolvable:$true] %s677_s25 }
  0x28   : > { %s4542_s30 = smov 128   ;;  %s4543_s27 = smov 8  }
  0x29   : > { %s4060_s28 = smov [#allocation16]   ;;  %s4566_s16 = sld [smem:[#allocation49_spill]] }
  0x2a   : > { %s709_s0 = sshll.u32 %s4060_s28, 4  ;;  %s759_s6 = sshll.u32 %s4532_s19, 4  ;;  %s710_s0 = int_to_ptr.vmem [resolvable:$true] %s709_s0  ;;  %s760_s6 = int_to_ptr.hbm [resolvable:$true] %s759_s6 }
  0x2b   : > { %s675_s18 = sshll.u32 %s4564_s11, 4  ;;  %s4061_s4 = smov [#allocation19]   ;;  %s676_s18 = int_to_ptr.hbm [resolvable:$true] %s675_s18 }
  0x2c   : > { %3351 = dma.hbm_to_vmem [thread:$0]  (!%p4224_p5), %s676_s18, 2048, %s678_s25, [#allocation14], %s4542_s30, %s4542_s30, %s4543_s27  }
  0x2d   : > { %s707_s29 = sshll.u32 %s4565_s14, 4  ;;  %s733_s23 = sshll.u32 %s4061_s4, 4  ;;  %s708_s29 = int_to_ptr.hbm [resolvable:$true] %s707_s29  ;;  %s734_s23 = int_to_ptr.vmem [resolvable:$true] %s733_s23 }
  0x2e   : > { %3357 = dma.hbm_to_vmem [thread:$0]  (!%p4224_p5), %s708_s29, 16, %s710_s0, [#allocation17]  }
  0x2f   : > { %s731_s7 = sshll.u32 %s4566_s16, 4  ;;  %s4062_s18 = smov [#allocation22]   ;;  %s732_s7 = int_to_ptr.hbm [resolvable:$true] %s731_s7 }
  0x30   : > { %3363 = dma.hbm_to_vmem [thread:$0]  (!%p4224_p5), %s732_s7, 16, %s734_s23, [#allocation20]  }
  0x31   : > { %s761_s25 = sshll.u32 %s4062_s18, 4  ;;  %s786_s2 = sshll.u32 %s4534_s21, 4  ;;  %s762_s25 = int_to_ptr.vmem [resolvable:$true] %s761_s25  ;;  %s787_s2 = int_to_ptr.hbm [resolvable:$true] %s786_s2 }
  0x32   : > { %s4567_s29 = smov 4   ;;  %s4568_s0 = smov 64  }
  0x33   : > { %3369 = dma.hbm_to_vmem [thread:$0]  (!%p4224_p5), %s760_s6, 2048, %s762_s25, [#allocation23], %s4568_s0, %s4568_s0, %s4567_s29  }
  0x34   : > { %s4569_s5 = sld [smem:[#allocation41_spill]]  ;;  %s4063_s27 = smov [#allocation25]  }
  0x35   : > { %s788_s23 = sshll.u32 %s4063_s27, 4  ;;  %s4064_s7 = smov [#allocation2]   ;;  %s789_s23 = int_to_ptr.vmem [resolvable:$true] %s788_s23 }
  0x36   : > { %3375 = dma.hbm_to_vmem [thread:$0]  (!%p4224_p5), %s787_s2, 16, %s789_s23, [#allocation26]  }
  0x37   : > { %s584_s18 = sshll.u32 %s4064_s7, 4  ;;  %s4065_s9 = smov 192   ;;  %s585_s18 = int_to_ptr.vmem [resolvable:$true] %s584_s18 }
  0x38   : > { %s4066_s28 = smov 12   ;;  %s4570_s11 = sld [smem:[#allocation44_spill]] }
  0x39   : > { %s4067_s4 = smov [#allocation6]   ;;  %s638_s2 = sshll.u32 %s4521_s8, 4  ;;  %s639_s2 = int_to_ptr.hbm [resolvable:$true] %s638_s2 }
  0x3a   : > { %s582_s30 = sshll.u32 %s4569_s5, 4  ;;  %s616_s27 = sshll.u32 %s4067_s4, 4  ;;  %s583_s30 = int_to_ptr.hbm [resolvable:$true] %s582_s30  ;;  %s617_s27 = int_to_ptr.vmem [resolvable:$true] %s616_s27 }
  0x3b   : > { %3330 = dma.hbm_to_vmem [thread:$0]  (!%p4224_p5), %s583_s30, 3072, %s585_s18, [#allocation3], %s4065_s9, %s4065_s9, %s4066_s28  }
  0x3c   : > { %s4068_s23 = smov [#allocation9]   ;;  %s664_s18 = sshll.u32 %s4523_s10, 4  ;;  %s665_s18 = int_to_ptr.hbm [resolvable:$true] %s664_s18 }
  0x3d   : > { %s640_s7 = sshll.u32 %s4068_s23, 4  ;;  %s692_s28 = sshll.u32 %s4526_s13, 4  ;;  %s641_s7 = int_to_ptr.vmem [resolvable:$true] %s640_s7  ;;  %s693_s28 = int_to_ptr.hbm [resolvable:$true] %s692_s28 }
  0x3e   : > { %s614_s24 = sshll.u32 %s4570_s11, 4  ;;  %s4069_s14 = smov [#allocation12]   ;;  %s615_s24 = int_to_ptr.hbm [resolvable:$true] %s614_s24 }
  0x3f   : > { %3336 = dma.hbm_to_vmem [thread:$0]  (!%p4224_p5), %s615_s24, 16, %s617_s27, [#allocation5]  }
  0x40   : > { %3342 = dma.hbm_to_vmem [thread:$0]  (!%p4224_p5), %s639_s2, 16, %s641_s7, [#allocation8]  }
  0x41   : > { %s666_s6 = sshll.u32 %s4069_s14, 4  ;;  %s4070_s25 = smov [#allocation15]   ;;  %s667_s6 = int_to_ptr.vmem [resolvable:$true] %s666_s6 }
  0x42   : > { %3348 = dma.hbm_to_vmem [thread:$0]  (!%p4224_p5), %s665_s18, 16, %s667_s6, [#allocation11]  }
  0x43   : > { %s694_s24 = sshll.u32 %s4070_s25, 4  ;;  %s719_s27 = sshll.u32 %s4528_s15, 4  ;;  %s695_s24 = int_to_ptr.vmem [resolvable:$true] %s694_s24  ;;  %s720_s27 = int_to_ptr.hbm [resolvable:$true] %s719_s27 }
  0x44   : > { %3354 = dma.hbm_to_vmem [thread:$0]  (!%p4224_p5), %s693_s28, 1024, %s695_s24, [#allocation14], %s4568_s0, %s4568_s0, %s4567_s29  }
  0x45   : > { %s742_s23 = sshll.u32 %s4530_s17, 4  ;;  %s4071_s7 = smov [#allocation18]   ;;  %s743_s23 = int_to_ptr.hbm [resolvable:$true] %s742_s23 }
  0x46   : > { %s721_s30 = sshll.u32 %s4071_s7, 4  ;;  %s4072_s18 = smov [#allocation21]   ;;  %s722_s30 = int_to_ptr.vmem [resolvable:$true] %s721_s30 }
  0x47   : > { %3360 = dma.hbm_to_vmem [thread:$0]  (!%p4224_p5), %s720_s27, 16, %s722_s30, [#allocation17]  }
  0x48   : > { %s744_s11 = sshll.u32 %s4072_s18, 4  ;;  %s774_s6 = sshll.u32 %s4533_s20, 4  ;;  %s745_s11 = int_to_ptr.vmem [resolvable:$true] %s744_s11  ;;  %s775_s6 = int_to_ptr.hbm [resolvable:$true] %s774_s6 }
  0x49   : > { %s4571_s29 = smov 8   ;;  %s4572_s0 = smov 128  }
  0x4a   : > { %3366 = dma.hbm_to_vmem [thread:$0]  (!%p4224_p5), %s743_s23, 2048, %s745_s11, [#allocation20], %s4572_s0, %s4572_s0, %s4571_s29  }
  0x4b   : > { %s798_s24 = sshll.u32 %s4535_s22, 4  ;;  %s4073_s16 = smov [#allocation24]   ;;  %s799_s24 = int_to_ptr.hbm [resolvable:$true] %s798_s24 }
  0x4c   : > { %s776_s4 = sshll.u32 %s4073_s16, 4  ;;  %s4074_s27 = smov [#allocation27]   ;;  %s777_s4 = int_to_ptr.vmem [resolvable:$true] %s776_s4 }
  0x4d   : > { %3372 = dma.hbm_to_vmem [thread:$0]  (!%p4224_p5), %s775_s6, 16, %s777_s4, [#allocation23]  }
  0x4e   : > { %s800_s5 = sshll.u32 %s4074_s27, 4  ;;  %834 = sbr.rel (%p4213_p3) target bundleno = 3613 (0xe1d), region = 112  ;;  %s801_s5 = int_to_ptr.vmem [resolvable:$true] %s800_s5 }
  0x4f   : > { %3378 = dma.hbm_to_vmem [thread:$0]  (!%p4224_p5), %s799_s24, 16, %s801_s5, [#allocation26]  }
  0x53   : > { %4013 = dma.done.wait (%p3379_p2), [#allocation3], 3072  }
  0x54   : > { %4015 = vsyncadd (%p3379_p2), [#allocation3], 4294964224 }
  0x55   : > { %4017 = dma.done.wait (%p3379_p2), [#allocation5], 1040  }
  0x56   : > { %4019 = vsyncadd (%p3379_p2), [#allocation5], 4294966256 }
  0x57   : > { %4021 = dma.done.wait (%p3379_p2), [#allocation8], 32  }
  0x58   : > { %4023 = vsyncadd (%p3379_p2), [#allocation8], 4294967264 }
  0x59   : > { %4025 = dma.done.wait (%p3379_p2), [#allocation11], 1040  }
  0x5a   : > { %4027 = vsyncadd (%p3379_p2), [#allocation11], 4294966256 }
  0x5b   : > { %4029 = dma.done.wait (%p3379_p2), [#allocation14], 3072  }
  0x5c   : > { %4031 = vsyncadd (%p3379_p2), [#allocation14], 4294964224 }
  0x5d   : > { %4033 = dma.done.wait (%p3379_p2), [#allocation17], 32  }
  0x5e   : > { %4035 = vsyncadd (%p3379_p2), [#allocation17], 4294967264 }
  0x5f   : > { %4037 = dma.done.wait (%p3379_p2), [#allocation20], 2064  }
  0x60   : > { %4039 = vsyncadd (%p3379_p2), [#allocation20], 4294965232 }
  0x61   : > { %4041 = dma.done.wait (%p3379_p2), [#allocation23], 2064  }
  0x62   : > { %4043 = vsyncadd (%p3379_p2), [#allocation23], 4294965232 }
  0x63   : > { %4045 = dma.done.wait (%p3379_p2), [#allocation26], 32  }
  0x64   : > { %4047 = vsyncadd (%p3379_p2), [#allocation26], 4294967264  ;;  %v2847_v0 = vld [vmem:[#allocation2 + $0xa8] sm:$0xf]  ;;  %v3185_v1 = vld [vmem:[#allocation2 + $0xb0] sm:$0xf0] }
  0x65   : > { %v3184_v2 = vld [vmem:[#allocation2 + $0xac] sm:$0xf]  ;;  %v2848_v3 = vor.u32 %v3185_v1, %v2847_v0  ;;  %v2849_v4 = vld [vmem:[#allocation2 + $0xb4] sm:$0xf0]  ;;  %v2835_v5 = vld [vmem:[#allocation2 + $0x90] sm:$0xf] }
  0x66   : > { %v3182_v6 = vld [vmem:[#allocation2 + $0x98] sm:$0xf0]  ;;  %v2852_v7 = vor.u32 %v3184_v2, %v2849_v4  ;;  %v3181_v8 = vld [vmem:[#allocation2 + $0x94] sm:$0xf]  ;;  %v2837_v9 = vld [vmem:[#allocation2 + $0x9c] sm:$0xf0] }
  0x67   : > { %1173 = vmatpush.bf16.msra.mxu0 %v2848_v3  ;;  %v2836_v10 = vor.u32 %v3182_v6, %v2835_v5  ;;  %v2840_v11 = vor.u32 %v3181_v8, %v2837_v9  ;;  %v2823_v12 = vld [vmem:[#allocation2 + $0x78] sm:$0xf]  ;;  %v3179_v13 = vld [vmem:[#allocation2 + $0x80] sm:$0xf0]  ;;  %v3178_v14 = vld [vmem:[#allocation2 + $0x7c] sm:$0xf] }
  0x68   : > { %1186 = vmatpush.bf16.msra.mxu1 %v2852_v7  ;;  %v2825_v15 = vld [vmem:[#allocation2 + $0x84] sm:$0xf0]  ;;  %v2824_v16 = vor.u32 %v3179_v13, %v2823_v12  ;;  %v2811_v18 = vld [vmem:[#allocation2 + $0x60] sm:$0xf]  ;;  %v3176_v19 = vld [vmem:[#allocation2 + $0x68] sm:$0xf0] }
  0x69   : > { %v2828_v17 = vor.u32 %v3178_v14, %v2825_v15  ;;  %v3175_v20 = vld [vmem:[#allocation2 + $0x64] sm:$0xf]  ;;  %v2813_v21 = vld [vmem:[#allocation2 + $0x6c] sm:$0xf0]  ;;  %v2812_v22 = vor.u32 %v3176_v19, %v2811_v18  ;;  %v3186_v24 = vld [vmem:[#allocation2 + $0xb8] sm:$0xf0] }
  0x6a   : > { %v2855_v23 = vld [vmem:[#allocation2 + $0xb0] sm:$0xf]  ;;  %v2843_v25 = vld [vmem:[#allocation2 + $0x98] sm:$0xf]  ;;  %v2816_v26 = vor.u32 %v3175_v20, %v2813_v21  ;;  %v2799_v27 = vld [vmem:[#allocation2 + $0x48] sm:$0xf] }
  0x6b   : > { %1174 = vmatpush.bf16.msra.mxu0 %v2836_v10  ;;  %v3173_v28 = vld [vmem:[#allocation2 + $0x50] sm:$0xf0]  ;;  %v2856_v29 = vor.u32 %v3186_v24, %v2855_v23  ;;  %v3183_v30 = vld [vmem:[#allocation2 + $0xa0] sm:$0xf0]  ;;  %v3172_v31 = vld [vmem:[#allocation2 + $0x4c] sm:$0xf] }
  0x6c   : > { %1187 = vmatpush.bf16.msra.mxu1 %v2840_v11  ;;  %v2801_v32 = vld [vmem:[#allocation2 + $0x54] sm:$0xf0]  ;;  %v2787_v33 = vld [vmem:[#allocation2 + $0x30] sm:$0xf]  ;;  %p985_p6 = scmp.lt.s32.totalorder %s4208_s1, 1  ;;  %v2844_v34 = vor.u32 %v3183_v30, %v2843_v25  ;;  %v2800_v35 = vor.u32 %v3173_v28, %v2799_v27  ;;  %s4573_s23 = sld [smem:[#allocation38_spill]] }
  0x6d   : > { %1199 = vmatpush.bf16.msra.mxu2 %v2856_v29  ;;  %v3170_v36 = vld [vmem:[#allocation2 + $0x38] sm:$0xf0]  ;;  %v2831_v37 = vld [vmem:[#allocation2 + $0x80] sm:$0xf]  ;;  %v3180_v38 = vld [vmem:[#allocation2 + $0x88] sm:$0xf0]  ;;  %v2804_v39 = vor.u32 %v3172_v31, %v2801_v32 }
  0x6e   : > { %v3169_v40 = vld [vmem:[#allocation2 + $0x34] sm:$0xf]  ;;  %v2789_v41 = vld [vmem:[#allocation2 + $0x3c] sm:$0xf0]  ;;  %v2819_v42 = vld [vmem:[#allocation2 + $0x68] sm:$0xf]  ;;  %v2832_v44 = vor.u32 %v3180_v38, %v2831_v37  ;;  %v2788_v45 = vor.u32 %v3170_v36, %v2787_v33 }
  0x6f   : > { %1175 = vmatpush.bf16.msra.mxu0 %v2824_v16  ;;  %v3177_v43 = vld [vmem:[#allocation2 + $0x70] sm:$0xf0]  ;;  %v2792_v46 = vor.u32 %v3169_v40, %v2789_v41  ;;  %v2775_v47 = vld [vmem:[#allocation2 + $0x18] sm:$0xf]  ;;  %v3167_v48 = vld [vmem:[#allocation2 + $0x20] sm:$0xf0] }
  0x70   : > { %1188 = vmatpush.bf16.msra.mxu1 %v2828_v17  ;;  %v3166_v49 = vld [vmem:[#allocation2 + $0x1c] sm:$0xf]  ;;  %v2777_v50 = vld [vmem:[#allocation2 + $0x24] sm:$0xf0]  ;;  %s4581_s1 = smov (!%p985_p6, %s4208_s1), 1  ;;  %v2820_v51 = vor.u32 %v3177_v43, %v2819_v42  ;;  %v2776_v52 = vor.u32 %v3167_v48, %v2775_v47  ;;  %s4574_s11 = sld [smem:[#allocation42_spill]] }
  0x71   : > { %1200 = vmatpush.bf16.msra.mxu2 %v2844_v34  ;;  %v2807_v53 = vld [vmem:[#allocation2 + $0x50] sm:$0xf]  ;;  %v3174_v54 = vld [vmem:[#allocation2 + $0x58] sm:$0xf0]  ;;  %v2780_v55 = vor.u32 %v3166_v49, %v2777_v50  ;;  %v2763_v56 = vld [vmem:[#allocation2] sm:$0xf] }
  0x72   : > { %v3164_v57 = vld [vmem:[#allocation2 + $0x8] sm:$0xf0]  ;;  %v3163_v58 = vld [vmem:[#allocation2 + $0x4] sm:$0xf]  ;;  %v2765_v59 = vld [vmem:[#allocation2 + $0xc] sm:$0xf0]  ;;  %v2808_v60 = vor.u32 %v3174_v54, %v2807_v53 }
  0x73   : > { %1176 = vmatpush.bf16.msra.mxu0 %v2812_v22  ;;  %s4370_s26 = sshll.u32 %s4581_s1, 2  ;;  %v2764_v61 = vor.u32 %v3164_v57, %v2763_v56  ;;  %v2795_v62 = vld [vmem:[#allocation2 + $0x38] sm:$0xf]  ;;  %v3171_v63 = vld [vmem:[#allocation2 + $0x40] sm:$0xf0]  ;;  %v2768_v0 = vor.u32 %v3163_v58, %v2765_v59  ;;  %vm1217_vm0 = vcmask 261120  }
  0x74   : > { %1189 = vmatpush.bf16.msra.mxu1 %v2816_v26  ;;  %s988_s7 = scalar_lea.vmem %s4573_s23, %s4370_s26  ;;  %v2796_v1 = vor.u32 %v3171_v63, %v2795_v62  ;;  %v2783_v3 = vld [vmem:[#allocation2 + $0x20] sm:$0xf]  ;;  %v3168_v4 = vld [vmem:[#allocation2 + $0x28] sm:$0xf0]  ;;  %v2771_v6 = vld [vmem:[#allocation2 + $0x8] sm:$0xf] }
  0x75   : > { %1201 = vmatpush.bf16.msra.mxu2 %v2832_v44  ;;  %v4376_v2 = vld [vmem:[%s988_s7] sm:$0xf]  ;;  %v2784_v5 = vor.u32 %v3168_v4, %v2783_v3  ;;  %v3165_v7 = vld [vmem:[#allocation2 + $0x10] sm:$0xf0]  ;;  %s4075_s9 = smov 64   ;;  %s4076_s14 = smov 96  }
  0x76   : > { %v2772_v8 = vor.u32 %v3165_v7, %v2771_v6  ;;  %v1037_v9 = vld [vmem:[%s4574_s11] sm:$0x7]  ;;  %s4077_s6 = smov 32   ;;  %vm1253_vm1 = vcmask 1043456   ;;  %s2759_s29 = sshll.u32 %s4581_s1, 3  ;;  %vm1237_vm2 = vcmask 64512  }
  0x77   : > { %1177 = vmatpush.bf16.msra.mxu0 %v2800_v35  ;;  %v1039_v10 = vperm.slane %v1037_v9, 0  ;;  %v1040_v11 = vperm.slane %v1037_v9, 1  ;;  %v1041_v27 = vperm.slane %v1037_v9, 2  ;;  %s4575_s25 = sld [smem:[#allocation40_spill]]  ;;  %vm1460_vm3 = vcmask 523264  }
  0x78   : > { %1190 = vmatpush.bf16.msra.mxu1 %v2804_v39  ;;  %vm1462_vm4 = vcmask 785408   ;;  %s4576_s4 = sld [smem:[#allocation39_spill]] }
  0x79   : > { %1202 = vmatpush.bf16.msra.mxu2 %v2820_v51  ;;  %s4577_s7 = sld [smem:[#allocation50_spill]] }
  0x7a   : > { %s4578_s11 = sld [smem:[#allocation51_spill]] }
  0x7b   : > { %1178 = vmatpush.bf16.msra.mxu0 %v2788_v45 }
  0x7c   : > { %1191 = vmatpush.bf16.msra.mxu1 %v2792_v46 }
  0x7d   : > { %1203 = vmatpush.bf16.msra.mxu2 %v2808_v60  ;;  %s996_s24 = scalar_lea.vmem %s4575_s25, %s2759_s29 }
  0x7e   : > { %v1212_v36 = vld [vmem:[%s996_s24] sm:$0xff]  ;;  %s992_s27 = scalar_lea.vmem %s4576_s4, %s4370_s26 }
  0x7f   : > { %1179 = vmatpush.bf16.msra.mxu0 %v2776_v52 }
  0x80   : > { %1192 = vmatpush.bf16.msra.mxu1 %v2780_v55 }
  0x81   : > { %1204 = vmatpush.bf16.msra.mxu2 %v2796_v1 }
  0x83   : > { %1180 = vmatpush.bf16.msra.mxu0 %v2764_v61 }
  0x84   : > { %1193 = vmatpush.bf16.msra.mxu1 %v2768_v0 }
  0x85   : > { %1205 = vmatpush.bf16.msra.mxu2 %v2784_v5 }
  0x86   : > { %1181 = vmatmul.bf16.vlgmr.msra.gmra.mxu0 %v4376_v2 }
  0x87   : > { %1194 = vmatmul.bf16.vlgmr.msra.gmra.mxu1 %v4376_v2 }
  0x89   : > { %1206 = vmatpush.bf16.msra.mxu2 %v2772_v8 }
  0x8c   : > { %1207 = vmatmul.bf16.vlgmr.msra.gmra.mxu2 %v4376_v2 }
 0x103   : > { %v1182_v12 = vpop.f32.mrf.mxu0 }
 0x104   : > { %v1183_v13 = vadd.f32 %v1182_v12, %v1039_v10  ;;  %v1195_v14 = vpop.f32.mrf.mxu1 }
 0x105   : > { %v1196_v15 = vadd.f32 %v1195_v14, %v1040_v11 }
 0x106   : > { %v1213_v16 = vmul.f32 0.17677669, %v1183_v13 }
 0x107   : > { %v1215_v17 = vpack.c.bf16 %v1196_v15, %v1196_v15 }
 0x108   : > { %v1214_v18 = vpack.c.bf16 %v1213_v16, %v1213_v16 }
 0x109   : > { %v1276_v19 = vunpack.c.l.b16 %v1215_v17  ;;  %v1222_v20 = vsel %vm1217_vm0, %v1215_v17, 0 }
 0x10a   : > { %1231 = vmatpush.bf16.xpose.msra.mxu3 %v1222_v20  ;;  %v1271_v24 = vunpack.c.l.b16 %v1214_v18 }
 0x10b   : > { %v1277_v21 = vpack.c.b16 %v1276_v19, %v1276_v19  ;;  %v1184_v22 = vpop.f32.mrf.mxu0 }
 0x10c   : > { %v1197_v23 = vpop.f32.mrf.mxu1  ;;  %v1272_v25 = vpack.c.b16 %v1271_v24, %v1271_v24 }
 0x10d   : > { %1337 = vrot.lane.b32.xlu2 %v1277_v21, %s4075_s9  ;;  %1278 = vrot.lane.b32.xlu1 %v1277_v21, %s4076_s14 }
 0x10f   : > { %v1208_v26 = vpop.f32.mrf.mxu2 }
 0x110   : > { %v1209_v28 = vadd.f32 %v1208_v26, %v1041_v27 }
 0x111   : > { %2857 = vmatmul.msk.bf16.vlgmr.msra.gmra.mxu3 %vm1217_vm0, %v1214_v18 }
 0x112   : > { %v1216_v30 = vpack.c.bf16 %v1209_v28, %v1209_v28 }
 0x114   : > { %v1255_v31 = vsel %vm1253_vm1, %v1216_v30, 0  ;;  %v1312_v6 = vunpack.c.l.b16 %v1216_v30 }
 0x115   : > { %1393 = vrot.lane.b32.xlu2 %v1277_v21, %s4077_s6  ;;  %1273 = vrot.lane.b32.xlu1 %v1272_v25, %s4076_s14 }
 0x116   : > { %1264 = vmatpush.bf16.msrb.mxu3 %v1255_v31  ;;  %v1313_v7 = vpack.c.b16 %v1312_v6, %v1312_v6  ;;  %v4078_v6 = vmov 128.0  }
 0x117   : > { %v1210_v29 = vpop.f32.mrf.mxu2 }
 0x11d   : > { %1391 = vrot.lane.b32.xlu1 %v1272_v25, %s4077_s6 }
 0x167   : > { %v1338_v32 = vpop.permute.xlu2 %1337 }
 0x168   : > { %v1343_v33 = vsel %vm1217_vm0, %v1338_v32, 0 }
 0x169   : > { %1352 = vmatpush.bf16.xpose.msrb.mxu2 %v1343_v33 }
 0x16f   : > { %v1394_v49 = vpop.permute.xlu2 %1393 }
 0x170   : > { %v1399_v51 = vsel %vm1217_vm0, %v1394_v49, 0  ;;  %v3192_v49 = vld [vmem:[#allocation4 + $0x28] sm:$0xff] }
 0x17f   : > { %v1279_v34 = vpop.permute.xlu1 %1278 }
 0x180   : > { %v1284_v35 = vsel %vm1217_vm0, %v1279_v34, 0 }
 0x181   : > { %1293 = vmatpush.bf16.xpose.msra.mxu3 %v1284_v35 }
 0x187   : > { %v1274_v53 = vpop.permute.xlu1 %1273 }
 0x18f   : > { %v1392_v54 = vpop.permute.xlu1 %1391 }
 0x194   : > { %v1233_v37 = vpop.f32.mrf.mxu3 }
 0x195   : > { %v1234_v38 = vadd.f32 %v1233_v37, %v1212_v36 }
 0x197   : > { %v1238_v39 = vsel %vm1237_vm2, %v1234_v38, -inf }
 0x198   : > { %1239 = vmax.xlane.f32.xlu0 %v1238_v39 }
 0x19c   : > { %v1235_v40 = vpop.f32.mrf.mxu3 }
 0x20b   : > { %v1240_v41 = vpop.xlane.xlu0 %1239 }
 0x20c   : > { %v1241_v42 = vsub.f32 %v1234_v38, %v1240_v41 }
 0x20e   : > { %v1242_v43 = vmul.f32 1.442695, %v1241_v42 }
 0x210   : > { %3458 = vpow2.f32 %v1242_v43 }
 0x216   : > { %v3459_v44 = vpop.eup %3458 }
 0x217   : > { %v1244_v45 = vsel %vm1237_vm2, %v3459_v44, 0.0 }
 0x218   : > { %1245 = vadd.xlane.f32.xlu0 %v1244_v45 }
 0x22c   : > { %1335 = vrot.lane.b32.xlu0 %v1272_v25, %s4075_s9 }
 0x28b   : > { %v1246_v46 = vpop.xlane.xlu0 %1245 }
 0x28c   : > { %3460 = vrcp.f32 %v1246_v46 }
 0x292   : > { %v3461_v47 = vpop.eup %3460 }
 0x293   : > { %v1248_v48 = vmul.f32 %v3461_v47, %v3459_v44  ;;  %v3194_v47 = vld [vmem:[#allocation4 + $0x38] sm:$0xff] }
 0x294   : > { %1533 = vmatpush.bf16.msrb.mxu1 %v3194_v47  ;;  %v3195_v47 = vld [vmem:[#allocation10] sm:$0xff] }
 0x295   : > { %v1249_v50 = vpack.c.bf16 %v1248_v48, %v1248_v48  ;;  %v3193_v48 = vld [vmem:[#allocation4 + $0x30] sm:$0xff] }
 0x297   : > { %2858 = vmatmul.msk.bf16.vlgmr.msrb.gmra.mxu3 %vm1237_vm2, %v1249_v50  ;;  %v3191_v50 = vld [vmem:[#allocation4 + $0x20] sm:$0xff] }
 0x298   : > { %1408 = vmatpush.bf16.xpose.msrb.mxu3 %v1399_v51  ;;  %1534 = vmatpush.bf16.msrb.mxu1 %v3193_v48  ;;  %v3190_v51 = vld [vmem:[#allocation4 + $0x18] sm:$0xff] }
 0x29c   : > { %1535 = vmatpush.bf16.msrb.mxu1 %v3192_v49 }
 0x29e   : > { %v1336_v52 = vpop.permute.xlu0 %1335 }
 0x29f   : > { %2861 = vmatmul.msk.bf16.vlgmr.msrb.gmra.mxu2 %vm1217_vm0, %v1336_v52  ;;  %v3189_v52 = vld [vmem:[#allocation4 + $0x10] sm:$0xff] }
 0x2a0   : > { %1536 = vmatpush.bf16.msrb.mxu1 %v3191_v50 }
 0x2a4   : > { %1537 = vmatpush.bf16.msrb.mxu1 %v3190_v51 }
 0x2a7   : > { %2859 = vmatmul.msk.bf16.vlgmr.msra.gmra.mxu3 %vm1217_vm0, %v1274_v53  ;;  %v3188_v53 = vld [vmem:[#allocation4 + $0x8] sm:$0xff] }
 0x2a8   : > { %1538 = vmatpush.bf16.msrb.mxu1 %v3189_v52 }
 0x2ac   : > { %1539 = vmatpush.bf16.msrb.mxu1 %v3188_v53 }
 0x2b7   : > { %2863 = vmatmul.msk.bf16.vlgmr.msrb.gmra.mxu3 %vm1217_vm0, %v1392_v54  ;;  %v3187_v54 = vld [vmem:[#allocation4] sm:$0xff] }
 0x2b8   : > { %1540 = vmatpush.bf16.msrb.mxu1 %v3187_v54 }
 0x31a   : > { %v4406_v55 = vpop.f32.mrf.mxu3 }
 0x322   : > { %v1268_v56 = vpop.f32.mrf.mxu3  ;;  %v1354_v57 = vpop.f32.mrf.mxu2 }
 0x323   : > { %v1355_v58 = vadd.f32 %v1354_v57, %v1212_v36 }
 0x325   : > { %v1358_v59 = vsel %vm1237_vm2, %v1355_v58, -inf }
 0x326   : > { %1359 = vmax.xlane.f32.xlu1 %v1358_v59 }
 0x32a   : > { %v1295_v60 = vpop.f32.mrf.mxu3  ;;  %v1356_v61 = vpop.f32.mrf.mxu2 }
 0x32b   : > { %v1296_v62 = vadd.f32 %v1295_v60, %v1212_v36 }
 0x32d   : > { %v1299_v63 = vsel %vm1237_vm2, %v1296_v62, -inf }
 0x32e   : > { %1300 = vmax.xlane.f32.xlu2 %v1299_v63  ;;  %v3448_v63 = vld [vmem:[#allocation6] ss:$0 sm:$0xff] }
 0x332   : > { %v1297_v0 = vpop.f32.mrf.mxu3 }
 0x333   : > { %v1004_v0 = vunpack.c.l.bf16 %v4376_v2 }
 0x33a   : > { %v1410_v1 = vpop.f32.mrf.mxu3 }
 0x33b   : > { %v1411_v3 = vadd.f32 %v1410_v1, %v1212_v36 }
 0x33d   : > { %v1414_v4 = vsel %vm1237_vm2, %v1411_v3, -inf }
 0x33e   : > { %1415 = vmax.xlane.f32.xlu0 %v1414_v4 }
 0x342   : > { %v1412_v5 = vpop.f32.mrf.mxu3 }
 0x352   : > { %1370 = vrot.lane.b32.xlu0 %v1313_v7, %s4075_s9 }
 0x399   : > { %v1360_v8 = vpop.xlane.xlu1 %1359 }
 0x39a   : > { %v1361_v9 = vsub.f32 %v1355_v58, %v1360_v8  ;;  %v3218_v8 = vld [vmem:[#allocation13 + $0x74] sm:$0xf0] }
 0x39c   : > { %v1362_v10 = vmul.f32 1.442695, %v1361_v9 }
 0x39e   : > { %3462 = vpow2.f32 %v1362_v10  ;;  %v3216_v10 = vld [vmem:[#allocation13 + $0x64] sm:$0xf0] }
 0x3a1   : > { %v1301_v11 = vpop.xlane.xlu2 %1300 }
 0x3a2   : > { %v1302_v12 = vsub.f32 %v1296_v62, %v1301_v11 }
 0x3a4   : > { %v3463_v13 = vpop.eup %3462  ;;  %v1303_v14 = vmul.f32 1.442695, %v1302_v12 }
 0x3a5   : > { %v1364_v15 = vsel %vm1237_vm2, %v3463_v13, 0.0 }
 0x3a6   : > { %3464 = vpow2.f32 %v1303_v14  ;;  %1365 = vadd.xlane.f32.xlu1 %v1364_v15  ;;  %v3214_v14 = vld [vmem:[#allocation13 + $0x54] sm:$0xf0] }
 0x3a7   : > { %v3202_v15 = vld [vmem:[#allocation10 + $0x38] sm:$0xff] }
 0x3ac   : > { %v3465_v16 = vpop.eup %3464 }
 0x3ad   : > { %v1305_v17 = vsel %vm1237_vm2, %v3465_v16, 0.0 }
 0x3ae   : > { %1306 = vadd.xlane.f32.xlu2 %v1305_v17  ;;  %v2963_v17 = vld [vmem:[#allocation13 + $0x40] sm:$0xf] }
 0x3b1   : > { %v1416_v18 = vpop.xlane.xlu0 %1415 }
 0x3b2   : > { %v1417_v19 = vsub.f32 %v1411_v3, %v1416_v18  ;;  %v3212_v18 = vld [vmem:[#allocation13 + $0x44] sm:$0xf0] }
 0x3b4   : > { %v1418_v20 = vmul.f32 1.442695, %v1417_v19 }
 0x3b6   : > { %3466 = vpow2.f32 %v1418_v20  ;;  %v2964_v20 = vor.u32 %v3212_v18, %v2963_v17 }
 0x3bc   : > { %v3467_v21 = vpop.eup %3466 }
 0x3bd   : > { %v1420_v22 = vsel %vm1237_vm2, %v3467_v21, 0.0 }
 0x3be   : > { %1421 = vadd.xlane.f32.xlu1 %v1420_v22  ;;  %v3210_v22 = vld [vmem:[#allocation13 + $0x34] sm:$0xf0] }
 0x3c4   : > { %v1371_v23 = vpop.permute.xlu0 %1370 }
 0x3c5   : > { %v1376_v24 = vsel %vm1253_vm1, %v1371_v23, 0 }
 0x3c6   : > { %1314 = vrot.lane.b32.xlu2 %v1313_v7, %s4076_s14  ;;  %1385 = vmatpush.bf16.msra.mxu2 %v1376_v24 }
 0x3ca   : > { %1653 = vmatpush.bf16.msrb.mxu2 %v3202_v15 }
 0x3d7   : > { %1426 = vrot.lane.b32.xlu1 %v1313_v7, %s4077_s6  ;;  %v2987_v7 = vld [vmem:[#allocation13 + $0x70] sm:$0xf] }
 0x3d8   : > { %v2988_v9 = vor.u32 %v3218_v8, %v2987_v7 }
 0x3da   : > { %1768 = vmatpush.bf16.msra.mxu3 %v2988_v9 }
 0x419   : > { %v1366_v25 = vpop.xlane.xlu1 %1365 }
 0x41a   : > { %3468 = vrcp.f32 %v1366_v25  ;;  %v2947_v25 = vld [vmem:[#allocation13 + $0x20] sm:$0xf] }
 0x420   : > { %v3469_v26 = vpop.eup %3468 }
 0x421   : > { %v1368_v27 = vmul.f32 %v3469_v26, %v3463_v13  ;;  %v1307_v28 = vpop.xlane.xlu2 %1306  ;;  %v2971_v13 = vld [vmem:[#allocation13 + $0x50] sm:$0xf]  ;;  %v3208_v26 = vld [vmem:[#allocation13 + $0x24] sm:$0xf0] }
 0x422   : > { %3470 = vrcp.f32 %v1307_v28  ;;  %v2948_v28 = vor.u32 %v3208_v26, %v2947_v25  ;;  %v2981_v25 = vld [vmem:[#allocation13 + $0x68] sm:$0xf0] }
 0x423   : > { %v1369_v29 = vpack.c.bf16 %v1368_v27, %v1368_v27 }
 0x425   : > { %2862 = vmatmul.msk.bf16.vlgmr.msra.gmra.mxu2 %vm1237_vm2, %v1369_v29 }
 0x428   : > { %v3471_v30 = vpop.eup %3470 }
 0x429   : > { %v1309_v31 = vmul.f32 %v3471_v30, %v3465_v16  ;;  %v1315_v32 = vpop.permute.xlu2 %1314  ;;  %v2972_v16 = vor.u32 %v3214_v14, %v2971_v13 }
 0x42a   : > { %v1320_v33 = vsel %vm1253_vm1, %v1315_v32, 0 }
 0x42b   : > { %1329 = vmatpush.bf16.msrb.mxu0 %v1320_v33  ;;  %v1310_v34 = vpack.c.bf16 %v1309_v31, %v1309_v31 }
 0x42e   : > { %2860 = vmatmul.msk.bf16.vlgmr.msrb.gmra.mxu0 %vm1237_vm2, %v1310_v34  ;;  %v2939_v34 = vld [vmem:[#allocation13 + $0x10] sm:$0xf] }
 0x431   : > { %v1422_v35 = vpop.xlane.xlu1 %1421 }
 0x432   : > { %3472 = vrcp.f32 %v1422_v35  ;;  %v3206_v35 = vld [vmem:[#allocation13 + $0x14] sm:$0xf0] }
 0x433   : > { %3474 = vrcp.f32 %v4078_v6 }
 0x438   : > { %v3473_v36 = vpop.eup %3472 }
 0x439   : > { %v1424_v37 = vmul.f32 %v3473_v36, %v3467_v21  ;;  %v3475_v12 = vpop.eup %3474  ;;  %v2955_v21 = vld [vmem:[#allocation13 + $0x30] sm:$0xf]  ;;  %v2940_v36 = vor.u32 %v3206_v35, %v2939_v34  ;;  %v3209_v34 = vld [vmem:[#allocation13 + $0x34] sm:$0xf]  ;;  %v2957_v35 = vld [vmem:[#allocation13 + $0x38] sm:$0xf0] }
 0x43a   : > { %v1552_v2 = vmul.f32 128.0, %v3475_v12  ;;  %v2956_v24 = vor.u32 %v3210_v22, %v2955_v21  ;;  %vm1556_vm5 = vweird.f32 %v3475_v12  ;;  %v3217_v21 = vld [vmem:[#allocation13 + $0x74] sm:$0xf]  ;;  %v2989_v22 = vld [vmem:[#allocation13 + $0x78] sm:$0xf0] }
 0x43b   : > { %v1425_v40 = vpack.c.bf16 %v1424_v37, %v1424_v37  ;;  %v3201_v37 = vld [vmem:[#allocation10 + $0x30] sm:$0xff] }
 0x43c   : > { %v1553_v19 = vsub.f32 1.0, %v1552_v2  ;;  %1654 = vmatpush.bf16.msrb.mxu2 %v3201_v37  ;;  %v2960_v37 = vor.u32 %v3209_v34, %v2957_v35 }
 0x43e   : > { %v1554_v23 = vmul.f32 %v3475_v12, %v1553_v19 }
 0x440   : > { %v1555_v27 = vadd.f32 %v3475_v12, %v1554_v23  ;;  %v3215_v23 = vld [vmem:[#allocation13 + $0x64] sm:$0xf] }
 0x441   : > { %v2984_v26 = vor.u32 %v3215_v23, %v2981_v25 }
 0x442   : > { %v4431_v29 = vsel %vm1556_vm5, %v3475_v12, %v1555_v27  ;;  %v3213_v27 = vld [vmem:[#allocation13 + $0x54] sm:$0xf] }
 0x449   : > { %v1427_v38 = vpop.permute.xlu1 %1426 }
 0x44a   : > { %v1432_v39 = vsel %vm1253_vm1, %v1427_v38, 0  ;;  %v2931_v38 = vld [vmem:[#allocation13] sm:$0xf] }
 0x44b   : > { %1441 = vmatpush.bf16.msra.mxu0 %v1432_v39  ;;  %v3204_v39 = vld [vmem:[#allocation13 + $0x4] sm:$0xf0] }
 0x44e   : > { %2864 = vmatmul.msk.bf16.vlgmr.msra.gmra.mxu0 %vm1237_vm2, %v1425_v40  ;;  %v2932_v40 = vor.u32 %v3204_v39, %v2931_v38  ;;  %v3207_v38 = vld [vmem:[#allocation13 + $0x24] sm:$0xf]  ;;  %v2949_v39 = vld [vmem:[#allocation13 + $0x28] sm:$0xf0] }
 0x4a8   : > { %v1387_v41 = vpop.f32.mrf.mxu2 }
 0x4ab   : > { %v1331_v42 = vpop.f32.mrf.mxu0 }
 0x4ac   : > { %1448 = vrot.lane.b32.xlu2 %v1331_v42, %s4077_s6  ;;  %v4438_v42 = vld [vmem:[%s992_s27] sm:$0xf] }
 0x4b0   : > { %v1389_v43 = vpop.f32.mrf.mxu2 }
 0x4b1   : > { %v3199_v43 = vld [vmem:[#allocation10 + $0x20] sm:$0xff] }
 0x4b3   : > { %v1333_v44 = vpop.f32.mrf.mxu0 }
 0x4b4   : > { %1452 = vrot.lane.b32.xlu2 %v1387_v41, %s4075_s9  ;;  %v3200_v41 = vld [vmem:[#allocation10 + $0x28] sm:$0xff]  ;;  %v3198_v44 = vld [vmem:[#allocation10 + $0x18] sm:$0xff] }
 0x4b5   : > { %1655 = vmatpush.bf16.msrb.mxu2 %v3200_v41  ;;  %v3205_v41 = vld [vmem:[#allocation13 + $0x14] sm:$0xf] }
 0x4b9   : > { %1656 = vmatpush.bf16.msrb.mxu2 %v3199_v43  ;;  %v2941_v43 = vld [vmem:[#allocation13 + $0x18] sm:$0xf0] }
 0x4bd   : > { %1657 = vmatpush.bf16.msrb.mxu2 %v3198_v44 }
 0x4cb   : > { %v1443_v45 = vpop.f32.mrf.mxu0 }
 0x4cc   : > { %1456 = vrot.lane.b32.xlu0 %v1443_v45, %s4076_s14  ;;  %v3197_v45 = vld [vmem:[#allocation10 + $0x10] sm:$0xff] }
 0x4cd   : > { %1658 = vmatpush.bf16.msrb.mxu2 %v3197_v45 }
 0x4d3   : > { %v1445_v46 = vpop.f32.mrf.mxu0 }
 0x4d4   : > { %v3196_v46 = vld [vmem:[#allocation10 + $0x8] sm:$0xff] }
 0x4d5   : > { %1659 = vmatpush.bf16.msrb.mxu2 %v3196_v46 }
 0x4d9   : > { %1660 = vmatpush.bf16.msrb.mxu2 %v3195_v47  ;;  %v2944_v47 = vor.u32 %v3205_v41, %v2941_v43 }
 0x506   : > { %v1449_v56 = vpop.permute.xlu2 %1448 }
 0x507   : > { %v1459_v58 = vsel %vm1217_vm0, %v4406_v55, %v1449_v56  ;;  %v2979_v55 = vld [vmem:[#allocation13 + $0x60] sm:$0xf] }
 0x508   : > { %v2980_v11 = vor.u32 %v3216_v10, %v2979_v55  ;;  %v3451_v10 = vld [vmem:[#allocation12] ss:$0 sm:$0xff] }
 0x50a   : > { %1769 = vmatpush.bf16.msra.mxu3 %v2980_v11 }
 0x50e   : > { %v1453_v57 = vpop.permute.xlu2 %1452  ;;  %1770 = vmatpush.bf16.msra.mxu3 %v2972_v16 }
 0x50f   : > { %v1461_v59 = vsel %vm1460_vm3, %v1459_v58, %v1453_v57  ;;  %v3449_v58 = vld [vmem:[#allocation7] ss:$0 sm:$0xff] }
 0x512   : > { %1771 = vmatpush.bf16.msra.mxu3 %v2964_v20 }
 0x516   : > { %1772 = vmatpush.bf16.msra.mxu3 %v2956_v24  ;;  %v2992_v24 = vor.u32 %v3217_v21, %v2989_v22 }
 0x518   : > { %1781 = vmatpush.bf16.msrb.mxu0 %v2992_v24 }
 0x51a   : > { %1773 = vmatpush.bf16.msra.mxu3 %v2948_v28  ;;  %v2973_v28 = vld [vmem:[#allocation13 + $0x58] sm:$0xf0] }
 0x51c   : > { %1782 = vmatpush.bf16.msrb.mxu0 %v2984_v26 }
 0x51e   : > { %1774 = vmatpush.bf16.msra.mxu3 %v2940_v36 }
 0x522   : > { %1775 = vmatpush.bf16.msra.mxu3 %v2932_v40  ;;  %v2952_v40 = vor.u32 %v3207_v38, %v2949_v39 }
 0x525   : > { %1776 = vmatmul.bf16.vlgmr.msra.gmra.mxu3 %v4438_v42 }
 0x53e   : > { %v1457_v60 = vpop.permute.xlu0 %1456 }
 0x53f   : > { %v1463_v61 = vsel %vm1462_vm4, %v1461_v59, %v1457_v60 }
 0x540   : > { %v1464_v62 = vpack.c.bf16 %v1463_v61, %v1463_v61  ;;  %v3450_v61 = vld [vmem:[#allocation9] ss:$0 sm:$0xff] }
 0x542   : > { %1541 = vmatmul.bf16.vlgmr.msrb.gmra.mxu1 %v1464_v62 }
 0x5bf   : > { %v1542_v1 = vpop.f32.mrf.mxu1 }
 0x5c0   : > { %v1543_v3 = vadd.f32 %v3448_v63, %v1542_v1  ;;  %v4449_v1 = vld [vmem:[%s4525_s12] sm:$0x3] }
 0x5c2   : > { %v1546_v4 = vadd.f32 %v1543_v3, %v1004_v0  ;;  %v1684_v3 = vperm.slane %v4449_v1, 0 }
 0x5c4   : > { %1549 = vadd.xlane.f32.xlu2 %v1546_v4 }
 0x5c7   : > { %v1544_v5 = vpop.f32.mrf.mxu1 }
 0x637   : > { %v1550_v30 = vpop.xlane.xlu2 %1549 }
 0x638   : > { %v1558_v31 = vmul.f32 %v4431_v29, %v1550_v30  ;;  %v2976_v30 = vor.u32 %v3213_v27, %v2973_v28 }
 0x63a   : > { %v1559_v32 = vsub.f32 %v1546_v4, %v1558_v31  ;;  %v1777_v4 = vpop.f32.mrf.mxu3  ;;  %v3211_v31 = vld [vmem:[#allocation13 + $0x44] sm:$0xf]  ;;  %1783 = vmatpush.bf16.msrb.mxu0 %v2976_v30 }
 0x63b   : > { %v1778_v5 = vadd.f32 %v1777_v4, %v1684_v3 }
 0x63c   : > { %v1560_v33 = vmul.f32 %v1559_v32, %v1559_v32 }
 0x63d   : > { %v1796_v6 = vpack.c.bf16 %v1778_v5, %v1778_v5 }
 0x63e   : > { %1561 = vadd.xlane.f32.xlu0 %v1560_v33 }
 0x63f   : > { %v1802_v7 = vsel %vm1217_vm0, %v1796_v6, 0  ;;  %v1854_v8 = vunpack.c.l.b16 %v1796_v6 }
 0x640   : > { %1811 = vmatpush.bf16.xpose.msra.mxu1 %v1802_v7 }
 0x641   : > { %v1855_v55 = vpack.c.b16 %v1854_v8, %v1854_v8 }
 0x642   : > { %v1779_v9 = vpop.f32.mrf.mxu3 }
 0x643   : > { %1856 = vrot.lane.b32.xlu1 %v1855_v55, %s4076_s14 }
 0x64b   : > { %1915 = vrot.lane.b32.xlu1 %v1855_v55, %s4075_s9 }
 0x6b1   : > { %v1562_v48 = vpop.xlane.xlu0 %1561 }
 0x6b2   : > { %v1563_v49 = vmul.f32 %v1562_v48, %v4431_v29 }
 0x6b4   : > { %v1564_v50 = vadd.f32 1e-05, %v1563_v49  ;;  %v3203_v49 = vld [vmem:[#allocation13 + $0x4] sm:$0xf] }
 0x6b5   : > { %v1857_v17 = vpop.permute.xlu1 %1856 }
 0x6b6   : > { %3476 = vrsqrt.f32 %v1564_v50  ;;  %vm1571_vm7 = vweird.f32 %v1564_v50  ;;  %v1862_v18 = vsel %vm1217_vm0, %v1857_v17, 0 }
 0x6b7   : > { %1871 = vmatpush.bf16.xpose.msrb.mxu3 %v1862_v18 }
 0x6bc   : > { %v3477_v51 = vpop.eup %3476 }
 0x6bd   : > { %v1566_v52 = vmul.f32 %v3477_v51, %v1564_v50  ;;  %vm1572_vm6 = vweird.f32 %v3477_v51  ;;  %v1916_v19 = vpop.permute.xlu1 %1915  ;;  %v2933_v50 = vld [vmem:[#allocation13 + $0x8] sm:$0xf0] }
 0x6be   : > { %vm1573_vm8 = vmor %vm1571_vm7, %vm1572_vm6  ;;  %v1921_v20 = vsel %vm1217_vm0, %v1916_v19, 0 }
 0x6bf   : > { %v1567_v53 = vmul.f32 %v3477_v51, %v1566_v52  ;;  %1930 = vmatpush.bf16.xpose.msrb.mxu1 %v1921_v20 }
 0x6c1   : > { %v1568_v54 = vmul.f32 0.5, %v1567_v53 }
 0x6c3   : > { %v1569_v56 = vsub.f32 1.5, %v1568_v54 }
 0x6c5   : > { %v1570_v57 = vmul.f32 %v3477_v51, %v1569_v56 }
 0x6c7   : > { %v1574_v59 = vsel %vm1573_vm8, %v3477_v51, %v1570_v57  ;;  %v2936_v51 = vor.u32 %v3203_v49, %v2933_v50 }
 0x6c8   : > { %v1575_v60 = vmul.f32 %v1574_v59, %v1559_v32  ;;  %v2965_v32 = vld [vmem:[#allocation13 + $0x48] sm:$0xf0] }
 0x6c9   : > { %v2968_v33 = vor.u32 %v3211_v31, %v2965_v32 }
 0x6ca   : > { %v1579_v62 = vmul.f32 %v3449_v58, %v1575_v60 }
 0x6cb   : > { %1784 = vmatpush.bf16.msrb.mxu0 %v2968_v33 }
 0x6cc   : > { %v4442_v63 = vadd.f32 %v3450_v61, %v1579_v62 }
 0x6ce   : > { %v1584_v0 = vpack.c.bf16 %v4442_v63, %v4442_v63 }
 0x6cf   : > { %1785 = vmatpush.bf16.msrb.mxu0 %v2960_v37 }
 0x6d0   : > { %1661 = vmatmul.bf16.vlgmr.msrb.gmra.mxu2 %v1584_v0  ;;  %v1685_v0 = vperm.slane %v4449_v1, 1 }
 0x6d3   : > { %1786 = vmatpush.bf16.msrb.mxu0 %v2952_v40 }
 0x6d7   : > { %1787 = vmatpush.bf16.msrb.mxu0 %v2944_v47 }
 0x6db   : > { %1788 = vmatpush.bf16.msrb.mxu0 %v2936_v51 }
 0x6de   : > { %1789 = vmatmul.bf16.vlgmr.msrb.gmra.mxu0 %v4438_v42 }
 0x753   : > { %v1662_v11 = vpop.f32.mrf.mxu2 }
 0x754   : > { %v1663_v12 = vadd.f32 %v3451_v10, %v1662_v11 }
 0x756   : > { %v1794_v13 = vmul.f32 0.17677669, %v1663_v12 }
 0x758   : > { %v1795_v14 = vpack.c.bf16 %v1794_v13, %v1794_v13 }
 0x75a   : > { %v1849_v15 = vunpack.c.l.b16 %v1795_v14  ;;  %2993 = vmatmul.msk.bf16.vlgmr.msra.gmra.mxu1 %vm1217_vm0, %v1795_v14 }
 0x75b   : > { %v1664_v2 = vpop.f32.mrf.mxu2  ;;  %v1790_v5 = vpop.f32.mrf.mxu0 }
 0x75c   : > { %v1850_v16 = vpack.c.b16 %v1849_v15, %v1849_v15  ;;  %v1791_v6 = vadd.f32 %v1790_v5, %v1685_v0  ;;  %v3224_v0 = vld [vmem:[#allocation15 + $0x28] sm:$0xff]  ;;  %v3221_v5 = vld [vmem:[#allocation15 + $0x10] sm:$0xff] }
 0x75e   : > { %1969 = vrot.lane.b32.xlu2 %v1850_v16, %s4077_s6  ;;  %1851 = vrot.lane.b32.xlu1 %v1850_v16, %s4076_s14  ;;  %v1797_v7 = vpack.c.bf16 %v1791_v6, %v1791_v6  ;;  %v3220_v6 = vld [vmem:[#allocation15 + $0x8] sm:$0xff] }
 0x760   : > { %v1833_v8 = vsel %vm1253_vm1, %v1797_v7, 0  ;;  %v1890_v1 = vunpack.c.l.b16 %v1797_v7  ;;  %v3219_v7 = vld [vmem:[#allocation15] sm:$0xff] }
 0x761   : > { %1842 = vmatpush.bf16.msra.mxu2 %v1833_v8 }
 0x762   : > { %v1891_v13 = vpack.c.b16 %v1890_v1, %v1890_v1  ;;  %v3452_v1 = vld [vmem:[#allocation16] ss:$0 sm:$0xff] }
 0x763   : > { %v1792_v10 = vpop.f32.mrf.mxu0 }
 0x766   : > { %1971 = vrot.lane.b32.xlu1 %v1855_v55, %s4077_s6 }
 0x76e   : > { %1913 = vrot.lane.b32.xlu1 %v1850_v16, %s4075_s9 }
 0x7b8   : > { %v1970_v53 = vpop.permute.xlu2 %1969 }
 0x7d0   : > { %v1852_v36 = vpop.permute.xlu1 %1851 }
 0x7d1   : > { %2995 = vmatmul.msk.bf16.vlgmr.msrb.gmra.mxu3 %vm1217_vm0, %v1852_v36 }
 0x7d7   : > { %v1813_v44 = vpop.f32.mrf.mxu1 }
 0x7d8   : > { %v1972_v45 = vpop.permute.xlu1 %1971  ;;  %v1817_v46 = vsel %vm1237_vm2, %v1813_v44, -inf }
 0x7d9   : > { %v1977_v48 = vsel %vm1217_vm0, %v1972_v45, 0  ;;  %1818 = vmax.xlane.f32.xlu1 %v1817_v46 }
 0x7da   : > { %1986 = vmatpush.bf16.xpose.msra.mxu3 %v1977_v48 }
 0x7df   : > { %v1815_v52 = vpop.f32.mrf.mxu1 }
 0x7e0   : > { %v1914_v54 = vpop.permute.xlu1 %1913 }
 0x7e1   : > { %2997 = vmatmul.msk.bf16.vlgmr.msrb.gmra.mxu1 %vm1217_vm0, %v1914_v54  ;;  %2999 = vmatmul.msk.bf16.vlgmr.msra.gmra.mxu3 %vm1217_vm0, %v1970_v53 }
 0x84c   : > { %v1819_v56 = vpop.xlane.xlu1 %1818 }
 0x84d   : > { %v1820_v57 = vsub.f32 %v1813_v44, %v1819_v56 }
 0x84f   : > { %v1821_v58 = vmul.f32 1.442695, %v1820_v57 }
 0x851   : > { %3478 = vpow2.f32 %v1821_v58 }
 0x854   : > { %v1873_v59 = vpop.f32.mrf.mxu3 }
 0x855   : > { %v1877_v9 = vsel %vm1237_vm2, %v1873_v59, -inf }
 0x857   : > { %v3479_v60 = vpop.eup %3478 }
 0x858   : > { %v1823_v61 = vsel %vm1237_vm2, %v3479_v60, 0.0 }
 0x859   : > { %1824 = vadd.xlane.f32.xlu2 %v1823_v61  ;;  %v3226_v61 = vld [vmem:[#allocation15 + $0x38] sm:$0xff] }
 0x85a   : > { %2109 = vmatpush.bf16.msra.mxu1 %v3226_v61 }
 0x85c   : > { %v1875_v62 = vpop.f32.mrf.mxu3 }
 0x85d   : > { %v3225_v62 = vld [vmem:[#allocation15 + $0x30] sm:$0xff] }
 0x85e   : > { %v1932_v3 = vpop.f32.mrf.mxu1  ;;  %2110 = vmatpush.bf16.msra.mxu1 %v3225_v62  ;;  %v3045_v62 = vld [vmem:[#allocation21 + $0x18] sm:$0xf0] }
 0x85f   : > { %v1936_v4 = vsel %vm1237_vm2, %v1932_v3, -inf }
 0x860   : > { %1937 = vmax.xlane.f32.xlu0 %v1936_v4  ;;  %v3222_v4 = vld [vmem:[#allocation15 + $0x18] sm:$0xff] }
 0x862   : > { %2111 = vmatpush.bf16.msra.mxu1 %v3224_v0  ;;  %v3035_v0 = vld [vmem:[#allocation21] sm:$0xf] }
 0x864   : > { %v1988_v42 = vpop.f32.mrf.mxu3 }
 0x865   : > { %v1992_v12 = vsel %vm1237_vm2, %v1988_v42, -inf }
 0x866   : > { %v1934_v55 = vpop.f32.mrf.mxu1 }
 0x868   : > { %1878 = vmax.xlane.f32.xlu0 %v1877_v9 }
 0x86c   : > { %v1990_v11 = vpop.f32.mrf.mxu3 }
 0x870   : > { %1993 = vmax.xlane.f32.xlu0 %v1992_v12 }
 0x884   : > { %1892 = vrot.lane.b32.xlu0 %v1891_v13, %s4076_s14 }
 0x8cc   : > { %v1825_v14 = vpop.xlane.xlu2 %1824 }
 0x8cd   : > { %3480 = vrcp.f32 %v1825_v14 }
 0x8d3   : > { %v3481_v15 = vpop.eup %3480  ;;  %v1938_v2 = vpop.xlane.xlu0 %1937 }
 0x8d4   : > { %v1827_v16 = vmul.f32 %v3481_v15, %v3479_v60  ;;  %v1939_v17 = vsub.f32 %v1932_v3, %v1938_v2  ;;  %v3223_v3 = vld [vmem:[#allocation15 + $0x20] sm:$0xff] }
 0x8d5   : > { %2112 = vmatpush.bf16.msra.mxu1 %v3223_v3  ;;  %v3228_v3 = vld [vmem:[#allocation21 + $0x4] sm:$0xf0] }
 0x8d6   : > { %v1828_v18 = vpack.c.bf16 %v1827_v16, %v1827_v16  ;;  %v1940_v19 = vmul.f32 1.442695, %v1939_v17  ;;  %v3091_v16 = vld [vmem:[#allocation21 + $0x70] sm:$0xf]  ;;  %v3242_v17 = vld [vmem:[#allocation21 + $0x74] sm:$0xf0] }
 0x8d8   : > { %3482 = vpow2.f32 %v1940_v19  ;;  %2994 = vmatmul.msk.bf16.vlgmr.msra.gmra.mxu2 %vm1237_vm2, %v1828_v18  ;;  %v3241_v18 = vld [vmem:[#allocation21 + $0x74] sm:$0xf]  ;;  %v3092_v19 = vor.u32 %v3242_v17, %v3091_v16 }
 0x8d9   : > { %2113 = vmatpush.bf16.msra.mxu1 %v3222_v4 }
 0x8db   : > { %v1879_v20 = vpop.xlane.xlu0 %1878 }
 0x8dc   : > { %v1880_v21 = vsub.f32 %v1873_v59, %v1879_v20  ;;  %v3093_v20 = vld [vmem:[#allocation21 + $0x78] sm:$0xf0] }
 0x8dd   : > { %2114 = vmatpush.bf16.msra.mxu1 %v3221_v5  ;;  %v3227_v5 = vld [vmem:[#allocation21 + $0x4] sm:$0xf] }
 0x8de   : > { %v3483_v22 = vpop.eup %3482  ;;  %v1881_v23 = vmul.f32 1.442695, %v1880_v21  ;;  %v3096_v21 = vor.u32 %v3241_v18, %v3093_v20  ;;  %v3246_v18 = vld [vmem:[#allocation22 + $0x18] sm:$0xff] }
 0x8df   : > { %v1942_v24 = vsel %vm1237_vm2, %v3483_v22, 0.0 }
 0x8e0   : > { %3484 = vpow2.f32 %v1881_v23  ;;  %1943 = vadd.xlane.f32.xlu1 %v1942_v24  ;;  %2269 = vmatpush.bf16.msrb.mxu3 %v3096_v21 }
 0x8e1   : > { %2115 = vmatpush.bf16.msra.mxu1 %v3220_v6  ;;  %v3037_v6 = vld [vmem:[#allocation21 + $0x8] sm:$0xf0] }
 0x8e3   : > { %v1994_v25 = vpop.xlane.xlu0 %1993 }
 0x8e4   : > { %v1995_v26 = vsub.f32 %v1988_v42, %v1994_v25 }
 0x8e5   : > { %2116 = vmatpush.bf16.msra.mxu1 %v3219_v7  ;;  %v3036_v7 = vor.u32 %v3228_v3, %v3035_v0 }
 0x8e6   : > { %v3485_v27 = vpop.eup %3484  ;;  %v1996_v28 = vmul.f32 1.442695, %v1995_v26  ;;  %v3240_v26 = vld [vmem:[#allocation21 + $0x64] sm:$0xf0] }
 0x8e7   : > { %v1883_v30 = vsel %vm1237_vm2, %v3485_v27, 0.0 }
 0x8e8   : > { %3486 = vpow2.f32 %v1996_v28  ;;  %1884 = vadd.xlane.f32.xlu0 %v1883_v30  ;;  %v3085_v30 = vld [vmem:[#allocation21 + $0x68] sm:$0xf0] }
 0x8ee   : > { %v3487_v31 = vpop.eup %3486 }
 0x8ef   : > { %v1998_v32 = vsel %vm1237_vm2, %v3487_v31, 0.0 }
 0x8f0   : > { %1999 = vadd.xlane.f32.xlu1 %v1998_v32  ;;  %v3075_v32 = vld [vmem:[#allocation21 + $0x50] sm:$0xf] }
 0x8f6   : > { %v1893_v33 = vpop.permute.xlu0 %1892 }
 0x8f7   : > { %v1898_v34 = vsel %vm1253_vm1, %v1893_v33, 0  ;;  %v3238_v33 = vld [vmem:[#allocation21 + $0x54] sm:$0xf0] }
 0x8f8   : > { %1907 = vmatpush.bf16.msra.mxu0 %v1898_v34  ;;  %v3237_v34 = vld [vmem:[#allocation21 + $0x54] sm:$0xf] }
 0x8fc   : > { %1948 = vrot.lane.b32.xlu0 %v1891_v13, %s4075_s9 }
 0x909   : > { %2004 = vrot.lane.b32.xlu1 %v1891_v13, %s4077_s6 }
 0x953   : > { %v1944_v37 = vpop.xlane.xlu1 %1943 }
 0x95b   : > { %v1844_v35 = vpop.f32.mrf.mxu2  ;;  %v1885_v36 = vpop.xlane.xlu0 %1884 }
 0x95c   : > { %3488 = vrcp.f32 %v1885_v36  ;;  %v3077_v36 = vld [vmem:[#allocation21 + $0x58] sm:$0xf0] }
 0x95d   : > { %3490 = vrcp.f32 %v1944_v37  ;;  %v3080_v37 = vor.u32 %v3237_v34, %v3077_v36  ;;  %v3244_v34 = vld [vmem:[#allocation22 + $0x8] sm:$0xff]  ;;  %v3243_v36 = vld [vmem:[#allocation22] sm:$0xff] }
 0x962   : > { %v3489_v38 = vpop.eup %3488 }
 0x963   : > { %v1887_v39 = vmul.f32 %v3489_v38, %v3485_v27  ;;  %v1846_v40 = vpop.f32.mrf.mxu2  ;;  %v3491_v43 = vpop.eup %3490  ;;  %v3239_v27 = vld [vmem:[#allocation21 + $0x64] sm:$0xf]  ;;  %v3067_v38 = vld [vmem:[#allocation21 + $0x40] sm:$0xf] }
 0x964   : > { %v1946_v44 = vmul.f32 %v3491_v43, %v3483_v22  ;;  %v2000_v45 = vpop.xlane.xlu1 %1999  ;;  %v3235_v40 = vld [vmem:[#allocation21 + $0x44] sm:$0xf]  ;;  %v3069_v43 = vld [vmem:[#allocation21 + $0x48] sm:$0xf0] }
 0x965   : > { %v1888_v41 = vpack.c.bf16 %v1887_v39, %v1887_v39  ;;  %3492 = vrcp.f32 %v2000_v45  ;;  %v3236_v39 = vld [vmem:[#allocation21 + $0x44] sm:$0xf0]  ;;  %v3059_v45 = vld [vmem:[#allocation21 + $0x30] sm:$0xf] }
 0x966   : > { %v1947_v48 = vpack.c.bf16 %v1946_v44, %v1946_v44  ;;  %v3072_v44 = vor.u32 %v3235_v40, %v3069_v43 }
 0x967   : > { %2996 = vmatmul.msk.bf16.vlgmr.msra.gmra.mxu0 %vm1237_vm2, %v1888_v41  ;;  %v3068_v41 = vor.u32 %v3236_v39, %v3067_v38  ;;  %v2170_v38 = vld [vmem:[%s4577_s7] sm:$0x3] }
 0x968   : > { %v2172_v39 = vperm.slane %v2170_v38, 0 }
 0x96b   : > { %v3493_v49 = vpop.eup %3492 }
 0x96c   : > { %v2002_v50 = vmul.f32 %v3493_v49, %v3487_v31  ;;  %v3088_v31 = vor.u32 %v3239_v27, %v3085_v30  ;;  %v3061_v49 = vld [vmem:[#allocation21 + $0x38] sm:$0xf0] }
 0x96d   : > { %v3454_v30 = vld [vmem:[#allocation19] ss:$0 sm:$0xff] }
 0x96e   : > { %v1949_v46 = vpop.permute.xlu0 %1948  ;;  %v2003_v53 = vpack.c.bf16 %v2002_v50, %v2002_v50  ;;  %2270 = vmatpush.bf16.msrb.mxu3 %v3088_v31 }
 0x96f   : > { %v1954_v47 = vsel %vm1253_vm1, %v1949_v46, 0  ;;  %v3234_v46 = vld [vmem:[#allocation21 + $0x34] sm:$0xf0] }
 0x970   : > { %1963 = vmatpush.bf16.msrb.mxu2 %v1954_v47  ;;  %v3233_v47 = vld [vmem:[#allocation21 + $0x34] sm:$0xf] }
 0x971   : > { %v3064_v50 = vor.u32 %v3233_v47, %v3061_v49 }
 0x972   : > { %2271 = vmatpush.bf16.msrb.mxu3 %v3080_v37  ;;  %v3251_v37 = vld [vmem:[#allocation22 + $0x40] sm:$0xff] }
 0x973   : > { %2998 = vmatmul.msk.bf16.vlgmr.msrb.gmra.mxu2 %vm1237_vm2, %v1947_v48  ;;  %v3060_v48 = vor.u32 %v3234_v46, %v3059_v45 }
 0x974   : > { %2256 = vmatpush.bf16.msra.mxu2 %v3092_v19  ;;  %v3254_v19 = vld [vmem:[#allocation22 + $0x58] sm:$0xff] }
 0x976   : > { %2272 = vmatpush.bf16.msrb.mxu3 %v3072_v44 }
 0x97a   : > { %2273 = vmatpush.bf16.msrb.mxu3 %v3064_v50 }
 0x97b   : > { %v2005_v51 = vpop.permute.xlu1 %2004 }
 0x97c   : > { %v2010_v52 = vsel %vm1253_vm1, %v2005_v51, 0  ;;  %v3051_v51 = vld [vmem:[#allocation21 + $0x20] sm:$0xf] }
 0x97d   : > { %2019 = vmatpush.bf16.msrb.mxu0 %v2010_v52  ;;  %v3232_v52 = vld [vmem:[#allocation21 + $0x24] sm:$0xf0] }
 0x980   : > { %3000 = vmatmul.msk.bf16.vlgmr.msrb.gmra.mxu0 %vm1237_vm2, %v2003_v53  ;;  %v3231_v53 = vld [vmem:[#allocation21 + $0x24] sm:$0xf] }
 0x9e4   : > { %v1909_v54 = vpop.f32.mrf.mxu0 }
 0x9e5   : > { %2026 = vrot.lane.b32.xlu0 %v1909_v54, %s4077_s6  ;;  %v3052_v54 = vor.u32 %v3232_v52, %v3051_v51  ;;  %v3455_v51 = vld [vmem:[#allocation24] ss:$0 sm:$0xff] }
 0x9ec   : > { %v1911_v56 = vpop.f32.mrf.mxu0 }
 0x9ed   : > { %v3053_v56 = vld [vmem:[#allocation21 + $0x28] sm:$0xf0] }
 0x9f6   : > { %v1965_v57 = vpop.f32.mrf.mxu2 }
 0x9f7   : > { %2030 = vrot.lane.b32.xlu2 %v1965_v57, %s4075_s9  ;;  %v3056_v57 = vor.u32 %v3231_v53, %v3053_v56  ;;  %s1000_s9 = scalar_lea.vmem %s4578_s11, %s4370_s26 }
 0x9f9   : > { %2274 = vmatpush.bf16.msrb.mxu3 %v3056_v57 }
 0x9fd   : > { %v2021_v58 = vpop.f32.mrf.mxu0 }
 0x9fe   : > { %2034 = vrot.lane.b32.xlu0 %v2021_v58, %s4076_s14  ;;  %v1967_v59 = vpop.f32.mrf.mxu2  ;;  %v3043_v58 = vld [vmem:[#allocation21 + $0x10] sm:$0xf] }
 0x9ff   : > { %v3230_v59 = vld [vmem:[#allocation21 + $0x14] sm:$0xf0] }
 0xa00   : > { %v3044_v61 = vor.u32 %v3230_v59, %v3043_v58 }
 0xa05   : > { %v2023_v60 = vpop.f32.mrf.mxu0 }
 0xa06   : > { %v3229_v60 = vld [vmem:[#allocation21 + $0x14] sm:$0xf] }
 0xa07   : > { %v3048_v4 = vor.u32 %v3229_v60, %v3045_v62 }
 0xa09   : > { %2275 = vmatpush.bf16.msrb.mxu3 %v3048_v4 }
 0xa51   : > { %v2031_v55 = vpop.permute.xlu2 %2030 }
 0xa57   : > { %v2027_v42 = vpop.permute.xlu0 %2026 }
 0xa58   : > { %v2037_v8 = vsel %vm1217_vm0, %v1844_v35, %v2027_v42  ;;  %v3076_v35 = vor.u32 %v3238_v33, %v3075_v32  ;;  %v3040_v42 = vor.u32 %v3227_v5, %v3037_v6 }
 0xa59   : > { %v2038_v9 = vsel %vm1460_vm3, %v2037_v8, %v2031_v55  ;;  %v3250_v8 = vld [vmem:[#allocation22 + $0x38] sm:$0xff] }
 0xa5a   : > { %2276 = vmatpush.bf16.msrb.mxu3 %v3040_v42  ;;  %v3258_v55 = vld [vmem:[#allocation22 + $0x78] sm:$0xff]  ;;  %2418 = vmatpush.bf16.msra.mxu0 %v3250_v8 }
 0xa5b   : > { %2431 = vmatpush.bf16.msrb.mxu1 %v3258_v55 }
 0xa70   : > { %v2035_v10 = vpop.permute.xlu0 %2034 }
 0xa71   : > { %v2039_v11 = vsel %vm1462_vm4, %v2038_v9, %v2035_v10 }
 0xa72   : > { %v2040_v12 = vpack.c.bf16 %v2039_v11, %v2039_v11  ;;  %v3249_v11 = vld [vmem:[#allocation22 + $0x30] sm:$0xff] }
 0xa73   : > { %2419 = vmatpush.bf16.msra.mxu0 %v3249_v11 }
 0xa74   : > { %2117 = vmatmul.bf16.vlgmr.msra.gmra.mxu1 %v2040_v12  ;;  %v3257_v12 = vld [vmem:[#allocation22 + $0x70] sm:$0xff] }
 0xa75   : > { %2432 = vmatpush.bf16.msrb.mxu1 %v3257_v12  ;;  %v3457_v12 = vld [vmem:[#allocation27] ss:$0 sm:$0xff] }
 0xaf1   : > { %v2118_v13 = vpop.f32.mrf.mxu1 }
 0xaf2   : > { %v2119_v14 = vadd.f32 %v3452_v1, %v2118_v13  ;;  %v3248_v13 = vld [vmem:[#allocation22 + $0x28] sm:$0xff] }
 0xaf3   : > { %2420 = vmatpush.bf16.msra.mxu0 %v3248_v13 }
 0xaf4   : > { %v2122_v15 = vadd.f32 %v2119_v14, %v4442_v63  ;;  %v3083_v63 = vld [vmem:[#allocation21 + $0x60] sm:$0xf]  ;;  %v3256_v14 = vld [vmem:[#allocation22 + $0x68] sm:$0xff] }
 0xaf5   : > { %v3084_v28 = vor.u32 %v3240_v26, %v3083_v63  ;;  %2433 = vmatpush.bf16.msrb.mxu1 %v3256_v14  ;;  %v3453_v26 = vld [vmem:[#allocation18] ss:$0 sm:$0xff] }
 0xaf6   : > { %2125 = vadd.xlane.f32.xlu0 %v2122_v15 }
 0xaf7   : > { %2257 = vmatpush.bf16.msra.mxu2 %v3084_v28 }
 0xaf9   : > { %v2120_v2 = vpop.f32.mrf.mxu1 }
 0xafa   : > { %v3255_v2 = vld [vmem:[#allocation22 + $0x60] sm:$0xff] }
 0xafb   : > { %2258 = vmatpush.bf16.msra.mxu2 %v3076_v35  ;;  %2434 = vmatpush.bf16.msrb.mxu1 %v3255_v2  ;;  %v3252_v35 = vld [vmem:[#allocation22 + $0x48] sm:$0xff] }
 0xaff   : > { %2259 = vmatpush.bf16.msra.mxu2 %v3068_v41  ;;  %2435 = vmatpush.bf16.msrb.mxu1 %v3254_v19 }
 0xb03   : > { %2260 = vmatpush.bf16.msra.mxu2 %v3060_v48 }
 0xb07   : > { %2261 = vmatpush.bf16.msra.mxu2 %v3052_v54 }
 0xb0b   : > { %2262 = vmatpush.bf16.msra.mxu2 %v3044_v61 }
 0xb0f   : > { %2263 = vmatpush.bf16.msra.mxu2 %v3036_v7 }
 0xb69   : > { %v2126_v22 = vpop.xlane.xlu0 %2125 }
 0xb6a   : > { %v2127_v23 = vmul.f32 %v2126_v22, %v4431_v29  ;;  %v3245_v22 = vld [vmem:[#allocation22 + $0x10] sm:$0xff] }
 0xb6c   : > { %v4495_v24 = vsub.f32 %v2122_v15, %v2127_v23  ;;  %v3247_v15 = vld [vmem:[#allocation22 + $0x20] sm:$0xff]  ;;  %v3253_v23 = vld [vmem:[#allocation22 + $0x50] sm:$0xff] }
 0xb6d   : > { %2421 = vmatpush.bf16.msra.mxu0 %v3247_v15  ;;  %2436 = vmatpush.bf16.msrb.mxu1 %v3253_v23 }
 0xb6e   : > { %v2129_v25 = vmul.f32 %v4495_v24, %v4495_v24 }
 0xb70   : > { %2130 = vadd.xlane.f32.xlu1 %v2129_v25 }
 0xb71   : > { %2422 = vmatpush.bf16.msra.mxu0 %v3246_v18  ;;  %2437 = vmatpush.bf16.msrb.mxu1 %v3252_v35 }
 0xb75   : > { %2423 = vmatpush.bf16.msra.mxu0 %v3245_v22  ;;  %2438 = vmatpush.bf16.msrb.mxu1 %v3251_v37 }
 0xb79   : > { %2424 = vmatpush.bf16.msra.mxu0 %v3244_v34 }
 0xb7d   : > { %2425 = vmatpush.bf16.msra.mxu0 %v3243_v36 }
 0xbe3   : > { %v2131_v9 = vpop.xlane.xlu1 %2130 }
 0xbe4   : > { %v2132_v10 = vmul.f32 %v2131_v9, %v4431_v29 }
 0xbe6   : > { %v2133_v1 = vadd.f32 1e-05, %v2132_v10  ;;  %v3456_v10 = vld [vmem:[#allocation25] ss:$0 sm:$0xff] }
 0xbe8   : > { %3494 = vrsqrt.f32 %v2133_v1  ;;  %vm2140_vm10 = vweird.f32 %v2133_v1 }
 0xbee   : > { %v3495_v16 = vpop.eup %3494 }
 0xbef   : > { %v2135_v17 = vmul.f32 %v3495_v16, %v2133_v1  ;;  %vm2141_vm9 = vweird.f32 %v3495_v16 }
 0xbf0   : > { %vm2142_vm11 = vmor %vm2140_vm10, %vm2141_vm9 }
 0xbf1   : > { %v2136_v20 = vmul.f32 %v3495_v16, %v2135_v17 }
 0xbf3   : > { %v2137_v21 = vmul.f32 0.5, %v2136_v20 }
 0xbf5   : > { %v2138_v25 = vsub.f32 1.5, %v2137_v21 }
 0xbf7   : > { %v2139_v63 = vmul.f32 %v3495_v16, %v2138_v25 }
 0xbf9   : > { %v2143_v27 = vsel %vm2142_vm11, %v3495_v16, %v2139_v63 }
 0xbfa   : > { %v2144_v28 = vmul.f32 %v2143_v27, %v4495_v24  ;;  %v2173_v24 = vperm.slane %v2170_v38, 1 }
 0xbfc   : > { %v2148_v31 = vmul.f32 %v3453_v26, %v2144_v28 }
 0xbfe   : > { %v2152_v32 = vadd.f32 %v3454_v30, %v2148_v31 }
 0xc00   : > { %v2153_v33 = vpack.c.bf16 %v2152_v32, %v2152_v32 }
 0xc02   : > { %2264 = vmatmul.bf16.vlgmr.msra.gmra.mxu2 %v2153_v33  ;;  %2277 = vmatmul.bf16.vlgmr.msrb.gmra.mxu3 %v2153_v33 }
 0xc85   : > { %v2265_v40 = vpop.f32.mrf.mxu2  ;;  %v2278_v41 = vpop.f32.mrf.mxu3 }
 0xc86   : > { %v2266_v43 = vadd.f32 %v2265_v40, %v2172_v39  ;;  %v2279_v44 = vadd.f32 %v2278_v41, %v2173_v24 }
 0xc88   : > { %v2282_v45 = vmax.f32 %v2266_v43, 0.0  ;;  %v2283_v46 = vmax.f32 %v2279_v44, 0.0 }
 0xc8a   : > { %v2284_v47 = vpack.c.bf16 %v2282_v45, %v2282_v45  ;;  %v2285_v48 = vpack.c.bf16 %v2283_v46, %v2283_v46 }
 0xc8c   : > { %2426 = vmatmul.bf16.vlgmr.msra.gmra.mxu0 %v2284_v47  ;;  %2439 = vmatmul.bf16.vlgmr.msrb.gmra.mxu1 %v2285_v48 }
 0xc8d   : > { %v2267_v49 = vpop.f32.mrf.mxu2  ;;  %v2280_v50 = vpop.f32.mrf.mxu3 }
 0xd09   : > { %v2427_v52 = vpop.f32.mrf.mxu0  ;;  %v2440_v53 = vpop.f32.mrf.mxu1 }
 0xd0a   : > { %v2428_v54 = vadd.f32 %v3455_v51, %v2427_v52 }
 0xd0c   : > { %v2441_v56 = vadd.f32 %v2440_v53, %v2428_v54 }
 0xd0e   : > { %v2444_v57 = vadd.f32 %v2441_v56, %v2152_v32 }
 0xd10   : > { %2447 = vadd.xlane.f32.xlu2 %v2444_v57 }
 0xd11   : > { %v2429_v58 = vpop.f32.mrf.mxu0  ;;  %v2442_v59 = vpop.f32.mrf.mxu1 }
 0xd83   : > { %v2448_v60 = vpop.xlane.xlu2 %2447 }
 0xd84   : > { %v2449_v61 = vmul.f32 %v2448_v60, %v4431_v29 }
 0xd86   : > { %v2450_v62 = vsub.f32 %v2444_v57, %v2449_v61 }
 0xd88   : > { %v2451_v0 = vmul.f32 %v2450_v62, %v2450_v62 }
 0xd8a   : > { %2452 = vadd.xlane.f32.xlu0 %v2451_v0 }
 0xdfd   : > { %v2453_v3 = vpop.xlane.xlu0 %2452 }
 0xdfe   : > { %v2454_v4 = vmul.f32 %v2453_v3, %v4431_v29 }
 0xe00   : > { %v2455_v5 = vadd.f32 1e-05, %v2454_v4 }
 0xe02   : > { %3496 = vrsqrt.f32 %v2455_v5  ;;  %vm2462_vm13 = vweird.f32 %v2455_v5 }
 0xe08   : > { %v3497_v6 = vpop.eup %3496 }
 0xe09   : > { %v2457_v7 = vmul.f32 %v3497_v6, %v2455_v5  ;;  %vm2463_vm12 = vweird.f32 %v3497_v6 }
 0xe0a   : > { %vm2464_vm14 = vmor %vm2462_vm13, %vm2463_vm12 }
 0xe0b   : > { %v2458_v42 = vmul.f32 %v3497_v6, %v2457_v7 }
 0xe0d   : > { %v2459_v8 = vmul.f32 0.5, %v2458_v42 }
 0xe0f   : > { %v2460_v55 = vsub.f32 1.5, %v2459_v8 }
 0xe11   : > { %v2461_v9 = vmul.f32 %v3497_v6, %v2460_v55 }
 0xe13   : > { %v2465_v11 = vsel %vm2464_vm14, %v3497_v6, %v2461_v9 }
 0xe14   : > { %v2466_v1 = vmul.f32 %v2465_v11, %v2450_v62 }
 0xe16   : > { %v2470_v13 = vmul.f32 %v3456_v10, %v2466_v1 }
 0xe18   : > { %v2474_v14 = vadd.f32 %v3457_v12, %v2470_v13 }
 0xe1a   : > { %v2475_v29 = vpack.c.bf16 %v2474_v14, %v2474_v14 }
 0xe1c   : > { %2476 = vst [vmem:[%s1000_s9] sm:$0xf] %v2475_v29 }
 0xe1d PF: > { %s4579_s14 = sld [smem:[#allocation37_spill]] }
 0xe23   : > { %s42_s4 = sadd.s32 1, %s4579_s14  }
 0xe24   : > { %p39_p7 = scmp.ge.s32.totalorder %s42_s4, 4  }
 0xe26   :  { %41 = sbr.rel (!%p39_p7) target bundleno = 24 (0x18), region = 217 }
 0xe2b   :  { %2496 = vsyncpa [#allocation3], 1 }
 0xe2c   :  { %2498 = vsyncpa [#allocation3 + $0x1], 1 }
 0xe2d   :  { %2499 = vsyncpa [#allocation5], 1 }
 0xe2e   :  { %2500 = vsyncpa [#allocation8], 1 }
 0xe2f   :  { %2501 = vsyncpa [#allocation11], 1 }
 0xe30   :  { %2502 = vsyncpa [#allocation14], 1 }
 0xe31   :  { %2503 = vsyncpa [#allocation17], 1 }
 0xe32   :  { %2504 = vsyncpa [#allocation20], 1 }
 0xe33   :  { %2505 = vsyncpa [#allocation23], 1 }
 0xe34   :  { %2506 = vsyncpa [#allocation26], 1 }

// kernel: transformer_seq2seq_forward.9
= control target key start
LH: loop header
LB: loop body
LE: loop exit
PB: predicated region body
PF: predicated region fallthrough
CT: control target
= control target key end

     0   :  { %s828_s0 = inlined_call_operand.vmem [shape: bf16[16,128], index: 0, kind: input, shape index: {}]   ;;  %s829_s1 = inlined_call_operand.vmem [shape: f32[1,128], index: 1, kind: input, shape index: {}]   ;;  %s830_s2 = inlined_call_operand.vmem [shape: f32[1,128], index: 2, kind: input, shape index: {}]   ;;  %s831_s3 = inlined_call_operand.vmem [shape: bf16[128,512], index: 3, kind: input, shape index: {}]   ;;  %s832_s4 = inlined_call_operand.vmem [shape: f32[1,512], index: 4, kind: input, shape index: {}]   ;;  %s833_s5 = inlined_call_operand.hbm [shape: f32[16,512], index: 5, kind: output, shape index: {}]  }
   0x1   :  { %v530_v0 = vld [vmem:[%s828_s0] sm:$0xff]  }
   0x2   :  { %v531_v1 = vunpack.c.l.bf16 %v530_v0 }
   0x3   :  { %10 = vsyncpa [#allocation3], 0  ;;  %v532_v2 = vunpack.c.h.bf16 %v530_v0  ;;  %v571_v3 = vmov 128.0   ;;  %v483_v18 = vld [vmem:[%s831_s3 + $0xe0] sm:$0xf]  ;;  %s357_s23 = sshll.u32 %s833_s5, 4  ;;  %s358_s23 = int_to_ptr.hbm [resolvable:$true] %s357_s23 }
   0x4   :  { %27 = vadd.xlane.f32.xlu0 %v531_v1  ;;  %539 = vrcp.f32 %v571_v3  ;;  %v527_v19 = vld [vmem:[%s831_s3 + $0xec] sm:$0xf0]  ;;  %v525_v20 = vld [vmem:[%s831_s3 + $0xe4] sm:$0xf]  ;;  %v485_v22 = vld [vmem:[%s831_s3 + $0xf0] sm:$0xf0] }
   0x5   :  { %v484_v21 = vor.u32 %v527_v19, %v483_v18  ;;  %v491_v23 = vld [vmem:[%s831_s3 + $0xe8] sm:$0xf]  ;;  %v528_v24 = vld [vmem:[%s831_s3 + $0xf4] sm:$0xf0]  ;;  %v488_v25 = vor.u32 %v525_v20, %v485_v22  ;;  %v526_v27 = vld [vmem:[%s831_s3 + $0xec] sm:$0xf] }
   0x6   :  { %v492_v26 = vor.u32 %v528_v24, %v491_v23  ;;  %v493_v28 = vld [vmem:[%s831_s3 + $0xf8] sm:$0xf0]  ;;  %v467_v30 = vld [vmem:[%s831_s3 + $0xc0] sm:$0xf]  ;;  %v523_v31 = vld [vmem:[%s831_s3 + $0xcc] sm:$0xf0] }
   0x7   :  { %287 = vmatpush.bf16.msra.mxu0 %v484_v21  ;;  %v496_v29 = vor.u32 %v526_v27, %v493_v28  ;;  %301 = vmatpush.bf16.msra.mxu1 %v488_v25  ;;  %v521_v32 = vld [vmem:[%s831_s3 + $0xc4] sm:$0xf]  ;;  %v468_v33 = vor.u32 %v523_v31, %v467_v30  ;;  %v469_v34 = vld [vmem:[%s831_s3 + $0xd0] sm:$0xf0]  ;;  %v475_v35 = vld [vmem:[%s831_s3 + $0xc8] sm:$0xf] }
   0x8   :  { %315 = vmatpush.bf16.msra.mxu2 %v492_v26  ;;  %v524_v36 = vld [vmem:[%s831_s3 + $0xd4] sm:$0xf0]  ;;  %v472_v37 = vor.u32 %v521_v32, %v469_v34  ;;  %v522_v39 = vld [vmem:[%s831_s3 + $0xcc] sm:$0xf]  ;;  %v477_v40 = vld [vmem:[%s831_s3 + $0xd8] sm:$0xf0] }
   0x9   :  { %329 = vmatpush.bf16.msra.mxu3 %v496_v29  ;;  %v476_v38 = vor.u32 %v524_v36, %v475_v35  ;;  %v480_v41 = vor.u32 %v522_v39, %v477_v40  ;;  %v451_v42 = vld [vmem:[%s831_s3 + $0xa0] sm:$0xf]  ;;  %v519_v43 = vld [vmem:[%s831_s3 + $0xac] sm:$0xf0]  ;;  %v517_v44 = vld [vmem:[%s831_s3 + $0xa4] sm:$0xf] }
   0xa   :  { %v540_v4 = vpop.eup %539  ;;  %v452_v45 = vor.u32 %v519_v43, %v451_v42  ;;  %v453_v46 = vld [vmem:[%s831_s3 + $0xb0] sm:$0xf0]  ;;  %v459_v47 = vld [vmem:[%s831_s3 + $0xa8] sm:$0xf]  ;;  %v520_v48 = vld [vmem:[%s831_s3 + $0xb4] sm:$0xf0] }
   0xb   :  { %v32_v5 = vmul.f32 128.0, %v540_v4  ;;  %vm36_vm0 = vweird.f32 %v540_v4  ;;  %288 = vmatpush.bf16.msra.mxu0 %v468_v33  ;;  %302 = vmatpush.bf16.msra.mxu1 %v472_v37  ;;  %v456_v49 = vor.u32 %v517_v44, %v453_v46  ;;  %v460_v50 = vor.u32 %v520_v48, %v459_v47  ;;  %v518_v51 = vld [vmem:[%s831_s3 + $0xac] sm:$0xf]  ;;  %v461_v52 = vld [vmem:[%s831_s3 + $0xb8] sm:$0xf0]  ;;  %s573_s24 = smov 512  }
   0xc   :  { %29 = vadd.xlane.f32.xlu0 %v532_v2  ;;  %316 = vmatpush.bf16.msra.mxu2 %v476_v38  ;;  %v464_v53 = vor.u32 %v518_v51, %v461_v52  ;;  %v435_v54 = vld [vmem:[%s831_s3 + $0x80] sm:$0xf]  ;;  %v515_v55 = vld [vmem:[%s831_s3 + $0x8c] sm:$0xf0]  ;;  %v513_v56 = vld [vmem:[%s831_s3 + $0x84] sm:$0xf] }
   0xd   :  { %v33_v6 = vsub.f32 1.0, %v32_v5  ;;  %330 = vmatpush.bf16.msra.mxu3 %v480_v41  ;;  %v436_v57 = vor.u32 %v515_v55, %v435_v54  ;;  %v437_v58 = vld [vmem:[%s831_s3 + $0x90] sm:$0xf0]  ;;  %v443_v59 = vld [vmem:[%s831_s3 + $0x88] sm:$0xf]  ;;  %s574_s25 = smov 32  }
   0xe   :  { %v516_v60 = vld [vmem:[%s831_s3 + $0x94] sm:$0xf0]  ;;  %v440_v61 = vor.u32 %v513_v56, %v437_v58  ;;  %v514_v63 = vld [vmem:[%s831_s3 + $0x8c] sm:$0xf]  ;;  %v445_v0 = vld [vmem:[%s831_s3 + $0x98] sm:$0xf0] }
   0xf   :  { %v34_v7 = vmul.f32 %v540_v4, %v33_v6  ;;  %289 = vmatpush.bf16.msra.mxu0 %v452_v45  ;;  %303 = vmatpush.bf16.msra.mxu1 %v456_v49  ;;  %v444_v62 = vor.u32 %v516_v60, %v443_v59  ;;  %v511_v3 = vld [vmem:[%s831_s3 + $0x6c] sm:$0xf0]  ;;  %v421_v6 = vld [vmem:[%s831_s3 + $0x70] sm:$0xf0]  ;;  %v505_v19 = vld [vmem:[%s831_s3 + $0x44] sm:$0xf] }
  0x10   :  { %317 = vmatpush.bf16.msra.mxu2 %v460_v50  ;;  %v507_v18 = vld [vmem:[%s831_s3 + $0x4c] sm:$0xf0]  ;;  %v405_v21 = vld [vmem:[%s831_s3 + $0x50] sm:$0xf0]  ;;  %v411_v22 = vld [vmem:[%s831_s3 + $0x48] sm:$0xf] }
  0x11   :  { %v35_v8 = vadd.f32 %v540_v4, %v34_v7  ;;  %331 = vmatpush.bf16.msra.mxu3 %v464_v53  ;;  %v427_v7 = vld [vmem:[%s831_s3 + $0x68] sm:$0xf]  ;;  %v508_v23 = vld [vmem:[%s831_s3 + $0x54] sm:$0xf0]  ;;  %v408_v24 = vor.u32 %v505_v19, %v405_v21  ;;  %v506_v26 = vld [vmem:[%s831_s3 + $0x4c] sm:$0xf] }
  0x12   :  { %v412_v25 = vor.u32 %v508_v23, %v411_v22  ;;  %v413_v27 = vld [vmem:[%s831_s3 + $0x58] sm:$0xf0]  ;;  %v387_v29 = vld [vmem:[%s831_s3 + $0x20] sm:$0xf]  ;;  %v503_v30 = vld [vmem:[%s831_s3 + $0x2c] sm:$0xf0] }
  0x13   :  { %v608_v9 = vsel %vm36_vm0, %v540_v4, %v35_v8  ;;  %290 = vmatpush.bf16.msra.mxu0 %v436_v57  ;;  %304 = vmatpush.bf16.msra.mxu1 %v440_v61  ;;  %v509_v4 = vld [vmem:[%s831_s3 + $0x64] sm:$0xf]  ;;  %v512_v8 = vld [vmem:[%s831_s3 + $0x74] sm:$0xf0]  ;;  %v416_v28 = vor.u32 %v506_v26, %v413_v27  ;;  %v388_v32 = vor.u32 %v503_v30, %v387_v29  ;;  %v389_v33 = vld [vmem:[%s831_s3 + $0x30] sm:$0xf0] }
  0x14   :  { %318 = vmatpush.bf16.msra.mxu2 %v444_v62  ;;  %v501_v31 = vld [vmem:[%s831_s3 + $0x24] sm:$0xf]  ;;  %v395_v34 = vld [vmem:[%s831_s3 + $0x28] sm:$0xf]  ;;  %v504_v35 = vld [vmem:[%s831_s3 + $0x34] sm:$0xf0] }
  0x15   :  { %v392_v36 = vor.u32 %v501_v31, %v389_v33  ;;  %v396_v37 = vor.u32 %v504_v35, %v395_v34  ;;  %v502_v38 = vld [vmem:[%s831_s3 + $0x2c] sm:$0xf]  ;;  %v397_v39 = vld [vmem:[%s831_s3 + $0x38] sm:$0xf0]  ;;  %v371_v40 = vld [vmem:[%s831_s3] sm:$0xf] }
  0x16   :  { %v400_v42 = vor.u32 %v502_v38, %v397_v39  ;;  %v499_v43 = vld [vmem:[%s831_s3 + $0xc] sm:$0xf0]  ;;  %v497_v44 = vld [vmem:[%s831_s3 + $0x4] sm:$0xf]  ;;  %v373_v45 = vld [vmem:[%s831_s3 + $0x10] sm:$0xf0] }
  0x17   :  { %v372_v47 = vor.u32 %v499_v43, %v371_v40  ;;  %v376_v48 = vor.u32 %v497_v44, %v373_v45  ;;  %v379_v49 = vld [vmem:[%s831_s3 + $0x8] sm:$0xf]  ;;  %v500_v50 = vld [vmem:[%s831_s3 + $0x14] sm:$0xf0]  ;;  %v498_v51 = vld [vmem:[%s831_s3 + $0xc] sm:$0xf] }
  0x18   :  { %v380_v52 = vor.u32 %v500_v50, %v379_v49  ;;  %v381_v53 = vld [vmem:[%s831_s3 + $0x18] sm:$0xf0] }
  0x19   :  { %v384_v55 = vor.u32 %v498_v51, %v381_v53 }
  0x77   :  { %v28_v10 = vpop.xlane.xlu0 %27 }
  0x78   :  { %v38_v11 = vmul.f32 %v608_v9, %v28_v10  ;;  %v424_v10 = vor.u32 %v509_v4, %v421_v6 }
  0x7a   :  { %v611_v12 = vsub.f32 %v531_v1, %v38_v11  ;;  %v448_v1 = vor.u32 %v514_v63, %v445_v0  ;;  %v428_v11 = vor.u32 %v512_v8, %v427_v7  ;;  %305 = vmatpush.bf16.msra.mxu1 %v424_v10  ;;  %v537_v7 = vld [vmem:[%s829_s1] ss:$0 sm:$0xff] }
  0x7c   :  { %v42_v13 = vmul.f32 %v611_v12, %v611_v12  ;;  %332 = vmatpush.bf16.msra.mxu3 %v448_v1  ;;  %319 = vmatpush.bf16.msra.mxu2 %v428_v11 }
  0x7e   :  { %44 = vadd.xlane.f32.xlu1 %v42_v13  ;;  %v510_v13 = vld [vmem:[%s831_s3 + $0x6c] sm:$0xf]  ;;  %306 = vmatpush.bf16.msra.mxu1 %v408_v24 }
  0x7f   :  { %v30_v14 = vpop.xlane.xlu0 %29 }
  0x80   :  { %v39_v15 = vmul.f32 %v608_v9, %v30_v14  ;;  %v429_v14 = vld [vmem:[%s831_s3 + $0x78] sm:$0xf0]  ;;  %320 = vmatpush.bf16.msra.mxu2 %v412_v25 }
  0x82   :  { %v616_v16 = vsub.f32 %v532_v2, %v39_v15  ;;  %v419_v2 = vld [vmem:[%s831_s3 + $0x60] sm:$0xf]  ;;  %v432_v15 = vor.u32 %v510_v13, %v429_v14  ;;  %307 = vmatpush.bf16.msra.mxu1 %v392_v36 }
  0x83   :  { %v420_v5 = vor.u32 %v511_v3, %v419_v2  ;;  %v538_v14 = vld [vmem:[%s830_s2] ss:$0 sm:$0xff]  ;;  %s572_s2 = smov [#allocation2]  }
  0x84   :  { %v43_v17 = vmul.f32 %v616_v16, %v616_v16  ;;  %333 = vmatpush.bf16.msra.mxu3 %v432_v15  ;;  %321 = vmatpush.bf16.msra.mxu2 %v396_v37 }
  0x85   :  { %291 = vmatpush.bf16.msra.mxu0 %v420_v5 }
  0x86   :  { %46 = vadd.xlane.f32.xlu1 %v43_v17  ;;  %v403_v17 = vld [vmem:[%s831_s3 + $0x40] sm:$0xf]  ;;  %308 = vmatpush.bf16.msra.mxu1 %v376_v48 }
  0x87   :  { %v404_v20 = vor.u32 %v507_v18, %v403_v17 }
  0x88   :  { %334 = vmatpush.bf16.msra.mxu3 %v416_v28  ;;  %322 = vmatpush.bf16.msra.mxu2 %v380_v52 }
  0x89   :  { %292 = vmatpush.bf16.msra.mxu0 %v404_v20 }
  0x8c   :  { %335 = vmatpush.bf16.msra.mxu3 %v400_v42 }
  0x8d   :  { %293 = vmatpush.bf16.msra.mxu0 %v388_v32 }
  0x90   :  { %336 = vmatpush.bf16.msra.mxu3 %v384_v55 }
  0x91   :  { %294 = vmatpush.bf16.msra.mxu0 %v372_v47 }
  0xf1   :  { %v45_v41 = vpop.xlane.xlu1 %44 }
  0xf2   :  { %v48_v46 = vmul.f32 %v45_v41, %v608_v9 }
  0xf4   :  { %v50_v54 = vadd.f32 1e-05, %v48_v46 }
  0xf6   :  { %541 = vrsqrt.f32 %v50_v54  ;;  %vm58_vm2 = vweird.f32 %v50_v54 }
  0xf9   :  { %v47_v56 = vpop.xlane.xlu1 %46 }
  0xfa   :  { %v49_v57 = vmul.f32 %v47_v56, %v608_v9 }
  0xfc   :  { %v542_v58 = vpop.eup %541  ;;  %v51_v59 = vadd.f32 1e-05, %v49_v57 }
  0xfd   :  { %v53_v60 = vmul.f32 %v542_v58, %v50_v54  ;;  %vm59_vm1 = vweird.f32 %v542_v58 }
  0xfe   :  { %543 = vrsqrt.f32 %v51_v59  ;;  %vm60_vm3 = vmor %vm58_vm2, %vm59_vm1  ;;  %vm68_vm5 = vweird.f32 %v51_v59 }
  0xff   :  { %v54_v61 = vmul.f32 %v542_v58, %v53_v60 }
 0x101   :  { %v55_v62 = vmul.f32 0.5, %v54_v61 }
 0x103   :  { %v56_v63 = vsub.f32 1.5, %v55_v62 }
 0x104   :  { %v544_v0 = vpop.eup %543 }
 0x105   :  { %v57_v1 = vmul.f32 %v542_v58, %v56_v63  ;;  %v63_v2 = vmul.f32 %v544_v0, %v51_v59  ;;  %vm69_vm4 = vweird.f32 %v544_v0 }
 0x106   :  { %vm70_vm6 = vmor %vm68_vm5, %vm69_vm4 }
 0x107   :  { %v64_v3 = vmul.f32 %v544_v0, %v63_v2  ;;  %v61_v4 = vsel %vm60_vm3, %v542_v58, %v57_v1 }
 0x108   :  { %v72_v9 = vmul.f32 %v61_v4, %v611_v12  ;;  %v117_v12 = vld [vmem:[%s832_s4] sm:$0xf]  ;;  %s355_s4 = sshll.u32 %s572_s2, 4  ;;  %s356_s4 = int_to_ptr.vmem [resolvable:$true] %s355_s4 }
 0x109   :  { %v65_v5 = vmul.f32 0.5, %v64_v3  ;;  %v119_v20 = vperm.slane %v117_v12, 0  ;;  %v120_v21 = vperm.slane %v117_v12, 1  ;;  %v121_v25 = vperm.slane %v117_v12, 2 }
 0x10a   :  { %v77_v13 = vmul.f32 %v537_v7, %v72_v9  ;;  %v122_v26 = vperm.slane %v117_v12, 3 }
 0x10b   :  { %v66_v6 = vsub.f32 1.5, %v65_v5 }
 0x10c   :  { %v82_v17 = vadd.f32 %v538_v14, %v77_v13 }
 0x10d   :  { %v67_v8 = vmul.f32 %v544_v0, %v66_v6 }
 0x10f   :  { %v71_v10 = vsel %vm70_vm6, %v544_v0, %v67_v8 }
 0x110   :  { %v73_v11 = vmul.f32 %v71_v10, %v616_v16 }
 0x112   :  { %v78_v15 = vmul.f32 %v537_v7, %v73_v11 }
 0x114   :  { %v83_v18 = vadd.f32 %v538_v14, %v78_v15 }
 0x116   :  { %v84_v19 = vpack.c.bf16 %v83_v18, %v82_v17 }
 0x118   :  { %295 = vmatmul.bf16.vlgmr.msra.gmra.mxu0 %v84_v19  ;;  %309 = vmatmul.bf16.vlgmr.msra.gmra.mxu1 %v84_v19 }
 0x119   :  { %323 = vmatmul.bf16.vlgmr.msra.gmra.mxu2 %v84_v19  ;;  %337 = vmatmul.bf16.vlgmr.msra.gmra.mxu3 %v84_v19 }
 0x195   :  { %v296_v16 = vpop.f32.mrf.mxu0  ;;  %v310_v22 = vpop.f32.mrf.mxu1 }
 0x196   :  { %v297_v23 = vadd.f32 %v296_v16, %v119_v20  ;;  %v311_v24 = vadd.f32 %v310_v22, %v120_v21 }
 0x198   :  { %343 = vst [vmem:[#allocation2] sm:$0xff] %v297_v23 }
 0x199   :  { %344 = vst [vmem:[#allocation2 + $0x8] sm:$0xff] %v311_v24 }
 0x19c   :  { %v324_v27 = vpop.f32.mrf.mxu2  ;;  %v338_v28 = vpop.f32.mrf.mxu3 }
 0x19d   :  { %v325_v29 = vadd.f32 %v324_v27, %v121_v25  ;;  %v339_v30 = vadd.f32 %v338_v28, %v122_v26  ;;  %v298_v31 = vpop.f32.mrf.mxu0  ;;  %v312_v32 = vpop.f32.mrf.mxu1 }
 0x19e   :  { %v299_v33 = vadd.f32 %v298_v31, %v119_v20  ;;  %v313_v34 = vadd.f32 %v312_v32, %v120_v21 }
 0x19f   :  { %345 = vst [vmem:[#allocation2 + $0x10] sm:$0xff] %v325_v29 }
 0x1a0   :  { %346 = vst [vmem:[#allocation2 + $0x18] sm:$0xff] %v339_v30 }
 0x1a1   :  { %347 = vst [vmem:[#allocation2 + $0x20] sm:$0xff] %v299_v33 }
 0x1a2   :  { %348 = vst [vmem:[#allocation2 + $0x28] sm:$0xff] %v313_v34 }
 0x1a4   :  { %v326_v35 = vpop.f32.mrf.mxu2  ;;  %v340_v36 = vpop.f32.mrf.mxu3 }
 0x1a5   :  { %v327_v37 = vadd.f32 %v326_v35, %v121_v25  ;;  %v341_v38 = vadd.f32 %v340_v36, %v122_v26 }
 0x1a7   :  { %349 = vst [vmem:[#allocation2 + $0x30] sm:$0xff] %v327_v37 }
 0x1a8   :  { %350 = vst [vmem:[#allocation2 + $0x38] sm:$0xff] %v341_v38 }
 0x1a9   :  { %363 = dma.vmem_to_hbm [thread:$0]  %s356_s4, 1024, %s358_s23, [#allocation3], %s573_s24, %s573_s24, %s574_s25  }
 0x1aa   :  { %569 = dma.done.wait [#allocation3], 1024  }
 0x1ab   :  { %570 = vsyncadd [#allocation3], 4294966272 }
 0x1ac   :  { %368 = vsyncpa [#allocation3], 1 }

</bundles_post_ra>
